<compile_context>
chip_gen: v7x
topology: tpu7x:2x2x1
jax: 0.10.0
libtpu: 0.0.40
codegen_flags: <defaults>
</compile_context>

<pallas_src>
import math
from functools import partial

import numpy as np
import jax
import jax.numpy as jnp
from jax.experimental import pallas as pl
from jax.experimental.pallas import tpu as pltpu


# -----------------------------------------------------------------------------
# Fused time-embedding MLP + class-cond add + SiLU + 4 projection heads (1 call)
# -----------------------------------------------------------------------------
def _temb_proj_kernel(*refs, add_cond):
    if add_cond:
        t0, w1, b1, w2, b2, cs, wp, bp, p_out = refs
    else:
        t0, w1, b1, w2, b2, wp, bp, p_out = refs
    h = jnp.dot(t0[...], w1[...], preferred_element_type=jnp.float32) + b1[...]
    h = h * jax.nn.sigmoid(h)                               # SiLU
    te = jnp.dot(h, w2[...], preferred_element_type=jnp.float32) + b2[...]
    if add_cond:
        te = te + cs[...]                                   # summed class embedding
    ta = te * jax.nn.sigmoid(te)                            # SiLU(temb) feeds projections
    p_out[...] = jnp.dot(ta, wp[...], preferred_element_type=jnp.float32) + bp[...]


def temb_and_projections(t_sin, params, csum):
    """Concatenated per-sample projection vector (B, 6*c0):
    [proj1 (c0) | proj2 (2c0) | proj_mid (2c0) | proj_up (c0)]."""
    B, _ = t_sin.shape
    wp_all = jnp.concatenate([params["proj1_w"], params["proj2_w"],
                              params["proj_mid_w"], params["proj_up_w"]], axis=1)
    bp_all = jnp.concatenate([params["proj1_b"], params["proj2_b"],
                              params["proj_mid_b"], params["proj_up_b"]])
    add_cond = csum is not None
    args = [t_sin, params["t_w1"], params["t_b1"].reshape(1, -1),
            params["t_w2"], params["t_b2"].reshape(1, -1)]
    if add_cond:
        args.append(csum)
    args += [wp_all, bp_all.reshape(1, -1)]
    return pl.pallas_call(
        partial(_temb_proj_kernel, add_cond=add_cond),
        out_shape=jax.ShapeDtypeStruct((B, wp_all.shape[1]), jnp.float32),
        in_specs=[pl.BlockSpec(memory_space=pltpu.MemorySpace.VMEM)] * len(args),
        out_specs=pl.BlockSpec(memory_space=pltpu.MemorySpace.VMEM),
    )(*args)


# -----------------------------------------------------------------------------
# Fully fused per-image U-Net forward.
#
# Geometry: every activation lives in a channels-first flat buffer (C, Hp*Wp)
# where valid pixel (r, c) sits at flat index (r+1)*Wp + (c+1) and everything
# else is zero (the conv halo).  A 3x3 "same" conv is then 9 shifted flat views
# stacked on the contraction axis and one MXU matmul.
# -----------------------------------------------------------------------------
def _fused_unet_kernel(xp_ref, p_ref, mf_ref, mh_ref,
                       wi_ref, bi_ref, w1_ref, b1_ref, w2_ref, b2_ref,
                       wm_ref, bm_ref, wu_ref, bu_ref, wo_ref, bo_ref,
                       pmat_ref, umat_ref,
                       o_ref,
                       h0_buf, cat_buf, pld_buf, d2_buf, u1_buf, rhs_buf,
                       *, c0, W, Wp, M, Mp, W2, W2p, M2, M2p):
    f32 = jnp.float32
    bf16 = jnp.bfloat16

    def conv(src, cin, w_ref, b_ref, temb, act, wrow, m_len):
        # Stack the 9 shifted im2col views along the contraction (sublane) axis of
        # rhs_buf, then run ONE deep (Cout, 9*Cin) @ (9*Cin, m_len) matmul.
        for t in range(9):
            dy, dx = divmod(t, 3)
            off = dy * wrow + dx
            rhs_buf[t * cin:(t + 1) * cin, :m_len] = src[:, off:off + m_len]
        y = jnp.dot(w_ref[...], rhs_buf[:9 * cin, :m_len],
                    preferred_element_type=f32)
        y = y + b_ref[...]                                  # (Cout, 1) f32 bias
        if temb is not None:
            y = y + temb                                    # (Cout, 1) per-sample temb
        if act:
            y = y * jax.nn.sigmoid(y)                       # SiLU
        return y                                            # (Cout, m_len) f32

    def store_padded(dst, y_masked, wrow, m_len):
        # Write into the next layer's zero-padded flat geometry (halo offset +wrow+1).
        dst[...] = jnp.zeros(dst.shape, dst.dtype)
        dst[:, wrow + 1:wrow + 1 + m_len] = y_masked

    mf = mf_ref[...]                                        # (1, M)  valid-col mask (full res)
    mh = mh_ref[...]                                        # (1, M2) valid-col mask (half res)
    pv = p_ref[0]                                           # (6c0, 1) projected temb, this image
    p1, p2 = pv[0:c0, :], pv[c0:3 * c0, :]
    pm, pu = pv[3 * c0:5 * c0, :], pv[5 * c0:6 * c0, :]

    # conv_in (no temb, no act)
    y = conv(xp_ref[0], xp_ref.shape[1], wi_ref, bi_ref, None, False, Wp, M)
    store_padded(h0_buf, (y * mf).astype(bf16), Wp, M)

    # conv1 (+temb, SiLU) -> d1 (skip) lives in the bottom rows of cat_buf
    y = conv(h0_buf[...], c0, w1_ref, b1_ref, p1, True, Wp, M)
    d1 = (y * mf).astype(bf16)
    cat_buf[2 * c0:, :] = jnp.zeros((c0, Mp), bf16)
    cat_buf[2 * c0:, Wp + 1:Wp + 1 + M] = d1
    # 2x2 average pool as a matmul straight into the padded half-res geometry
    pld_buf[...] = jnp.dot(d1, pmat_ref[...],
                           preferred_element_type=f32).astype(bf16)

    # conv2 (+temb, SiLU)
    y = conv(pld_buf[...], c0, w2_ref, b2_ref, p2, True, W2p, M2)
    store_padded(d2_buf, (y * mh).astype(bf16), W2p, M2)

    # conv_mid (+temb, SiLU)
    y = conv(d2_buf[...], 2 * c0, wm_ref, bm_ref, pm, True, W2p, M2)
    # nearest-2x upsample as a matmul straight into the padded full-res geometry
    cat_buf[:2 * c0, :] = jnp.dot(y.astype(bf16), umat_ref[...],
                                  preferred_element_type=f32).astype(bf16)

    # conv_up over [upsampled | d1] (+temb, SiLU)
    y = conv(cat_buf[...], 3 * c0, wu_ref, bu_ref, pu, True, Wp, M)
    store_padded(u1_buf, (y * mf).astype(bf16), Wp, M)

    # conv_out (no temb, no act), lane-dense (Cout, M) store
    y = conv(u1_buf[...], c0, wo_ref, bo_ref, None, False, Wp, M)
    o_ref[0] = y.astype(o_ref.dtype)


# -----------------------------------------------------------------------------
# Parameters (deterministic synthetic init; shapes follow the module structure)
# -----------------------------------------------------------------------------
def init_params(key, cin, c0, num_classes):
    keys = jax.random.split(key, 16)

    def w(k, shape, fan_in):
        return jax.random.normal(k, shape, jnp.float32) / jnp.sqrt(float(fan_in))

    def conv_w(k, ci, co):
        return w(k, (3, 3, ci, co), 9 * ci)

    p = {}
    p["t_w1"] = w(keys[0], (c0, 4 * c0), c0);        p["t_b1"] = jnp.zeros((4 * c0,))
    p["t_w2"] = w(keys[1], (4 * c0, c0), 4 * c0);    p["t_b2"] = jnp.zeros((c0,))
    emb = jax.random.normal(keys[2], (num_classes + 1, c0), jnp.float32)
    p["class_emb"] = emb.at[0].set(0.0)                      # padding_idx=0
    p["conv_in_w"] = conv_w(keys[3], cin, c0);         p["conv_in_b"] = jnp.zeros((c0,))
    p["conv1_w"] = conv_w(keys[4], c0, c0);            p["conv1_b"] = jnp.zeros((c0,))
    p["proj1_w"] = w(keys[5], (c0, c0), c0);           p["proj1_b"] = jnp.zeros((c0,))
    p["conv2_w"] = conv_w(keys[6], c0, 2 * c0);        p["conv2_b"] = jnp.zeros((2 * c0,))
    p["proj2_w"] = w(keys[7], (c0, 2 * c0), c0);       p["proj2_b"] = jnp.zeros((2 * c0,))
    p["conv_mid_w"] = conv_w(keys[8], 2 * c0, 2 * c0); p["conv_mid_b"] = jnp.zeros((2 * c0,))
    p["proj_mid_w"] = w(keys[9], (c0, 2 * c0), c0);    p["proj_mid_b"] = jnp.zeros((2 * c0,))
    p["conv_up_w"] = conv_w(keys[10], 3 * c0, c0);     p["conv_up_b"] = jnp.zeros((c0,))
    p["proj_up_w"] = w(keys[11], (c0, c0), c0);        p["proj_up_b"] = jnp.zeros((c0,))
    p["conv_out_w"] = conv_w(keys[12], c0, cin);       p["conv_out_b"] = jnp.zeros((cin,))
    return p


# -----------------------------------------------------------------------------
# ConditionalUnet.forward
# -----------------------------------------------------------------------------
def conditional_unet_forward(params, x_nchw, t, cond=None, *, c0=32):
    f32, bf16 = jnp.float32, jnp.bfloat16
    x = x_nchw.astype(f32)
    B, Cin, H, W = x.shape
    assert H % 2 == 0 and W % 2 == 0

    # --- unet.time_encoding(t): sinusoidal part (tiny glue) ---
    half = c0 // 2
    freqs = jnp.exp(-math.log(10000.0) * jnp.arange(half, dtype=f32) / half)
    ang = t.astype(f32)[:, None] * freqs[None, :]
    t_sin = jnp.concatenate([jnp.sin(ang), jnp.cos(ang)], axis=-1)       # (B, c0)

    # --- class conditioning: Embedding(padding_idx=0) -> sum over tokens ---
    csum = None
    if cond is not None:
        # TODO(synk): embedding-row gather kept in JAX (jnp.take); a manual-DMA Pallas
        # gather only pays off for a much larger class vocabulary.
        csum = jnp.take(params["class_emb"], cond, axis=0).sum(axis=1)   # (B, c0)

    # --- fused: time-MLP + cond add + SiLU + 4 projection heads (one tiny call) ---
    p_all = temb_and_projections(t_sin, params, csum)                    # (B, 6c0) f32
    p_in = p_all.reshape(B, 6 * c0, 1)

    # --- geometry (lane-dense: H*Wp and H2*W2p are multiples of 128) ---
    def round_wp(h, w):
        step = 128 // math.gcd(h, 128)
        return -(-(w + 2) // step) * step
    Wp = round_wp(H, W);   Hp = H + 3;   M = H * Wp;    Mp = Hp * Wp
    H2, W2 = H // 2, W // 2
    W2p = round_wp(H2, W2); H2p = H2 + 3; M2 = H2 * W2p; M2p = H2p * W2p
    cin_pad = -(-Cin // 16) * 16                       # sublane-aligned stacked im2col

    # padded, channel-padded bf16 input, flattened to the in-kernel geometry
    xpad = jnp.pad(x.astype(bf16),
                   ((0, 0), (0, cin_pad - Cin), (1, Hp - H - 1), (1, Wp - W - 1)))
    xflat = xpad.reshape(B, cin_pad, Mp)

    # weights reshaped to (Cout, 9*Cin) matching the stacked im2col row order
    def wmat(w):
        return jnp.transpose(w, (3, 0, 1, 2)).reshape(w.shape[3], -1).astype(bf16)

    def bcol(b):
        return b.reshape(-1, 1).astype(f32)

    w_in_p = jnp.pad(params["conv_in_w"], ((0, 0), (0, 0), (0, cin_pad - Cin), (0, 0)))
    weights = [wmat(w_in_p), bcol(params["conv_in_b"]),
               wmat(params["conv1_w"]), bcol(params["conv1_b"]),
               wmat(params["conv2_w"]), bcol(params["conv2_b"]),
               wmat(params["conv_mid_w"]), bcol(params["conv_mid_b"]),
               wmat(params["conv_up_w"]), bcol(params["conv_up_b"]),
               wmat(params["conv_out_w"]), bcol(params["conv_out_b"])]

    # validity masks (zero the right-pad columns of each conv output row)
    mask_full = jnp.asarray((np.arange(M) % Wp < W).astype(np.float32).reshape(1, M))
    mask_half = jnp.asarray((np.arange(M2) % W2p < W2).astype(np.float32).reshape(1, M2))

    # 2x2 avg-pool matrix: (output flat geometry) -> (padded half-res geometry)
    pool_m = np.zeros((M, M2p), np.float32)
    for i in range(H2):
        for j in range(W2):
            tgt = (i + 1) * W2p + (j + 1)
            for di in range(2):
                for dj in range(2):
                    pool_m[(2 * i + di) * Wp + (2 * j + dj), tgt] = 0.25
    # nearest-2x upsample matrix: (half-res output flat) -> (padded full-res geometry)
    up_m = np.zeros((M2, Mp), np.float32)
    for i in range(H2):
        for j in range(W2):
            src = i * W2p + j
            for di in range(2):
                for dj in range(2):
                    up_m[src, (2 * i + di + 1) * Wp + (2 * j + dj + 1)] = 1.0
    pool_m = jnp.asarray(pool_m, bf16)
    up_m = jnp.asarray(up_m, bf16)

    def bc(shape):                                      # grid-invariant full-array block
        return pl.BlockSpec(shape, lambda b: (0,) * len(shape))

    in_specs = [
        pl.BlockSpec((1, cin_pad, Mp), lambda b: (b, 0, 0)),   # padded input image
        pl.BlockSpec((1, 6 * c0, 1), lambda b: (b, 0, 0)),     # projected temb vector
        bc((1, M)), bc((1, M2)),                               # masks
    ]
    for wa, ba in zip(weights[0::2], weights[1::2]):
        in_specs += [bc(tuple(wa.shape)), bc(tuple(ba.shape))]
    in_specs += [bc((M, M2p)), bc((M2, Mp))]                   # pool / upsample matrices

    conv_cfg = [(9 * cin_pad, c0, M), (9 * c0, c0, M), (9 * c0, 2 * c0, M2),
                (9 * 2 * c0, 2 * c0, M2), (9 * 3 * c0, c0, M), (9 * c0, Cin, M)]
    flops = B * (sum(2 * k * co * m for k, co, m in conv_cfg)
                 + 2 * c0 * M * M2p + 2 * (2 * c0) * M2 * Mp)
    bytes_in = (xflat.size * 2 + p_in.size * 4 + (M + M2) * 4
                + (M * M2p + M2 * Mp) * 2
                + sum(a.size * a.dtype.itemsize for a in weights))
    cost = pl.CostEstimate(flops=flops,
                           transcendentals=B * 2 * (c0 * M + 2 * c0 * M2),
                           bytes_accessed=bytes_in + B * Cin * M * 4)

    kernel = partial(_fused_unet_kernel, c0=c0, W=W, Wp=Wp, M=M, Mp=Mp,
                     W2=W2, W2p=W2p, M2=M2, M2p=M2p)

    out = pl.pallas_call(
        kernel,
        out_shape=jax.ShapeDtypeStruct((B, Cin, M), f32),
        grid=(B,),
        in_specs=in_specs,
        out_specs=pl.BlockSpec((1, Cin, M), lambda b: (b, 0, 0)),
        scratch_shapes=[
            pltpu.VMEM((c0, Mp), bf16),           # h0 (padded)
            pltpu.VMEM((3 * c0, Mp), bf16),       # [upsampled mid | d1 skip] (padded)
            pltpu.VMEM((c0, M2p), bf16),          # pooled d1 (padded, half res)
            pltpu.VMEM((2 * c0, M2p), bf16),      # d2 (padded, half res)
            pltpu.VMEM((c0, Mp), bf16),           # u1 (padded)
            pltpu.VMEM((9 * 3 * c0, M), bf16),    # shared stacked-im2col RHS
        ],
        compiler_params=pltpu.CompilerParams(dimension_semantics=("parallel",)),
        cost_estimate=cost,
    )(xflat, p_in, mask_full, mask_half, *weights, pool_m, up_m)

    # drop the right-pad columns (single tiny slice for the whole forward)
    return out.reshape(B, Cin, H, Wp)[:, :, :, :W]


# -----------------------------------------------------------------------------
# Pure-JAX float32 reference (for a loose sanity check against bf16 kernel)
# -----------------------------------------------------------------------------
def _ref_conv(x, w, b):
    y = jax.lax.conv_general_dilated(
        x, w, window_strides=(1, 1), padding="SAME",
        dimension_numbers=("NCHW", "HWIO", "NCHW"),
        precision=jax.lax.Precision.HIGHEST)
    return y + b.reshape(1, -1, 1, 1)


def reference_forward(params, x, t, cond, *, c0=32):
    x = x.astype(jnp.float32)
    B, _, H, W = x.shape
    half = c0 // 2
    freqs = jnp.exp(-math.log(10000.0) * jnp.arange(half, dtype=jnp.float32) / half)
    ang = t.astype(jnp.float32)[:, None] * freqs[None, :]
    t_sin = jnp.concatenate([jnp.sin(ang), jnp.cos(ang)], axis=-1)
    h = t_sin @ params["t_w1"] + params["t_b1"]
    h = h * jax.nn.sigmoid(h)
    te = h @ params["t_w2"] + params["t_b2"]
    if cond is not None:
        te = te + jnp.take(params["class_emb"], cond, axis=0).sum(axis=1)
    ta = te * jax.nn.sigmoid(te)

    def proj(name):
        return ta @ params[name + "_w"] + params[name + "_b"]

    def silu(v):
        return v * jax.nn.sigmoid(v)

    p1, p2, pm, pu = proj("proj1"), proj("proj2"), proj("proj_mid"), proj("proj_up")
    h0 = _ref_conv(x, params["conv_in_w"], params["conv_in_b"])
    d1 = silu(_ref_conv(h0, params["conv1_w"], params["conv1_b"]) + p1[:, :, None, None])
    pld = d1.reshape(B, c0, H // 2, 2, W // 2, 2).mean(axis=(3, 5))
    d2 = silu(_ref_conv(pld, params["conv2_w"], params["conv2_b"]) + p2[:, :, None, None])
    m = silu(_ref_conv(d2, params["conv_mid_w"], params["conv_mid_b"]) + pm[:, :, None, None])
    up = jnp.repeat(jnp.repeat(m, 2, axis=2), 2, axis=3)
    cat = jnp.concatenate([up, d1], axis=1)
    u1 = silu(_ref_conv(cat, params["conv_up_w"], params["conv_up_b"]) + pu[:, :, None, None])
    return _ref_conv(u1, params["conv_out_w"], params["conv_out_b"])


# -----------------------------------------------------------------------------
if __name__ == "__main__":
    key = jax.random.PRNGKey(0)
    B, Cin, H, W = 2, 4, 16, 16
    C0, NUM_CLASSES, K = 32, 10, 3

    kx, kt, kc, kp = jax.random.split(key, 4)
    x = jax.random.normal(kx, (B, Cin, H, W), jnp.float32)
    t = jax.random.uniform(kt, (B,), jnp.float32, 0.0, 1000.0)
    cond = jax.random.randint(kc, (B, K), 0, NUM_CLASSES + 1)   # 0 == padding idx
    params = init_params(kp, Cin, C0, NUM_CLASSES)

    fwd = jax.jit(partial(conditional_unet_forward, c0=C0))
    out = fwd(params, x, t, cond)
    jax.block_until_ready(out)
    assert out.shape == (B, Cin, H, W) and out.dtype == jnp.float32
    assert bool(jnp.all(jnp.isfinite(out)))

    # loose sanity check vs float32 reference (kernel uses bf16 intermediates)
    ref = reference_forward(params, x, t, cond, c0=C0)
    err = float(jnp.max(jnp.abs(out - ref)) / (jnp.max(jnp.abs(ref)) + 1e-6))
    assert err < 0.25, f"kernel/reference mismatch: rel-max err {err:.4f}"

    print("KERNEL_OK")
</pallas_src>

<mosaic_0001>
module attributes {stable_mosaic.version = 11 : i64} {
  func.func @_temb_proj_kernel(%arg0: memref<2x32xf32, #tpu.memory_space<vmem>>, %arg1: memref<32x128xf32, #tpu.memory_space<vmem>>, %arg2: memref<1x128xf32, #tpu.memory_space<vmem>>, %arg3: memref<128x32xf32, #tpu.memory_space<vmem>>, %arg4: memref<1x32xf32, #tpu.memory_space<vmem>>, %arg5: memref<2x32xf32, #tpu.memory_space<vmem>>, %arg6: memref<32x192xf32, #tpu.memory_space<vmem>>, %arg7: memref<1x192xf32, #tpu.memory_space<vmem>>, %arg8: memref<2x192xf32, #tpu.memory_space<vmem>>) attributes {dimension_semantics = [], scalar_prefetch = 0 : i64, scratch_operands = 0 : i64, tpu.core_type = #tpu.core_type<tc>} {
    %c0 = arith.constant 0 : index
    %c0_0 = arith.constant 0 : index
    %0 = vector.load %arg0[%c0, %c0_0] : memref<2x32xf32, #tpu.memory_space<vmem>>, vector<2x32xf32>
    %c0_1 = arith.constant 0 : index
    %c0_2 = arith.constant 0 : index
    %1 = vector.load %arg1[%c0_1, %c0_2] : memref<32x128xf32, #tpu.memory_space<vmem>>, vector<32x128xf32>
    %cst = arith.constant dense<0.000000e+00> : vector<2x128xf32>
    %2 = tpu.matmul %0, %1, %cst {dimension_numbers = #tpu.dot_dimension_numbers<[1], [0], [0], [1], [0, 0, 1, 1], [], []>} : vector<2x32xf32>, vector<32x128xf32>, vector<2x128xf32> -> vector<2x128xf32>
    %c0_3 = arith.constant 0 : index
    %c0_4 = arith.constant 0 : index
    %3 = vector.load %arg2[%c0_3, %c0_4] : memref<1x128xf32, #tpu.memory_space<vmem>>, vector<1x128xf32>
    %4 = vector.broadcast %3 : vector<1x128xf32> to vector<2x128xf32>
    %5 = arith.addf %2, %4 : vector<2x128xf32>
    %6 = arith.negf %5 : vector<2x128xf32>
    %7 = math.exp %6 : vector<2x128xf32>
    %cst_5 = arith.constant 1.000000e+00 : f32
    %8 = vector.broadcast %cst_5 : f32 to vector<2x128xf32>
    %9 = arith.addf %8, %7 : vector<2x128xf32>
    %10 = arith.divf %8, %9 : vector<2x128xf32>
    %11 = arith.mulf %5, %10 : vector<2x128xf32>
    %c0_6 = arith.constant 0 : index
    %c0_7 = arith.constant 0 : index
    %12 = vector.load %arg3[%c0_6, %c0_7] : memref<128x32xf32, #tpu.memory_space<vmem>>, vector<128x32xf32>
    %cst_8 = arith.constant dense<0.000000e+00> : vector<2x32xf32>
    %13 = tpu.matmul %11, %12, %cst_8 {dimension_numbers = #tpu.dot_dimension_numbers<[1], [0], [0], [1], [0, 0, 1, 1], [], []>} : vector<2x128xf32>, vector<128x32xf32>, vector<2x32xf32> -> vector<2x32xf32>
    %c0_9 = arith.constant 0 : index
    %c0_10 = arith.constant 0 : index
    %14 = vector.load %arg4[%c0_9, %c0_10] : memref<1x32xf32, #tpu.memory_space<vmem>>, vector<1x32xf32>
    %15 = vector.broadcast %14 : vector<1x32xf32> to vector<2x32xf32>
    %16 = arith.addf %13, %15 : vector<2x32xf32>
    %c0_11 = arith.constant 0 : index
    %c0_12 = arith.constant 0 : index
    %17 = vector.load %arg5[%c0_11, %c0_12] : memref<2x32xf32, #tpu.memory_space<vmem>>, vector<2x32xf32>
    %18 = arith.addf %16, %17 : vector<2x32xf32>
    %19 = arith.negf %18 : vector<2x32xf32>
    %20 = math.exp %19 : vector<2x32xf32>
    %cst_13 = arith.constant 1.000000e+00 : f32
    %21 = vector.broadcast %cst_13 : f32 to vector<2x32xf32>
    %22 = arith.addf %21, %20 : vector<2x32xf32>
    %23 = arith.divf %21, %22 : vector<2x32xf32>
    %24 = arith.mulf %18, %23 : vector<2x32xf32>
    %c0_14 = arith.constant 0 : index
    %c0_15 = arith.constant 0 : index
    %25 = vector.load %arg6[%c0_14, %c0_15] : memref<32x192xf32, #tpu.memory_space<vmem>>, vector<32x192xf32>
    %cst_16 = arith.constant dense<0.000000e+00> : vector<2x192xf32>
    %26 = tpu.matmul %24, %25, %cst_16 {dimension_numbers = #tpu.dot_dimension_numbers<[1], [0], [0], [1], [0, 0, 1, 1], [], []>} : vector<2x32xf32>, vector<32x192xf32>, vector<2x192xf32> -> vector<2x192xf32>
    %c0_17 = arith.constant 0 : index
    %c0_18 = arith.constant 0 : index
    %27 = vector.load %arg7[%c0_17, %c0_18] : memref<1x192xf32, #tpu.memory_space<vmem>>, vector<1x192xf32>
    %28 = vector.broadcast %27 : vector<1x192xf32> to vector<2x192xf32>
    %29 = arith.addf %26, %28 : vector<2x192xf32>
    %c0_19 = arith.constant 0 : index
    %c0_20 = arith.constant 0 : index
    %30 = vector.load %arg8[%c0_19, %c0_20] : memref<2x192xf32, #tpu.memory_space<vmem>>, vector<2x192xf32>
    tpu.vector_store %arg8[%c0_19, %c0_20], %29 {strides = array<i32>} : memref<2x192xf32, #tpu.memory_space<vmem>>, vector<2x192xf32>,
    return
  }
}

module attributes {stable_mosaic.version = 11 : i64} {
  func.func @_fused_unet_kernel(%arg0: i32, %arg1: memref<1x16x456xbf16, #tpu.memory_space<vmem>>, %arg2: memref<1x192x1xf32, #tpu.memory_space<vmem>>, %arg3: memref<1x384xf32, #tpu.memory_space<vmem>>, %arg4: memref<1x128xf32, #tpu.memory_space<vmem>>, %arg5: memref<32x144xbf16, #tpu.memory_space<vmem>>, %arg6: memref<32x1xf32, #tpu.memory_space<vmem>>, %arg7: memref<32x288xbf16, #tpu.memory_space<vmem>>, %arg8: memref<32x1xf32, #tpu.memory_space<vmem>>, %arg9: memref<64x288xbf16, #tpu.memory_space<vmem>>, %arg10: memref<64x1xf32, #tpu.memory_space<vmem>>, %arg11: memref<64x576xbf16, #tpu.memory_space<vmem>>, %arg12: memref<64x1xf32, #tpu.memory_space<vmem>>, %arg13: memref<32x864xbf16, #tpu.memory_space<vmem>>, %arg14: memref<32x1xf32, #tpu.memory_space<vmem>>, %arg15: memref<4x288xbf16, #tpu.memory_space<vmem>>, %arg16: memref<4x1xf32, #tpu.memory_space<vmem>>, %arg17: memref<384x176xbf16, #tpu.memory_space<vmem>>, %arg18: memref<128x456xbf16, #tpu.memory_space<vmem>>, %arg19: memref<1x4x384xf32, #tpu.memory_space<vmem>>, %arg20: memref<32x456xbf16, #tpu.memory_space<vmem>>, %arg21: memref<96x456xbf16, #tpu.memory_space<vmem>>, %arg22: memref<32x176xbf16, #tpu.memory_space<vmem>>, %arg23: memref<64x176xbf16, #tpu.memory_space<vmem>>, %arg24: memref<32x456xbf16, #tpu.memory_space<vmem>>, %arg25: memref<864x384xbf16, #tpu.memory_space<vmem>>) attributes {dimension_semantics = [#tpu.dimension_semantics<parallel>], iteration_bounds = array<i64: 2>, scalar_prefetch = 0 : i64, scratch_operands = 6 : i64, tpu.core_type = #tpu.core_type<tc>, window_params = [{transform_indices = @transform_0, window_bounds = array<i64: 1, 16, 456>}, {transform_indices = @transform_1, window_bounds = array<i64: 1, 192, 1>}, {pipeline_mode = #tpu.pipeline_mode<synchronous>, transform_indices = @transform_2, window_bounds = array<i64: 1, 384>}, {pipeline_mode = #tpu.pipeline_mode<synchronous>, transform_indices = @transform_3, window_bounds = array<i64: 1, 128>}, {pipeline_mode = #tpu.pipeline_mode<synchronous>, transform_indices = @transform_4, window_bounds = array<i64: 32, 144>}, {pipeline_mode = #tpu.pipeline_mode<synchronous>, transform_indices = @transform_5, window_bounds = array<i64: 32, 1>}, {pipeline_mode = #tpu.pipeline_mode<synchronous>, transform_indices = @transform_6, window_bounds = array<i64: 32, 288>}, {pipeline_mode = #tpu.pipeline_mode<synchronous>, transform_indices = @transform_7, window_bounds = array<i64: 32, 1>}, {pipeline_mode = #tpu.pipeline_mode<synchronous>, transform_indices = @transform_8, window_bounds = array<i64: 64, 288>}, {pipeline_mode = #tpu.pipeline_mode<synchronous>, transform_indices = @transform_9, window_bounds = array<i64: 64, 1>}, {pipeline_mode = #tpu.pipeline_mode<synchronous>, transform_indices = @transform_10, window_bounds = array<i64: 64, 576>}, {pipeline_mode = #tpu.pipeline_mode<synchronous>, transform_indices = @transform_11, window_bounds = array<i64: 64, 1>}, {pipeline_mode = #tpu.pipeline_mode<synchronous>, transform_indices = @transform_12, window_bounds = array<i64: 32, 864>}, {pipeline_mode = #tpu.pipeline_mode<synchronous>, transform_indices = @transform_13, window_bounds = array<i64: 32, 1>}, {pipeline_mode = #tpu.pipeline_mode<synchronous>, transform_indices = @transform_14, window_bounds = array<i64: 4, 288>}, {pipeline_mode = #tpu.pipeline_mode<synchronous>, transform_indices = @transform_15, window_bounds = array<i64: 4, 1>}, {pipeline_mode = #tpu.pipeline_mode<synchronous>, transform_indices = @transform_16, window_bounds = array<i64: 384, 176>}, {pipeline_mode = #tpu.pipeline_mode<synchronous>, transform_indices = @transform_17, window_bounds = array<i64: 128, 456>}, {transform_indices = @transform_18, window_bounds = array<i64: 1, 4, 384>}]} {
    %c0 = arith.constant 0 : index
    %c0_0 = arith.constant 0 : index
    %0 = vector.load %arg3[%c0, %c0_0] : memref<1x384xf32, #tpu.memory_space<vmem>>, vector<1x384xf32>
    %c0_1 = arith.constant 0 : index
    %c0_2 = arith.constant 0 : index
    %1 = vector.load %arg4[%c0_1, %c0_2] : memref<1x128xf32, #tpu.memory_space<vmem>>, vector<1x128xf32>
    %c0_3 = arith.constant 0 : index
    %c0_4 = arith.constant 0 : index
    %c0_5 = arith.constant 0 : index
    %2 = vector.load %arg2[%c0_3, %c0_4, %c0_5] : memref<1x192x1xf32, #tpu.memory_space<vmem>>, vector<1x192x1xf32>
    %3 = vector.shape_cast %2 : vector<1x192x1xf32> to vector<192x1xf32>
    %4 = vector.extract_strided_slice %3 {offsets = [0, 0], sizes = [32, 1], strides = [1, 1]} : vector<192x1xf32> to vector<32x1xf32>
    %5 = vector.extract_strided_slice %3 {offsets = [32, 0], sizes = [64, 1], strides = [1, 1]} : vector<192x1xf32> to vector<64x1xf32>
    %6 = vector.extract_strided_slice %3 {offsets = [96, 0], sizes = [64, 1], strides = [1, 1]} : vector<192x1xf32> to vector<64x1xf32>
    %7 = vector.extract_strided_slice %3 {offsets = [160, 0], sizes = [32, 1], strides = [1, 1]} : vector<192x1xf32> to vector<32x1xf32>
    %c0_6 = arith.constant 0 : index
    %c0_7 = arith.constant 0 : index
    %c0_8 = arith.constant 0 : index
    %8 = vector.load %arg1[%c0_6, %c0_7, %c0_8] : memref<1x16x456xbf16, #tpu.memory_space<vmem>>, vector<1x16x456xbf16>
    %9 = vector.shape_cast %8 : vector<1x16x456xbf16> to vector<16x456xbf16>
    %10 = vector.extract_strided_slice %9 {offsets = [0, 0], sizes = [16, 384], strides = [1, 1]} : vector<16x456xbf16> to vector<16x384xbf16>
    %c0_9 = arith.constant 0 : index
    %c0_10 = arith.constant 0 : index
    %11 = vector.load %arg25[%c0_9, %c0_10] : memref<864x384xbf16, #tpu.memory_space<vmem>>, vector<16x384xbf16>
    tpu.vector_store %arg25[%c0_9, %c0_10], %10 {strides = array<i32>} : memref<864x384xbf16, #tpu.memory_space<vmem>>, vector<16x384xbf16>,
    %12 = vector.extract_strided_slice %9 {offsets = [0, 1], sizes = [16, 384], strides = [1, 1]} : vector<16x456xbf16> to vector<16x384xbf16>
    %c16 = arith.constant 16 : index
    %c0_11 = arith.constant 0 : index
    %13 = vector.load %arg25[%c16, %c0_11] : memref<864x384xbf16, #tpu.memory_space<vmem>>, vector<16x384xbf16>
    tpu.vector_store %arg25[%c16, %c0_11], %12 {strides = array<i32>} : memref<864x384xbf16, #tpu.memory_space<vmem>>, vector<16x384xbf16>,
    %14 = vector.extract_strided_slice %9 {offsets = [0, 2], sizes = [16, 384], strides = [1, 1]} : vector<16x456xbf16> to vector<16x384xbf16>
    %c32 = arith.constant 32 : index
    %c0_12 = arith.constant 0 : index
    %15 = vector.load %arg25[%c32, %c0_12] : memref<864x384xbf16, #tpu.memory_space<vmem>>, vector<16x384xbf16>
    tpu.vector_store %arg25[%c32, %c0_12], %14 {strides = array<i32>} : memref<864x384xbf16, #tpu.memory_space<vmem>>, vector<16x384xbf16>,
    %16 = vector.extract_strided_slice %9 {offsets = [0, 24], sizes = [16, 384], strides = [1, 1]} : vector<16x456xbf16> to vector<16x384xbf16>
    %c48 = arith.constant 48 : index
    %c0_13 = arith.constant 0 : index
    %17 = vector.load %arg25[%c48, %c0_13] : memref<864x384xbf16, #tpu.memory_space<vmem>>, vector<16x384xbf16>
    tpu.vector_store %arg25[%c48, %c0_13], %16 {strides = array<i32>} : memref<864x384xbf16, #tpu.memory_space<vmem>>, vector<16x384xbf16>,
    %18 = vector.extract_strided_slice %9 {offsets = [0, 25], sizes = [16, 384], strides = [1, 1]} : vector<16x456xbf16> to vector<16x384xbf16>
    %c64 = arith.constant 64 : index
    %c0_14 = arith.constant 0 : index
    %19 = vector.load %arg25[%c64, %c0_14] : memref<864x384xbf16, #tpu.memory_space<vmem>>, vector<16x384xbf16>
    tpu.vector_store %arg25[%c64, %c0_14], %18 {strides = array<i32>} : memref<864x384xbf16, #tpu.memory_space<vmem>>, vector<16x384xbf16>,
    %20 = vector.extract_strided_slice %9 {offsets = [0, 26], sizes = [16, 384], strides = [1, 1]} : vector<16x456xbf16> to vector<16x384xbf16>
    %c80 = arith.constant 80 : index
    %c0_15 = arith.constant 0 : index
    %21 = vector.load %arg25[%c80, %c0_15] : memref<864x384xbf16, #tpu.memory_space<vmem>>, vector<16x384xbf16>
    tpu.vector_store %arg25[%c80, %c0_15], %20 {strides = array<i32>} : memref<864x384xbf16, #tpu.memory_space<vmem>>, vector<16x384xbf16>,
    %22 = vector.extract_strided_slice %9 {offsets = [0, 48], sizes = [16, 384], strides = [1, 1]} : vector<16x456xbf16> to vector<16x384xbf16>
    %c96 = arith.constant 96 : index
    %c0_16 = arith.constant 0 : index
    %23 = vector.load %arg25[%c96, %c0_16] : memref<864x384xbf16, #tpu.memory_space<vmem>>, vector<16x384xbf16>
    tpu.vector_store %arg25[%c96, %c0_16], %22 {strides = array<i32>} : memref<864x384xbf16, #tpu.memory_space<vmem>>, vector<16x384xbf16>,
    %24 = vector.extract_strided_slice %9 {offsets = [0, 49], sizes = [16, 384], strides = [1, 1]} : vector<16x456xbf16> to vector<16x384xbf16>
    %c112 = arith.constant 112 : index
    %c0_17 = arith.constant 0 : index
    %25 = vector.load %arg25[%c112, %c0_17] : memref<864x384xbf16, #tpu.memory_space<vmem>>, vector<16x384xbf16>
    tpu.vector_store %arg25[%c112, %c0_17], %24 {strides = array<i32>} : memref<864x384xbf16, #tpu.memory_space<vmem>>, vector<16x384xbf16>,
    %26 = vector.extract_strided_slice %9 {offsets = [0, 50], sizes = [16, 384], strides = [1, 1]} : vector<16x456xbf16> to vector<16x384xbf16>
    %c128 = arith.constant 128 : index
    %c0_18 = arith.constant 0 : index
    %27 = vector.load %arg25[%c128, %c0_18] : memref<864x384xbf16, #tpu.memory_space<vmem>>, vector<16x384xbf16>
    tpu.vector_store %arg25[%c128, %c0_18], %26 {strides = array<i32>} : memref<864x384xbf16, #tpu.memory_space<vmem>>, vector<16x384xbf16>,
    %c0_19 = arith.constant 0 : index
    %c0_20 = arith.constant 0 : index
    %28 = vector.load %arg5[%c0_19, %c0_20] : memref<32x144xbf16, #tpu.memory_space<vmem>>, vector<32x144xbf16>
    %c0_21 = arith.constant 0 : index
    %c0_22 = arith.constant 0 : index
    %29 = vector.load %arg25[%c0_21, %c0_22] : memref<864x384xbf16, #tpu.memory_space<vmem>>, vector<144x384xbf16>
    %cst = arith.constant dense<0.000000e+00> : vector<32x384xf32>
    %30 = tpu.matmul %28, %29, %cst {dimension_numbers = #tpu.dot_dimension_numbers<[1], [0], [0], [1], [0, 0, 1, 1], [], []>} : vector<32x144xbf16>, vector<144x384xbf16>, vector<32x384xf32> -> vector<32x384xf32>
    %c0_23 = arith.constant 0 : index
    %c0_24 = arith.constant 0 : index
    %31 = vector.load %arg6[%c0_23, %c0_24] : memref<32x1xf32, #tpu.memory_space<vmem>>, vector<32x1xf32>
    %32 = vector.broadcast %31 : vector<32x1xf32> to vector<32x384xf32>
    %33 = arith.addf %30, %32 : vector<32x384xf32>
    %34 = vector.broadcast %0 : vector<1x384xf32> to vector<32x384xf32>
    %35 = arith.mulf %33, %34 : vector<32x384xf32>
    %36 = arith.truncf %35 : vector<32x384xf32> to vector<32x384xbf16>
    %cst_25 = arith.constant 0.000000e+00 : bf16
    %37 = vector.broadcast %cst_25 : bf16 to vector<32x456xbf16>
    %c0_26 = arith.constant 0 : index
    %c0_27 = arith.constant 0 : index
    %38 = vector.load %arg20[%c0_26, %c0_27] : memref<32x456xbf16, #tpu.memory_space<vmem>>, vector<32x456xbf16>
    tpu.vector_store %arg20[%c0_26, %c0_27], %37 {strides = array<i32>} : memref<32x456xbf16, #tpu.memory_space<vmem>>, vector<32x456xbf16>,
    %c0_28 = arith.constant 0 : index
    %c25 = arith.constant 25 : index
    %39 = vector.load %arg20[%c0_28, %c25] : memref<32x456xbf16, #tpu.memory_space<vmem>>, vector<32x384xbf16>
    tpu.vector_store %arg20[%c0_28, %c25], %36 {strides = array<i32>} : memref<32x456xbf16, #tpu.memory_space<vmem>>, vector<32x384xbf16>,
    %c0_29 = arith.constant 0 : index
    %c0_30 = arith.constant 0 : index
    %40 = vector.load %arg20[%c0_29, %c0_30] : memref<32x456xbf16, #tpu.memory_space<vmem>>, vector<32x456xbf16>
    %41 = vector.extract_strided_slice %40 {offsets = [0, 0], sizes = [32, 384], strides = [1, 1]} : vector<32x456xbf16> to vector<32x384xbf16>
    %c0_31 = arith.constant 0 : index
    %c0_32 = arith.constant 0 : index
    %42 = vector.load %arg25[%c0_31, %c0_32] : memref<864x384xbf16, #tpu.memory_space<vmem>>, vector<32x384xbf16>
    tpu.vector_store %arg25[%c0_31, %c0_32], %41 {strides = array<i32>} : memref<864x384xbf16, #tpu.memory_space<vmem>>, vector<32x384xbf16>,
    %43 = vector.extract_strided_slice %40 {offsets = [0, 1], sizes = [32, 384], strides = [1, 1]} : vector<32x456xbf16> to vector<32x384xbf16>
    %c32_33 = arith.constant 32 : index
    %c0_34 = arith.constant 0 : index
    %44 = vector.load %arg25[%c32_33, %c0_34] : memref<864x384xbf16, #tpu.memory_space<vmem>>, vector<32x384xbf16>
    tpu.vector_store %arg25[%c32_33, %c0_34], %43 {strides = array<i32>} : memref<864x384xbf16, #tpu.memory_space<vmem>>, vector<32x384xbf16>,
    %45 = vector.extract_strided_slice %40 {offsets = [0, 2], sizes = [32, 384], strides = [1, 1]} : vector<32x456xbf16> to vector<32x384xbf16>
    %c64_35 = arith.constant 64 : index
    %c0_36 = arith.constant 0 : index
    %46 = vector.load %arg25[%c64_35, %c0_36] : memref<864x384xbf16, #tpu.memory_space<vmem>>, vector<32x384xbf16>
    tpu.vector_store %arg25[%c64_35, %c0_36], %45 {strides = array<i32>} : memref<864x384xbf16, #tpu.memory_space<vmem>>, vector<32x384xbf16>,
    %47 = vector.extract_strided_slice %40 {offsets = [0, 24], sizes = [32, 384], strides = [1, 1]} : vector<32x456xbf16> to vector<32x384xbf16>
    %c96_37 = arith.constant 96 : index
    %c0_38 = arith.constant 0 : index
    %48 = vector.load %arg25[%c96_37, %c0_38] : memref<864x384xbf16, #tpu.memory_space<vmem>>, vector<32x384xbf16>
    tpu.vector_store %arg25[%c96_37, %c0_38], %47 {strides = array<i32>} : memref<864x384xbf16, #tpu.memory_space<vmem>>, vector<32x384xbf16>,
    %49 = vector.extract_strided_slice %40 {offsets = [0, 25], sizes = [32, 384], strides = [1, 1]} : vector<32x456xbf16> to vector<32x384xbf16>
    %c128_39 = arith.constant 128 : index
    %c0_40 = arith.constant 0 : index
    %50 = vector.load %arg25[%c128_39, %c0_40] : memref<864x384xbf16, #tpu.memory_space<vmem>>, vector<32x384xbf16>
    tpu.vector_store %arg25[%c128_39, %c0_40], %49 {strides = array<i32>} : memref<864x384xbf16, #tpu.memory_space<vmem>>, vector<32x384xbf16>,
    %51 = vector.extract_strided_slice %40 {offsets = [0, 26], sizes = [32, 384], strides = [1, 1]} : vector<32x456xbf16> to vector<32x384xbf16>
    %c160 = arith.constant 160 : index
    %c0_41 = arith.constant 0 : index
    %52 = vector.load %arg25[%c160, %c0_41] : memref<864x384xbf16, #tpu.memory_space<vmem>>, vector<32x384xbf16>
    tpu.vector_store %arg25[%c160, %c0_41], %51 {strides = array<i32>} : memref<864x384xbf16, #tpu.memory_space<vmem>>, vector<32x384xbf16>,
    %53 = vector.extract_strided_slice %40 {offsets = [0, 48], sizes = [32, 384], strides = [1, 1]} : vector<32x456xbf16> to vector<32x384xbf16>
    %c192 = arith.constant 192 : index
    %c0_42 = arith.constant 0 : index
    %54 = vector.load %arg25[%c192, %c0_42] : memref<864x384xbf16, #tpu.memory_space<vmem>>, vector<32x384xbf16>
    tpu.vector_store %arg25[%c192, %c0_42], %53 {strides = array<i32>} : memref<864x384xbf16, #tpu.memory_space<vmem>>, vector<32x384xbf16>,
    %55 = vector.extract_strided_slice %40 {offsets = [0, 49], sizes = [32, 384], strides = [1, 1]} : vector<32x456xbf16> to vector<32x384xbf16>
    %c224 = arith.constant 224 : index
    %c0_43 = arith.constant 0 : index
    %56 = vector.load %arg25[%c224, %c0_43] : memref<864x384xbf16, #tpu.memory_space<vmem>>, vector<32x384xbf16>
    tpu.vector_store %arg25[%c224, %c0_43], %55 {strides = array<i32>} : memref<864x384xbf16, #tpu.memory_space<vmem>>, vector<32x384xbf16>,
    %57 = vector.extract_strided_slice %40 {offsets = [0, 50], sizes = [32, 384], strides = [1, 1]} : vector<32x456xbf16> to vector<32x384xbf16>
    %c256 = arith.constant 256 : index
    %c0_44 = arith.constant 0 : index
    %58 = vector.load %arg25[%c256, %c0_44] : memref<864x384xbf16, #tpu.memory_space<vmem>>, vector<32x384xbf16>
    tpu.vector_store %arg25[%c256, %c0_44], %57 {strides = array<i32>} : memref<864x384xbf16, #tpu.memory_space<vmem>>, vector<32x384xbf16>,
    %c0_45 = arith.constant 0 : index
    %c0_46 = arith.constant 0 : index
    %59 = vector.load %arg7[%c0_45, %c0_46] : memref<32x288xbf16, #tpu.memory_space<vmem>>, vector<32x288xbf16>
    %c0_47 = arith.constant 0 : index
    %c0_48 = arith.constant 0 : index
    %60 = vector.load %arg25[%c0_47, %c0_48] : memref<864x384xbf16, #tpu.memory_space<vmem>>, vector<288x384xbf16>
    %cst_49 = arith.constant dense<0.000000e+00> : vector<32x384xf32>
    %61 = tpu.matmul %59, %60, %cst_49 {dimension_numbers = #tpu.dot_dimension_numbers<[1], [0], [0], [1], [0, 0, 1, 1], [], []>} : vector<32x288xbf16>, vector<288x384xbf16>, vector<32x384xf32> -> vector<32x384xf32>
    %c0_50 = arith.constant 0 : index
    %c0_51 = arith.constant 0 : index
    %62 = vector.load %arg8[%c0_50, %c0_51] : memref<32x1xf32, #tpu.memory_space<vmem>>, vector<32x1xf32>
    %63 = vector.broadcast %62 : vector<32x1xf32> to vector<32x384xf32>
    %64 = arith.addf %61, %63 : vector<32x384xf32>
    %65 = vector.broadcast %4 : vector<32x1xf32> to vector<32x384xf32>
    %66 = arith.addf %64, %65 : vector<32x384xf32>
    %67 = arith.negf %66 : vector<32x384xf32>
    %68 = math.exp %67 : vector<32x384xf32>
    %cst_52 = arith.constant 1.000000e+00 : f32
    %69 = vector.broadcast %cst_52 : f32 to vector<32x384xf32>
    %70 = arith.addf %69, %68 : vector<32x384xf32>
    %71 = arith.divf %69, %70 : vector<32x384xf32>
    %72 = arith.mulf %66, %71 : vector<32x384xf32>
    %73 = vector.broadcast %0 : vector<1x384xf32> to vector<32x384xf32>
    %74 = arith.mulf %72, %73 : vector<32x384xf32>
    %75 = arith.truncf %74 : vector<32x384xf32> to vector<32x384xbf16>
    %cst_53 = arith.constant 0.000000e+00 : bf16
    %76 = vector.broadcast %cst_53 : bf16 to vector<32x456xbf16>
    %c64_54 = arith.constant 64 : index
    %c0_55 = arith.constant 0 : index
    %77 = vector.load %arg21[%c64_54, %c0_55] : memref<96x456xbf16, #tpu.memory_space<vmem>>, vector<32x456xbf16>
    tpu.vector_store %arg21[%c64_54, %c0_55], %76 {strides = array<i32>} : memref<96x456xbf16, #tpu.memory_space<vmem>>, vector<32x456xbf16>,
    %c64_56 = arith.constant 64 : index
    %c25_57 = arith.constant 25 : index
    %78 = vector.load %arg21[%c64_56, %c25_57] : memref<96x456xbf16, #tpu.memory_space<vmem>>, vector<32x384xbf16>
    tpu.vector_store %arg21[%c64_56, %c25_57], %75 {strides = array<i32>} : memref<96x456xbf16, #tpu.memory_space<vmem>>, vector<32x384xbf16>,
    %c0_58 = arith.constant 0 : index
    %c0_59 = arith.constant 0 : index
    %79 = vector.load %arg17[%c0_58, %c0_59] : memref<384x176xbf16, #tpu.memory_space<vmem>>, vector<384x176xbf16>
    %cst_60 = arith.constant dense<0.000000e+00> : vector<32x176xf32>
    %80 = tpu.matmul %75, %79, %cst_60 {dimension_numbers = #tpu.dot_dimension_numbers<[1], [0], [0], [1], [0, 0, 1, 1], [], []>} : vector<32x384xbf16>, vector<384x176xbf16>, vector<32x176xf32> -> vector<32x176xf32>
    %81 = arith.truncf %80 : vector<32x176xf32> to vector<32x176xbf16>
    %c0_61 = arith.constant 0 : index
    %c0_62 = arith.constant 0 : index
    %82 = vector.load %arg22[%c0_61, %c0_62] : memref<32x176xbf16, #tpu.memory_space<vmem>>, vector<32x176xbf16>
    tpu.vector_store %arg22[%c0_61, %c0_62], %81 {strides = array<i32>} : memref<32x176xbf16, #tpu.memory_space<vmem>>, vector<32x176xbf16>,
    %c0_63 = arith.constant 0 : index
    %c0_64 = arith.constant 0 : index
    %83 = vector.load %arg22[%c0_63, %c0_64] : memref<32x176xbf16, #tpu.memory_space<vmem>>, vector<32x176xbf16>
    %84 = vector.extract_strided_slice %83 {offsets = [0, 0], sizes = [32, 128], strides = [1, 1]} : vector<32x176xbf16> to vector<32x128xbf16>
    %c0_65 = arith.constant 0 : index
    %c0_66 = arith.constant 0 : index
    %85 = vector.load %arg25[%c0_65, %c0_66] : memref<864x384xbf16, #tpu.memory_space<vmem>>, vector<32x128xbf16>
    tpu.vector_store %arg25[%c0_65, %c0_66], %84 {strides = array<i32>} : memref<864x384xbf16, #tpu.memory_space<vmem>>, vector<32x128xbf16>,
    %86 = vector.extract_strided_slice %83 {offsets = [0, 1], sizes = [32, 128], strides = [1, 1]} : vector<32x176xbf16> to vector<32x128xbf16>
    %c32_67 = arith.constant 32 : index
    %c0_68 = arith.constant 0 : index
    %87 = vector.load %arg25[%c32_67, %c0_68] : memref<864x384xbf16, #tpu.memory_space<vmem>>, vector<32x128xbf16>
    tpu.vector_store %arg25[%c32_67, %c0_68], %86 {strides = array<i32>} : memref<864x384xbf16, #tpu.memory_space<vmem>>, vector<32x128xbf16>,
    %88 = vector.extract_strided_slice %83 {offsets = [0, 2], sizes = [32, 128], strides = [1, 1]} : vector<32x176xbf16> to vector<32x128xbf16>
    %c64_69 = arith.constant 64 : index
    %c0_70 = arith.constant 0 : index
    %89 = vector.load %arg25[%c64_69, %c0_70] : memref<864x384xbf16, #tpu.memory_space<vmem>>, vector<32x128xbf16>
    tpu.vector_store %arg25[%c64_69, %c0_70], %88 {strides = array<i32>} : memref<864x384xbf16, #tpu.memory_space<vmem>>, vector<32x128xbf16>,
    %90 = vector.extract_strided_slice %83 {offsets = [0, 16], sizes = [32, 128], strides = [1, 1]} : vector<32x176xbf16> to vector<32x128xbf16>
    %c96_71 = arith.constant 96 : index
    %c0_72 = arith.constant 0 : index
    %91 = vector.load %arg25[%c96_71, %c0_72] : memref<864x384xbf16, #tpu.memory_space<vmem>>, vector<32x128xbf16>
    tpu.vector_store %arg25[%c96_71, %c0_72], %90 {strides = array<i32>} : memref<864x384xbf16, #tpu.memory_space<vmem>>, vector<32x128xbf16>,
    %92 = vector.extract_strided_slice %83 {offsets = [0, 17], sizes = [32, 128], strides = [1, 1]} : vector<32x176xbf16> to vector<32x128xbf16>
    %c128_73 = arith.constant 128 : index
    %c0_74 = arith.constant 0 : index
    %93 = vector.load %arg25[%c128_73, %c0_74] : memref<864x384xbf16, #tpu.memory_space<vmem>>, vector<32x128xbf16>
    tpu.vector_store %arg25[%c128_73, %c0_74], %92 {strides = array<i32>} : memref<864x384xbf16, #tpu.memory_space<vmem>>, vector<32x128xbf16>,
    %94 = vector.extract_strided_slice %83 {offsets = [0, 18], sizes = [32, 128], strides = [1, 1]} : vector<32x176xbf16> to vector<32x128xbf16>
    %c160_75 = arith.constant 160 : index
    %c0_76 = arith.constant 0 : index
    %95 = vector.load %arg25[%c160_75, %c0_76] : memref<864x384xbf16, #tpu.memory_space<vmem>>, vector<32x128xbf16>
    tpu.vector_store %arg25[%c160_75, %c0_76], %94 {strides = array<i32>} : memref<864x384xbf16, #tpu.memory_space<vmem>>, vector<32x128xbf16>,
    %96 = vector.extract_strided_slice %83 {offsets = [0, 32], sizes = [32, 128], strides = [1, 1]} : vector<32x176xbf16> to vector<32x128xbf16>
    %c192_77 = arith.constant 192 : index
    %c0_78 = arith.constant 0 : index
    %97 = vector.load %arg25[%c192_77, %c0_78] : memref<864x384xbf16, #tpu.memory_space<vmem>>, vector<32x128xbf16>
    tpu.vector_store %arg25[%c192_77, %c0_78], %96 {strides = array<i32>} : memref<864x384xbf16, #tpu.memory_space<vmem>>, vector<32x128xbf16>,
    %98 = vector.extract_strided_slice %83 {offsets = [0, 33], sizes = [32, 128], strides = [1, 1]} : vector<32x176xbf16> to vector<32x128xbf16>
    %c224_79 = arith.constant 224 : index
    %c0_80 = arith.constant 0 : index
    %99 = vector.load %arg25[%c224_79, %c0_80] : memref<864x384xbf16, #tpu.memory_space<vmem>>, vector<32x128xbf16>
    tpu.vector_store %arg25[%c224_79, %c0_80], %98 {strides = array<i32>} : memref<864x384xbf16, #tpu.memory_space<vmem>>, vector<32x128xbf16>,
    %100 = vector.extract_strided_slice %83 {offsets = [0, 34], sizes = [32, 128], strides = [1, 1]} : vector<32x176xbf16> to vector<32x128xbf16>
    %c256_81 = arith.constant 256 : index
    %c0_82 = arith.constant 0 : index
    %101 = vector.load %arg25[%c256_81, %c0_82] : memref<864x384xbf16, #tpu.memory_space<vmem>>, vector<32x128xbf16>
    tpu.vector_store %arg25[%c256_81, %c0_82], %100 {strides = array<i32>} : memref<864x384xbf16, #tpu.memory_space<vmem>>, vector<32x128xbf16>,
    %c0_83 = arith.constant 0 : index
    %c0_84 = arith.constant 0 : index
    %102 = vector.load %arg9[%c0_83, %c0_84] : memref<64x288xbf16, #tpu.memory_space<vmem>>, vector<64x288xbf16>
    %c0_85 = arith.constant 0 : index
    %c0_86 = arith.constant 0 : index
    %103 = vector.load %arg25[%c0_85, %c0_86] : memref<864x384xbf16, #tpu.memory_space<vmem>>, vector<288x128xbf16>
    %cst_87 = arith.constant dense<0.000000e+00> : vector<64x128xf32>
    %104 = tpu.matmul %102, %103, %cst_87 {dimension_numbers = #tpu.dot_dimension_numbers<[1], [0], [0], [1], [0, 0, 1, 1], [], []>} : vector<64x288xbf16>, vector<288x128xbf16>, vector<64x128xf32> -> vector<64x128xf32>
    %c0_88 = arith.constant 0 : index
    %c0_89 = arith.constant 0 : index
    %105 = vector.load %arg10[%c0_88, %c0_89] : memref<64x1xf32, #tpu.memory_space<vmem>>, vector<64x1xf32>
    %106 = vector.broadcast %105 : vector<64x1xf32> to vector<64x128xf32>
    %107 = arith.addf %104, %106 : vector<64x128xf32>
    %108 = vector.broadcast %5 : vector<64x1xf32> to vector<64x128xf32>
    %109 = arith.addf %107, %108 : vector<64x128xf32>
    %110 = arith.negf %109 : vector<64x128xf32>
    %111 = math.exp %110 : vector<64x128xf32>
    %cst_90 = arith.constant 1.000000e+00 : f32
    %112 = vector.broadcast %cst_90 : f32 to vector<64x128xf32>
    %113 = arith.addf %112, %111 : vector<64x128xf32>
    %114 = arith.divf %112, %113 : vector<64x128xf32>
    %115 = arith.mulf %109, %114 : vector<64x128xf32>
    %116 = vector.broadcast %1 : vector<1x128xf32> to vector<64x128xf32>
    %117 = arith.mulf %115, %116 : vector<64x128xf32>
    %118 = arith.truncf %117 : vector<64x128xf32> to vector<64x128xbf16>
    %cst_91 = arith.constant 0.000000e+00 : bf16
    %119 = vector.broadcast %cst_91 : bf16 to vector<64x176xbf16>
    %c0_92 = arith.constant 0 : index
    %c0_93 = arith.constant 0 : index
    %120 = vector.load %arg23[%c0_92, %c0_93] : memref<64x176xbf16, #tpu.memory_space<vmem>>, vector<64x176xbf16>
    tpu.vector_store %arg23[%c0_92, %c0_93], %119 {strides = array<i32>} : memref<64x176xbf16, #tpu.memory_space<vmem>>, vector<64x176xbf16>,
    %c0_94 = arith.constant 0 : index
    %c17 = arith.constant 17 : index
    %121 = vector.load %arg23[%c0_94, %c17] : memref<64x176xbf16, #tpu.memory_space<vmem>>, vector<64x128xbf16>
    tpu.vector_store %arg23[%c0_94, %c17], %118 {strides = array<i32>} : memref<64x176xbf16, #tpu.memory_space<vmem>>, vector<64x128xbf16>,
    %c0_95 = arith.constant 0 : index
    %c0_96 = arith.constant 0 : index
    %122 = vector.load %arg23[%c0_95, %c0_96] : memref<64x176xbf16, #tpu.memory_space<vmem>>, vector<64x176xbf16>
    %123 = vector.extract_strided_slice %122 {offsets = [0, 0], sizes = [64, 128], strides = [1, 1]} : vector<64x176xbf16> to vector<64x128xbf16>
    %c0_97 = arith.constant 0 : index
    %c0_98 = arith.constant 0 : index
    %124 = vector.load %arg25[%c0_97, %c0_98] : memref<864x384xbf16, #tpu.memory_space<vmem>>, vector<64x128xbf16>
    tpu.vector_store %arg25[%c0_97, %c0_98], %123 {strides = array<i32>} : memref<864x384xbf16, #tpu.memory_space<vmem>>, vector<64x128xbf16>,
    %125 = vector.extract_strided_slice %122 {offsets = [0, 1], sizes = [64, 128], strides = [1, 1]} : vector<64x176xbf16> to vector<64x128xbf16>
    %c64_99 = arith.constant 64 : index
    %c0_100 = arith.constant 0 : index
    %126 = vector.load %arg25[%c64_99, %c0_100] : memref<864x384xbf16, #tpu.memory_space<vmem>>, vector<64x128xbf16>
    tpu.vector_store %arg25[%c64_99, %c0_100], %125 {strides = array<i32>} : memref<864x384xbf16, #tpu.memory_space<vmem>>, vector<64x128xbf16>,
    %127 = vector.extract_strided_slice %122 {offsets = [0, 2], sizes = [64, 128], strides = [1, 1]} : vector<64x176xbf16> to vector<64x128xbf16>
    %c128_101 = arith.constant 128 : index
    %c0_102 = arith.constant 0 : index
    %128 = vector.load %arg25[%c128_101, %c0_102] : memref<864x384xbf16, #tpu.memory_space<vmem>>, vector<64x128xbf16>
    tpu.vector_store %arg25[%c128_101, %c0_102], %127 {strides = array<i32>} : memref<864x384xbf16, #tpu.memory_space<vmem>>, vector<64x128xbf16>,
    %129 = vector.extract_strided_slice %122 {offsets = [0, 16], sizes = [64, 128], strides = [1, 1]} : vector<64x176xbf16> to vector<64x128xbf16>
    %c192_103 = arith.constant 192 : index
    %c0_104 = arith.constant 0 : index
    %130 = vector.load %arg25[%c192_103, %c0_104] : memref<864x384xbf16, #tpu.memory_space<vmem>>, vector<64x128xbf16>
    tpu.vector_store %arg25[%c192_103, %c0_104], %129 {strides = array<i32>} : memref<864x384xbf16, #tpu.memory_space<vmem>>, vector<64x128xbf16>,
    %131 = vector.extract_strided_slice %122 {offsets = [0, 17], sizes = [64, 128], strides = [1, 1]} : vector<64x176xbf16> to vector<64x128xbf16>
    %c256_105 = arith.constant 256 : index
    %c0_106 = arith.constant 0 : index
    %132 = vector.load %arg25[%c256_105, %c0_106] : memref<864x384xbf16, #tpu.memory_space<vmem>>, vector<64x128xbf16>
    tpu.vector_store %arg25[%c256_105, %c0_106], %131 {strides = array<i32>} : memref<864x384xbf16, #tpu.memory_space<vmem>>, vector<64x128xbf16>,
    %133 = vector.extract_strided_slice %122 {offsets = [0, 18], sizes = [64, 128], strides = [1, 1]} : vector<64x176xbf16> to vector<64x128xbf16>
    %c320 = arith.constant 320 : index
    %c0_107 = arith.constant 0 : index
    %134 = vector.load %arg25[%c320, %c0_107] : memref<864x384xbf16, #tpu.memory_space<vmem>>, vector<64x128xbf16>
    tpu.vector_store %arg25[%c320, %c0_107], %133 {strides = array<i32>} : memref<864x384xbf16, #tpu.memory_space<vmem>>, vector<64x128xbf16>,
    %135 = vector.extract_strided_slice %122 {offsets = [0, 32], sizes = [64, 128], strides = [1, 1]} : vector<64x176xbf16> to vector<64x128xbf16>
    %c384 = arith.constant 384 : index
    %c0_108 = arith.constant 0 : index
    %136 = vector.load %arg25[%c384, %c0_108] : memref<864x384xbf16, #tpu.memory_space<vmem>>, vector<64x128xbf16>
    tpu.vector_store %arg25[%c384, %c0_108], %135 {strides = array<i32>} : memref<864x384xbf16, #tpu.memory_space<vmem>>, vector<64x128xbf16>,
    %137 = vector.extract_strided_slice %122 {offsets = [0, 33], sizes = [64, 128], strides = [1, 1]} : vector<64x176xbf16> to vector<64x128xbf16>
    %c448 = arith.constant 448 : index
    %c0_109 = arith.constant 0 : index
    %138 = vector.load %arg25[%c448, %c0_109] : memref<864x384xbf16, #tpu.memory_space<vmem>>, vector<64x128xbf16>
    tpu.vector_store %arg25[%c448, %c0_109], %137 {strides = array<i32>} : memref<864x384xbf16, #tpu.memory_space<vmem>>, vector<64x128xbf16>,
    %139 = vector.extract_strided_slice %122 {offsets = [0, 34], sizes = [64, 128], strides = [1, 1]} : vector<64x176xbf16> to vector<64x128xbf16>
    %c512 = arith.constant 512 : index
    %c0_110 = arith.constant 0 : index
    %140 = vector.load %arg25[%c512, %c0_110] : memref<864x384xbf16, #tpu.memory_space<vmem>>, vector<64x128xbf16>
    tpu.vector_store %arg25[%c512, %c0_110], %139 {strides = array<i32>} : memref<864x384xbf16, #tpu.memory_space<vmem>>, vector<64x128xbf16>,
    %c0_111 = arith.constant 0 : index
    %c0_112 = arith.constant 0 : index
    %141 = vector.load %arg11[%c0_111, %c0_112] : memref<64x576xbf16, #tpu.memory_space<vmem>>, vector<64x576xbf16>
    %c0_113 = arith.constant 0 : index
    %c0_114 = arith.constant 0 : index
    %142 = vector.load %arg25[%c0_113, %c0_114] : memref<864x384xbf16, #tpu.memory_space<vmem>>, vector<576x128xbf16>
    %cst_115 = arith.constant dense<0.000000e+00> : vector<64x128xf32>
    %143 = tpu.matmul %141, %142, %cst_115 {dimension_numbers = #tpu.dot_dimension_numbers<[1], [0], [0], [1], [0, 0, 1, 1], [], []>} : vector<64x576xbf16>, vector<576x128xbf16>, vector<64x128xf32> -> vector<64x128xf32>
    %c0_116 = arith.constant 0 : index
    %c0_117 = arith.constant 0 : index
    %144 = vector.load %arg12[%c0_116, %c0_117] : memref<64x1xf32, #tpu.memory_space<vmem>>, vector<64x1xf32>
    %145 = vector.broadcast %144 : vector<64x1xf32> to vector<64x128xf32>
    %146 = arith.addf %143, %145 : vector<64x128xf32>
    %147 = vector.broadcast %6 : vector<64x1xf32> to vector<64x128xf32>
    %148 = arith.addf %146, %147 : vector<64x128xf32>
    %149 = arith.negf %148 : vector<64x128xf32>
    %150 = math.exp %149 : vector<64x128xf32>
    %cst_118 = arith.constant 1.000000e+00 : f32
    %151 = vector.broadcast %cst_118 : f32 to vector<64x128xf32>
    %152 = arith.addf %151, %150 : vector<64x128xf32>
    %153 = arith.divf %151, %152 : vector<64x128xf32>
    %154 = arith.mulf %148, %153 : vector<64x128xf32>
    %155 = arith.truncf %154 : vector<64x128xf32> to vector<64x128xbf16>
    %c0_119 = arith.constant 0 : index
    %c0_120 = arith.constant 0 : index
    %156 = vector.load %arg18[%c0_119, %c0_120] : memref<128x456xbf16, #tpu.memory_space<vmem>>, vector<128x456xbf16>
    %cst_121 = arith.constant dense<0.000000e+00> : vector<64x456xf32>
    %157 = tpu.matmul %155, %156, %cst_121 {dimension_numbers = #tpu.dot_dimension_numbers<[1], [0], [0], [1], [0, 0, 1, 1], [], []>} : vector<64x128xbf16>, vector<128x456xbf16>, vector<64x456xf32> -> vector<64x456xf32>
    %158 = arith.truncf %157 : vector<64x456xf32> to vector<64x456xbf16>
    %c0_122 = arith.constant 0 : index
    %c0_123 = arith.constant 0 : index
    %159 = vector.load %arg21[%c0_122, %c0_123] : memref<96x456xbf16, #tpu.memory_space<vmem>>, vector<64x456xbf16>
    tpu.vector_store %arg21[%c0_122, %c0_123], %158 {strides = array<i32>} : memref<96x456xbf16, #tpu.memory_space<vmem>>, vector<64x456xbf16>,
    %c0_124 = arith.constant 0 : index
    %c0_125 = arith.constant 0 : index
    %160 = vector.load %arg21[%c0_124, %c0_125] : memref<96x456xbf16, #tpu.memory_space<vmem>>, vector<96x456xbf16>
    %161 = vector.extract_strided_slice %160 {offsets = [0, 0], sizes = [96, 384], strides = [1, 1]} : vector<96x456xbf16> to vector<96x384xbf16>
    %c0_126 = arith.constant 0 : index
    %c0_127 = arith.constant 0 : index
    %162 = vector.load %arg25[%c0_126, %c0_127] : memref<864x384xbf16, #tpu.memory_space<vmem>>, vector<96x384xbf16>
    tpu.vector_store %arg25[%c0_126, %c0_127], %161 {strides = array<i32>} : memref<864x384xbf16, #tpu.memory_space<vmem>>, vector<96x384xbf16>,
    %163 = vector.extract_strided_slice %160 {offsets = [0, 1], sizes = [96, 384], strides = [1, 1]} : vector<96x456xbf16> to vector<96x384xbf16>
    %c96_128 = arith.constant 96 : index
    %c0_129 = arith.constant 0 : index
    %164 = vector.load %arg25[%c96_128, %c0_129] : memref<864x384xbf16, #tpu.memory_space<vmem>>, vector<96x384xbf16>
    tpu.vector_store %arg25[%c96_128, %c0_129], %163 {strides = array<i32>} : memref<864x384xbf16, #tpu.memory_space<vmem>>, vector<96x384xbf16>,
    %165 = vector.extract_strided_slice %160 {offsets = [0, 2], sizes = [96, 384], strides = [1, 1]} : vector<96x456xbf16> to vector<96x384xbf16>
    %c192_130 = arith.constant 192 : index
    %c0_131 = arith.constant 0 : index
    %166 = vector.load %arg25[%c192_130, %c0_131] : memref<864x384xbf16, #tpu.memory_space<vmem>>, vector<96x384xbf16>
    tpu.vector_store %arg25[%c192_130, %c0_131], %165 {strides = array<i32>} : memref<864x384xbf16, #tpu.memory_space<vmem>>, vector<96x384xbf16>,
    %167 = vector.extract_strided_slice %160 {offsets = [0, 24], sizes = [96, 384], strides = [1, 1]} : vector<96x456xbf16> to vector<96x384xbf16>
    %c288 = arith.constant 288 : index
    %c0_132 = arith.constant 0 : index
    %168 = vector.load %arg25[%c288, %c0_132] : memref<864x384xbf16, #tpu.memory_space<vmem>>, vector<96x384xbf16>
    tpu.vector_store %arg25[%c288, %c0_132], %167 {strides = array<i32>} : memref<864x384xbf16, #tpu.memory_space<vmem>>, vector<96x384xbf16>,
    %169 = vector.extract_strided_slice %160 {offsets = [0, 25], sizes = [96, 384], strides = [1, 1]} : vector<96x456xbf16> to vector<96x384xbf16>
    %c384_133 = arith.constant 384 : index
    %c0_134 = arith.constant 0 : index
    %170 = vector.load %arg25[%c384_133, %c0_134] : memref<864x384xbf16, #tpu.memory_space<vmem>>, vector<96x384xbf16>
    tpu.vector_store %arg25[%c384_133, %c0_134], %169 {strides = array<i32>} : memref<864x384xbf16, #tpu.memory_space<vmem>>, vector<96x384xbf16>,
    %171 = vector.extract_strided_slice %160 {offsets = [0, 26], sizes = [96, 384], strides = [1, 1]} : vector<96x456xbf16> to vector<96x384xbf16>
    %c480 = arith.constant 480 : index
    %c0_135 = arith.constant 0 : index
    %172 = vector.load %arg25[%c480, %c0_135] : memref<864x384xbf16, #tpu.memory_space<vmem>>, vector<96x384xbf16>
    tpu.vector_store %arg25[%c480, %c0_135], %171 {strides = array<i32>} : memref<864x384xbf16, #tpu.memory_space<vmem>>, vector<96x384xbf16>,
    %173 = vector.extract_strided_slice %160 {offsets = [0, 48], sizes = [96, 384], strides = [1, 1]} : vector<96x456xbf16> to vector<96x384xbf16>
    %c576 = arith.constant 576 : index
    %c0_136 = arith.constant 0 : index
    %174 = vector.load %arg25[%c576, %c0_136] : memref<864x384xbf16, #tpu.memory_space<vmem>>, vector<96x384xbf16>
    tpu.vector_store %arg25[%c576, %c0_136], %173 {strides = array<i32>} : memref<864x384xbf16, #tpu.memory_space<vmem>>, vector<96x384xbf16>,
    %175 = vector.extract_strided_slice %160 {offsets = [0, 49], sizes = [96, 384], strides = [1, 1]} : vector<96x456xbf16> to vector<96x384xbf16>
    %c672 = arith.constant 672 : index
    %c0_137 = arith.constant 0 : index
    %176 = vector.load %arg25[%c672, %c0_137] : memref<864x384xbf16, #tpu.memory_space<vmem>>, vector<96x384xbf16>
    tpu.vector_store %arg25[%c672, %c0_137], %175 {strides = array<i32>} : memref<864x384xbf16, #tpu.memory_space<vmem>>, vector<96x384xbf16>,
    %177 = vector.extract_strided_slice %160 {offsets = [0, 50], sizes = [96, 384], strides = [1, 1]} : vector<96x456xbf16> to vector<96x384xbf16>
    %c768 = arith.constant 768 : index
    %c0_138 = arith.constant 0 : index
    %178 = vector.load %arg25[%c768, %c0_138] : memref<864x384xbf16, #tpu.memory_space<vmem>>, vector<96x384xbf16>
    tpu.vector_store %arg25[%c768, %c0_138], %177 {strides = array<i32>} : memref<864x384xbf16, #tpu.memory_space<vmem>>, vector<96x384xbf16>,
    %c0_139 = arith.constant 0 : index
    %c0_140 = arith.constant 0 : index
    %179 = vector.load %arg13[%c0_139, %c0_140] : memref<32x864xbf16, #tpu.memory_space<vmem>>, vector<32x864xbf16>
    %c0_141 = arith.constant 0 : index
    %c0_142 = arith.constant 0 : index
    %180 = vector.load %arg25[%c0_141, %c0_142] : memref<864x384xbf16, #tpu.memory_space<vmem>>, vector<864x384xbf16>
    %cst_143 = arith.constant dense<0.000000e+00> : vector<32x384xf32>
    %181 = tpu.matmul %179, %180, %cst_143 {dimension_numbers = #tpu.dot_dimension_numbers<[1], [0], [0], [1], [0, 0, 1, 1], [], []>} : vector<32x864xbf16>, vector<864x384xbf16>, vector<32x384xf32> -> vector<32x384xf32>
    %c0_144 = arith.constant 0 : index
    %c0_145 = arith.constant 0 : index
    %182 = vector.load %arg14[%c0_144, %c0_145] : memref<32x1xf32, #tpu.memory_space<vmem>>, vector<32x1xf32>
    %183 = vector.broadcast %182 : vector<32x1xf32> to vector<32x384xf32>
    %184 = arith.addf %181, %183 : vector<32x384xf32>
    %185 = vector.broadcast %7 : vector<32x1xf32> to vector<32x384xf32>
    %186 = arith.addf %184, %185 : vector<32x384xf32>
    %187 = arith.negf %186 : vector<32x384xf32>
    %188 = math.exp %187 : vector<32x384xf32>
    %cst_146 = arith.constant 1.000000e+00 : f32
    %189 = vector.broadcast %cst_146 : f32 to vector<32x384xf32>
    %190 = arith.addf %189, %188 : vector<32x384xf32>
    %191 = arith.divf %189, %190 : vector<32x384xf32>
    %192 = arith.mulf %186, %191 : vector<32x384xf32>
    %193 = vector.broadcast %0 : vector<1x384xf32> to vector<32x384xf32>
    %194 = arith.mulf %192, %193 : vector<32x384xf32>
    %195 = arith.truncf %194 : vector<32x384xf32> to vector<32x384xbf16>
    %cst_147 = arith.constant 0.000000e+00 : bf16
    %196 = vector.broadcast %cst_147 : bf16 to vector<32x456xbf16>
    %c0_148 = arith.constant 0 : index
    %c0_149 = arith.constant 0 : index
    %197 = vector.load %arg24[%c0_148, %c0_149] : memref<32x456xbf16, #tpu.memory_space<vmem>>, vector<32x456xbf16>
    tpu.vector_store %arg24[%c0_148, %c0_149], %196 {strides = array<i32>} : memref<32x456xbf16, #tpu.memory_space<vmem>>, vector<32x456xbf16>,
    %c0_150 = arith.constant 0 : index
    %c25_151 = arith.constant 25 : index
    %198 = vector.load %arg24[%c0_150, %c25_151] : memref<32x456xbf16, #tpu.memory_space<vmem>>, vector<32x384xbf16>
    tpu.vector_store %arg24[%c0_150, %c25_151], %195 {strides = array<i32>} : memref<32x456xbf16, #tpu.memory_space<vmem>>, vector<32x384xbf16>,
    %c0_152 = arith.constant 0 : index
    %c0_153 = arith.constant 0 : index
    %199 = vector.load %arg24[%c0_152, %c0_153] : memref<32x456xbf16, #tpu.memory_space<vmem>>, vector<32x456xbf16>
    %200 = vector.extract_strided_slice %199 {offsets = [0, 0], sizes = [32, 384], strides = [1, 1]} : vector<32x456xbf16> to vector<32x384xbf16>
    %c0_154 = arith.constant 0 : index
    %c0_155 = arith.constant 0 : index
    %201 = vector.load %arg25[%c0_154, %c0_155] : memref<864x384xbf16, #tpu.memory_space<vmem>>, vector<32x384xbf16>
    tpu.vector_store %arg25[%c0_154, %c0_155], %200 {strides = array<i32>} : memref<864x384xbf16, #tpu.memory_space<vmem>>, vector<32x384xbf16>,
    %202 = vector.extract_strided_slice %199 {offsets = [0, 1], sizes = [32, 384], strides = [1, 1]} : vector<32x456xbf16> to vector<32x384xbf16>
    %c32_156 = arith.constant 32 : index
    %c0_157 = arith.constant 0 : index
    %203 = vector.load %arg25[%c32_156, %c0_157] : memref<864x384xbf16, #tpu.memory_space<vmem>>, vector<32x384xbf16>
    tpu.vector_store %arg25[%c32_156, %c0_157], %202 {strides = array<i32>} : memref<864x384xbf16, #tpu.memory_space<vmem>>, vector<32x384xbf16>,
    %204 = vector.extract_strided_slice %199 {offsets = [0, 2], sizes = [32, 384], strides = [1, 1]} : vector<32x456xbf16> to vector<32x384xbf16>
    %c64_158 = arith.constant 64 : index
    %c0_159 = arith.constant 0 : index
    %205 = vector.load %arg25[%c64_158, %c0_159] : memref<864x384xbf16, #tpu.memory_space<vmem>>, vector<32x384xbf16>
    tpu.vector_store %arg25[%c64_158, %c0_159], %204 {strides = array<i32>} : memref<864x384xbf16, #tpu.memory_space<vmem>>, vector<32x384xbf16>,
    %206 = vector.extract_strided_slice %199 {offsets = [0, 24], sizes = [32, 384], strides = [1, 1]} : vector<32x456xbf16> to vector<32x384xbf16>
    %c96_160 = arith.constant 96 : index
    %c0_161 = arith.constant 0 : index
    %207 = vector.load %arg25[%c96_160, %c0_161] : memref<864x384xbf16, #tpu.memory_space<vmem>>, vector<32x384xbf16>
    tpu.vector_store %arg25[%c96_160, %c0_161], %206 {strides = array<i32>} : memref<864x384xbf16, #tpu.memory_space<vmem>>, vector<32x384xbf16>,
    %208 = vector.extract_strided_slice %199 {offsets = [0, 25], sizes = [32, 384], strides = [1, 1]} : vector<32x456xbf16> to vector<32x384xbf16>
    %c128_162 = arith.constant 128 : index
    %c0_163 = arith.constant 0 : index
    %209 = vector.load %arg25[%c128_162, %c0_163] : memref<864x384xbf16, #tpu.memory_space<vmem>>, vector<32x384xbf16>
    tpu.vector_store %arg25[%c128_162, %c0_163], %208 {strides = array<i32>} : memref<864x384xbf16, #tpu.memory_space<vmem>>, vector<32x384xbf16>,
    %210 = vector.extract_strided_slice %199 {offsets = [0, 26], sizes = [32, 384], strides = [1, 1]} : vector<32x456xbf16> to vector<32x384xbf16>
    %c160_164 = arith.constant 160 : index
    %c0_165 = arith.constant 0 : index
    %211 = vector.load %arg25[%c160_164, %c0_165] : memref<864x384xbf16, #tpu.memory_space<vmem>>, vector<32x384xbf16>
    tpu.vector_store %arg25[%c160_164, %c0_165], %210 {strides = array<i32>} : memref<864x384xbf16, #tpu.memory_space<vmem>>, vector<32x384xbf16>,
    %212 = vector.extract_strided_slice %199 {offsets = [0, 48], sizes = [32, 384], strides = [1, 1]} : vector<32x456xbf16> to vector<32x384xbf16>
    %c192_166 = arith.constant 192 : index
    %c0_167 = arith.constant 0 : index
    %213 = vector.load %arg25[%c192_166, %c0_167] : memref<864x384xbf16, #tpu.memory_space<vmem>>, vector<32x384xbf16>
    tpu.vector_store %arg25[%c192_166, %c0_167], %212 {strides = array<i32>} : memref<864x384xbf16, #tpu.memory_space<vmem>>, vector<32x384xbf16>,
    %214 = vector.extract_strided_slice %199 {offsets = [0, 49], sizes = [32, 384], strides = [1, 1]} : vector<32x456xbf16> to vector<32x384xbf16>
    %c224_168 = arith.constant 224 : index
    %c0_169 = arith.constant 0 : index
    %215 = vector.load %arg25[%c224_168, %c0_169] : memref<864x384xbf16, #tpu.memory_space<vmem>>, vector<32x384xbf16>
    tpu.vector_store %arg25[%c224_168, %c0_169], %214 {strides = array<i32>} : memref<864x384xbf16, #tpu.memory_space<vmem>>, vector<32x384xbf16>,
    %216 = vector.extract_strided_slice %199 {offsets = [0, 50], sizes = [32, 384], strides = [1, 1]} : vector<32x456xbf16> to vector<32x384xbf16>
    %c256_170 = arith.constant 256 : index
    %c0_171 = arith.constant 0 : index
    %217 = vector.load %arg25[%c256_170, %c0_171] : memref<864x384xbf16, #tpu.memory_space<vmem>>, vector<32x384xbf16>
    tpu.vector_store %arg25[%c256_170, %c0_171], %216 {strides = array<i32>} : memref<864x384xbf16, #tpu.memory_space<vmem>>, vector<32x384xbf16>,
    %c0_172 = arith.constant 0 : index
    %c0_173 = arith.constant 0 : index
    %218 = vector.load %arg15[%c0_172, %c0_173] : memref<4x288xbf16, #tpu.memory_space<vmem>>, vector<4x288xbf16>
    %c0_174 = arith.constant 0 : index
    %c0_175 = arith.constant 0 : index
    %219 = vector.load %arg25[%c0_174, %c0_175] : memref<864x384xbf16, #tpu.memory_space<vmem>>, vector<288x384xbf16>
    %cst_176 = arith.constant dense<0.000000e+00> : vector<4x384xf32>
    %220 = tpu.matmul %218, %219, %cst_176 {dimension_numbers = #tpu.dot_dimension_numbers<[1], [0], [0], [1], [0, 0, 1, 1], [], []>} : vector<4x288xbf16>, vector<288x384xbf16>, vector<4x384xf32> -> vector<4x384xf32>
    %c0_177 = arith.constant 0 : index
    %c0_178 = arith.constant 0 : index
    %221 = vector.load %arg16[%c0_177, %c0_178] : memref<4x1xf32, #tpu.memory_space<vmem>>, vector<4x1xf32>
    %222 = vector.broadcast %221 : vector<4x1xf32> to vector<4x384xf32>
    %223 = arith.addf %220, %222 : vector<4x384xf32>
    %c0_179 = arith.constant 0 : index
    %c0_180 = arith.constant 0 : index
    %c0_181 = arith.constant 0 : index
    %224 = vector.load %arg19[%c0_179, %c0_180, %c0_181] : memref<1x4x384xf32, #tpu.memory_space<vmem>>, vector<1x4x384xf32>
    %225 = vector.shape_cast %224 : vector<1x4x384xf32> to vector<4x384xf32>
    %226 = vector.shape_cast %223 : vector<4x384xf32> to vector<1x4x384xf32>
    tpu.vector_store %arg19[%c0_179, %c0_180, %c0_181], %226 {strides = array<i32>} : memref<1x4x384xf32, #tpu.memory_space<vmem>>, vector<1x4x384xf32>,
    return
  }
  func.func @transform_0(%arg0: i32) -> (i32, i32, i32) {
    %c0_i32 = arith.constant 0 : i32
    %c0_i32_0 = arith.constant 0 : i32
    %c0_i32_1 = arith.constant 0 : i32
    return %arg0, %c0_i32, %c0_i32_0 : i32, i32, i32
  }
  func.func @transform_1(%arg0: i32) -> (i32, i32, i32) {
    %c0_i32 = arith.constant 0 : i32
    %c0_i32_0 = arith.constant 0 : i32
    %c0_i32_1 = arith.constant 0 : i32
    return %arg0, %c0_i32, %c0_i32_0 : i32, i32, i32
  }
  func.func @transform_2(%arg0: i32) -> (i32, i32) {
    %c0_i32 = arith.constant 0 : i32
    %c0_i32_0 = arith.constant 0 : i32
    %c0_i32_1 = arith.constant 0 : i32
    return %c0_i32, %c0_i32_0 : i32, i32
  }
  func.func @transform_3(%arg0: i32) -> (i32, i32) {
    %c0_i32 = arith.constant 0 : i32
    %c0_i32_0 = arith.constant 0 : i32
    %c0_i32_1 = arith.constant 0 : i32
    return %c0_i32, %c0_i32_0 : i32, i32
  }
  func.func @transform_4(%arg0: i32) -> (i32, i32) {
    %c0_i32 = arith.constant 0 : i32
    %c0_i32_0 = arith.constant 0 : i32
    %c0_i32_1 = arith.constant 0 : i32
    return %c0_i32, %c0_i32_0 : i32, i32
  }
  func.func @transform_5(%arg0: i32) -> (i32, i32) {
    %c0_i32 = arith.constant 0 : i32
    %c0_i32_0 = arith.constant 0 : i32
    %c0_i32_1 = arith.constant 0 : i32
    return %c0_i32, %c0_i32_0 : i32, i32
  }
  func.func @transform_6(%arg0: i32) -> (i32, i32) {
    %c0_i32 = arith.constant 0 : i32
    %c0_i32_0 = arith.constant 0 : i32
    %c0_i32_1 = arith.constant 0 : i32
    return %c0_i32, %c0_i32_0 : i32, i32
  }
  func.func @transform_7(%arg0: i32) -> (i32, i32) {
    %c0_i32 = arith.constant 0 : i32
    %c0_i32_0 = arith.constant 0 : i32
    %c0_i32_1 = arith.constant 0 : i32
    return %c0_i32, %c0_i32_0 : i32, i32
  }
  func.func @transform_8(%arg0: i32) -> (i32, i32) {
    %c0_i32 = arith.constant 0 : i32
    %c0_i32_0 = arith.constant 0 : i32
    %c0_i32_1 = arith.constant 0 : i32
    return %c0_i32, %c0_i32_0 : i32, i32
  }
  func.func @transform_9(%arg0: i32) -> (i32, i32) {
    %c0_i32 = arith.constant 0 : i32
    %c0_i32_0 = arith.constant 0 : i32
    %c0_i32_1 = arith.constant 0 : i32
    return %c0_i32, %c0_i32_0 : i32, i32
  }
  func.func @transform_10(%arg0: i32) -> (i32, i32) {
    %c0_i32 = arith.constant 0 : i32
    %c0_i32_0 = arith.constant 0 : i32
    %c0_i32_1 = arith.constant 0 : i32
    return %c0_i32, %c0_i32_0 : i32, i32
  }
  func.func @transform_11(%arg0: i32) -> (i32, i32) {
    %c0_i32 = arith.constant 0 : i32
    %c0_i32_0 = arith.constant 0 : i32
    %c0_i32_1 = arith.constant 0 : i32
    return %c0_i32, %c0_i32_0 : i32, i32
  }
  func.func @transform_12(%arg0: i32) -> (i32, i32) {
    %c0_i32 = arith.constant 0 : i32
    %c0_i32_0 = arith.constant 0 : i32
    %c0_i32_1 = arith.constant 0 : i32
    return %c0_i32, %c0_i32_0 : i32, i32
  }
  func.func @transform_13(%arg0: i32) -> (i32, i32) {
    %c0_i32 = arith.constant 0 : i32
    %c0_i32_0 = arith.constant 0 : i32
    %c0_i32_1 = arith.constant 0 : i32
    return %c0_i32, %c0_i32_0 : i32, i32
  }
  func.func @transform_14(%arg0: i32) -> (i32, i32) {
    %c0_i32 = arith.constant 0 : i32
    %c0_i32_0 = arith.constant 0 : i32
    %c0_i32_1 = arith.constant 0 : i32
    return %c0_i32, %c0_i32_0 : i32, i32
  }
  func.func @transform_15(%arg0: i32) -> (i32, i32) {
    %c0_i32 = arith.constant 0 : i32
    %c0_i32_0 = arith.constant 0 : i32
    %c0_i32_1 = arith.constant 0 : i32
    return %c0_i32, %c0_i32_0 : i32, i32
  }
  func.func @transform_16(%arg0: i32) -> (i32, i32) {
    %c0_i32 = arith.constant 0 : i32
    %c0_i32_0 = arith.constant 0 : i32
    %c0_i32_1 = arith.constant 0 : i32
    return %c0_i32, %c0_i32_0 : i32, i32
  }
  func.func @transform_17(%arg0: i32) -> (i32, i32) {
    %c0_i32 = arith.constant 0 : i32
    %c0_i32_0 = arith.constant 0 : i32
    %c0_i32_1 = arith.constant 0 : i32
    return %c0_i32, %c0_i32_0 : i32, i32
  }
  func.func @transform_18(%arg0: i32) -> (i32, i32, i32) {
    %c0_i32 = arith.constant 0 : i32
    %c0_i32_0 = arith.constant 0 : i32
    %c0_i32_1 = arith.constant 0 : i32
    return %arg0, %c0_i32, %c0_i32_0 : i32, i32, i32
  }
}

</mosaic_0001>

<bundles_post_ra>
// kernel: conditional_unet_forward.2
= control target key start
LH: loop header
LB: loop body
LE: loop exit
PB: predicated region body
PF: predicated region fallthrough
CT: control target
= control target key end

     0   :  { %v461_v0 = vmov 0.0|0.0   ;;  %vm462_vm0 = vmmov 0   ;;  %v463_v4 = vmov 0.0   ;;  %vm41_vm1 = vcmask 261120   ;;  %s614_s1 = inlined_call_operand.vmem [shape: f32[32,128], index: 1, kind: input, shape index: {}]   ;;  %s615_s0 = inlined_call_operand.vmem [shape: f32[2,32], index: 0, kind: input, shape index: {}]   ;;  %s616_s3 = inlined_call_operand.vmem [shape: f32[128,32], index: 3, kind: input, shape index: {}]   ;;  %s617_s2 = inlined_call_operand.vmem [shape: f32[1,128], index: 2, kind: input, shape index: {}]   ;;  %s618_s6 = inlined_call_operand.vmem [shape: f32[32,192], index: 6, kind: input, shape index: {}]   ;;  %s619_s4 = inlined_call_operand.vmem [shape: f32[1,32], index: 4, kind: input, shape index: {}]   ;;  %s620_s5 = inlined_call_operand.vmem [shape: f32[2,32], index: 5, kind: input, shape index: {}]   ;;  %s621_s7 = inlined_call_operand.vmem [shape: f32[1,192], index: 7, kind: input, shape index: {}]   ;;  %s622_s8 = inlined_call_operand.vmem [shape: f32[2,192], index: 8, kind: output, shape index: {}]  }
   0x1   :  { %411 = vmatprep.subr.bf16.mxu0 %v461_v0  ;;  %v30_v1 = vld [vmem:[%s614_s1] sm:$0xff]  ;;  %v31_v2 = vld [vmem:[%s614_s1 + $0x8] sm:$0xff]  ;;  %v32_v3 = vld [vmem:[%s614_s1 + $0x10] sm:$0xff]  ;;  %373 = vmatprep.mubr.msk.f32.mxu0 %vm462_vm0, %v463_v4  ;;  %vm329_vm2 = vcmask 1041408   ;;  %vm330_vm3 = vcmask 519170  }
   0x2   :  { %v412_v5 = vpack.c.bf16 %v31_v2, %v30_v1  ;;  %v33_v6 = vld [vmem:[%s614_s1 + $0x18] sm:$0xff]  ;;  %417 = vmatprep.subr.bf16.mxu1 %v461_v0  ;;  %408 = vmatprep.mubr.msk.f32.mxu1 %vm462_vm0, %v463_v4  ;;  %v29_v8 = vld [vmem:[%s615_s0] sm:$0x3]  ;;  %v123_v10 = vld [vmem:[%s616_s3 + $0x8] sm:$0xff]  ;;  %v234_v1 = vlaneseq }
   0x3   :  { %v415_v7 = vpack.c.bf16 %v33_v6, %v32_v3  ;;  %v122_v9 = vld [vmem:[%s616_s3] sm:$0xff]  ;;  %v124_v12 = vld [vmem:[%s616_s3 + $0x10] sm:$0xff]  ;;  %v125_v13 = vld [vmem:[%s616_s3 + $0x18] sm:$0xff]  ;;  %v464_v6 = vmov 1983009808  }
   0x4   :  { %413 = vmatpush3.bf16.msra.mxu0 %v412_v5  ;;  %v418_v11 = vpack.c.bf16 %v123_v10, %v122_v9  ;;  %v421_v14 = vpack.c.bf16 %v125_v13, %v124_v12  ;;  %v126_v15 = vld [vmem:[%s616_s3 + $0x20] sm:$0xff]  ;;  %v127_v16 = vld [vmem:[%s616_s3 + $0x28] sm:$0xff]  ;;  %v128_v18 = vld [vmem:[%s616_s3 + $0x30] sm:$0xff]  ;;  %v235_v2 = vshrl.u32 %v234_v1, 7 }
   0x5   :  { %414 = vmatprep.subr.bf16.mxu0 %v461_v0  ;;  %v424_v17 = vpack.c.bf16 %v127_v16, %v126_v15  ;;  %v129_v19 = vld [vmem:[%s616_s3 + $0x38] sm:$0xff]  ;;  %v130_v21 = vld [vmem:[%s616_s3 + $0x40] sm:$0xff]  ;;  %v131_v22 = vld [vmem:[%s616_s3 + $0x48] sm:$0xff] }
   0x6   :  { %419 = vmatpush3.bf16.msra.mxu1 %v418_v11  ;;  %v427_v20 = vpack.c.bf16 %v129_v19, %v128_v18  ;;  %v430_v23 = vpack.c.bf16 %v131_v22, %v130_v21  ;;  %v132_v24 = vld [vmem:[%s616_s3 + $0x50] sm:$0xff]  ;;  %v133_v25 = vld [vmem:[%s616_s3 + $0x58] sm:$0xff]  ;;  %v134_v27 = vld [vmem:[%s616_s3 + $0x60] sm:$0xff]  ;;  %v236_v3 = vsub.s32 0, %v235_v2  ;;  %v240_v5 = vsub.s32 1, %v235_v2 }
   0x7   :  { %420 = vmatprep.subr.bf16.mxu1 %v461_v0  ;;  %v433_v26 = vpack.c.bf16 %v133_v25, %v132_v24  ;;  %v135_v28 = vld [vmem:[%s616_s3 + $0x68] sm:$0xff]  ;;  %v136_v30 = vld [vmem:[%s616_s3 + $0x70] sm:$0xff]  ;;  %v137_v31 = vld [vmem:[%s616_s3 + $0x78] sm:$0xff] }
   0x8   :  { %416 = vmatpush3.bf16.msra.mxu0 %v415_v7  ;;  %v436_v29 = vpack.c.bf16 %v135_v28, %v134_v27  ;;  %v439_v32 = vpack.c.bf16 %v137_v31, %v136_v30  ;;  %v337_v33 = vld [vmem:[%s617_s2] ss:$0 sm:$0xff]  ;;  %v225_v42 = vld [vmem:[%s618_s6 + $0x8] sm:$0xff]  ;;  %v227_v43 = vld [vmem:[%s618_s6 + $0x18] sm:$0xff]  ;;  %v322_v7 = vunpack.c.l.s4 %v464_v6 }
   0x9   :  { %v441_v44 = vpack.c.bf16 %v227_v43, %v225_v42  ;;  %v224_v45 = vld [vmem:[%s618_s6] sm:$0xff]  ;;  %v226_v46 = vld [vmem:[%s618_s6 + $0x10] sm:$0xff]  ;;  %v229_v48 = vld [vmem:[%s618_s6 + $0x28] sm:$0xff] }
   0xa   :  { %422 = vmatpush3.bf16.msra.mxu1 %v421_v14  ;;  %v443_v47 = vpack.c.bf16 %v226_v46, %v224_v45  ;;  %v231_v49 = vld [vmem:[%s618_s6 + $0x38] sm:$0xff]  ;;  %v228_v51 = vld [vmem:[%s618_s6 + $0x20] sm:$0xff]  ;;  %v230_v52 = vld [vmem:[%s618_s6 + $0x30] sm:$0xff]  ;;  %v323_v10 = vunpack.c.0.s8 %v322_v7 }
   0xb   :  { %374 = vmatmul.mubr.msk.f32.vlgmr.msra.gmra.mrb[0].mxu0 %vm41_vm1, %v29_v8  ;;  %423 = vmatprep.subr.bf16.mxu1 %v461_v0  ;;  %v445_v50 = vpack.c.bf16 %v231_v49, %v229_v48  ;;  %v447_v53 = vpack.c.bf16 %v230_v52, %v228_v51  ;;  %v340_v54 = vld [vmem:[%s619_s4] ss:$0 sm:$0xff]  ;;  %vm331_vm4 = vmor %vm330_vm3, %vm329_vm2 }
   0xc   :  { %311 = vmatprep.mubr.f32.mxu0 %v463_v4  ;;  %442 = vmatprep.subr.bf16.mxu0 %v441_v44  ;;  %v215_v56 = vld [vmem:[%s620_s5] sm:$0x3]  ;;  %v326_v15 = vsub.s32 %v323_v10, %v235_v2 }
   0xd   :  { %444 = vmatpush1.bf16.msra.mxu0 %v443_v47  ;;  %v232_v4 = vld [vmem:[%s621_s7] sm:$0x3] }
   0xe   :  { %425 = vmatpush3.bf16.msra.mxu1 %v424_v17  ;;  %446 = vmatprep.subr.bf16.mxu0 %v445_v50  ;;  %v237_v8 = vrot.slane %v232_v4, %v236_v3  ;;  %v241_v9 = vrot.slane %v232_v4, %v240_v5 }
   0xf   :  { %426 = vmatprep.subr.bf16.mxu1 %v461_v0 }
  0x11   :  { %448 = vmatpush1.bf16.msra.mxu0 %v447_v53 }
  0x12   :  { %428 = vmatpush3.bf16.msra.mxu1 %v427_v20 }
  0x13   :  { %429 = vmatprep.subr.bf16.mxu1 %v461_v0 }
  0x16   :  { %431 = vmatpush3.bf16.msra.mxu1 %v430_v23 }
  0x17   :  { %432 = vmatprep.subr.bf16.mxu1 %v461_v0 }
  0x1a   :  { %434 = vmatpush3.bf16.msra.mxu1 %v433_v26 }
  0x1b   :  { %435 = vmatprep.subr.bf16.mxu1 %v461_v0 }
  0x1e   :  { %437 = vmatpush3.bf16.msra.mxu1 %v436_v29 }
  0x1f   :  { %438 = vmatprep.subr.bf16.mxu1 %v461_v0 }
  0x22   :  { %440 = vmatpush3.bf16.msra.mxu1 %v439_v32 }
  0xde   :  { %v111_v34 = vpop.f32.mrb[0].mxu0 }
  0xdf   :  { %v112_v35 = vadd.f32 %v337_v33, %v111_v34  ;;  %v375_v36 = vpop.f32.mrb[1].mxu0 }
  0xe1   :  { %v339_v37 = vmul.f32 -1.442695, %v112_v35 }
  0xe3   :  { %453 = vpow2.f32 %v339_v37 }
  0xed   :  { %v454_v38 = vpop.eup %453 }
  0xee   :  { %v118_v39 = vadd.f32 1.0, %v454_v38 }
  0xf0   :  { %455 = vrcp.f32 %v118_v39 }
  0xfa   :  { %v456_v40 = vpop.eup %455 }
  0xfb   :  { %v121_v41 = vmul.f32 %v456_v40, %v112_v35 }
  0xfd   :  { %409 = vmatmul.mubr.f32.vlgmr.msra.gmra.mrb[0].mxu1 %v121_v41 }
 0x1d0   :  { %v211_v55 = vpop.f32.mrb[0].mxu1 }
 0x1d1   :  { %v212_v57 = vadd.f32 %v340_v54, %v211_v55  ;;  %v410_v58 = vpop.f32.mrb[1].mxu1 }
 0x1d3   :  { %v216_v59 = vadd.f32 %v215_v56, %v212_v57 }
 0x1d5   :  { %v341_v60 = vmul.f32 -1.442695, %v216_v59 }
 0x1d7   :  { %457 = vpow2.f32 %v341_v60 }
 0x1e1   :  { %v458_v61 = vpop.eup %457 }
 0x1e2   :  { %v220_v62 = vadd.f32 1.0, %v458_v61 }
 0x1e4   :  { %459 = vrcp.f32 %v220_v62 }
 0x1ee   :  { %v460_v63 = vpop.eup %459 }
 0x1ef   :  { %v223_v0 = vmul.f32 %v460_v63, %v216_v59 }
 0x1f1   :  { %342 = vmatmul.mubr.msk.f32.vlgmr.msra.gmra.mrb[2].mxu0 %vm41_vm1, %v223_v0 }
 0x2c4   :  { %v313_v11 = vpop.f32.mrb[2].mxu0 }
 0x2c5   :  { %v314_v12 = vadd.f32 %v313_v11, %v237_v8  ;;  %v315_v13 = vpop.f32.mrb[3].mxu0 }
 0x2c6   :  { %v316_v14 = vadd.f32 %v315_v13, %v241_v9 }
 0x2c8   :  { %v320_v16 = vcombine.low %v314_v12, %v316_v14 }
 0x2ca   :  { %v327_v17 = vrot.slane %v320_v16, %v326_v15 }
 0x2cc   :  { %332 = vst.msk [vmem:[%s622_s8] sm:$0xf] %vm331_vm4, %v327_v17 }

// kernel: conditional_unet_forward.3
= control target key start
LH: loop header
LB: loop body
LE: loop exit
PB: predicated region body
PF: predicated region fallthrough
CT: control target
= control target key end

     0   :  { %s7481_s27 = smov 0   ;;  %s10431_s0 = inlined_call_operand.vmem [shape: bf16[2,16,456], index: 0, kind: input, shape index: {}]   ;;  %s10432_s1 = inlined_call_operand.vmem [shape: f32[2,192,1], index: 1, kind: input, shape index: {}]   ;;  %s10433_s2 = inlined_call_operand.vmem [shape: f32[1,384], index: 2, kind: input, shape index: {}]   ;;  %s10434_s3 = inlined_call_operand.vmem [shape: f32[1,128], index: 3, kind: input, shape index: {}]   ;;  %s10435_s4 = inlined_call_operand.vmem [shape: bf16[32,144], index: 4, kind: input, shape index: {}]   ;;  %s10436_s5 = inlined_call_operand.vmem [shape: f32[32,1], index: 5, kind: input, shape index: {}]   ;;  %s10437_s6 = inlined_call_operand.vmem [shape: bf16[32,288], index: 6, kind: input, shape index: {}]   ;;  %s10438_s7 = inlined_call_operand.vmem [shape: f32[32,1], index: 7, kind: input, shape index: {}]   ;;  %s10439_s8 = inlined_call_operand.vmem [shape: bf16[64,288], index: 8, kind: input, shape index: {}]   ;;  %s10440_s9 = inlined_call_operand.vmem [shape: f32[64,1], index: 9, kind: input, shape index: {}]   ;;  %s10441_s10 = inlined_call_operand.vmem [shape: bf16[64,576], index: 10, kind: input, shape index: {}]   ;;  %s10442_s11 = inlined_call_operand.vmem [shape: f32[64,1], index: 11, kind: input, shape index: {}]   ;;  %s10443_s12 = inlined_call_operand.vmem [shape: bf16[32,864], index: 12, kind: input, shape index: {}]   ;;  %s10444_s13 = inlined_call_operand.vmem [shape: f32[32,1], index: 13, kind: input, shape index: {}]   ;;  %s10445_s14 = inlined_call_operand.vmem [shape: bf16[4,288], index: 14, kind: input, shape index: {}]   ;;  %s10446_s15 = inlined_call_operand.vmem [shape: f32[4,1], index: 15, kind: input, shape index: {}]   ;;  %s10447_s16 = inlined_call_operand.vmem [shape: bf16[384,176], index: 16, kind: input, shape index: {}]   ;;  %s10448_s17 = inlined_call_operand.vmem [shape: bf16[128,456], index: 17, kind: input, shape index: {}]   ;;  %s10449_s18 = inlined_call_operand.vmem [shape: f32[2,4,384], index: 18, kind: output, shape index: {}]  }
   0x1   :  { %10528 = sst [smem:[#allocation72_spill]] %s10431_s0 }
   0x2   :  { %10529 = sst [smem:[#allocation73_spill]] %s10432_s1 }
   0x3   :  { %10530 = sst [smem:[#allocation74_spill]] %s10433_s2 }
   0x4   :  { %10531 = sst [smem:[#allocation75_spill]] %s10434_s3 }
   0x5   :  { %10532 = sst [smem:[#allocation76_spill]] %s10435_s4 }
   0x6   :  { %10533 = sst [smem:[#allocation77_spill]] %s10436_s5 }
   0x7   :  { %10534 = sst [smem:[#allocation78_spill]] %s10437_s6 }
   0x8   :  { %10535 = sst [smem:[#allocation79_spill]] %s10438_s7 }
   0x9   :  { %10536 = sst [smem:[#allocation80_spill]] %s10439_s8 }
   0xa LB: > { %s6330_s28 = sadd.s32 4294967295, %s7364_s27   ;;  %p6334_p0 = scmp.ge.s32.totalorder %s7364_s27, 1  ;;  %s7364_s27 = sphi %s7481_s27, %s28_s27  }
   0xb   : > { %p522_p1 = scmp.lt.s32.totalorder %s7364_s27, 3 }
   0xd   : > { %p523_p2 = pnand %p6334_p0, %p522_p1 }
   0xf   : > { %526 = sbr.rel (%p523_p2) target bundleno = 3855 (0xf0f), region = 92 }
  0x16   : > { %p7489_p3 = scmp.lt.s32.totalorder %s6330_s28, 1  ;;  %v7366_v0 = vmov 0   ;;  %s10538_s1 = sld [smem:[#allocation72_spill]]  ;;  %vm866_vm0 = vcmask 130048   ;;  %vm657_vm1 = vcmask 1039360   ;;  %vm675_vm2 = vcmask 1031168  }
  0x17   : > { %926 = vmatprep.subr.bf16.mxu1 %v7366_v0  ;;  %1009 = vst [vmem:[#allocation2] sm:$0xff] %v7366_v0  ;;  %1014 = vst [vmem:[#allocation2 + $0x20] sm:$0xff] %v7366_v0  ;;  %6981 = vset.pattern.permute.xlu1 %v7366_v0  ;;  %s10466_s21 = smov 127   ;;  %s10460_s22 = smov 126   ;;  %vm693_vm3 = vcmask 850944   ;;  %vm711_vm4 = vcmask 842752  }
  0x18   : > { %1814 = vst [vmem:[#allocation3 + $0x80] sm:$0xff] %v7366_v0  ;;  %1818 = vst [vmem:[#allocation3 + $0xa0] sm:$0xff] %v7366_v0  ;;  %s10787_s28 = smov (!%p7489_p3, %s6330_s28), 1  ;;  %6980 = vset.pattern.permute.xlu0 %v7366_v0  ;;  %s10464_s2 = smov 104   ;;  %vm729_vm5 = vcmask 834560   ;;  %vm10483_vm6 = vcmask 654336  }
  0x19   : > { %2797 = vst [vmem:[#allocation5] sm:$0xff] %v7366_v0  ;;  %2799 = vst [vmem:[#allocation5 + $0x10] sm:$0xff] %v7366_v0  ;;  %s6544_s30 = sshll.u32 %s10787_s28, 5  ;;  %s10456_s23 = smov 103   ;;  %vm10479_vm7 = vcmask 646144   ;;  %vm10478_vm8 = vcmask 637952  }
  0x1a   : > { %2801 = vst [vmem:[#allocation5 + $0x20] sm:$0xff] %v7366_v0  ;;  %2803 = vst [vmem:[#allocation5 + $0x30] sm:$0xff] %v7366_v0  ;;  %s10454_s24 = smov 102   ;;  %s10452_s25 = smov 80   ;;  %vm1012_vm9 = vcmask 588800   ;;  %vm1036_vm10 = vcmask 203776  }
  0x1b   : > { %5672 = vst [vmem:[#allocation6] sm:$0xff] %v7366_v0  ;;  %5676 = vst [vmem:[#allocation6 + $0x20] sm:$0xff] %v7366_v0  ;;  %s10450_s26 = smov 79   ;;  %s10539_s4 = sld [smem:[#allocation76_spill]]  ;;  %vm1049_vm11 = vcmask 1047752   ;;  %vm10482_vm12 = vcmask 261120  }
  0x1c   : > { %s585_s20 = scalar_lea.vmem %s10538_s1, %s6544_s30  ;;  %s10462_s0 = smov 78   ;;  %1013 = vst.msk [vmem:[#allocation2 + $0x18] sm:$0xff] %vm1012_vm9, %v7366_v0  ;;  %1017 = vst.msk [vmem:[#allocation2 + $0x38] sm:$0xff] %vm1012_vm9, %v7366_v0  ;;  %vm2259_vm13 = vcmask 392192   ;;  %vm2324_vm14 = vcmask 908288   ;;  %vm2339_vm15 = vcmask 900096  }
  0x1d   : > { %v6982_v1 = vld [vmem:[%s585_s20 + $0x4] ss:$16 sps:$4 sm:$0xff]   ;;  %v6984_v2 = vld [vmem:[%s585_s20] ss:$16 sps:$4 sm:$0xff]   ;;  %v6985_v3 = vld [vmem:[%s585_s20 + $0x8] ss:$16 sps:$4 sm:$0xff]  }
  0x1e   : > { %651 = vrot.lane.b32.xlu0 %v6982_v1, %s10466_s21  ;;  %v6987_v4 = vld [vmem:[%s585_s20 + $0xc] ss:$16 sps:$4 sm:$0xff]   ;;  %873 = vmatprep.subr.bf16.mxu0 %v6982_v1  ;;  %s10540_s5 = sld [smem:[#allocation77_spill]]  ;;  %1817 = vst.msk [vmem:[#allocation3 + $0x98] sm:$0xff] %vm1012_vm9, %v7366_v0  ;;  %1821 = vst.msk [vmem:[#allocation3 + $0xb8] sm:$0xff] %vm1012_vm9, %v7366_v0  ;;  %s10547_s19 = smov 80  }
  0x1f   : > { %649 = vrot.lane.b32.xlu1 %v6984_v2, %s10466_s21  ;;  %874 = vmatpush1.bf16.msra.mxu0 %v6984_v2  ;;  %5675 = vst.msk [vmem:[#allocation6 + $0x18] sm:$0xff] %vm1012_vm9, %v7366_v0  ;;  %5679 = vst.msk [vmem:[#allocation6 + $0x38] sm:$0xff] %vm1012_vm9, %v7366_v0  ;;  %s10548_s1 = smov 79   ;;  %s10549_s6 = sld [smem:[#allocation78_spill]] }
  0x20   : > { %927 = vmatpush1.bf16.msra.mxu1 %v6985_v3  ;;  %s6950_s30 = smul.u32 192, %s10787_s28  ;;  %s10550_s7 = sld [smem:[#allocation79_spill]] }
  0x21   : > { %928 = vmatprep.subr.bf16.mxu1 %v7366_v0  ;;  %v6990_v5 = vld [vmem:[%s10539_s4 + $0x4] ss:$8 sps:$4 sm:$0xff]   ;;  %s10552_s20 = smov 127   ;;  %s10474_s29 = smov 96  }
  0x22   : > { %653 = vrot.lane.b32.xlu0 %v6985_v3, %s10466_s21  ;;  %6347 = vmatprep.mubr.msk.bf16.mxu0 %vm866_vm0, %v6990_v5  ;;  %s10554_s8 = sld [smem:[#allocation80_spill]]  ;;  %s10555_s3 = sld [smem:[#allocation75_spill]] }
  0x23   : > { %655 = vrot.lane.b32.xlu1 %v6987_v4, %s10466_s21  ;;  %6349 = vmatprep.mubr.msk.bf16.mxu1 %vm866_vm0, %v6990_v5  ;;  %v6993_v5 = vld [vmem:[%s10539_s4 + $0x10] ss:$8 sps:$4 sm:$0xff]  }
  0x24   : > { %v824_v6 = vld [vmem:[%s10540_s5] sm:$0xff]  ;;  %v825_v7 = vld [vmem:[%s10540_s5 + $0x8] sm:$0xff]  ;;  %v827_v8 = vld [vmem:[%s10540_s5 + $0x18] sm:$0xff] }
  0x25   : > { %v826_v9 = vld [vmem:[%s10540_s5 + $0x10] sm:$0xff]  ;;  %s7382_s5 = smov 17  }
  0x26   : > { %669 = vrot.lane.b32.xlu0 %v6982_v1, %s10460_s22 }
  0x27   : > { %671 = vrot.lane.b32.xlu1 %v6985_v3, %s10460_s22 }
  0x2a   : > { %667 = vrot.lane.b32.xlu0 %v6984_v2, %s10460_s22 }
  0x2b   : > { %673 = vrot.lane.b32.xlu1 %v6987_v4, %s10460_s22 }
  0x2e   : > { %687 = vrot.lane.b32.xlu0 %v6982_v1, %s10464_s2 }
  0x2f   : > { %689 = vrot.lane.b32.xlu1 %v6985_v3, %s10464_s2 }
  0x32   : > { %685 = vrot.lane.b32.xlu0 %v6984_v2, %s10464_s2 }
  0x33   : > { %691 = vrot.lane.b32.xlu1 %v6987_v4, %s10464_s2 }
  0x36   : > { %705 = vrot.lane.b32.xlu0 %v6982_v1, %s10456_s23 }
  0x37   : > { %707 = vrot.lane.b32.xlu1 %v6985_v3, %s10456_s23 }
  0x3a   : > { %703 = vrot.lane.b32.xlu0 %v6984_v2, %s10456_s23 }
  0x3b   : > { %709 = vrot.lane.b32.xlu1 %v6987_v4, %s10456_s23 }
  0x3e   : > { %723 = vrot.lane.b32.xlu0 %v6982_v1, %s10454_s24 }
  0x3f   : > { %725 = vrot.lane.b32.xlu1 %v6985_v3, %s10454_s24 }
  0x42   : > { %721 = vrot.lane.b32.xlu0 %v6984_v2, %s10454_s24 }
  0x43   : > { %727 = vrot.lane.b32.xlu1 %v6987_v4, %s10454_s24  ;;  %s10542_s24 = sld [smem:[#allocation74_spill]] }
  0x46   : > { %741 = vrot.lane.b32.xlu0 %v6982_v1, %s10452_s25 }
  0x47   : > { %743 = vrot.lane.b32.xlu1 %v6985_v3, %s10452_s25 }
  0x4a   : > { %739 = vrot.lane.b32.xlu0 %v6984_v2, %s10452_s25 }
  0x4b   : > { %745 = vrot.lane.b32.xlu1 %v6987_v4, %s10452_s25  ;;  %s10458_s25 = smov 25  }
  0x4e   : > { %759 = vrot.lane.b32.xlu0 %v6982_v1, %s10450_s26 }
  0x4f   : > { %761 = vrot.lane.b32.xlu1 %v6985_v3, %s10450_s26 }
  0x52   : > { %757 = vrot.lane.b32.xlu0 %v6984_v2, %s10450_s26 }
  0x53   : > { %763 = vrot.lane.b32.xlu1 %v6987_v4, %s10450_s26  ;;  %s10546_s26 = smov 102  }
  0x56   : > { %777 = vrot.lane.b32.xlu0 %v6982_v1, %s10462_s0 }
  0x57   : > { %779 = vrot.lane.b32.xlu1 %v6985_v3, %s10462_s0 }
  0x5a   : > { %775 = vrot.lane.b32.xlu0 %v6984_v2, %s10462_s0  ;;  %v6988_v2 = vld [vmem:[%s10539_s4] ss:$8 sps:$4 sm:$0xff]  }
  0x5b   : > { %781 = vrot.lane.b32.xlu1 %v6987_v4, %s10462_s0  ;;  %v6991_v4 = vld [vmem:[%s10539_s4 + $0x14] ss:$8 sps:$4 sm:$0xff]   ;;  %s10558_s4 = smov 111  }
  0x5e   : > { %830 = vperm.xlu0 %6980, %v824_v6   ;;  %v976_v6 = vlaneseq }
  0x5f   : > { %835 = vperm.xlu1 %6981, %v825_v7  }
  0x60   : > { %v7618_v7 = vshrl.u32 %v976_v6, 7 }
  0x62   : > { %845 = vperm.xlu0 %6980, %v827_v8   ;;  %10541 = vst [vmem:[#allocation8_spill] sm:$0xff] %v7618_v7  ;;  %v978_v8 = vsub.s32 0, %v7618_v7 }
  0x63   : > { %840 = vperm.xlu1 %6981, %v826_v9   ;;  %v982_v9 = vsub.s32 1, %v7618_v7 }
  0x90   : > { %v652_v10 = vpop.permute.xlu0 %651 }
  0x91   : > { %v650_v11 = vpop.permute.xlu1 %649 }
  0x92   : > { %v658_v16 = vsel %vm657_vm1, %v650_v11, %v652_v10  ;;  %v986_v11 = vsub.s32 2, %v7618_v7 }
  0x94   : > { %v654_v12 = vpop.permute.xlu0 %653 }
  0x95   : > { %v656_v13 = vpop.permute.xlu1 %655  ;;  %v659_v14 = vsel %vm657_vm1, %v652_v10, %v654_v12  ;;  %v597_v10 = vld [vmem:[%s10542_s24] sm:$0x7]  ;;  %s10472_s24 = smov 95  }
  0x96   : > { %875 = vmatprep.subr.bf16.mxu0 %v659_v14  ;;  %v660_v15 = vsel %vm657_vm1, %v654_v12, %v656_v13  ;;  %v7626_v13 = vrot.slane %v597_v10, %v978_v8 }
  0x97   : > { %929 = vmatpush1.bf16.msra.mxu1 %v660_v15  ;;  %876 = vmatpush1.bf16.msra.mxu0 %v658_v16  ;;  %v7628_v16 = vrot.slane %v597_v10, %v982_v9 }
  0x98   : > { %v670_v17 = vpop.permute.xlu0 %669  ;;  %930 = vmatprep.subr.bf16.mxu1 %v7366_v0  ;;  %10543 = vst [vmem:[#allocation9_spill] sm:$0xff] %v7626_v13 }
  0x99   : > { %v672_v18 = vpop.permute.xlu1 %671  ;;  %10544 = vst [vmem:[#allocation10_spill] sm:$0xff] %v7628_v16 }
  0x9a   : > { %v677_v19 = vsel %vm675_vm2, %v670_v17, %v672_v18 }
  0x9b   : > { %877 = vmatprep.subr.bf16.mxu0 %v677_v19 }
  0x9c   : > { %v668_v20 = vpop.permute.xlu0 %667 }
  0x9d   : > { %v674_v21 = vpop.permute.xlu1 %673  ;;  %v676_v22 = vsel %vm675_vm2, %v668_v20, %v670_v17  ;;  %v7630_v20 = vrot.slane %v597_v10, %v986_v11 }
  0x9e   : > { %878 = vmatpush1.bf16.msra.mxu0 %v676_v22  ;;  %v678_v23 = vsel %vm675_vm2, %v672_v18, %v674_v21 }
  0x9f   : > { %931 = vmatpush1.bf16.msra.mxu1 %v678_v23  ;;  %10545 = vst [vmem:[#allocation11_spill] sm:$0xff] %v7630_v20 }
  0xa0   : > { %v688_v24 = vpop.permute.xlu0 %687  ;;  %932 = vmatprep.subr.bf16.mxu1 %v7366_v0 }
  0xa1   : > { %v690_v25 = vpop.permute.xlu1 %689 }
  0xa2   : > { %v695_v26 = vsel %vm693_vm3, %v688_v24, %v690_v25 }
  0xa3   : > { %879 = vmatprep.subr.bf16.mxu0 %v695_v26 }
  0xa4   : > { %v686_v27 = vpop.permute.xlu0 %685 }
  0xa5   : > { %v692_v28 = vpop.permute.xlu1 %691  ;;  %v694_v29 = vsel %vm693_vm3, %v686_v27, %v688_v24 }
  0xa6   : > { %880 = vmatpush1.bf16.msra.mxu0 %v694_v29  ;;  %v696_v30 = vsel %vm693_vm3, %v690_v25, %v692_v28 }
  0xa7   : > { %933 = vmatpush1.bf16.msra.mxu1 %v696_v30 }
  0xa8   : > { %v706_v31 = vpop.permute.xlu0 %705  ;;  %934 = vmatprep.subr.bf16.mxu1 %v7366_v0 }
  0xa9   : > { %v708_v32 = vpop.permute.xlu1 %707 }
  0xaa   : > { %v713_v33 = vsel %vm711_vm4, %v706_v31, %v708_v32 }
  0xab   : > { %881 = vmatprep.subr.bf16.mxu0 %v713_v33 }
  0xac   : > { %v704_v34 = vpop.permute.xlu0 %703 }
  0xad   : > { %v710_v35 = vpop.permute.xlu1 %709  ;;  %v712_v36 = vsel %vm711_vm4, %v704_v34, %v706_v31 }
  0xae   : > { %882 = vmatpush1.bf16.msra.mxu0 %v712_v36  ;;  %v714_v37 = vsel %vm711_vm4, %v708_v32, %v710_v35 }
  0xaf   : > { %935 = vmatpush1.bf16.msra.mxu1 %v714_v37 }
  0xb0   : > { %v724_v38 = vpop.permute.xlu0 %723  ;;  %936 = vmatprep.subr.bf16.mxu1 %v7366_v0 }
  0xb1   : > { %v726_v39 = vpop.permute.xlu1 %725 }
  0xb2   : > { %v731_v40 = vsel %vm729_vm5, %v724_v38, %v726_v39 }
  0xb3   : > { %883 = vmatprep.subr.bf16.mxu0 %v731_v40 }
  0xb4   : > { %v722_v41 = vpop.permute.xlu0 %721 }
  0xb5   : > { %v728_v42 = vpop.permute.xlu1 %727  ;;  %v730_v43 = vsel %vm729_vm5, %v722_v41, %v724_v38 }
  0xb6   : > { %884 = vmatpush1.bf16.msra.mxu0 %v730_v43  ;;  %v732_v44 = vsel %vm729_vm5, %v726_v39, %v728_v42 }
  0xb7   : > { %937 = vmatpush1.bf16.msra.mxu1 %v732_v44 }
  0xb8   : > { %v742_v45 = vpop.permute.xlu0 %741  ;;  %938 = vmatprep.subr.bf16.mxu1 %v7366_v0 }
  0xb9   : > { %v744_v46 = vpop.permute.xlu1 %743 }
  0xba   : > { %v749_v47 = vsel %vm10483_vm6, %v742_v45, %v744_v46 }
  0xbb   : > { %885 = vmatprep.subr.bf16.mxu0 %v749_v47 }
  0xbc   : > { %v740_v48 = vpop.permute.xlu0 %739 }
  0xbd   : > { %v746_v49 = vpop.permute.xlu1 %745  ;;  %v748_v50 = vsel %vm10483_vm6, %v740_v48, %v742_v45 }
  0xbe   : > { %886 = vmatpush1.bf16.msra.mxu0 %v748_v50  ;;  %v750_v51 = vsel %vm10483_vm6, %v744_v46, %v746_v49 }
  0xbf   : > { %939 = vmatpush1.bf16.msra.mxu1 %v750_v51 }
  0xc0   : > { %v760_v52 = vpop.permute.xlu0 %759  ;;  %940 = vmatprep.subr.bf16.mxu1 %v7366_v0 }
  0xc1   : > { %v762_v53 = vpop.permute.xlu1 %761 }
  0xc2   : > { %v767_v54 = vsel %vm10479_vm7, %v760_v52, %v762_v53 }
  0xc3   : > { %887 = vmatprep.subr.bf16.mxu0 %v767_v54 }
  0xc4   : > { %v758_v55 = vpop.permute.xlu0 %757 }
  0xc5   : > { %v764_v56 = vpop.permute.xlu1 %763  ;;  %v766_v57 = vsel %vm10479_vm7, %v758_v55, %v760_v52 }
  0xc6   : > { %888 = vmatpush1.bf16.msra.mxu0 %v766_v57  ;;  %v768_v58 = vsel %vm10479_vm7, %v762_v53, %v764_v56 }
  0xc7   : > { %941 = vmatpush1.bf16.msra.mxu1 %v768_v58 }
  0xc8   : > { %v778_v59 = vpop.permute.xlu0 %777  ;;  %942 = vmatprep.subr.bf16.mxu1 %v7366_v0 }
  0xc9   : > { %v780_v60 = vpop.permute.xlu1 %779 }
  0xca   : > { %v785_v61 = vsel %vm10478_vm8, %v778_v59, %v780_v60 }
  0xcb   : > { %889 = vmatprep.subr.bf16.mxu0 %v785_v61 }
  0xcc   : > { %v776_v62 = vpop.permute.xlu0 %775 }
  0xcd   : > { %v782_v63 = vpop.permute.xlu1 %781  ;;  %v784_v1 = vsel %vm10478_vm8, %v776_v62, %v778_v59 }
  0xce   : > { %890 = vmatpush1.bf16.msra.mxu0 %v784_v1  ;;  %v786_v3 = vsel %vm10478_vm8, %v780_v60, %v782_v63 }
  0xcf   : > { %943 = vmatpush1.bf16.msra.mxu1 %v786_v3 }
  0xd1   : > { %906 = vmatmul.mubr.bf16.vlgmr.msra.gmra.mrb[0].mxu0 %v6988_v2 }
  0xd2   : > { %959 = vmatmul.mubr.bf16.vlgmr.msra.gmra.mrb[0].mxu1 %v6988_v2  ;;  %6348 = vmatprep.mubr.msk.bf16.mxu0 %vm866_vm0, %v6991_v4 }
  0xd3   : > { %6350 = vmatprep.mubr.msk.bf16.mxu1 %vm866_vm0, %v6991_v4  ;;  %vm2354_vm0 = vcmask 785408  }
  0xd9   : > { %916 = vmatmul.mubr.bf16.gmra.mrb[4].mxu0 %v6993_v5 }
  0xda   : > { %967 = vmatmul.mubr.bf16.gmra.mrb[4].mxu1 %v6993_v5 }
  0xdd   : > { %v831_v12 = vpop.permute.xlu0 %830 }
  0xde   : > { %v836_v14 = vpop.permute.xlu1 %835 }
  0xe1   : > { %v846_v36 = vpop.permute.xlu0 %845 }
  0xe2   : > { %v841_v38 = vpop.permute.xlu1 %840 }
 0x1a4   : > { %v907_v15 = vpop.f32.mrb[0].mxu0 }
 0x1a5   : > { %v908_v0 = vadd.f32 %v907_v15, %v831_v12  ;;  %v960_v17 = vpop.f32.mrb[0].mxu1  ;;  %v909_v18 = vpop.f32.mrb[1].mxu0 }
 0x1a6   : > { %v961_v19 = vadd.f32 %v960_v17, %v831_v12  ;;  %v910_v21 = vadd.f32 %v909_v18, %v831_v12  ;;  %v962_v22 = vpop.f32.mrb[1].mxu1  ;;  %v911_v23 = vpop.f32.mrb[2].mxu0  ;;  %v6996_v17 = vld [vmem:[%s10549_s6 + $0x4] ss:$12 sps:$4 sm:$0xff]  }
 0x1a7   : > { %v991_v24 = vmul.f32 %v7626_v13, %v908_v0  ;;  %v963_v25 = vpop.f32.mrb[2].mxu1  ;;  %v912_v26 = vadd.f32 %v911_v23, %v836_v14  ;;  %v913_v27 = vpop.f32.mrb[3].mxu0  ;;  %1508 = vmatprep.mubr.bf16.mxu0 %v6996_v17  ;;  %1614 = vmatprep.mubr.bf16.mxu1 %v6996_v17  ;;  %v1416_v23 = vld [vmem:[%s10550_s7 + $0x8] sm:$0xff] }
 0x1a8   : > { %v992_v28 = vmul.f32 %v7628_v16, %v910_v21  ;;  %v964_v29 = vadd.f32 %v963_v25, %v836_v14  ;;  %v914_v30 = vadd.f32 %v913_v27, %v836_v14  ;;  %v965_v31 = vpop.f32.mrb[3].mxu1  ;;  %v993_v33 = vmul.f32 %v7630_v20, %v961_v19 }
 0x1a9   : > { %v994_v32 = vmul.f32 %v7626_v13, %v912_v26  ;;  %v1415_v31 = vld [vmem:[%s10550_s7] sm:$0xff] }
 0x1aa   : > { %v996_v34 = vmul.f32 %v7630_v20, %v964_v29  ;;  %v995_v35 = vmul.f32 %v7628_v16, %v914_v30  ;;  %v1418_v29 = vld [vmem:[%s10550_s7 + $0x18] sm:$0xff] }
 0x1ab   : > { %v1003_v37 = vpack.c.bf16 %v994_v32, %v991_v24 }
 0x1ac   : > { %v917_v39 = vpop.f32.mrb[4].mxu0  ;;  %v1005_v40 = vpack.c.bf16 %v996_v34, %v993_v33  ;;  %v1004_v41 = vpack.c.bf16 %v995_v35, %v992_v28 }
 0x1ad   : > { %v918_v42 = vadd.f32 %v917_v39, %v841_v38  ;;  %v968_v43 = vpop.f32.mrb[4].mxu1  ;;  %v919_v44 = vpop.f32.mrb[5].mxu0 }
 0x1ae   : > { %v969_v45 = vadd.f32 %v968_v43, %v841_v38  ;;  %v970_v46 = vpop.f32.mrb[5].mxu1  ;;  %1028 = vrot.lane.b32.xlu1 %v1005_v40, %s10458_s25  ;;  %v920_v47 = vadd.f32 %v919_v44, %v841_v38  ;;  %v921_v48 = vpop.f32.mrb[6].mxu0  ;;  %1026 = vrot.lane.b32.xlu0 %v1004_v41, %s10458_s25  ;;  %v1417_v38 = vld [vmem:[%s10550_s7 + $0x10] sm:$0xff] }
 0x1af   : > { %v922_v49 = vadd.f32 %v921_v48, %v846_v36  ;;  %v971_v50 = vpop.f32.mrb[6].mxu1  ;;  %v923_v51 = vpop.f32.mrb[7].mxu0  ;;  %v997_v55 = vmul.f32 %v7626_v13, %v918_v42 }
 0x1b0   : > { %v972_v52 = vadd.f32 %v971_v50, %v846_v36  ;;  %v924_v53 = vadd.f32 %v923_v51, %v846_v36  ;;  %v973_v54 = vpop.f32.mrb[7].mxu1  ;;  %v999_v57 = vmul.f32 %v7630_v20, %v969_v45  ;;  %v998_v58 = vmul.f32 %v7628_v16, %v920_v47 }
 0x1b1   : > { %v1000_v56 = vmul.f32 %v7626_v13, %v922_v49 }
 0x1b2   : > { %v1002_v59 = vmul.f32 %v7630_v20, %v972_v52  ;;  %v1001_v60 = vmul.f32 %v7628_v16, %v924_v53  ;;  %1024 = vrot.lane.b32.xlu1 %v1003_v37, %s10458_s25 }
 0x1b3   : > { %v1006_v61 = vpack.c.bf16 %v1000_v56, %v997_v55 }
 0x1b4   : > { %v1007_v62 = vpack.c.bf16 %v1001_v60, %v998_v58  ;;  %v1008_v63 = vpack.c.bf16 %v1002_v59, %v999_v57 }
 0x1b5   : > { %1030 = vrot.lane.b32.xlu0 %v1006_v61, %s10458_s25 }
 0x1b6   : > { %1032 = vrot.lane.b32.xlu1 %v1007_v62, %s10458_s25 }
 0x1b9   : > { %1034 = vrot.lane.b32.xlu0 %v1008_v63, %s10458_s25  ;;  %s10551_s25 = sld [smem:[#allocation73_spill]] }
 0x220   : > { %v1029_v1 = vpop.permute.xlu1 %1028  ;;  %v1027_v2 = vpop.permute.xlu0 %1026 }
 0x221   : > { %1054 = vst.msk [vmem:[#allocation2 + $0x18] sm:$0xff] %vm1036_vm10, %v1029_v1  ;;  %v7652_v3 = vsel %vm1036_vm10, %v1027_v2, %v1029_v1 }
 0x222   : > { %1085 = vrot.lane.b32.xlu0 %v7652_v3, %s10466_s21 }
 0x224   : > { %v1025_v4 = vpop.permute.xlu1 %1024 }
 0x225   : > { %v1037_v5 = vsel %vm1036_vm10, %v1025_v4, %v1027_v2  ;;  %1050 = vst.msk [vmem:[#allocation2] sm:$0xff] %vm1049_vm11, %v1025_v4 }
 0x226   : > { %1476 = vmatprep.subr.bf16.mxu0 %v1037_v5  ;;  %1119 = vrot.lane.b32.xlu0 %v7652_v3, %s10460_s22 }
 0x227   : > { %v1031_v6 = vpop.permute.xlu0 %1030 }
 0x228   : > { %1055 = vst.msk [vmem:[#allocation2 + $0x20] sm:$0xff] %vm1049_vm11, %v1031_v6  ;;  %v1033_v8 = vpop.permute.xlu1 %1032  ;;  %v1062_v0 = vld [vmem:[#allocation2 + $0x18] sm:$0xff] }
 0x229   : > { %v7662_v9 = vsel %vm1036_vm10, %v1031_v6, %v1033_v8 }
 0x22a   : > { %1153 = vrot.lane.b32.xlu0 %v7652_v3, %s10464_s2 }
 0x22b   : > { %v1035_v10 = vpop.permute.xlu0 %1034 }
 0x22c   : > { %v7667_v11 = vsel %vm1036_vm10, %v1033_v8, %v1035_v10  ;;  %1058 = vst.msk [vmem:[#allocation2 + $0x38] sm:$0xff] %vm1036_vm10, %v1035_v10  ;;  %v1059_v12 = vld [vmem:[#allocation2] sm:$0xff] }
 0x22d   : > { %1081 = vrot.lane.b32.xlu1 %v1059_v12, %s10466_s21  ;;  %1477 = vmatpush1.bf16.msra.mxu0 %v1059_v12 }
 0x22e   : > { %1478 = vmatprep.subr.bf16.mxu0 %v7662_v9  ;;  %1187 = vrot.lane.b32.xlu0 %v7652_v3, %s10456_s23 }
 0x22f   : > { %v1063_v14 = vld [vmem:[#allocation2 + $0x20] sm:$0xff] }
 0x231   : > { %1115 = vrot.lane.b32.xlu1 %v1059_v12, %s10460_s22  ;;  %1479 = vmatpush1.bf16.msra.mxu0 %v1063_v14 }
 0x232   : > { %1221 = vrot.lane.b32.xlu0 %v7652_v3, %s10546_s26 }
 0x233   : > { %v1066_v15 = vld [vmem:[#allocation2 + $0x38] sm:$0xff] }
 0x235   : > { %1149 = vrot.lane.b32.xlu1 %v1059_v12, %s10464_s2 }
 0x236   : > { %1089 = vrot.lane.b32.xlu0 %v1063_v14, %s10466_s21 }
 0x239   : > { %1183 = vrot.lane.b32.xlu1 %v1059_v12, %s10456_s23 }
 0x23a   : > { %1123 = vrot.lane.b32.xlu0 %v1063_v14, %s10460_s22 }
 0x23d   : > { %1217 = vrot.lane.b32.xlu1 %v1059_v12, %s10546_s26 }
 0x23e   : > { %1157 = vrot.lane.b32.xlu0 %v1063_v14, %s10464_s2 }
 0x241   : > { %1083 = vrot.lane.b32.xlu1 %v1037_v5, %s10466_s21 }
 0x242   : > { %1191 = vrot.lane.b32.xlu0 %v1063_v14, %s10456_s23 }
 0x245   : > { %1117 = vrot.lane.b32.xlu1 %v1037_v5, %s10460_s22 }
 0x246   : > { %1091 = vrot.lane.b32.xlu0 %v7662_v9, %s10466_s21 }
 0x249   : > { %1151 = vrot.lane.b32.xlu1 %v1037_v5, %s10464_s2 }
 0x24a   : > { %1225 = vrot.lane.b32.xlu0 %v1063_v14, %s10546_s26 }
 0x24d   : > { %1185 = vrot.lane.b32.xlu1 %v1037_v5, %s10456_s23 }
 0x24e   : > { %1125 = vrot.lane.b32.xlu0 %v7662_v9, %s10460_s22 }
 0x251   : > { %1219 = vrot.lane.b32.xlu1 %v1037_v5, %s10546_s26 }
 0x252   : > { %1255 = vrot.lane.b32.xlu0 %v7652_v3, %s10547_s19 }
 0x255   : > { %1093 = vrot.lane.b32.xlu1 %v7667_v11, %s10466_s21 }
 0x256   : > { %1159 = vrot.lane.b32.xlu0 %v7662_v9, %s10464_s2 }
 0x259   : > { %1253 = vrot.lane.b32.xlu1 %v1037_v5, %s10547_s19 }
 0x25a   : > { %1259 = vrot.lane.b32.xlu0 %v1063_v14, %s10547_s19 }
 0x25d   : > { %1127 = vrot.lane.b32.xlu1 %v7667_v11, %s10460_s22 }
 0x25e   : > { %1193 = vrot.lane.b32.xlu0 %v7662_v9, %s10456_s23 }
 0x261   : > { %1251 = vrot.lane.b32.xlu1 %v1059_v12, %s10547_s19 }
 0x262   : > { %1289 = vrot.lane.b32.xlu0 %v7652_v3, %s10548_s1 }
 0x265   : > { %1161 = vrot.lane.b32.xlu1 %v7667_v11, %s10464_s2 }
 0x266   : > { %1227 = vrot.lane.b32.xlu0 %v7662_v9, %s10546_s26 }
 0x269   : > { %1287 = vrot.lane.b32.xlu1 %v1037_v5, %s10548_s1 }
 0x26a   : > { %1293 = vrot.lane.b32.xlu0 %v1063_v14, %s10548_s1 }
 0x26d   : > { %1195 = vrot.lane.b32.xlu1 %v7667_v11, %s10456_s23 }
 0x26e   : > { %1261 = vrot.lane.b32.xlu0 %v7662_v9, %s10547_s19 }
 0x271   : > { %1285 = vrot.lane.b32.xlu1 %v1059_v12, %s10548_s1 }
 0x272   : > { %1197 = vrot.lane.b32.xlu0 %v1066_v15, %s10456_s23 }
 0x275   : > { %1229 = vrot.lane.b32.xlu1 %v7667_v11, %s10546_s26 }
 0x276   : > { %1295 = vrot.lane.b32.xlu0 %v7662_v9, %s10548_s1 }
 0x279   : > { %1189 = vrot.lane.b32.xlu1 %v1062_v0, %s10456_s23  ;;  %s10476_s23 = smov 112  }
 0x27a   : > { %1321 = vrot.lane.b32.xlu0 %v1037_v5, %s10462_s0 }
 0x27d   : > { %1263 = vrot.lane.b32.xlu1 %v7667_v11, %s10547_s19 }
 0x27e   : > { %1087 = vrot.lane.b32.xlu0 %v1062_v0, %s10466_s21 }
 0x281   : > { %1223 = vrot.lane.b32.xlu1 %v1062_v0, %s10546_s26 }
 0x282   : > { %1231 = vrot.lane.b32.xlu0 %v1066_v15, %s10546_s26 }
 0x285   : > { %1297 = vrot.lane.b32.xlu1 %v7667_v11, %s10548_s1 }
 0x286   : > { %1331 = vrot.lane.b32.xlu0 %v7667_v11, %s10462_s0 }
 0x289   : > { %1323 = vrot.lane.b32.xlu1 %v7652_v3, %s10462_s0 }
 0x28a   : > { %1327 = vrot.lane.b32.xlu0 %v1063_v14, %s10462_s0 }
 0x28d   : > { %1319 = vrot.lane.b32.xlu1 %v1059_v12, %s10462_s0 }
 0x28e   : > { %1121 = vrot.lane.b32.xlu0 %v1062_v0, %s10460_s22 }
 0x291   : > { %1095 = vrot.lane.b32.xlu1 %v1066_v15, %s10466_s21  ;;  %s10553_s21 = smov 126  }
 0x292   : > { %1129 = vrot.lane.b32.xlu0 %v1066_v15, %s10460_s22  ;;  %s7766_s22 = scalar_lea.vmem %s10551_s25, %s6950_s30  ;;  %s10480_s30 = smov 94  }
 0x293   : > { %v600_v26 = vld [vmem:[%s7766_s22 + $0x8] sm:$0xff]  ;;  %v602_v33 = vld [vmem:[%s7766_s22 + $0x18] sm:$0xff]  ;;  %v599_v35 = vld [vmem:[%s7766_s22] sm:$0xff]  ;;  %s10557_s25 = smov 96  }
 0x294   : > { %v7746_v18 = vpop.permute.xlu0 %1085  ;;  %v601_v43 = vld [vmem:[%s7766_s22 + $0x10] sm:$0xff] }
 0x295   : > { %1329 = vrot.lane.b32.xlu1 %v7662_v9, %s10462_s0 }
 0x296   : > { %1155 = vrot.lane.b32.xlu0 %v1062_v0, %s10464_s2 }
 0x298   : > { %v7751_v19 = vpop.permute.xlu0 %1119 }
 0x299   : > { %1257 = vrot.lane.b32.xlu1 %v1062_v0, %s10547_s19 }
 0x29a   : > { %1163 = vrot.lane.b32.xlu0 %v1066_v15, %s10464_s2  ;;  %s10470_s2 = smov 111  }
 0x29c   : > { %v7756_v21 = vpop.permute.xlu0 %1153 }
 0x29d   : > { %1265 = vrot.lane.b32.xlu1 %v1066_v15, %s10547_s19 }
 0x29e   : > { %1333 = vrot.lane.b32.xlu0 %v1066_v15, %s10462_s0 }
 0x29f   : > { %v1082_v22 = vpop.permute.xlu1 %1081 }
 0x2a0   : > { %v7768_v24 = vpop.permute.xlu0 %1187 }
 0x2a1   : > { %1291 = vrot.lane.b32.xlu1 %v1062_v0, %s10548_s1 }
 0x2a2   : > { %1426 = vperm.xlu0 %6980, %v1416_v23  }
 0x2a3   : > { %v1116_v25 = vpop.permute.xlu1 %1115 }
 0x2a4   : > { %v7772_v27 = vpop.permute.xlu0 %1221 }
 0x2a5   : > { %1299 = vrot.lane.b32.xlu1 %v1066_v15, %s10548_s1 }
 0x2a6   : > { %1687 = vperm.xlu0 %6980, %v600_v26  }
 0x2a7   : > { %v1150_v28 = vpop.permute.xlu1 %1149 }
 0x2a8   : > { %v1090_v30 = vpop.permute.xlu0 %1089 }
 0x2a9   : > { %1325 = vrot.lane.b32.xlu1 %v1062_v0, %s10462_s0  ;;  %s10468_s0 = smov 110  }
 0x2aa   : > { %1436 = vperm.xlu0 %6980, %v1418_v29  }
 0x2ab   : > { %v1184_v32 = vpop.permute.xlu1 %1183 }
 0x2ac   : > { %v1124_v34 = vpop.permute.xlu0 %1123 }
 0x2ad   : > { %1421 = vperm.xlu1 %6981, %v1415_v31  }
 0x2ae   : > { %1697 = vperm.xlu0 %6980, %v602_v33  }
 0x2af   : > { %v7784_v36 = vpop.permute.xlu1 %1217 }
 0x2b0   : > { %v1158_v37 = vpop.permute.xlu0 %1157 }
 0x2b1   : > { %1682 = vperm.xlu1 %6981, %v599_v35  }
 0x2b3   : > { %v1084_v39 = vpop.permute.xlu1 %1083 }
 0x2b4   : > { %v1098_v40 = vsel %vm657_vm1, %v1084_v39, %v7746_v18  ;;  %v1097_v41 = vsel %vm657_vm1, %v1082_v22, %v1084_v39  ;;  %v1192_v42 = vpop.permute.xlu0 %1191 }
 0x2b5   : > { %1431 = vperm.xlu1 %6981, %v1417_v38   ;;  %1480 = vmatprep.subr.bf16.mxu0 %v1098_v40 }
 0x2b6   : > { %1481 = vmatpush1.bf16.msra.mxu0 %v1097_v41 }
 0x2b7   : > { %v1118_v44 = vpop.permute.xlu1 %1117 }
 0x2b8   : > { %v1092_v45 = vpop.permute.xlu0 %1091  ;;  %v1132_v56 = vsel %vm675_vm2, %v1118_v44, %v7751_v19  ;;  %v1131_v59 = vsel %vm675_vm2, %v1116_v25, %v1118_v44 }
 0x2b9   : > { %1692 = vperm.xlu1 %6981, %v601_v43   ;;  %v1100_v55 = vsel %vm657_vm1, %v1090_v30, %v1092_v45 }
 0x2bb   : > { %v1152_v46 = vpop.permute.xlu1 %1151 }
 0x2bc   : > { %v1226_v47 = vpop.permute.xlu0 %1225  ;;  %v1166_v1 = vsel %vm693_vm3, %v1152_v46, %v7756_v21  ;;  %v1165_v5 = vsel %vm693_vm3, %v1150_v28, %v1152_v46 }
 0x2bf   : > { %v1186_v48 = vpop.permute.xlu1 %1185 }
 0x2c0   : > { %v1126_v49 = vpop.permute.xlu0 %1125  ;;  %v1200_v12 = vsel %vm711_vm4, %v1186_v48, %v7768_v24  ;;  %v1199_v0 = vsel %vm711_vm4, %v1184_v32, %v1186_v48 }
 0x2c1   : > { %v1134_v63 = vsel %vm675_vm2, %v1124_v34, %v1126_v49 }
 0x2c3   : > { %v1220_v50 = vpop.permute.xlu1 %1219 }
 0x2c4   : > { %v7793_v51 = vpop.permute.xlu0 %1255  ;;  %v1234_v26 = vsel %vm729_vm5, %v1220_v50, %v7772_v27  ;;  %v1233_v30 = vsel %vm729_vm5, %v7784_v36, %v1220_v50 }
 0x2c7   : > { %v7795_v52 = vpop.permute.xlu1 %1093 }
 0x2c8   : > { %v1101_v53 = vsel %vm657_vm1, %v1092_v45, %v7795_v52  ;;  %v1160_v54 = vpop.permute.xlu0 %1159 }
 0x2c9   : > { %1482 = vmatprep.subr.bf16.mxu0 %v1101_v53  ;;  %v1168_v10 = vsel %vm693_vm3, %v1158_v37, %v1160_v54 }
 0x2ca   : > { %1483 = vmatpush1.bf16.msra.mxu0 %v1100_v55 }
 0x2cb   : > { %1484 = vmatprep.subr.bf16.mxu0 %v1132_v56  ;;  %v1254_v57 = vpop.permute.xlu1 %1253 }
 0x2cc   : > { %v1260_v58 = vpop.permute.xlu0 %1259  ;;  %v1268_v35 = vsel %vm10483_vm6, %v1254_v57, %v7793_v51 }
 0x2ce   : > { %1485 = vmatpush1.bf16.msra.mxu0 %v1131_v59 }
 0x2cf   : > { %v7803_v60 = vpop.permute.xlu1 %1127 }
 0x2d0   : > { %v1135_v61 = vsel %vm675_vm2, %v1126_v49, %v7803_v60  ;;  %v1194_v62 = vpop.permute.xlu0 %1193 }
 0x2d1   : > { %1486 = vmatprep.subr.bf16.mxu0 %v1135_v61  ;;  %v1202_v25 = vsel %vm711_vm4, %v1192_v42, %v1194_v62  ;;  %v6999_v61 = vld [vmem:[%s10549_s6 + $0x18] ss:$12 sps:$4 sm:$0xff]  }
 0x2d2   : > { %1487 = vmatpush1.bf16.msra.mxu0 %v1134_v63 }
 0x2d3   : > { %1488 = vmatprep.subr.bf16.mxu0 %v1166_v1  ;;  %v1252_v2 = vpop.permute.xlu1 %1251 }
 0x2d4   : > { %v7810_v4 = vpop.permute.xlu0 %1289  ;;  %v1267_v36 = vsel %vm10483_vm6, %v1252_v2, %v1254_v57  ;;  %v7864_v2 = vld [vmem:[#allocation3 + $0x80] sm:$0xff] }
 0x2d5   : > { %2798 = vst.msk [vmem:[#allocation5 + $0x8] sm:$0xff] %vm2259_vm13, %v7864_v2  ;;  %2800 = vst.msk [vmem:[#allocation5 + $0x18] sm:$0xff] %vm2259_vm13, %v7864_v2 }
 0x2d6   : > { %1489 = vmatpush1.bf16.msra.mxu0 %v1165_v5  ;;  %2802 = vst.msk [vmem:[#allocation5 + $0x28] sm:$0xff] %vm2259_vm13, %v7864_v2  ;;  %2804 = vst.msk [vmem:[#allocation5 + $0x38] sm:$0xff] %vm2259_vm13, %v7864_v2 }
 0x2d7   : > { %v7813_v6 = vpop.permute.xlu1 %1161 }
 0x2d8   : > { %v1169_v8 = vsel %vm693_vm3, %v1160_v54, %v7813_v6  ;;  %v1228_v9 = vpop.permute.xlu0 %1227  ;;  %v6994_v54 = vld [vmem:[%s10549_s6] ss:$12 sps:$4 sm:$0xff]  }
 0x2d9   : > { %1490 = vmatprep.subr.bf16.mxu0 %v1169_v8  ;;  %v1236_v34 = vsel %vm729_vm5, %v1226_v47, %v1228_v9 }
 0x2da   : > { %1491 = vmatpush1.bf16.msra.mxu0 %v1168_v10 }
 0x2db   : > { %1492 = vmatprep.subr.bf16.mxu0 %v1200_v12  ;;  %v1288_v14 = vpop.permute.xlu1 %1287  ;;  %v7000_v12 = vld [vmem:[%s10549_s6 + $0x8] ss:$12 sps:$4 sm:$0xff]  }
 0x2dc   : > { %v1294_v15 = vpop.permute.xlu0 %1293 }
 0x2de   : > { %1493 = vmatpush1.bf16.msra.mxu0 %v1199_v0 }
 0x2df   : > { %v1196_v17 = vpop.permute.xlu1 %1195 }
 0x2e0   : > { %v1203_v22 = vsel %vm711_vm4, %v1194_v62, %v1196_v17  ;;  %v1262_v23 = vpop.permute.xlu0 %1261 }
 0x2e1   : > { %1494 = vmatprep.subr.bf16.mxu0 %v1203_v22  ;;  %v1270_v44 = vsel %vm10483_vm6, %v1260_v58, %v1262_v23 }
 0x2e2   : > { %1495 = vmatpush1.bf16.msra.mxu0 %v1202_v25 }
 0x2e3   : > { %1496 = vmatprep.subr.bf16.mxu0 %v1234_v26  ;;  %v1286_v28 = vpop.permute.xlu1 %1285 }
 0x2e4   : > { %v1198_v29 = vpop.permute.xlu0 %1197  ;;  %v1301_v47 = vsel %vm10479_vm7, %v1286_v28, %v1288_v14 }
 0x2e5   : > { %v1204_v40 = vsel %vm711_vm4, %v1196_v17, %v1198_v29 }
 0x2e6   : > { %1497 = vmatpush1.bf16.msra.mxu0 %v1233_v30 }
 0x2e7   : > { %v1230_v31 = vpop.permute.xlu1 %1229 }
 0x2e8   : > { %v1237_v32 = vsel %vm729_vm5, %v1228_v9, %v1230_v31  ;;  %v1296_v33 = vpop.permute.xlu0 %1295 }
 0x2e9   : > { %1498 = vmatprep.subr.bf16.mxu0 %v1237_v32 }
 0x2ea   : > { %1499 = vmatpush1.bf16.msra.mxu0 %v1236_v34  ;;  %v7007_v34 = vld [vmem:[%s10447_s16 + $0x14] ss:$8 sps:$4 sm:$0xff]  }
 0x2eb   : > { %1500 = vmatprep.subr.bf16.mxu0 %v1268_v35  ;;  %v1190_v37 = vpop.permute.xlu1 %1189  ;;  %v7005_v35 = vld [vmem:[%s10447_s16 + $0x10] ss:$8 sps:$4 sm:$0xff]  }
 0x2ec   : > { %v1201_v38 = vsel %vm711_vm4, %v7768_v24, %v1190_v37  ;;  %v1322_v39 = vpop.permute.xlu0 %1321  ;;  %v1302_v24 = vsel %vm10479_vm7, %v1288_v14, %v7810_v4  ;;  %v7010_v37 = vld [vmem:[%s10447_s16 + $0x24] ss:$8 sps:$4 sm:$0xff]  }
 0x2ed   : > { %6545 = vmatprep.subr.bf16.mxu1 %v1201_v38  ;;  %v7008_v38 = vld [vmem:[%s10447_s16 + $0x20] ss:$8 sps:$4 sm:$0xff]  }
 0x2ee   : > { %1501 = vmatpush1.bf16.msra.mxu0 %v1267_v36  ;;  %6546 = vmatpush3.bf16.msra.mxu1 %v7652_v3  ;;  %v7011_v36 = vld [vmem:[%s10447_s16 + $0x30] ss:$8 sps:$4 sm:$0xff]  }
 0x2ef   : > { %6547 = vmatprep.subr.bf16.mxu1 %v1204_v40  ;;  %v1264_v41 = vpop.permute.xlu1 %1263  ;;  %v7016_v40 = vld [vmem:[%s10447_s16 + $0x44] ss:$8 sps:$4 sm:$0xff]  }
 0x2f0   : > { %v1271_v42 = vsel %vm10483_vm6, %v1262_v23, %v1264_v41  ;;  %v1088_v43 = vpop.permute.xlu0 %1087 }
 0x2f1   : > { %1502 = vmatprep.subr.bf16.mxu0 %v1271_v42  ;;  %v1099_v48 = vsel %vm657_vm1, %v7746_v18, %v1088_v43  ;;  %v6997_v18 = vld [vmem:[%s10549_s6 + $0x1c] ss:$12 sps:$4 sm:$0xff]   ;;  %v7017_v43 = vld [vmem:[%s10447_s16 + $0x50] ss:$8 sps:$4 sm:$0xff]  }
 0x2f2   : > { %1503 = vmatpush1.bf16.msra.mxu0 %v1270_v44  ;;  %6548 = vmatpush3.bf16.msra.mxu1 %v7667_v11  ;;  %v7019_v42 = vld [vmem:[%s10447_s16 + $0x54] ss:$8 sps:$4 sm:$0xff]   ;;  %v7022_v44 = vld [vmem:[%s10447_s16 + $0x64] ss:$8 sps:$4 sm:$0xff]  }
 0x2f3   : > { %1504 = vmatprep.subr.bf16.mxu0 %v1302_v24  ;;  %v1224_v45 = vpop.permute.xlu1 %1223  ;;  %v7020_v24 = vld [vmem:[%s10447_s16 + $0x60] ss:$8 sps:$4 sm:$0xff]  }
 0x2f4   : > { %v1235_v3 = vsel %vm729_vm5, %v7772_v27, %v1224_v45  ;;  %v1232_v46 = vpop.permute.xlu0 %1231  ;;  %v1304_v27 = vsel %vm10479_vm7, %v1294_v15, %v1296_v33  ;;  %v7025_v45 = vld [vmem:[%s10447_s16 + $0x74] ss:$8 sps:$4 sm:$0xff]  }
 0x2f5   : > { %6549 = vmatprep.subr.bf16.mxu1 %v1235_v3  ;;  %v1238_v49 = vsel %vm729_vm5, %v1230_v31, %v1232_v46  ;;  %v7023_v3 = vld [vmem:[%s10447_s16 + $0x70] ss:$8 sps:$4 sm:$0xff]   ;;  %v7028_v46 = vld [vmem:[%s10447_s16 + $0x84] ss:$8 sps:$4 sm:$0xff]  }
 0x2f6   : > { %1505 = vmatpush1.bf16.msra.mxu0 %v1301_v47  ;;  %6550 = vmatpush3.bf16.msra.mxu1 %v1099_v48  ;;  %v7026_v47 = vld [vmem:[%s10447_s16 + $0x80] ss:$8 sps:$4 sm:$0xff]   ;;  %v7031_v48 = vld [vmem:[%s10447_s16 + $0x94] ss:$8 sps:$4 sm:$0xff]  }
 0x2f7   : > { %v1298_v11 = vpop.permute.xlu1 %1297  ;;  %6551 = vmatprep.subr.bf16.mxu1 %v1238_v49  ;;  %v7029_v49 = vld [vmem:[%s10447_s16 + $0x90] ss:$8 sps:$4 sm:$0xff]  }
 0x2f8   : > { %v1305_v50 = vsel %vm10479_vm7, %v1296_v33, %v1298_v11  ;;  %v7848_v53 = vpop.permute.xlu0 %1331  ;;  %v7004_v33 = vld [vmem:[%s10447_s16 + $0x4] ss:$8 sps:$4 sm:$0xff]  }
 0x2f9   : > { %1506 = vmatprep.subr.bf16.mxu0 %v1305_v50  ;;  %v7032_v50 = vld [vmem:[%s10447_s16 + $0xa0] ss:$8 sps:$4 sm:$0xff]  }
 0x2fa   : > { %1507 = vmatpush1.bf16.msra.mxu0 %v1304_v27  ;;  %v7035_v27 = vld [vmem:[%s10447_s16 + $0xb0] ss:$8 sps:$4 sm:$0xff]  }
 0x2fb   : > { %v1324_v55 = vpop.permute.xlu1 %1323 }
 0x2fc   : > { %v1336_v56 = vsel %vm10478_vm8, %v1322_v39, %v1324_v55  ;;  %v1328_v57 = vpop.permute.xlu0 %1327 }
 0x2fd   : > { %1509 = vmatmul.mubr.bf16.vlgmr.msra.gmra.mrb[8].mxu0 %v6994_v54  ;;  %1529 = vmatprep.subr.bf16.mxu0 %v1336_v56  ;;  %v7041_v56 = vld [vmem:[%s10447_s16 + $0xd0] ss:$8 sps:$4 sm:$0xff]  }
 0x2fe   : > { %1518 = vmatprep.mubr.bf16.mxu0 %v6997_v18 }
 0x2ff   : > { %v1320_v58 = vpop.permute.xlu1 %1319 }
 0x300   : > { %v1335_v59 = vsel %vm10478_vm8, %v1320_v58, %v1322_v39  ;;  %v1122_v63 = vpop.permute.xlu0 %1121  ;;  %v7013_v39 = vld [vmem:[%s10447_s16 + $0x34] ss:$8 sps:$4 sm:$0xff]   ;;  %v7044_v58 = vld [vmem:[%s10447_s16 + $0xe0] ss:$8 sps:$4 sm:$0xff]  }
 0x301   : > { %1530 = vmatpush1.bf16.msra.mxu0 %v1335_v59  ;;  %v1133_v15 = vsel %vm675_vm2, %v7751_v19, %v1122_v63  ;;  %v7049_v59 = vld [vmem:[%s10447_s16 + $0xf4] ss:$8 sps:$4 sm:$0xff]  }
 0x303   : > { %v1096_v62 = vpop.permute.xlu1 %1095 }
 0x304   : > { %v1102_v1 = vsel %vm657_vm1, %v7795_v52, %v1096_v62  ;;  %v1130_v10 = vpop.permute.xlu0 %1129  ;;  %v7052_v62 = vld [vmem:[%s10447_s16 + $0x104] ss:$8 sps:$4 sm:$0xff]  }
 0x305   : > { %1519 = vmatmul.mubr.bf16.gmra.mrb[12].mxu0 %v6999_v61  ;;  %6552 = vmatpush3.bf16.msra.mxu1 %v1102_v1  ;;  %v1136_v23 = vsel %vm675_vm2, %v7803_v60, %v1130_v10 }
 0x306   : > { %1561 = vmatprep.mubr.bf16.mxu0 %v7864_v2 }
 0x307   : > { %v1330_v5 = vpop.permute.xlu1 %1329 }
 0x308   : > { %v1339_v8 = vsel %vm10478_vm8, %v1330_v5, %v7848_v53  ;;  %v1338_v9 = vsel %vm10478_vm8, %v1328_v57, %v1330_v5  ;;  %v1156_v17 = vpop.permute.xlu0 %1155  ;;  %v7046_v57 = vld [vmem:[%s10447_s16 + $0xe4] ss:$8 sps:$4 sm:$0xff]  }
 0x309   : > { %1531 = vmatprep.subr.bf16.mxu0 %v1339_v8  ;;  %v1167_v26 = vsel %vm693_vm3, %v7756_v21, %v1156_v17 }
 0x30a   : > { %1532 = vmatpush1.bf16.msra.mxu0 %v1338_v9 }
 0x30b   : > { %v1258_v52 = vpop.permute.xlu1 %1257 }
 0x30c   : > { %v1269_v14 = vsel %vm10483_vm6, %v7793_v51, %v1258_v52  ;;  %v7001_v51 = vld [vmem:[%s10549_s6 + $0x20] ss:$12 sps:$4 sm:$0xff]   ;;  %v1164_v28 = vpop.permute.xlu0 %1163 }
 0x30d   : > { %6357 = vmatmul.mubr.msk.bf16.vlgmr.msra.gmra.mrb[8].mxu0 %vm10482_vm12, %v7000_v12  ;;  %6553 = vmatprep.subr.bf16.mxu1 %v1269_v14  ;;  %v1170_v30 = vsel %vm693_vm3, %v7813_v6, %v1164_v28  ;;  %v7002_v6 = vld [vmem:[%s10447_s16] ss:$8 sps:$4 sm:$0xff]  }
 0x30e   : > { %6554 = vmatpush3.bf16.msra.mxu1 %v1133_v15  ;;  %1571 = vmatprep.mubr.bf16.mxu0 %v7864_v2 }
 0x30f   : > { %v1266_v0 = vpop.permute.xlu1 %1265 }
 0x310   : > { %v1272_v22 = vsel %vm10483_vm6, %v1264_v41, %v1266_v0  ;;  %v1334_v31 = vpop.permute.xlu0 %1333  ;;  %v7014_v41 = vld [vmem:[%s10447_s16 + $0x40] ss:$8 sps:$4 sm:$0xff]   ;;  %vm2823_vm6 = vcmask 138240  }
 0x311   : > { %6555 = vmatprep.subr.bf16.mxu1 %v1272_v22  ;;  %v1340_v21 = vsel %vm10478_vm8, %v7848_v53, %v1334_v31  ;;  %v7037_v53 = vld [vmem:[%s10447_s16 + $0xb4] ss:$8 sps:$4 sm:$0xff]  }
 0x312   : > { %6556 = vmatpush3.bf16.msra.mxu1 %v1136_v23 }
 0x313   : > { %v1292_v19 = vpop.permute.xlu1 %1291 }
 0x314   : > { %v1303_v25 = vsel %vm10479_vm7, %v7810_v4, %v1292_v19 }
 0x315   : > { %6358 = vmatmul.mubr.msk.bf16.gmra.mrb[12].mxu0 %vm10482_vm12, %v7001_v51  ;;  %6557 = vmatprep.subr.bf16.mxu1 %v1303_v25 }
 0x316   : > { %6558 = vmatpush3.bf16.msra.mxu1 %v1167_v26 }
 0x317   : > { %v1300_v29 = vpop.permute.xlu1 %1299 }
 0x318   : > { %v1306_v60 = vsel %vm10479_vm7, %v1298_v11, %v1300_v29  ;;  %v7034_v11 = vld [vmem:[%s10447_s16 + $0xa4] ss:$8 sps:$4 sm:$0xff]   ;;  %vm2384_vm7 = vcmask 769024  }
 0x319   : > { %6559 = vmatprep.subr.bf16.mxu1 %v1306_v60 }
 0x31a   : > { %6560 = vmatpush3.bf16.msra.mxu1 %v1170_v30 }
 0x31b   : > { %v1326_v32 = vpop.permute.xlu1 %1325 }
 0x31c   : > { %v1337_v4 = vsel %vm10478_vm8, %v1324_v55, %v1326_v32  ;;  %v7043_v55 = vld [vmem:[%s10447_s16 + $0xd4] ss:$8 sps:$4 sm:$0xff]   ;;  %vm2309_vm8 = vcmask 916480  }
 0x31d   : > { %1615 = vmatmul.mubr.bf16.vlgmr.msra.gmra.mrb[8].mxu1 %v6994_v54  ;;  %6828 = vmatprep.subr.bf16.mxu1 %v1337_v4  ;;  %v7040_v54 = vld [vmem:[%s10447_s16 + $0xc4] ss:$8 sps:$4 sm:$0xff]  }
 0x31e   : > { %6829 = vmatpush3.bf16.msra.mxu1 %v1337_v4  ;;  %1622 = vmatprep.mubr.bf16.mxu1 %v6997_v18  ;;  %v7038_v18 = vld [vmem:[%s10447_s16 + $0xc0] ss:$8 sps:$4 sm:$0xff]  }
 0x31f   : > { %6830 = vmatprep.subr.bf16.mxu1 %v1340_v21 }
 0x321   : > { %v7999_v1 = vpop.permute.xlu0 %1426 }
 0x322   : > { %6831 = vmatpush3.bf16.msra.mxu1 %v1340_v21 }
 0x323   : > { %2148 = vmatprep.subr.bf16.mxu1 %v7004_v33 }
 0x325   : > { %1623 = vmatmul.mubr.bf16.gmra.mrb[12].mxu1 %v6999_v61  ;;  %v7047_v61 = vld [vmem:[%s10447_s16 + $0xf0] ss:$8 sps:$4 sm:$0xff]   ;;  %v8003_v8 = vpop.permute.xlu0 %1687 }
 0x326   : > { %6832 = vmatprep.mubr.msk.bf16.mxu1 %vm10482_vm12, %v7000_v12 }
 0x329   : > { %v8021_v26 = vpop.permute.xlu0 %1436 }
 0x32c   : > { %v7997_v63 = vpop.permute.xlu1 %1421 }
 0x32d   : > { %6833 = vmatmul.mubr.msk.bf16.vlgmr.msra.gmra.mrb[16].mxu1 %vm10482_vm12, %v7001_v51 }
 0x32e   : > { %2149 = vmatpush1.bf16.msra.mxu1 %v7002_v6 }
 0x32f   : > { %2150 = vmatprep.subr.bf16.mxu1 %v7007_v34 }
 0x330   : > { %v8001_v5 = vpop.permute.xlu1 %1682 }
 0x332   : > { %2151 = vmatpush1.bf16.msra.mxu1 %v7005_v35 }
 0x333   : > { %2152 = vmatprep.subr.bf16.mxu1 %v7010_v37 }
 0x334   : > { %v8011_v22 = vpop.permute.xlu1 %1431 }
 0x336   : > { %2153 = vmatpush1.bf16.msra.mxu1 %v7008_v38  ;;  %v8037_v38 = vpop.permute.xlu0 %1697 }
 0x337   : > { %2154 = vmatprep.subr.bf16.mxu1 %v7013_v39 }
 0x338   : > { %v8030_v21 = vpop.permute.xlu1 %1692 }
 0x33a   : > { %2155 = vmatpush1.bf16.msra.mxu1 %v7011_v36 }
 0x33b   : > { %2156 = vmatprep.subr.bf16.mxu1 %v7016_v40 }
 0x33e   : > { %2157 = vmatpush1.bf16.msra.mxu1 %v7014_v41 }
 0x33f   : > { %2158 = vmatprep.subr.bf16.mxu1 %v7019_v42 }
 0x342   : > { %2159 = vmatpush1.bf16.msra.mxu1 %v7017_v43 }
 0x343   : > { %2160 = vmatprep.subr.bf16.mxu1 %v7022_v44 }
 0x346   : > { %2161 = vmatpush1.bf16.msra.mxu1 %v7020_v24 }
 0x347   : > { %2162 = vmatprep.subr.bf16.mxu1 %v7025_v45 }
 0x34a   : > { %2163 = vmatpush1.bf16.msra.mxu1 %v7023_v3 }
 0x34b   : > { %2164 = vmatprep.subr.bf16.mxu1 %v7028_v46 }
 0x34e   : > { %2165 = vmatpush1.bf16.msra.mxu1 %v7026_v47 }
 0x34f   : > { %2166 = vmatprep.subr.bf16.mxu1 %v7031_v48 }
 0x352   : > { %2167 = vmatpush1.bf16.msra.mxu1 %v7029_v49 }
 0x353   : > { %2168 = vmatprep.subr.bf16.mxu1 %v7034_v11 }
 0x356   : > { %2169 = vmatpush1.bf16.msra.mxu1 %v7032_v50 }
 0x357   : > { %2170 = vmatprep.subr.bf16.mxu1 %v7037_v53 }
 0x35a   : > { %2171 = vmatpush1.bf16.msra.mxu1 %v7035_v27 }
 0x35b   : > { %2172 = vmatprep.subr.bf16.mxu1 %v7040_v54 }
 0x35e   : > { %2173 = vmatpush1.bf16.msra.mxu1 %v7038_v18 }
 0x35f   : > { %2174 = vmatprep.subr.bf16.mxu1 %v7043_v55 }
 0x362   : > { %2175 = vmatpush1.bf16.msra.mxu1 %v7041_v56 }
 0x363   : > { %2176 = vmatprep.subr.bf16.mxu1 %v7046_v57 }
 0x366   : > { %2177 = vmatpush1.bf16.msra.mxu1 %v7044_v58 }
 0x367   : > { %2178 = vmatprep.subr.bf16.mxu1 %v7049_v59 }
 0x36a   : > { %2179 = vmatpush1.bf16.msra.mxu1 %v7047_v61 }
 0x36b   : > { %2201 = vmatprep.subr.bf16.mxu1 %v7052_v62 }
 0x3e0   : > { %v1563_v9 = vpop.f32.mrb[8].mxu0 }
 0x3e1   : > { %v6888_v10 = vadd.f32 %v1563_v9, %v7997_v63  ;;  %v1565_v12 = vpop.f32.mrb[9].mxu0 }
 0x3e2   : > { %v6889_v52 = vadd.f32 %v1565_v12, %v7997_v63  ;;  %v1567_v14 = vpop.f32.mrb[10].mxu0 }
 0x3e3   : > { %v8008_v15 = vadd.f32 %v6888_v10, %v8001_v5  ;;  %v6890_v0 = vadd.f32 %v1567_v14, %v7999_v1  ;;  %v1569_v17 = vpop.f32.mrb[11].mxu0 }
 0x3e4   : > { %v8014_v23 = vadd.f32 %v6889_v52, %v8001_v5  ;;  %v6891_v51 = vadd.f32 %v1569_v17, %v7999_v1 }
 0x3e5   : > { %v6361_v19 = vmul.f32 -1.442695, %v8008_v15  ;;  %v8019_v25 = vadd.f32 %v6890_v0, %v8003_v8 }
 0x3e6   : > { %v6362_v28 = vmul.f32 -1.442695, %v8014_v23  ;;  %v8025_v29 = vadd.f32 %v6891_v51, %v8003_v8 }
 0x3e7   : > { %7187 = vpow2.f32 %v6361_v19  ;;  %v6364_v60 = vmul.f32 -1.442695, %v8019_v25 }
 0x3e8   : > { %7189 = vpow2.f32 %v6362_v28  ;;  %v6365_v30 = vmul.f32 -1.442695, %v8025_v29  ;;  %v1573_v31 = vpop.f32.mrb[12].mxu0 }
 0x3e9   : > { %7191 = vpow2.f32 %v6364_v60  ;;  %v6892_v32 = vadd.f32 %v1573_v31, %v8011_v22  ;;  %v1575_v4 = vpop.f32.mrb[13].mxu0 }
 0x3ea   : > { %7193 = vpow2.f32 %v6365_v30  ;;  %v6893_v33 = vadd.f32 %v1575_v4, %v8011_v22  ;;  %v1577_v6 = vpop.f32.mrb[14].mxu0 }
 0x3eb   : > { %v8034_v34 = vadd.f32 %v6892_v32, %v8030_v21  ;;  %v6894_v35 = vadd.f32 %v1577_v6, %v8021_v26  ;;  %v1579_v37 = vpop.f32.mrb[15].mxu0 }
 0x3ec   : > { %v8040_v39 = vadd.f32 %v6893_v33, %v8030_v21  ;;  %v6895_v36 = vadd.f32 %v1579_v37, %v8021_v26 }
 0x3ed   : > { %v6367_v40 = vmul.f32 -1.442695, %v8034_v34  ;;  %v8045_v41 = vadd.f32 %v6894_v35, %v8037_v38 }
 0x3ee   : > { %v6368_v42 = vmul.f32 -1.442695, %v8040_v39  ;;  %v8049_v43 = vadd.f32 %v6895_v36, %v8037_v38 }
 0x3ef   : > { %7195 = vpow2.f32 %v6367_v40  ;;  %v6370_v44 = vmul.f32 -1.442695, %v8045_v41 }
 0x3f0   : > { %7197 = vpow2.f32 %v6368_v42  ;;  %v6371_v24 = vmul.f32 -1.442695, %v8049_v43  ;;  %v6561_v45 = vpop.f32.mrb[8].mxu1 }
 0x3f1   : > { %v7188_v3 = vpop.eup %7187  ;;  %7199 = vpow2.f32 %v6370_v44  ;;  %v6562_v46 = vpop.f32.mrb[9].mxu1 }
 0x3f2   : > { %v7190_v47 = vpop.eup %7189  ;;  %v1748_v48 = vadd.f32 1.0, %v7188_v3  ;;  %7201 = vpow2.f32 %v6371_v24  ;;  %v6563_v49 = vadd.f32 %v6562_v46, %v6561_v45  ;;  %v6564_v11 = vpop.f32.mrb[10].mxu1 }
 0x3f3   : > { %v7192_v50 = vpop.eup %7191  ;;  %v1749_v53 = vadd.f32 1.0, %v7190_v47  ;;  %v6565_v27 = vpop.f32.mrb[11].mxu1 }
 0x3f4   : > { %v7194_v54 = vpop.eup %7193  ;;  %7203 = vrcp.f32 %v1748_v48  ;;  %v1751_v18 = vadd.f32 1.0, %v7192_v50  ;;  %v6566_v55 = vadd.f32 %v6565_v27, %v6564_v11  ;;  %v1617_v6 = vadd.f32 %v6563_v49, %v7997_v63 }
 0x3f5   : > { %7205 = vrcp.f32 %v1749_v53  ;;  %v1752_v56 = vadd.f32 1.0, %v7194_v54  ;;  %v7050_v53 = vld [vmem:[%s10447_s16 + $0x100] ss:$8 sps:$4 sm:$0xff]  }
 0x3f6   : > { %7207 = vrcp.f32 %v1751_v18  ;;  %v1620_v45 = vadd.f32 %v6566_v55, %v7999_v1  ;;  %v7055_v18 = vld [vmem:[%s10447_s16 + $0x114] ss:$8 sps:$4 sm:$0xff]  }
 0x3f7   : > { %7209 = vrcp.f32 %v1752_v56 }
 0x3f8   : > { %v6567_v57 = vpop.f32.mrb[12].mxu1 }
 0x3f9   : > { %v7196_v58 = vpop.eup %7195  ;;  %v6568_v59 = vpop.f32.mrb[13].mxu1 }
 0x3fa   : > { %v7198_v61 = vpop.eup %7197  ;;  %v1754_v62 = vadd.f32 1.0, %v7196_v58  ;;  %v6569_v9 = vadd.f32 %v6568_v59, %v6567_v57  ;;  %v6570_v10 = vpop.f32.mrb[14].mxu1  ;;  %v7053_v59 = vld [vmem:[%s10447_s16 + $0x110] ss:$8 sps:$4 sm:$0xff]  }
 0x3fb   : > { %v7200_v12 = vpop.eup %7199  ;;  %v1755_v52 = vadd.f32 1.0, %v7198_v61  ;;  %v6571_v14 = vpop.f32.mrb[15].mxu1 }
 0x3fc   : > { %v7202_v0 = vpop.eup %7201  ;;  %7211 = vrcp.f32 %v1754_v62  ;;  %v1757_v17 = vadd.f32 1.0, %v7200_v12  ;;  %v6572_v51 = vadd.f32 %v6571_v14, %v6570_v10  ;;  %v1625_v31 = vadd.f32 %v6569_v9, %v8011_v22  ;;  %v7056_v12 = vld [vmem:[%s10447_s16 + $0x120] ss:$8 sps:$4 sm:$0xff]  }
 0x3fd   : > { %7213 = vrcp.f32 %v1755_v52  ;;  %v1758_v19 = vadd.f32 1.0, %v7202_v0  ;;  %v7061_v52 = vld [vmem:[%s10447_s16 + $0x134] ss:$8 sps:$4 sm:$0xff]  }
 0x3fe   : > { %v7204_v28 = vpop.eup %7203  ;;  %7215 = vrcp.f32 %v1757_v17  ;;  %v1628_v42 = vadd.f32 %v6572_v51, %v8021_v26  ;;  %v7059_v51 = vld [vmem:[%s10447_s16 + $0x130] ss:$8 sps:$4 sm:$0xff]  }
 0x3ff   : > { %v7206_v60 = vpop.eup %7205  ;;  %v1784_v30 = vmul.f32 %v7204_v28, %v8008_v15  ;;  %7217 = vrcp.f32 %v1758_v19 }
 0x400   : > { %v7208_v32 = vpop.eup %7207  ;;  %v1785_v4 = vmul.f32 %v7206_v60, %v8014_v23  ;;  %v6834_v33 = vpop.f32.mrb[16].mxu1  ;;  %v7064_v60 = vld [vmem:[%s10447_s16 + $0x144] ss:$8 sps:$4 sm:$0xff]  }
 0x401   : > { %v7210_v35 = vpop.eup %7209  ;;  %v1787_v37 = vmul.f32 %v7208_v32, %v8019_v25  ;;  %v1674_v36 = vadd.f32 %v6834_v33, %v1625_v31  ;;  %v1665_v40 = vpop.f32.mrb[17].mxu1  ;;  %v1796_v22 = vmul.f32 %v1784_v30, %v7626_v13  ;;  %v7067_v33 = vld [vmem:[%s10447_s16 + $0x154] ss:$8 sps:$4 sm:$0xff]  }
 0x402   : > { %v1788_v44 = vmul.f32 %v7210_v35, %v8025_v29  ;;  %v1666_v24 = vadd.f32 %v1665_v40, %v1617_v6  ;;  %v6835_v15 = vpop.f32.mrb[18].mxu1  ;;  %v1797_v26 = vmul.f32 %v1785_v4, %v7628_v16  ;;  %v7062_v4 = vld [vmem:[%s10447_s16 + $0x140] ss:$8 sps:$4 sm:$0xff]   ;;  %v7065_v6 = vld [vmem:[%s10447_s16 + $0x150] ss:$8 sps:$4 sm:$0xff]  }
 0x403   : > { %v1799_v23 = vmul.f32 %v1787_v37, %v7626_v13  ;;  %v8064_v3 = vadd.f32 %v8030_v21, %v1674_v36  ;;  %v1677_v63 = vadd.f32 %v6835_v15, %v1628_v42  ;;  %v1668_v46 = vpop.f32.mrb[19].mxu1  ;;  %v7070_v35 = vld [vmem:[%s10447_s16 + $0x164] ss:$8 sps:$4 sm:$0xff]   ;;  %v7068_v36 = vld [vmem:[%s10447_s16 + $0x160] ss:$8 sps:$4 sm:$0xff]  }
 0x404   : > { %v8067_v25 = vadd.f32 %v8001_v5, %v1666_v24  ;;  %v1669_v47 = vadd.f32 %v1668_v46, %v1620_v45  ;;  %v1800_v29 = vmul.f32 %v1788_v44, %v7628_v16  ;;  %v7073_v44 = vld [vmem:[%s10447_s16 + $0x174] ss:$8 sps:$4 sm:$0xff]  }
 0x405   : > { %v6369_v48 = vmul.f32 -1.442695, %v8064_v3  ;;  %v8073_v1 = vadd.f32 %v8037_v38, %v1677_v63  ;;  %v8075_v49 = vpack.c.bf16 %v1799_v23, %v1796_v22  ;;  %v7071_v63 = vld [vmem:[%s10447_s16 + $0x170] ss:$8 sps:$4 sm:$0xff]  }
 0x406   : > { %v7212_v11 = vpop.eup %7211  ;;  %v6363_v21 = vmul.f32 -1.442695, %v8067_v25  ;;  %v8079_v50 = vadd.f32 %v8003_v8, %v1669_v47  ;;  %v8081_v5 = vpack.c.bf16 %v1800_v29, %v1797_v26 }
 0x407   : > { %v7214_v27 = vpop.eup %7213  ;;  %v1790_v54 = vmul.f32 %v7212_v11, %v8034_v34  ;;  %7219 = vpow2.f32 %v6369_v48  ;;  %v6372_v38 = vmul.f32 -1.442695, %v8073_v1 }
 0x408   : > { %v7216_v55 = vpop.eup %7215  ;;  %v1791_v8 = vmul.f32 %v7214_v27, %v8040_v39  ;;  %7221 = vpow2.f32 %v6363_v21  ;;  %v6366_v56 = vmul.f32 -1.442695, %v8079_v50  ;;  %2180 = vmatprep.mubr.bf16.mxu1 %v8081_v5  ;;  %v7058_v39 = vld [vmem:[%s10447_s16 + $0x124] ss:$8 sps:$4 sm:$0xff]  }
 0x409   : > { %v7218_v57 = vpop.eup %7217  ;;  %v1793_v58 = vmul.f32 %v7216_v55, %v8045_v41  ;;  %7223 = vpow2.f32 %v6372_v38  ;;  %2181 = vmatmul.mubr.bf16.vlgmr.msra.gmra.mrb[20].mxu1 %v8075_v49  ;;  %v1802_v61 = vmul.f32 %v1790_v54, %v7626_v13 }
 0x40a   : > { %v1794_v34 = vmul.f32 %v7218_v57, %v8049_v43  ;;  %7225 = vpow2.f32 %v6366_v56  ;;  %2202 = vmatpush1.bf16.msra.mxu1 %v7050_v53  ;;  %v1803_v62 = vmul.f32 %v1791_v8, %v7628_v16  ;;  %v7076_v57 = vld [vmem:[%s10554_s8 + $0x4] ss:$12 sps:$4 sm:$0xff]  }
 0x40b   : > { %2203 = vmatprep.subr.bf16.mxu1 %v7055_v18  ;;  %v1805_v41 = vmul.f32 %v1793_v58, %v7626_v13  ;;  %2577 = vmatprep.mubr.bf16.mxu0 %v7076_v57  ;;  %v2425_v58 = vld [vmem:[%s10440_s9] sm:$0xff] }
 0x40c   : > { %v1806_v9 = vmul.f32 %v1794_v34, %v7628_v16  ;;  %v2427_v34 = vld [vmem:[%s10440_s9 + $0x10] sm:$0xff] }
 0x40d   : > { %v8107_v43 = vpack.c.bf16 %v1805_v41, %v1802_v61  ;;  %v2429_v61 = vld [vmem:[%s10440_s9 + $0x20] sm:$0xff]  ;;  %v2428_v41 = vld [vmem:[%s10440_s9 + $0x18] sm:$0xff] }
 0x40e   : > { %2204 = vmatpush1.bf16.msra.mxu1 %v7053_v59  ;;  %v8109_v10 = vpack.c.bf16 %v1806_v9, %v1803_v62  ;;  %v603_v59 = vld [vmem:[%s7766_s22 + $0x20] sm:$0xff]  ;;  %v605_v62 = vld [vmem:[%s7766_s22 + $0x30] sm:$0xff]  ;;  %v604_v9 = vld [vmem:[%s7766_s22 + $0x28] sm:$0xff] }
 0x40f   : > { %2205 = vmatprep.subr.bf16.mxu1 %v7058_v39  ;;  %v2426_v39 = vld [vmem:[%s10440_s9 + $0x8] sm:$0xff] }
 0x410   : > { %2190 = vmatprep.mubr.bf16.mxu1 %v8109_v10 }
 0x411   : > { %v7220_v14 = vpop.eup %7219  ;;  %2191 = vmatmul.mubr.bf16.gmra.mrb[24].mxu1 %v8107_v43 }
 0x412   : > { %v7222_v0 = vpop.eup %7221  ;;  %v1756_v17 = vadd.f32 1.0, %v7220_v14  ;;  %2206 = vmatpush1.bf16.msra.mxu1 %v7056_v12  ;;  %2233 = vmatprep.mubr.bf16.mxu1 %v7864_v2  ;;  %v2431_v12 = vld [vmem:[%s10440_s9 + $0x30] sm:$0xff]  ;;  %v607_v14 = vld [vmem:[%s7766_s22 + $0x40] sm:$0xff] }
 0x413   : > { %v7224_v19 = vpop.eup %7223  ;;  %v1750_v28 = vadd.f32 1.0, %v7222_v0  ;;  %2207 = vmatprep.subr.bf16.mxu1 %v7061_v52  ;;  %v2430_v52 = vld [vmem:[%s10440_s9 + $0x28] sm:$0xff]  ;;  %v606_v0 = vld [vmem:[%s7766_s22 + $0x38] sm:$0xff] }
 0x414   : > { %v7226_v30 = vpop.eup %7225  ;;  %7227 = vrcp.f32 %v1756_v17  ;;  %v1759_v31 = vadd.f32 1.0, %v7224_v19  ;;  %v609_v17 = vld [vmem:[%s7766_s22 + $0x50] sm:$0xff]  ;;  %v608_v19 = vld [vmem:[%s7766_s22 + $0x48] sm:$0xff] }
 0x415   : > { %7229 = vrcp.f32 %v1750_v28  ;;  %v1753_v32 = vadd.f32 1.0, %v7226_v30  ;;  %v610_v28 = vld [vmem:[%s7766_s22 + $0x58] sm:$0xff] }
 0x416   : > { %7231 = vrcp.f32 %v1759_v31  ;;  %2208 = vmatpush1.bf16.msra.mxu1 %v7059_v51  ;;  %v2432_v51 = vld [vmem:[%s10440_s9 + $0x38] sm:$0xff] }
 0x417   : > { %7233 = vrcp.f32 %v1753_v32  ;;  %2209 = vmatprep.subr.bf16.mxu1 %v7064_v60 }
 0x41a   : > { %2210 = vmatpush1.bf16.msra.mxu1 %v7062_v4 }
 0x41b   : > { %2211 = vmatprep.subr.bf16.mxu1 %v7067_v33 }
 0x41e   : > { %v7228_v37 = vpop.eup %7227  ;;  %2212 = vmatpush1.bf16.msra.mxu1 %v7065_v6 }
 0x41f   : > { %v7230_v40 = vpop.eup %7229  ;;  %v1792_v42 = vmul.f32 %v7228_v37, %v8064_v3  ;;  %2213 = vmatprep.subr.bf16.mxu1 %v7070_v35 }
 0x420   : > { %v7232_v24 = vpop.eup %7231  ;;  %v1786_v15 = vmul.f32 %v7230_v40, %v8067_v25 }
 0x421   : > { %v7234_v45 = vpop.eup %7233  ;;  %v1795_v22 = vmul.f32 %v7232_v24, %v8073_v1  ;;  %v1804_v3 = vmul.f32 %v1792_v42, %v7630_v20 }
 0x422   : > { %v1789_v23 = vmul.f32 %v7234_v45, %v8079_v50  ;;  %2214 = vmatpush1.bf16.msra.mxu1 %v7068_v36  ;;  %v1798_v47 = vmul.f32 %v1786_v15, %v7630_v20 }
 0x423   : > { %2215 = vmatprep.subr.bf16.mxu1 %v7073_v44  ;;  %v1807_v46 = vmul.f32 %v1795_v22, %v7630_v20 }
 0x424   : > { %v1801_v26 = vmul.f32 %v1789_v23, %v7630_v20 }
 0x425   : > { %v8155_v25 = vpack.c.bf16 %v1807_v46, %v1804_v3 }
 0x426   : > { %v8157_v29 = vpack.c.bf16 %v1801_v26, %v1798_v47  ;;  %2216 = vmatpush1.bf16.msra.mxu1 %v7071_v63 }
 0x429   : > { %2234 = vmatmul.mubr.bf16.vlgmr.msra.gmra.mrb[20].mxu1 %v8157_v29 }
 0x42a   : > { %2243 = vmatprep.mubr.bf16.mxu1 %v7864_v2 }
 0x431   : > { %2244 = vmatmul.mubr.bf16.gmra.mrb[24].mxu1 %v8155_v25 }
 0x4fc   : > { %v2235_v48 = vpop.f32.mrb[20].mxu1 }
 0x4fd   : > { %v2237_v1 = vpop.f32.mrb[21].mxu1 }
 0x4fe   : > { %v2239_v11 = vpop.f32.mrb[22].mxu1 }
 0x4ff   : > { %v8170_v21 = vpack.c.bf16 %v2239_v11, %v2235_v48  ;;  %v2241_v50 = vpop.f32.mrb[23].mxu1 }
 0x500   : > { %v2255_v53 = vpack.c.bf16 %v2241_v50, %v2237_v1 }
 0x501   : > { %2316 = vrot.lane.b32.xlu1 %v8170_v21, %s10470_s2 }
 0x502   : > { %2260 = vst.msk [vmem:[#allocation4 + $0x8] sm:$0xff] %vm2259_vm13, %v2255_v53 }
 0x504   : > { %v2245_v27 = vpop.f32.mrb[24].mxu1 }
 0x505   : > { %v2247_v54 = vpop.f32.mrb[25].mxu1  ;;  %2331 = vrot.lane.b32.xlu1 %v8170_v21, %s10468_s0 }
 0x506   : > { %v2249_v2 = vpop.f32.mrb[26].mxu1 }
 0x507   : > { %v8177_v38 = vpack.c.bf16 %v2249_v2, %v2245_v27  ;;  %v2251_v18 = vpop.f32.mrb[27].mxu1 }
 0x508   : > { %v2257_v55 = vpack.c.bf16 %v2251_v18, %v2247_v54 }
 0x509   : > { %v2264_v8 = vld [vmem:[#allocation4 + $0x8] sm:$0xff]  ;;  %2273 = vrot.lane.b32.xlu1 %v8170_v21, %s10552_s20 }
 0x50a   : > { %2262 = vst.msk [vmem:[#allocation4 + $0x18] sm:$0xff] %vm2259_vm13, %v2257_v55  ;;  %2318 = vrot.lane.b32.xlu0 %v2264_v8, %s10470_s2  ;;  %vm2369_vm13 = vcmask 777216  }
 0x50d   : > { %2346 = vrot.lane.b32.xlu1 %v8170_v21, %s10474_s29 }
 0x50e   : > { %2333 = vrot.lane.b32.xlu0 %v2264_v8, %s10468_s0 }
 0x511   : > { %2287 = vrot.lane.b32.xlu1 %v8170_v21, %s10553_s21  ;;  %v2266_v56 = vld [vmem:[#allocation4 + $0x18] sm:$0xff] }
 0x512   : > { %2275 = vrot.lane.b32.xlu0 %v2264_v8, %s10552_s20 }
 0x515   : > { %2361 = vrot.lane.b32.xlu1 %v8170_v21, %s10472_s24 }
 0x516   : > { %2348 = vrot.lane.b32.xlu0 %v2264_v8, %s10474_s29 }
 0x519   : > { %2320 = vrot.lane.b32.xlu1 %v8177_v38, %s10470_s2 }
 0x51a   : > { %2289 = vrot.lane.b32.xlu0 %v2264_v8, %s10553_s21 }
 0x51d   : > { %2301 = vrot.lane.b32.xlu1 %v8170_v21, %s10476_s23 }
 0x51e   : > { %2363 = vrot.lane.b32.xlu0 %v2264_v8, %s10472_s24 }
 0x521   : > { %2335 = vrot.lane.b32.xlu1 %v8177_v38, %s10468_s0 }
 0x522   : > { %2322 = vrot.lane.b32.xlu0 %v2266_v56, %s10470_s2  ;;  %s10559_s2 = smov 95  }
 0x525   : > { %2277 = vrot.lane.b32.xlu1 %v8177_v38, %s10552_s20 }
 0x526   : > { %2303 = vrot.lane.b32.xlu0 %v2264_v8, %s10476_s23 }
 0x529   : > { %2350 = vrot.lane.b32.xlu1 %v8177_v38, %s10474_s29 }
 0x52a   : > { %2337 = vrot.lane.b32.xlu0 %v2266_v56, %s10468_s0  ;;  %s10560_s0 = smov 110  }
 0x52d   : > { %2291 = vrot.lane.b32.xlu1 %v8177_v38, %s10553_s21 }
 0x52e   : > { %2279 = vrot.lane.b32.xlu0 %v2266_v56, %s10552_s20 }
 0x531   : > { %2365 = vrot.lane.b32.xlu1 %v8177_v38, %s10472_s24 }
 0x532   : > { %2352 = vrot.lane.b32.xlu0 %v2266_v56, %s10474_s29  ;;  %s10561_s29 = smov 94  }
 0x535   : > { %2305 = vrot.lane.b32.xlu1 %v8177_v38, %s10476_s23 }
 0x536   : > { %2293 = vrot.lane.b32.xlu0 %v2266_v56, %s10553_s21 }
 0x539   : > { %2376 = vrot.lane.b32.xlu1 %v8170_v21, %s10480_s30 }
 0x53a   : > { %2367 = vrot.lane.b32.xlu0 %v2266_v56, %s10472_s24 }
 0x53d   : > { %2380 = vrot.lane.b32.xlu1 %v8177_v38, %s10480_s30 }
 0x53e   : > { %2307 = vrot.lane.b32.xlu0 %v2266_v56, %s10476_s23  ;;  %s10556_s23 = smov 112  }
 0x541   : > { %2435 = vperm.xlu1 %6981, %v2425_v58  }
 0x542   : > { %2378 = vrot.lane.b32.xlu0 %v2264_v8, %s10480_s30 }
 0x545   : > { %2445 = vperm.xlu1 %6981, %v2427_v34  }
 0x546   : > { %2382 = vrot.lane.b32.xlu0 %v2266_v56, %s10480_s30 }
 0x549   : > { %2677 = vperm.xlu1 %6981, %v603_v59  }
 0x54a   : > { %2440 = vperm.xlu0 %6980, %v2426_v39  }
 0x54d   : > { %2455 = vperm.xlu1 %6981, %v2429_v61   ;;  %v7074_v61 = vld [vmem:[%s10554_s8] ss:$12 sps:$4 sm:$0xff]  }
 0x54e   : > { %2450 = vperm.xlu0 %6980, %v2428_v41  }
 0x551   : > { %2687 = vperm.xlu1 %6981, %v605_v62   ;;  %v7077_v62 = vld [vmem:[%s10554_s8 + $0x1c] ss:$12 sps:$4 sm:$0xff]  }
 0x552   : > { %2682 = vperm.xlu0 %6980, %v604_v9  }
 0x555   : > { %2465 = vperm.xlu1 %6981, %v2431_v12  }
 0x556   : > { %2460 = vperm.xlu0 %6980, %v2430_v52  }
 0x559   : > { %2697 = vperm.xlu1 %6981, %v607_v14  }
 0x55a   : > { %2692 = vperm.xlu0 %6980, %v606_v0  }
 0x55d   : > { %2707 = vperm.xlu1 %6981, %v609_v17   ;;  %v7079_v17 = vld [vmem:[%s10554_s8 + $0x18] ss:$12 sps:$4 sm:$0xff]  }
 0x55e   : > { %2470 = vperm.xlu0 %6980, %v2432_v51   ;;  %v7080_v51 = vld [vmem:[%s10554_s8 + $0x34] ss:$12 sps:$4 sm:$0xff]  }
 0x562   : > { %2702 = vperm.xlu0 %6980, %v608_v19   ;;  %v7082_v19 = vld [vmem:[%s10554_s8 + $0x30] ss:$12 sps:$4 sm:$0xff]  }
 0x566   : > { %2712 = vperm.xlu0 %6980, %v610_v28   ;;  %v7083_v28 = vld [vmem:[%s10554_s8 + $0x4c] ss:$12 sps:$4 sm:$0xff]  }
 0x573   : > { %v2317_v60 = vpop.permute.xlu1 %2316 }
 0x577   : > { %v2332_v30 = vpop.permute.xlu1 %2331 }
 0x57b   : > { %v2274_v31 = vpop.permute.xlu1 %2273 }
 0x57c   : > { %v2319_v32 = vpop.permute.xlu0 %2318 }
 0x57d   : > { %v2325_v4 = vsel %vm2324_vm14, %v2317_v60, %v2319_v32  ;;  %v7085_v60 = vld [vmem:[%s10554_s8 + $0x48] ss:$12 sps:$4 sm:$0xff]   ;;  %v7088_v32 = vld [vmem:[%s10554_s8 + $0x38] ss:$12 sps:$4 sm:$0xff]  }
 0x57e   : > { %6577 = vmatprep.subr.bf16.mxu0 %v2325_v4  ;;  %v7089_v4 = vld [vmem:[%s10554_s8 + $0x50] ss:$12 sps:$4 sm:$0xff]  }
 0x57f   : > { %6578 = vmatpush3.bf16.msra.mxu0 %v8170_v21  ;;  %v2347_v33 = vpop.permute.xlu1 %2346 }
 0x580   : > { %v2334_v6 = vpop.permute.xlu0 %2333 }
 0x581   : > { %v2340_v63 = vsel %vm2339_vm15, %v2332_v30, %v2334_v6  ;;  %v7086_v30 = vld [vmem:[%s10554_s8 + $0x8] ss:$12 sps:$4 sm:$0xff]  }
 0x583   : > { %v2288_v35 = vpop.permute.xlu1 %2287 }
 0x584   : > { %v2276_v37 = vpop.permute.xlu0 %2275 }
 0x585   : > { %v2281_v47 = vsel %vm657_vm1, %v2274_v31, %v2276_v37  ;;  %v7087_v31 = vld [vmem:[%s10554_s8 + $0x20] ss:$12 sps:$4 sm:$0xff]  }
 0x587   : > { %v2362_v36 = vpop.permute.xlu1 %2361 }
 0x588   : > { %v2349_v40 = vpop.permute.xlu0 %2348 }
 0x589   : > { %v2355_v53 = vsel %vm2354_vm0, %v2347_v33, %v2349_v40 }
 0x58b   : > { %v2321_v42 = vpop.permute.xlu1 %2320 }
 0x58c   : > { %v2290_v44 = vpop.permute.xlu0 %2289 }
 0x58d   : > { %v2295_v54 = vsel %vm675_vm2, %v2288_v35, %v2290_v44 }
 0x58f   : > { %v2302_v24 = vpop.permute.xlu1 %2301 }
 0x590   : > { %v2364_v15 = vpop.permute.xlu0 %2363 }
 0x591   : > { %v2370_v8 = vsel %vm2369_vm13, %v2362_v36, %v2364_v15 }
 0x593   : > { %v2336_v45 = vpop.permute.xlu1 %2335 }
 0x594   : > { %v2323_v22 = vpop.permute.xlu0 %2322 }
 0x595   : > { %v2326_v23 = vsel %vm2324_vm14, %v2321_v42, %v2323_v22 }
 0x596   : > { %6579 = vmatprep.subr.bf16.mxu0 %v2326_v23 }
 0x597   : > { %6580 = vmatpush3.bf16.msra.mxu0 %v8177_v38  ;;  %v2278_v3 = vpop.permute.xlu1 %2277 }
 0x598   : > { %6581 = vmatprep.subr.bf16.mxu0 %v2340_v63  ;;  %v2304_v46 = vpop.permute.xlu0 %2303 }
 0x599   : > { %v2310_v58 = vsel %vm2309_vm8, %v2302_v24, %v2304_v46 }
 0x59b   : > { %6582 = vmatpush3.bf16.msra.mxu0 %v2281_v47  ;;  %v2351_v26 = vpop.permute.xlu1 %2350 }
 0x59c   : > { %v2338_v48 = vpop.permute.xlu0 %2337 }
 0x59d   : > { %v2341_v1 = vsel %vm2339_vm15, %v2336_v45, %v2338_v48 }
 0x59e   : > { %6583 = vmatprep.subr.bf16.mxu0 %v2341_v1 }
 0x59f   : > { %v2292_v21 = vpop.permute.xlu1 %2291 }
 0x5a0   : > { %v2280_v11 = vpop.permute.xlu0 %2279 }
 0x5a1   : > { %v2282_v50 = vsel %vm657_vm1, %v2278_v3, %v2280_v11 }
 0x5a2   : > { %6584 = vmatpush3.bf16.msra.mxu0 %v2282_v50 }
 0x5a3   : > { %6585 = vmatprep.subr.bf16.mxu0 %v2355_v53  ;;  %v2366_v38 = vpop.permute.xlu1 %2365 }
 0x5a4   : > { %v2353_v27 = vpop.permute.xlu0 %2352 }
 0x5a5   : > { %v2356_v2 = vsel %vm2354_vm0, %v2351_v26, %v2353_v27 }
 0x5a6   : > { %6586 = vmatpush3.bf16.msra.mxu0 %v2295_v54 }
 0x5a7   : > { %6587 = vmatprep.subr.bf16.mxu0 %v2356_v2  ;;  %v2306_v57 = vpop.permute.xlu1 %2305 }
 0x5a8   : > { %v2294_v18 = vpop.permute.xlu0 %2293 }
 0x5a9   : > { %v2296_v55 = vsel %vm675_vm2, %v2292_v21, %v2294_v18 }
 0x5aa   : > { %6588 = vmatpush3.bf16.msra.mxu0 %v2296_v55 }
 0x5ab   : > { %6589 = vmatprep.subr.bf16.mxu0 %v2370_v8  ;;  %v2377_v41 = vpop.permute.xlu1 %2376 }
 0x5ac   : > { %v2368_v56 = vpop.permute.xlu0 %2367 }
 0x5ad   : > { %v2371_v34 = vsel %vm2369_vm13, %v2366_v38, %v2368_v56 }
 0x5ae   : > { %6590 = vmatpush3.bf16.msra.mxu0 %v2310_v58 }
 0x5af   : > { %6591 = vmatprep.subr.bf16.mxu0 %v2371_v34  ;;  %v2381_v52 = vpop.permute.xlu1 %2380 }
 0x5b0   : > { %v2308_v59 = vpop.permute.xlu0 %2307 }
 0x5b1   : > { %v2311_v39 = vsel %vm2309_vm8, %v2306_v57, %v2308_v59 }
 0x5b2   : > { %6592 = vmatpush3.bf16.msra.mxu0 %v2311_v39 }
 0x5b4   : > { %v2379_v9 = vpop.permute.xlu0 %2378 }
 0x5b5   : > { %2578 = vmatmul.mubr.bf16.vlgmr.msra.gmra.mrb[16].mxu0 %v7074_v61  ;;  %v2385_v12 = vsel %vm2384_vm7, %v2377_v41, %v2379_v9 }
 0x5b6   : > { %6836 = vmatprep.subr.bf16.mxu0 %v2385_v12  ;;  %2585 = vmatprep.mubr.bf16.mxu0 %v7077_v62 }
 0x5b7   : > { %6837 = vmatpush3.bf16.msra.mxu0 %v2385_v12 }
 0x5b8   : > { %v2383_v14 = vpop.permute.xlu0 %2382 }
 0x5b9   : > { %v2386_v0 = vsel %vm2384_vm7, %v2381_v52, %v2383_v14 }
 0x5ba   : > { %6838 = vmatprep.subr.bf16.mxu0 %v2386_v0 }
 0x5bb   : > { %6839 = vmatpush3.bf16.msra.mxu0 %v2386_v0 }
 0x5bd   : > { %2586 = vmatmul.mubr.bf16.gmra.mrb[20].mxu0 %v7079_v17 }
 0x5be   : > { %2593 = vmatprep.mubr.bf16.mxu0 %v7080_v51 }
 0x5c0   : > { %v2436_v33 = vpop.permute.xlu1 %2435 }
 0x5c4   : > { %v2446_v24 = vpop.permute.xlu1 %2445 }
 0x5c5   : > { %2594 = vmatmul.mubr.bf16.gmra.mrb[24].mxu0 %v7082_v19 }
 0x5c6   : > { %2601 = vmatprep.mubr.bf16.mxu0 %v7083_v28 }
 0x5c8   : > { %v2678_v46 = vpop.permute.xlu1 %2677 }
 0x5c9   : > { %v2441_v37 = vpop.permute.xlu0 %2440 }
 0x5cc   : > { %v2456_v11 = vpop.permute.xlu1 %2455 }
 0x5cd   : > { %2602 = vmatmul.mubr.bf16.gmra.mrb[28].mxu0 %v7085_v60  ;;  %v2451_v15 = vpop.permute.xlu0 %2450 }
 0x5ce   : > { %6840 = vmatprep.mubr.msk.bf16.mxu0 %vm10482_vm12, %v7086_v30 }
 0x5d0   : > { %v2688_v2 = vpop.permute.xlu1 %2687 }
 0x5d1   : > { %v2683_v26 = vpop.permute.xlu0 %2682 }
 0x5d4   : > { %v2466_v34 = vpop.permute.xlu1 %2465 }
 0x5d5   : > { %6841 = vmatmul.mubr.msk.bf16.vlgmr.msra.gmra.mrb[32].mxu0 %vm10482_vm12, %v7087_v31  ;;  %v2461_v27 = vpop.permute.xlu0 %2460 }
 0x5d6   : > { %6844 = vmatprep.mubr.msk.bf16.mxu0 %vm10482_vm12, %v7088_v32 }
 0x5d8   : > { %v2698_v28 = vpop.permute.xlu1 %2697 }
 0x5d9   : > { %v2693_v55 = vpop.permute.xlu0 %2692 }
 0x5dd   : > { %6845 = vmatmul.mubr.msk.bf16.gmra.mrb[36].mxu0 %vm10482_vm12, %v7089_v4  ;;  %v2471_v39 = vpop.permute.xlu0 %2470  ;;  %vm2821_vm12 = vcmask 1047688  }
 0x5e1   : > { %v2703_v4 = vpop.permute.xlu0 %2702 }
 0x688   : > { %v6593_v6 = vpop.f32.mrb[16].mxu0 }
 0x689   : > { %v6594_v35 = vpop.f32.mrb[17].mxu0 }
 0x68a   : > { %v6595_v36 = vadd.f32 %v6594_v35, %v6593_v6  ;;  %v6596_v40 = vpop.f32.mrb[18].mxu0 }
 0x68b   : > { %v6597_v42 = vpop.f32.mrb[19].mxu0 }
 0x68c   : > { %v6598_v44 = vadd.f32 %v6597_v42, %v6596_v40  ;;  %v2580_v41 = vadd.f32 %v6595_v36, %v2436_v33 }
 0x68e   : > { %v2583_v0 = vadd.f32 %v6598_v44, %v2441_v37 }
 0x690   : > { %v6599_v45 = vpop.f32.mrb[20].mxu0 }
 0x691   : > { %v6600_v22 = vpop.f32.mrb[21].mxu0 }
 0x692   : > { %v6601_v23 = vadd.f32 %v6600_v22, %v6599_v45  ;;  %v6602_v63 = vpop.f32.mrb[22].mxu0  ;;  %v2708_v45 = vpop.permute.xlu1 %2707 }
 0x693   : > { %v6603_v3 = vpop.f32.mrb[23].mxu0 }
 0x694   : > { %v6604_v47 = vadd.f32 %v6603_v3, %v6602_v63  ;;  %v2588_v59 = vadd.f32 %v6601_v23, %v2446_v24 }
 0x696   : > { %v2591_v12 = vadd.f32 %v6604_v47, %v2451_v15 }
 0x698   : > { %v6605_v48 = vpop.f32.mrb[24].mxu0 }
 0x699   : > { %v6606_v1 = vpop.f32.mrb[25].mxu0 }
 0x69a   : > { %v6607_v21 = vadd.f32 %v6606_v1, %v6605_v48  ;;  %v6608_v50 = vpop.f32.mrb[26].mxu0 }
 0x69b   : > { %v6609_v53 = vpop.f32.mrb[27].mxu0 }
 0x69c   : > { %v6610_v54 = vadd.f32 %v6609_v53, %v6608_v50  ;;  %v2596_v42 = vadd.f32 %v6607_v21, %v2456_v11 }
 0x69e   : > { %v2599_v63 = vadd.f32 %v6610_v54, %v2461_v27 }
 0x6a0   : > { %v6611_v38 = vpop.f32.mrb[28].mxu0 }
 0x6a1   : > { %v6612_v18 = vpop.f32.mrb[29].mxu0 }
 0x6a2   : > { %v6613_v8 = vadd.f32 %v6612_v18, %v6611_v38  ;;  %v6614_v56 = vpop.f32.mrb[30].mxu0 }
 0x6a3   : > { %v6615_v57 = vpop.f32.mrb[31].mxu0 }
 0x6a4   : > { %v6616_v58 = vadd.f32 %v6615_v57, %v6614_v56  ;;  %v2604_v37 = vadd.f32 %v6613_v8, %v2466_v34 }
 0x6a6   : > { %v2607_v15 = vadd.f32 %v6616_v58, %v2471_v39 }
 0x6a8   : > { %v6842_v61 = vpop.f32.mrb[32].mxu0 }
 0x6a9   : > { %v2653_v62 = vadd.f32 %v6842_v61, %v2588_v59  ;;  %v2644_v9 = vpop.f32.mrb[33].mxu0 }
 0x6aa   : > { %v2645_v52 = vadd.f32 %v2644_v9, %v2580_v41  ;;  %v6843_v14 = vpop.f32.mrb[34].mxu0 }
 0x6ab   : > { %v8314_v17 = vadd.f32 %v2688_v2, %v2653_v62  ;;  %v2656_v51 = vadd.f32 %v6843_v14, %v2591_v12  ;;  %v2647_v19 = vpop.f32.mrb[35].mxu0 }
 0x6ac   : > { %v8316_v60 = vadd.f32 %v2678_v46, %v2645_v52  ;;  %v2648_v30 = vadd.f32 %v2647_v19, %v2583_v0  ;;  %v6445_v19 = vld [vmem:[%s10555_s3] ss:$0 sm:$0xff] }
 0x6ad   : > { %v6439_v31 = vmul.f32 -1.442695, %v8314_v17  ;;  %v8319_v32 = vadd.f32 %v2693_v55, %v2656_v51 }
 0x6ae   : > { %v6437_v33 = vmul.f32 -1.442695, %v8316_v60  ;;  %v8322_v6 = vadd.f32 %v2683_v26, %v2648_v30  ;;  %v2713_v26 = vpop.permute.xlu0 %2712 }
 0x6af   : > { %7235 = vpow2.f32 %v6439_v31  ;;  %v6440_v35 = vmul.f32 -1.442695, %v8319_v32 }
 0x6b0   : > { %7237 = vpow2.f32 %v6437_v33  ;;  %v6438_v36 = vmul.f32 -1.442695, %v8322_v6  ;;  %v6846_v40 = vpop.f32.mrb[36].mxu0 }
 0x6b1   : > { %7239 = vpow2.f32 %v6440_v35  ;;  %v2669_v44 = vadd.f32 %v6846_v40, %v2604_v37  ;;  %v2660_v24 = vpop.f32.mrb[37].mxu0 }
 0x6b2   : > { %7241 = vpow2.f32 %v6438_v36  ;;  %v2661_v22 = vadd.f32 %v2660_v24, %v2596_v42  ;;  %v6847_v23 = vpop.f32.mrb[38].mxu0 }
 0x6b3   : > { %v2721_v3 = vadd.f32 %v2708_v45, %v2669_v44  ;;  %v2672_v46 = vadd.f32 %v6847_v23, %v2607_v15  ;;  %v2663_v47 = vpop.f32.mrb[39].mxu0 }
 0x6b4   : > { %v2719_v48 = vadd.f32 %v2698_v28, %v2661_v22  ;;  %v2664_v1 = vadd.f32 %v2663_v47, %v2599_v63 }
 0x6b5   : > { %v6443_v50 = vmul.f32 -1.442695, %v2721_v3  ;;  %v2722_v53 = vadd.f32 %v2713_v26, %v2672_v46 }
 0x6b6   : > { %v6441_v2 = vmul.f32 -1.442695, %v2719_v48  ;;  %v2720_v38 = vadd.f32 %v2703_v4, %v2664_v1 }
 0x6b7   : > { %7243 = vpow2.f32 %v6443_v50  ;;  %v6444_v11 = vmul.f32 -1.442695, %v2722_v53 }
 0x6b8   : > { %7245 = vpow2.f32 %v6441_v2  ;;  %v6442_v21 = vmul.f32 -1.442695, %v2720_v38 }
 0x6b9   : > { %v7236_v18 = vpop.eup %7235  ;;  %7247 = vpow2.f32 %v6444_v11 }
 0x6ba   : > { %v7238_v55 = vpop.eup %7237  ;;  %v2749_v8 = vadd.f32 1.0, %v7236_v18  ;;  %7249 = vpow2.f32 %v6442_v21 }
 0x6bb   : > { %v7240_v27 = vpop.eup %7239  ;;  %v2747_v54 = vadd.f32 1.0, %v7238_v55 }
 0x6bc   : > { %v7242_v56 = vpop.eup %7241  ;;  %7251 = vrcp.f32 %v2749_v8  ;;  %v2750_v57 = vadd.f32 1.0, %v7240_v27  ;;  %v7092_v27 = vld [vmem:[%s10441_s10 + $0x4] ss:$20 sps:$4 sm:$0xff]  }
 0x6bd   : > { %7253 = vrcp.f32 %v2747_v54  ;;  %v2748_v58 = vadd.f32 1.0, %v7242_v56  ;;  %3328 = vmatprep.mubr.bf16.mxu0 %v7092_v27  ;;  %v7104_v54 = vld [vmem:[%s10441_s10 + $0xc] ss:$20 sps:$4 sm:$0xff]  }
 0x6be   : > { %7255 = vrcp.f32 %v2750_v57  ;;  %3393 = vmatprep.mubr.bf16.mxu1 %v7104_v54 }
 0x6bf   : > { %7257 = vrcp.f32 %v2748_v58 }
 0x6c1   : > { %v7244_v34 = vpop.eup %7243 }
 0x6c2   : > { %v7246_v59 = vpop.eup %7245  ;;  %v2753_v39 = vadd.f32 1.0, %v7244_v34 }
 0x6c3   : > { %v7248_v61 = vpop.eup %7247  ;;  %v2751_v41 = vadd.f32 1.0, %v7246_v59 }
 0x6c4   : > { %v7250_v62 = vpop.eup %7249  ;;  %7259 = vrcp.f32 %v2753_v39  ;;  %v2754_v9 = vadd.f32 1.0, %v7248_v61  ;;  %v3136_v61 = vld [vmem:[%s10442_s11 + $0x8] sm:$0xff] }
 0x6c5   : > { %7261 = vrcp.f32 %v2751_v41  ;;  %v2752_v12 = vadd.f32 1.0, %v7250_v62  ;;  %v3135_v41 = vld [vmem:[%s10442_s11] sm:$0xff] }
 0x6c6   : > { %v7252_v52 = vpop.eup %7251  ;;  %7263 = vrcp.f32 %v2754_v9 }
 0x6c7   : > { %v7254_v14 = vpop.eup %7253  ;;  %v2773_v0 = vmul.f32 %v7252_v52, %v8314_v17  ;;  %7265 = vrcp.f32 %v2752_v12  ;;  %v612_v12 = vld [vmem:[%s7766_s22 + $0x68] sm:$0xff]  ;;  %v611_v52 = vld [vmem:[%s7766_s22 + $0x60] sm:$0xff] }
 0x6c8   : > { %v7256_v51 = vpop.eup %7255  ;;  %v2771_v28 = vmul.f32 %v7254_v14, %v8316_v60 }
 0x6c9   : > { %v7258_v30 = vpop.eup %7257  ;;  %v2774_v31 = vmul.f32 %v7256_v51, %v8319_v32  ;;  %v2787_v33 = vmul.f32 %v6445_v19, %v2773_v0  ;;  %v3138_v51 = vld [vmem:[%s10442_s11 + $0x18] sm:$0xff] }
 0x6ca   : > { %v2772_v4 = vmul.f32 %v7258_v30, %v8322_v6  ;;  %v2785_v37 = vmul.f32 %v6445_v19, %v2771_v28 }
 0x6cb   : > { %v2788_v35 = vmul.f32 %v6445_v19, %v2774_v31  ;;  %v614_v31 = vld [vmem:[%s7766_s22 + $0x78] sm:$0xff] }
 0x6cc   : > { %v2786_v36 = vmul.f32 %v6445_v19, %v2772_v4  ;;  %v613_v4 = vld [vmem:[%s7766_s22 + $0x70] sm:$0xff] }
 0x6cd   : > { %v2794_v40 = vpack.c.bf16 %v2788_v35, %v2787_v33 }
 0x6ce   : > { %v7260_v42 = vpop.eup %7259  ;;  %v2793_v17 = vpack.c.bf16 %v2786_v36, %v2785_v37  ;;  %v3140_v36 = vld [vmem:[%s10442_s11 + $0x28] sm:$0xff] }
 0x6cf   : > { %v7262_v44 = vpop.eup %7261  ;;  %v2777_v24 = vmul.f32 %v7260_v42, %v2721_v3  ;;  %2811 = vrot.lane.b32.xlu0 %v2794_v40, %s7382_s5  ;;  %v3139_v40 = vld [vmem:[%s10442_s11 + $0x20] sm:$0xff] }
 0x6d0   : > { %v7264_v15 = vpop.eup %7263  ;;  %v2775_v45 = vmul.f32 %v7262_v44, %v2719_v48  ;;  %2809 = vrot.lane.b32.xlu1 %v2793_v17, %s7382_s5 }
 0x6d1   : > { %v7266_v60 = vpop.eup %7265  ;;  %v2778_v22 = vmul.f32 %v7264_v15, %v2722_v53  ;;  %v2791_v32 = vmul.f32 %v6445_v19, %v2777_v24  ;;  %v616_v24 = vld [vmem:[%s7766_s22 + $0x88] sm:$0xff]  ;;  %v615_v15 = vld [vmem:[%s7766_s22 + $0x80] sm:$0xff] }
 0x6d2   : > { %v2776_v23 = vmul.f32 %v7266_v60, %v2720_v38  ;;  %v2789_v6 = vmul.f32 %v6445_v19, %v2775_v45 }
 0x6d3   : > { %v2792_v63 = vmul.f32 %v6445_v19, %v2778_v22  ;;  %v3142_v22 = vld [vmem:[%s10442_s11 + $0x38] sm:$0xff] }
 0x6d4   : > { %v2790_v46 = vmul.f32 %v6445_v19, %v2776_v23  ;;  %v3137_v19 = vld [vmem:[%s10442_s11 + $0x10] sm:$0xff] }
 0x6d5   : > { %v2796_v47 = vpack.c.bf16 %v2792_v63, %v2791_v32  ;;  %v3141_v23 = vld [vmem:[%s10442_s11 + $0x30] sm:$0xff] }
 0x6d6   : > { %v2795_v26 = vpack.c.bf16 %v2790_v46, %v2789_v6  ;;  %v618_v46 = vld [vmem:[%s7766_s22 + $0x98] sm:$0xff] }
 0x6d7   : > { %2815 = vrot.lane.b32.xlu0 %v2796_v47, %s7382_s5  ;;  %v617_v47 = vld [vmem:[%s7766_s22 + $0x90] sm:$0xff] }
 0x6d8   : > { %2813 = vrot.lane.b32.xlu1 %v2795_v26, %s7382_s5  ;;  %s10562_s5 = smov 25  }
 0x741   : > { %v2812_v1 = vpop.permute.xlu0 %2811 }
 0x742   : > { %2825 = vst.msk [vmem:[#allocation5 + $0x10] sm:$0xff] %vm2821_vm12, %v2812_v1  ;;  %v2810_v3 = vpop.permute.xlu1 %2809 }
 0x743   : > { %2826 = vst.msk [vmem:[#allocation5 + $0x18] sm:$0xff] %vm2823_vm6, %v2812_v1  ;;  %2824 = vst.msk [vmem:[#allocation5 + $0x8] sm:$0xff] %vm2823_vm6, %v2810_v3 }
 0x744   : > { %2822 = vst.msk [vmem:[#allocation5] sm:$0xff] %vm2821_vm12, %v2810_v3 }
 0x749   : > { %v2816_v48 = vpop.permute.xlu0 %2815  ;;  %v8337_v53 = vld [vmem:[#allocation5 + $0x10] sm:$0xff] }
 0x74a   : > { %v2834_v50 = vld [vmem:[#allocation5 + $0x18] sm:$0xff]  ;;  %2829 = vst.msk [vmem:[#allocation5 + $0x30] sm:$0xff] %vm2821_vm12, %v2816_v48  ;;  %v2814_v2 = vpop.permute.xlu1 %2813  ;;  %2883 = vrot.lane.b32.xlu1 %v8337_v53, %s10553_s21  ;;  %v2832_v38 = vld [vmem:[#allocation5 + $0x8] sm:$0xff] }
 0x74b   : > { %2830 = vst.msk [vmem:[#allocation5 + $0x38] sm:$0xff] %vm2823_vm6, %v2816_v48  ;;  %2885 = vrot.lane.b32.xlu0 %v2834_v50, %s10553_s21  ;;  %2828 = vst.msk [vmem:[#allocation5 + $0x28] sm:$0xff] %vm2823_vm6, %v2814_v2  ;;  %v8361_v11 = vld [vmem:[#allocation5] sm:$0xff]  ;;  %vm3283_vm6 = vcmask 523264  }
 0x74c   : > { %2827 = vst.msk [vmem:[#allocation5 + $0x20] sm:$0xff] %vm2821_vm12, %v2814_v2 }
 0x74e   : > { %2911 = vrot.lane.b32.xlu1 %v8337_v53, %s10556_s23 }
 0x74f   : > { %2913 = vrot.lane.b32.xlu0 %v2834_v50, %s10556_s23 }
 0x751   : > { %v8384_v18 = vld [vmem:[#allocation5 + $0x30] sm:$0xff] }
 0x752   : > { %2855 = vrot.lane.b32.xlu1 %v8337_v53, %s10552_s20  ;;  %v2838_v21 = vld [vmem:[#allocation5 + $0x38] sm:$0xff]  ;;  %v2836_v55 = vld [vmem:[#allocation5 + $0x28] sm:$0xff] }
 0x753   : > { %2857 = vrot.lane.b32.xlu0 %v2834_v50, %s10552_s20  ;;  %v8401_v8 = vld [vmem:[#allocation5 + $0x20] sm:$0xff] }
 0x756   : > { %2995 = vrot.lane.b32.xlu1 %v8337_v53, %s10557_s25 }
 0x757   : > { %2997 = vrot.lane.b32.xlu0 %v2834_v50, %s10557_s25 }
 0x75a   : > { %2939 = vrot.lane.b32.xlu1 %v8337_v53, %s10558_s4 }
 0x75b   : > { %2941 = vrot.lane.b32.xlu0 %v2834_v50, %s10558_s4 }
 0x75e   : > { %3023 = vrot.lane.b32.xlu1 %v8337_v53, %s10559_s2 }
 0x75f   : > { %3025 = vrot.lane.b32.xlu0 %v2834_v50, %s10559_s2 }
 0x762   : > { %2879 = vrot.lane.b32.xlu1 %v8361_v11, %s10553_s21 }
 0x763   : > { %2881 = vrot.lane.b32.xlu0 %v2832_v38, %s10553_s21 }
 0x766   : > { %2907 = vrot.lane.b32.xlu1 %v8361_v11, %s10556_s23 }
 0x767   : > { %2909 = vrot.lane.b32.xlu0 %v2832_v38, %s10556_s23 }
 0x76a   : > { %2851 = vrot.lane.b32.xlu1 %v8361_v11, %s10552_s20 }
 0x76b   : > { %2853 = vrot.lane.b32.xlu0 %v2832_v38, %s10552_s20 }
 0x76e   : > { %2991 = vrot.lane.b32.xlu1 %v8361_v11, %s10557_s25 }
 0x76f   : > { %2993 = vrot.lane.b32.xlu0 %v2832_v38, %s10557_s25 }
 0x772   : > { %2935 = vrot.lane.b32.xlu1 %v8361_v11, %s10558_s4 }
 0x773   : > { %2937 = vrot.lane.b32.xlu0 %v2832_v38, %s10558_s4 }
 0x776   : > { %3019 = vrot.lane.b32.xlu1 %v8361_v11, %s10559_s2 }
 0x777   : > { %3021 = vrot.lane.b32.xlu0 %v2832_v38, %s10559_s2 }
 0x77a   : > { %2963 = vrot.lane.b32.xlu1 %v8361_v11, %s10560_s0 }
 0x77b   : > { %2965 = vrot.lane.b32.xlu0 %v2832_v38, %s10560_s0 }
 0x77e   : > { %2891 = vrot.lane.b32.xlu1 %v8384_v18, %s10553_s21 }
 0x77f   : > { %2893 = vrot.lane.b32.xlu0 %v2838_v21, %s10553_s21 }
 0x782   : > { %2919 = vrot.lane.b32.xlu1 %v8384_v18, %s10556_s23 }
 0x783   : > { %2921 = vrot.lane.b32.xlu0 %v2838_v21, %s10556_s23 }
 0x786   : > { %2863 = vrot.lane.b32.xlu1 %v8384_v18, %s10552_s20 }
 0x787   : > { %2865 = vrot.lane.b32.xlu0 %v2838_v21, %s10552_s20 }
 0x78a   : > { %3003 = vrot.lane.b32.xlu1 %v8384_v18, %s10557_s25 }
 0x78b   : > { %3005 = vrot.lane.b32.xlu0 %v2838_v21, %s10557_s25 }
 0x78e   : > { %2947 = vrot.lane.b32.xlu1 %v8384_v18, %s10558_s4 }
 0x78f   : > { %2949 = vrot.lane.b32.xlu0 %v2838_v21, %s10558_s4 }
 0x792   : > { %2887 = vrot.lane.b32.xlu1 %v8401_v8, %s10553_s21 }
 0x793   : > { %2889 = vrot.lane.b32.xlu0 %v2836_v55, %s10553_s21 }
 0x796   : > { %3047 = vrot.lane.b32.xlu1 %v8361_v11, %s10561_s29 }
 0x797   : > { %3049 = vrot.lane.b32.xlu0 %v2832_v38, %s10561_s29 }
 0x79a   : > { %2967 = vrot.lane.b32.xlu1 %v8337_v53, %s10560_s0 }
 0x79b   : > { %2969 = vrot.lane.b32.xlu0 %v2834_v50, %s10560_s0 }
 0x79e   : > { %2915 = vrot.lane.b32.xlu1 %v8401_v8, %s10556_s23 }
 0x79f   : > { %2917 = vrot.lane.b32.xlu0 %v2836_v55, %s10556_s23 }
 0x7a2   : > { %2859 = vrot.lane.b32.xlu1 %v8401_v8, %s10552_s20 }
 0x7a3   : > { %2861 = vrot.lane.b32.xlu0 %v2836_v55, %s10552_s20 }
 0x7a6   : > { %3051 = vrot.lane.b32.xlu1 %v8337_v53, %s10561_s29 }
 0x7a7   : > { %3053 = vrot.lane.b32.xlu0 %v2834_v50, %s10561_s29 }
 0x7aa   : > { %2999 = vrot.lane.b32.xlu1 %v8401_v8, %s10557_s25 }
 0x7ab   : > { %3001 = vrot.lane.b32.xlu0 %v2836_v55, %s10557_s25 }
 0x7ae   : > { %2943 = vrot.lane.b32.xlu1 %v8401_v8, %s10558_s4 }
 0x7af   : > { %2945 = vrot.lane.b32.xlu0 %v2836_v55, %s10558_s4  ;;  %s10624_s4 = smov 78  }
 0x7b2   : > { %3031 = vrot.lane.b32.xlu1 %v8384_v18, %s10559_s2 }
 0x7b3   : > { %3033 = vrot.lane.b32.xlu0 %v2838_v21, %s10559_s2 }
 0x7b6   : > { %2975 = vrot.lane.b32.xlu1 %v8384_v18, %s10560_s0 }
 0x7b7   : > { %2977 = vrot.lane.b32.xlu0 %v2838_v21, %s10560_s0 }
 0x7ba   : > { %3027 = vrot.lane.b32.xlu1 %v8401_v8, %s10559_s2 }
 0x7bb   : > { %3029 = vrot.lane.b32.xlu0 %v2836_v55, %s10559_s2 }
 0x7bc   : > { %v2884_v56 = vpop.permute.xlu1 %2883 }
 0x7bd   : > { %v2886_v57 = vpop.permute.xlu0 %2885 }
 0x7be   : > { %2971 = vrot.lane.b32.xlu1 %v8401_v8, %s10560_s0  ;;  %v2896_v17 = vsel %vm675_vm2, %v2884_v56, %v2886_v57 }
 0x7bf   : > { %2973 = vrot.lane.b32.xlu0 %v2836_v55, %s10560_s0  ;;  %s10563_s0 = smov 104  }
 0x7c0   : > { %v8445_v58 = vpop.permute.xlu1 %2911 }
 0x7c1   : > { %v8447_v34 = vpop.permute.xlu0 %2913 }
 0x7c2   : > { %3055 = vrot.lane.b32.xlu1 %v8401_v8, %s10561_s29 }
 0x7c3   : > { %3057 = vrot.lane.b32.xlu0 %v2836_v55, %s10561_s29 }
 0x7c4   : > { %v8452_v59 = vpop.permute.xlu1 %2855 }
 0x7c5   : > { %v8454_v39 = vpop.permute.xlu0 %2857 }
 0x7c6   : > { %3059 = vrot.lane.b32.xlu1 %v8384_v18, %s10561_s29 }
 0x7c7   : > { %3061 = vrot.lane.b32.xlu0 %v2838_v21, %s10561_s29  ;;  %s10564_s29 = smov 103  }
 0x7c8   : > { %v2996_v62 = vpop.permute.xlu1 %2995 }
 0x7c9   : > { %v2998_v9 = vpop.permute.xlu0 %2997 }
 0x7ca   : > { %3145 = vperm.xlu1 %6981, %v3135_v41   ;;  %v3008_v48 = vsel %vm2354_vm0, %v2996_v62, %v2998_v9 }
 0x7cb   : > { %3150 = vperm.xlu0 %6980, %v3136_v61  }
 0x7cc   : > { %v2940_v14 = vpop.permute.xlu1 %2939 }
 0x7cd   : > { %v2942_v0 = vpop.permute.xlu0 %2941 }
 0x7ce   : > { %3493 = vperm.xlu1 %6981, %v611_v52   ;;  %v2952_v2 = vsel %vm2324_vm14, %v2940_v14, %v2942_v0 }
 0x7cf   : > { %3498 = vperm.xlu0 %6980, %v612_v12  }
 0x7d0   : > { %v8473_v28 = vpop.permute.xlu1 %3023 }
 0x7d1   : > { %v8475_v30 = vpop.permute.xlu0 %3025 }
 0x7d2   : > { %3155 = vperm.xlu1 %6981, %v3137_v19  }
 0x7d3   : > { %3160 = vperm.xlu0 %6980, %v3138_v51  }
 0x7d4   : > { %v2880_v33 = vpop.permute.xlu1 %2879 }
 0x7d5   : > { %v2882_v35 = vpop.permute.xlu0 %2881 }
 0x7d6   : > { %v2895_v37 = vsel %vm675_vm2, %v2880_v33, %v2882_v35  ;;  %3503 = vperm.xlu1 %6981, %v613_v4  }
 0x7d7   : > { %3508 = vperm.xlu0 %6980, %v614_v31   ;;  %6623 = vmatprep.subr.bf16.mxu0 %v2895_v37 }
 0x7d8   : > { %6624 = vmatpush3.bf16.msra.mxu0 %v8361_v11  ;;  %v8487_v42 = vpop.permute.xlu1 %2907 }
 0x7d9   : > { %v2910_v44 = vpop.permute.xlu0 %2909  ;;  %6625 = vmatprep.subr.bf16.mxu0 %v2896_v17 }
 0x7da   : > { %3165 = vperm.xlu1 %6981, %v3139_v40   ;;  %v2923_v12 = vsel %vm2309_vm8, %v8487_v42, %v2910_v44  ;;  %v7093_v40 = vld [vmem:[%s10441_s10 + $0x2c] ss:$20 sps:$4 sm:$0xff]  }
 0x7db   : > { %3170 = vperm.xlu0 %6980, %v3140_v36  }
 0x7dc   : > { %6626 = vmatpush3.bf16.msra.mxu0 %v8337_v53  ;;  %v2852_v45 = vpop.permute.xlu1 %2851 }
 0x7dd   : > { %v2854_v60 = vpop.permute.xlu0 %2853 }
 0x7de   : > { %3513 = vperm.xlu1 %6981, %v615_v15   ;;  %v2867_v0 = vsel %vm657_vm1, %v2852_v45, %v2854_v60 }
 0x7df   : > { %3518 = vperm.xlu0 %6980, %v616_v24  }
 0x7e0   : > { %v2992_v32 = vpop.permute.xlu1 %2991 }
 0x7e1   : > { %v2994_v63 = vpop.permute.xlu0 %2993 }
 0x7e2   : > { %v3007_v6 = vsel %vm2354_vm0, %v2992_v32, %v2994_v63  ;;  %3175 = vperm.xlu1 %6981, %v3141_v23   ;;  %v7095_v23 = vld [vmem:[%s10441_s10 + $0x28] ss:$20 sps:$4 sm:$0xff]  }
 0x7e3   : > { %3180 = vperm.xlu0 %6980, %v3142_v22   ;;  %6663 = vmatprep.subr.bf16.mxu1 %v3007_v6  ;;  %v7096_v32 = vld [vmem:[%s10441_s10 + $0x54] ss:$20 sps:$4 sm:$0xff]  }
 0x7e4   : > { %v2936_v26 = vpop.permute.xlu1 %2935 }
 0x7e5   : > { %v2938_v1 = vpop.permute.xlu0 %2937 }
 0x7e6   : > { %v2951_v3 = vsel %vm2324_vm14, %v2936_v26, %v2938_v1  ;;  %3523 = vperm.xlu1 %6981, %v617_v47  }
 0x7e7   : > { %3528 = vperm.xlu0 %6980, %v618_v46   ;;  %6664 = vmatpush3.bf16.msra.mxu1 %v2951_v3 }
 0x7e8   : > { %6665 = vmatprep.subr.bf16.mxu1 %v3008_v48  ;;  %v8504_v50 = vpop.permute.xlu1 %3019  ;;  %v3036_v48 = vsel %vm2369_vm13, %v8473_v28, %v8475_v30 }
 0x7e9   : > { %v8506_v53 = vpop.permute.xlu0 %3021 }
 0x7ea   : > { %1828 = vrot.lane.b32.xlu1 %v8075_v49, %s10562_s5  ;;  %v3035_v47 = vsel %vm2369_vm13, %v8504_v50, %v8506_v53  ;;  %v7099_v50 = vld [vmem:[%s10441_s10 + $0x7c] ss:$20 sps:$4 sm:$0xff]  }
 0x7eb   : > { %1830 = vrot.lane.b32.xlu0 %v8081_v5, %s10562_s5  ;;  %6666 = vmatpush3.bf16.msra.mxu1 %v2952_v2  ;;  %v7098_v2 = vld [vmem:[%s10441_s10 + $0x50] ss:$20 sps:$4 sm:$0xff]  }
 0x7ec   : > { %v8513_v38 = vpop.permute.xlu1 %2963 }
 0x7ed   : > { %v8515_v11 = vpop.permute.xlu0 %2965 }
 0x7ee   : > { %1832 = vrot.lane.b32.xlu1 %v8157_v29, %s10562_s5  ;;  %v2979_v3 = vsel %vm2339_vm15, %v8513_v38, %v8515_v11 }
 0x7ef   : > { %1834 = vrot.lane.b32.xlu0 %v8107_v43, %s10562_s5 }
 0x7f0   : > { %v2892_v21 = vpop.permute.xlu1 %2891 }
 0x7f1   : > { %v2894_v55 = vpop.permute.xlu0 %2893 }
 0x7f2   : > { %1836 = vrot.lane.b32.xlu1 %v8109_v10, %s10562_s5 }
 0x7f3   : > { %1838 = vrot.lane.b32.xlu0 %v8155_v25, %s10562_s5  ;;  %v2898_v25 = vsel %vm675_vm2, %v2892_v21, %v2894_v55 }
 0x7f4   : > { %v2920_v49 = vpop.permute.xlu1 %2919 }
 0x7f5   : > { %v2922_v5 = vpop.permute.xlu0 %2921 }
 0x7f6   : > { %v2926_v37 = vsel %vm2309_vm8, %v2920_v49, %v2922_v5  ;;  %v7101_v5 = vld [vmem:[%s10441_s10 + $0x78] ss:$20 sps:$4 sm:$0xff]  }
 0x7f8   : > { %v2864_v27 = vpop.permute.xlu1 %2863 }
 0x7f9   : > { %v2866_v54 = vpop.permute.xlu0 %2865 }
 0x7fc   : > { %v3004_v56 = vpop.permute.xlu1 %3003 }
 0x7fd   : > { %v3006_v57 = vpop.permute.xlu0 %3005 }
 0x7fe   : > { %v3010_v22 = vsel %vm2354_vm0, %v3004_v56, %v3006_v57 }
 0x800   : > { %v2948_v61 = vpop.permute.xlu1 %2947 }
 0x801   : > { %v2950_v41 = vpop.permute.xlu0 %2949 }
 0x802   : > { %v2954_v46 = vsel %vm2324_vm14, %v2948_v61, %v2950_v41  ;;  %v7102_v41 = vld [vmem:[%s10441_s10 + $0x8] ss:$20 sps:$4 sm:$0xff]  }
 0x804   : > { %v2888_v43 = vpop.permute.xlu1 %2887 }
 0x805   : > { %v2890_v62 = vpop.permute.xlu0 %2889 }
 0x806   : > { %v2897_v29 = vsel %vm675_vm2, %v2888_v43, %v2890_v62  ;;  %v7107_v43 = vld [vmem:[%s10441_s10 + $0x34] ss:$20 sps:$4 sm:$0xff]  }
 0x807   : > { %6627 = vmatprep.subr.bf16.mxu0 %v2897_v29 }
 0x808   : > { %6628 = vmatpush3.bf16.msra.mxu0 %v8401_v8  ;;  %v3048_v9 = vpop.permute.xlu1 %3047  ;;  %v2924_v8 = vsel %vm2309_vm8, %v8445_v58, %v8447_v34  ;;  %v2870_v34 = vsel %vm657_vm1, %v2864_v27, %v2866_v54  ;;  %v7105_v27 = vld [vmem:[%s10441_s10 + $0x10] ss:$20 sps:$4 sm:$0xff]  }
 0x809   : > { %6629 = vmatprep.subr.bf16.mxu0 %v2898_v25  ;;  %v3050_v10 = vpop.permute.xlu0 %3049 }
 0x80c   : > { %6630 = vmatpush3.bf16.msra.mxu0 %v8384_v18  ;;  %v8531_v52 = vpop.permute.xlu1 %2967  ;;  %v2868_v18 = vsel %vm657_vm1, %v8452_v59, %v8454_v39  ;;  %v7090_v59 = vld [vmem:[%s10441_s10] ss:$20 sps:$4 sm:$0xff]   ;;  %v3063_v39 = vsel %vm2384_vm7, %v3048_v9, %v3050_v10  ;;  %v7106_v9 = vld [vmem:[%s10441_s10 + $0x38] ss:$20 sps:$4 sm:$0xff]  }
 0x80d   : > { %6631 = vmatprep.subr.bf16.mxu0 %v2923_v12  ;;  %v2970_v14 = vpop.permute.xlu0 %2969  ;;  %v7113_v10 = vld [vmem:[%s10441_s10 + $0x60] ss:$20 sps:$4 sm:$0xff]   ;;  %v7109_v12 = vld [vmem:[%s10441_s10 + $0x30] ss:$20 sps:$4 sm:$0xff]  }
 0x80e   : > { %v2980_v55 = vsel %vm2339_vm15, %v8531_v52, %v2970_v14  ;;  %v7110_v52 = vld [vmem:[%s10441_s10 + $0x5c] ss:$20 sps:$4 sm:$0xff]  }
 0x80f   : > { %v7114_v14 = vld [vmem:[%s10441_s10 + $0x88] ss:$20 sps:$4 sm:$0xff]  }
 0x810   : > { %6632 = vmatpush3.bf16.msra.mxu0 %v2867_v0  ;;  %v2916_v51 = vpop.permute.xlu1 %2915  ;;  %v7112_v0 = vld [vmem:[%s10441_s10 + $0x58] ss:$20 sps:$4 sm:$0xff]  }
 0x811   : > { %6633 = vmatprep.subr.bf16.mxu0 %v2924_v8  ;;  %v2918_v19 = vpop.permute.xlu0 %2917  ;;  %v7115_v8 = vld [vmem:[%s10441_s10 + $0x84] ss:$20 sps:$4 sm:$0xff]  }
 0x812   : > { %v2925_v31 = vsel %vm2309_vm8, %v2916_v51, %v2918_v19  ;;  %v8622_v51 = vld [vmem:[#allocation3 + $0x80] sm:$0xff] }
 0x814   : > { %6634 = vmatpush3.bf16.msra.mxu0 %v2868_v18  ;;  %v2860_v4 = vpop.permute.xlu1 %2859 }
 0x815   : > { %6635 = vmatprep.subr.bf16.mxu0 %v2925_v31  ;;  %v2862_v33 = vpop.permute.xlu0 %2861 }
 0x816   : > { %v2869_v35 = vsel %vm657_vm1, %v2860_v4, %v2862_v33  ;;  %v7117_v33 = vld [vmem:[%s10441_s10 + $0x80] ss:$20 sps:$4 sm:$0xff]  }
 0x818   : > { %6636 = vmatpush3.bf16.msra.mxu0 %v2869_v35  ;;  %v3052_v36 = vpop.permute.xlu1 %3051 }
 0x819   : > { %6637 = vmatprep.subr.bf16.mxu0 %v2926_v37  ;;  %v3054_v58 = vpop.permute.xlu0 %3053 }
 0x81a   : > { %v3064_v24 = vsel %vm2384_vm7, %v3052_v36, %v3054_v58 }
 0x81c   : > { %6638 = vmatpush3.bf16.msra.mxu0 %v2870_v34  ;;  %v3000_v42 = vpop.permute.xlu1 %2999 }
 0x81d   : > { %6848 = vmatprep.subr.bf16.mxu0 %v3063_v39  ;;  %v3002_v17 = vpop.permute.xlu0 %3001 }
 0x81e   : > { %v3009_v44 = vsel %vm2354_vm0, %v3000_v42, %v3002_v17 }
 0x81f   : > { %3329 = vmatmul.mubr.bf16.vlgmr.msra.gmra.mrb[40].mxu0 %v7090_v59  ;;  %6667 = vmatprep.subr.bf16.mxu1 %v3009_v44 }
 0x820   : > { %6849 = vmatpush3.bf16.msra.mxu0 %v3063_v39  ;;  %3336 = vmatprep.mubr.bf16.mxu0 %v7093_v40  ;;  %v2944_v15 = vpop.permute.xlu1 %2943 }
 0x821   : > { %6850 = vmatprep.subr.bf16.mxu0 %v3064_v24  ;;  %v2946_v45 = vpop.permute.xlu0 %2945 }
 0x822   : > { %v2953_v60 = vsel %vm2324_vm14, %v2944_v15, %v2946_v45 }
 0x823   : > { %6668 = vmatpush3.bf16.msra.mxu1 %v2953_v60 }
 0x824   : > { %6669 = vmatprep.subr.bf16.mxu1 %v3010_v22  ;;  %6851 = vmatpush3.bf16.msra.mxu0 %v3064_v24  ;;  %v3032_v63 = vpop.permute.xlu1 %3031 }
 0x825   : > { %v3034_v6 = vpop.permute.xlu0 %3033 }
 0x826   : > { %v3038_v49 = vsel %vm2369_vm13, %v3032_v63, %v3034_v6 }
 0x827   : > { %3337 = vmatmul.mubr.bf16.gmra.mrb[44].mxu0 %v7095_v23  ;;  %6670 = vmatpush3.bf16.msra.mxu1 %v2954_v46 }
 0x828   : > { %6671 = vmatprep.subr.bf16.mxu1 %v3035_v47  ;;  %3344 = vmatprep.mubr.bf16.mxu0 %v7096_v32  ;;  %v2976_v26 = vpop.permute.xlu1 %2975 }
 0x829   : > { %v2978_v1 = vpop.permute.xlu0 %2977 }
 0x82a   : > { %v2982_v57 = vsel %vm2339_vm15, %v2976_v26, %v2978_v1 }
 0x82b   : > { %6672 = vmatpush3.bf16.msra.mxu1 %v2979_v3 }
 0x82c   : > { %6673 = vmatprep.subr.bf16.mxu1 %v3036_v48  ;;  %v3028_v53 = vpop.permute.xlu1 %3027 }
 0x82d   : > { %v3030_v21 = vpop.permute.xlu0 %3029 }
 0x82e   : > { %v3037_v38 = vsel %vm2369_vm13, %v3028_v53, %v3030_v21  ;;  %v7118_v53 = vld [vmem:[%s10448_s17] ss:$16 sps:$4 sm:$0xff]   ;;  %v7121_v21 = vld [vmem:[%s10448_s17 + $0x8] ss:$16 sps:$4 sm:$0xff]  }
 0x82f   : > { %3345 = vmatmul.mubr.bf16.gmra.mrb[48].mxu0 %v7098_v2  ;;  %6674 = vmatpush3.bf16.msra.mxu1 %v2980_v55  ;;  %v7120_v2 = vld [vmem:[%s10448_s17 + $0x4] ss:$16 sps:$4 sm:$0xff]  }
 0x830   : > { %6675 = vmatprep.subr.bf16.mxu1 %v3037_v38  ;;  %3352 = vmatprep.mubr.bf16.mxu0 %v7099_v50  ;;  %v2972_v28 = vpop.permute.xlu1 %2971  ;;  %v7123_v50 = vld [vmem:[%s10448_s17 + $0xc] ss:$16 sps:$4 sm:$0xff]   ;;  %v7126_v55 = vld [vmem:[%s10448_s17 + $0x24] ss:$16 sps:$4 sm:$0xff]  }
 0x831   : > { %v2974_v30 = vpop.permute.xlu0 %2973  ;;  %v7129_v38 = vld [vmem:[%s10448_s17 + $0x2c] ss:$16 sps:$4 sm:$0xff]  }
 0x832   : > { %v2981_v11 = vsel %vm2339_vm15, %v2972_v28, %v2974_v30  ;;  %v7124_v28 = vld [vmem:[%s10448_s17 + $0x20] ss:$16 sps:$4 sm:$0xff]   ;;  %v7127_v30 = vld [vmem:[%s10448_s17 + $0x28] ss:$16 sps:$4 sm:$0xff]  }
 0x833   : > { %6676 = vmatpush3.bf16.msra.mxu1 %v2981_v11  ;;  %v7132_v11 = vld [vmem:[%s10448_s17 + $0x44] ss:$16 sps:$4 sm:$0xff]  }
 0x834   : > { %6677 = vmatprep.subr.bf16.mxu1 %v3038_v49  ;;  %v3056_v54 = vpop.permute.xlu1 %3055  ;;  %v7135_v49 = vld [vmem:[%s10448_s17 + $0x4c] ss:$16 sps:$4 sm:$0xff]  }
 0x835   : > { %v3058_v56 = vpop.permute.xlu0 %3057 }
 0x836   : > { %v3065_v61 = vsel %vm2384_vm7, %v3056_v54, %v3058_v56  ;;  %v7138_v54 = vld [vmem:[%s10448_s17 + $0x64] ss:$16 sps:$4 sm:$0xff]   ;;  %v7141_v56 = vld [vmem:[%s10448_s17 + $0x6c] ss:$16 sps:$4 sm:$0xff]  }
 0x837   : > { %3353 = vmatmul.mubr.bf16.gmra.mrb[52].mxu0 %v7101_v5  ;;  %6678 = vmatpush3.bf16.msra.mxu1 %v2982_v57  ;;  %v7130_v5 = vld [vmem:[%s10448_s17 + $0x40] ss:$16 sps:$4 sm:$0xff]  }
 0x838   : > { %6852 = vmatprep.subr.bf16.mxu0 %v3065_v61  ;;  %6856 = vmatprep.mubr.msk.bf16.mxu0 %vm3283_vm6, %v7105_v27  ;;  %v3060_v62 = vpop.permute.xlu1 %3059  ;;  %v7133_v27 = vld [vmem:[%s10448_s17 + $0x48] ss:$16 sps:$4 sm:$0xff]   ;;  %v7136_v57 = vld [vmem:[%s10448_s17 + $0x60] ss:$16 sps:$4 sm:$0xff]  }
 0x839   : > { %6853 = vmatpush3.bf16.msra.mxu0 %v3065_v61  ;;  %v3062_v29 = vpop.permute.xlu0 %3061  ;;  %3791 = vmatprep.subr.bf16.mxu1 %v7120_v2  ;;  %v7139_v61 = vld [vmem:[%s10448_s17 + $0x68] ss:$16 sps:$4 sm:$0xff]  }
 0x83a   : > { %3394 = vmatmul.mubr.bf16.vlgmr.msra.gmra.mrb[28].mxu1 %v7102_v41  ;;  %v3066_v25 = vsel %vm2384_vm7, %v3060_v62, %v3062_v29  ;;  %v7144_v41 = vld [vmem:[%s10448_s17 + $0x84] ss:$16 sps:$4 sm:$0xff]   ;;  %v7142_v62 = vld [vmem:[%s10448_s17 + $0x80] ss:$16 sps:$4 sm:$0xff]   ;;  %v7145_v29 = vld [vmem:[%s10448_s17 + $0x88] ss:$16 sps:$4 sm:$0xff]  }
 0x83b   : > { %6854 = vmatprep.subr.bf16.mxu0 %v3066_v25  ;;  %3401 = vmatprep.mubr.bf16.mxu1 %v7107_v43  ;;  %v7147_v43 = vld [vmem:[%s10448_s17 + $0x8c] ss:$16 sps:$4 sm:$0xff]   ;;  %vm10698_vm7 = vcmask 654336  }
 0x83c   : > { %3792 = vmatpush1.bf16.msra.mxu1 %v7118_v53  ;;  %vm10699_vm8 = vmmov %vm10698_vm7 }
 0x83d   : > { %6855 = vmatpush3.bf16.msra.mxu0 %v3066_v25  ;;  %3793 = vmatprep.subr.bf16.mxu1 %v7126_v55  ;;  %v7150_v25 = vld [vmem:[%s10448_s17 + $0xa4] ss:$16 sps:$4 sm:$0xff]   ;;  %vm10701_vm12 = vmmov %vm10698_vm7 }
 0x83e   : > { %3864 = vmatprep.subr.bf16.mxu0 %v7123_v50  ;;  %vm10702_vm14 = vmmov %vm10698_vm7 }
 0x83f   : > { %vm10703_vm15 = vmmov %vm10698_vm7 }
 0x840   : > { %6857 = vmatmul.mubr.msk.bf16.vlgmr.msra.gmra.mrb[56].mxu0 %vm3283_vm6, %v7106_v9  ;;  %3794 = vmatpush1.bf16.msra.mxu1 %v7124_v28  ;;  %v7153_v9 = vld [vmem:[%s10448_s17 + $0xac] ss:$16 sps:$4 sm:$0xff]   ;;  %vm10704_vm13 = vmmov %vm10698_vm7 }
 0x841   : > { %6860 = vmatprep.mubr.msk.bf16.mxu0 %vm3283_vm6, %v7113_v10  ;;  %3865 = vmatpush1.bf16.msra.mxu0 %v7121_v21  ;;  %v7148_v10 = vld [vmem:[%s10448_s17 + $0xa0] ss:$16 sps:$4 sm:$0xff]  }
 0x842   : > { %3402 = vmatmul.mubr.bf16.gmra.mrb[32].mxu1 %v7109_v12  ;;  %3866 = vmatprep.subr.bf16.mxu0 %v7129_v38  ;;  %v7151_v12 = vld [vmem:[%s10448_s17 + $0xa8] ss:$16 sps:$4 sm:$0xff]  }
 0x843   : > { %3409 = vmatprep.mubr.bf16.mxu1 %v7110_v52  ;;  %3795 = vmatprep.subr.bf16.mxu1 %v7132_v11  ;;  %v7156_v52 = vld [vmem:[%s10448_s17 + $0xc4] ss:$16 sps:$4 sm:$0xff]  }
 0x844   : > { %3796 = vmatpush1.bf16.msra.mxu1 %v7130_v5 }
 0x845   : > { %3867 = vmatpush1.bf16.msra.mxu0 %v7127_v30  ;;  %3797 = vmatprep.subr.bf16.mxu1 %v7138_v54 }
 0x846   : > { %3868 = vmatprep.subr.bf16.mxu0 %v7135_v49 }
 0x848   : > { %6861 = vmatmul.mubr.msk.bf16.gmra.mrb[60].mxu0 %vm3283_vm6, %v7114_v14  ;;  %3798 = vmatpush1.bf16.msra.mxu1 %v7136_v57  ;;  %v7159_v14 = vld [vmem:[%s10448_s17 + $0xcc] ss:$16 sps:$4 sm:$0xff]   ;;  %vm10705_vm6 = vmmov %vm10698_vm7 }
 0x849   : > { %3896 = vmatprep.mubr.bf16.mxu0 %v8622_v51  ;;  %v8625_v19 = vpop.permute.xlu1 %3145  ;;  %3869 = vmatpush1.bf16.msra.mxu0 %v7133_v27 }
 0x84a   : > { %3410 = vmatmul.mubr.bf16.gmra.mrb[36].mxu1 %v7112_v0  ;;  %v8627_v18 = vpop.permute.xlu0 %3150  ;;  %3870 = vmatprep.subr.bf16.mxu0 %v7141_v56  ;;  %v7154_v0 = vld [vmem:[%s10448_s17 + $0xc0] ss:$16 sps:$4 sm:$0xff]  }
 0x84b   : > { %3417 = vmatprep.mubr.bf16.mxu1 %v7115_v8  ;;  %3799 = vmatprep.subr.bf16.mxu1 %v7144_v41  ;;  %v7157_v8 = vld [vmem:[%s10448_s17 + $0xc8] ss:$16 sps:$4 sm:$0xff]  }
 0x84c   : > { %3800 = vmatpush1.bf16.msra.mxu1 %v7142_v62 }
 0x84d   : > { %v8629_v31 = vpop.permute.xlu1 %3493  ;;  %3871 = vmatpush1.bf16.msra.mxu0 %v7139_v61  ;;  %3801 = vmatprep.subr.bf16.mxu1 %v7150_v25 }
 0x84e   : > { %v8631_v4 = vpop.permute.xlu0 %3498  ;;  %3872 = vmatprep.subr.bf16.mxu0 %v7147_v43 }
 0x850   : > { %3802 = vmatpush1.bf16.msra.mxu1 %v7148_v10 }
 0x851   : > { %v8636_v35 = vpop.permute.xlu1 %3155  ;;  %3873 = vmatpush1.bf16.msra.mxu0 %v7145_v29  ;;  %3803 = vmatprep.subr.bf16.mxu1 %v7156_v52 }
 0x852   : > { %3418 = vmatmul.mubr.bf16.gmra.mrb[40].mxu1 %v7117_v33  ;;  %v8638_v37 = vpop.permute.xlu0 %3160  ;;  %3874 = vmatprep.subr.bf16.mxu0 %v7153_v9  ;;  %v7162_v33 = vld [vmem:[%s10448_s17 + $0xe4] ss:$16 sps:$4 sm:$0xff]  }
 0x853   : > { %3823 = vmatprep.mubr.bf16.mxu1 %v8622_v51 }
 0x854   : > { %3804 = vmatpush1.bf16.msra.mxu1 %v7154_v0 }
 0x855   : > { %v8641_v36 = vpop.permute.xlu1 %3503  ;;  %3875 = vmatpush1.bf16.msra.mxu0 %v7151_v12  ;;  %3805 = vmatprep.subr.bf16.mxu1 %v7162_v33 }
 0x856   : > { %v8643_v58 = vpop.permute.xlu0 %3508  ;;  %3876 = vmatprep.subr.bf16.mxu0 %v7159_v14 }
 0x859   : > { %v8645_v34 = vpop.permute.xlu1 %3165  ;;  %3877 = vmatpush1.bf16.msra.mxu0 %v7157_v8 }
 0x85a   : > { %v8647_v59 = vpop.permute.xlu0 %3170 }
 0x85d   : > { %v8649_v39 = vpop.permute.xlu1 %3513 }
 0x85e   : > { %v8651_v40 = vpop.permute.xlu0 %3518 }
 0x861   : > { %v8653_v42 = vpop.permute.xlu1 %3175 }
 0x862   : > { %v8655_v17 = vpop.permute.xlu0 %3180 }
 0x865   : > { %v8657_v44 = vpop.permute.xlu1 %3523 }
 0x866   : > { %v8659_v24 = vpop.permute.xlu0 %3528 }
 0x869   : > { %v1829_v15 = vpop.permute.xlu1 %1828 }
 0x86a   : > { %v1831_v45 = vpop.permute.xlu0 %1830  ;;  %1852 = vst.msk [vmem:[#allocation3 + $0x80] sm:$0xff] %vm1049_vm11, %v1829_v15 }
 0x86b   : > { %v8663_v60 = vsel %vm1036_vm10, %v1829_v15, %v1831_v45  ;;  %v7165_v15 = vld [vmem:[%s10448_s17 + $0xec] ss:$16 sps:$4 sm:$0xff]  }
 0x86c   : > { %1853 = vst [vmem:[#allocation3 + $0x88] sm:$0xff] %v8663_v60  ;;  %4069 = vrot.lane.b32.xlu1 %v8663_v60, %s10552_s20  ;;  %3878 = vmatprep.subr.bf16.mxu0 %v7165_v15 }
 0x86d   : > { %v1833_v22 = vpop.permute.xlu1 %1832 }
 0x86e   : > { %v1835_v23 = vpop.permute.xlu0 %1834  ;;  %v8669_v32 = vsel %vm1036_vm10, %v1831_v45, %v1833_v22  ;;  %1855 = vst.msk [vmem:[#allocation3 + $0x98] sm:$0xff] %vm1036_vm10, %v1833_v22  ;;  %v7160_v45 = vld [vmem:[%s10448_s17 + $0xe0] ss:$16 sps:$4 sm:$0xff]   ;;  %v7163_v22 = vld [vmem:[%s10448_s17 + $0xe8] ss:$16 sps:$4 sm:$0xff]  }
 0x86f   : > { %1856 = vst.msk [vmem:[#allocation3 + $0xa0] sm:$0xff] %vm1049_vm11, %v1835_v23  ;;  %1854 = vst [vmem:[#allocation3 + $0x90] sm:$0xff] %v8669_v32  ;;  %4071 = vrot.lane.b32.xlu0 %v8669_v32, %s10552_s20  ;;  %3806 = vmatpush1.bf16.msra.mxu1 %v7160_v45 }
 0x870   : > { %3879 = vmatpush1.bf16.msra.mxu0 %v7163_v22 }
 0x871   : > { %v1837_v63 = vpop.permute.xlu1 %1836  ;;  %v8676_v46 = vld [vmem:[#allocation3 + $0x80] sm:$0xff] }
 0x872   : > { %v1839_v6 = vpop.permute.xlu0 %1838  ;;  %v8679_v47 = vsel %vm1036_vm10, %v1835_v23, %v1837_v63  ;;  %4067 = vrot.lane.b32.xlu1 %v8676_v46, %s10552_s20 }
 0x873   : > { %v8682_v26 = vsel %vm1036_vm10, %v1837_v63, %v1839_v6  ;;  %1859 = vst.msk [vmem:[#allocation3 + $0xb8] sm:$0xff] %vm1036_vm10, %v1839_v6  ;;  %1857 = vst [vmem:[#allocation3 + $0xa8] sm:$0xff] %v8679_v47  ;;  %4077 = vrot.lane.b32.xlu0 %v8679_v47, %s10552_s20 }
 0x874   : > { %1858 = vst [vmem:[#allocation3 + $0xb0] sm:$0xff] %v8682_v26 }
 0x875   : > { %v8723_v3 = vld [vmem:[#allocation3 + $0x98] sm:$0xff] }
 0x876   : > { %v8691_v1 = vld [vmem:[#allocation3 + $0xa0] sm:$0xff]  ;;  %4079 = vrot.lane.b32.xlu1 %v8682_v26, %s10552_s20 }
 0x877   : > { %4075 = vrot.lane.b32.xlu0 %v8691_v1, %s10552_s20 }
 0x87a   : > { %4171 = vrot.lane.b32.xlu1 %v8663_v60, %s10553_s21  ;;  %v8729_v48 = vld [vmem:[#allocation3 + $0xb8] sm:$0xff] }
 0x87b   : > { %4173 = vrot.lane.b32.xlu0 %v8669_v32, %s10553_s21 }
 0x87e   : > { %4169 = vrot.lane.b32.xlu1 %v8676_v46, %s10553_s21 }
 0x87f   : > { %4179 = vrot.lane.b32.xlu0 %v8679_v47, %s10553_s21 }
 0x882   : > { %4181 = vrot.lane.b32.xlu1 %v8682_v26, %s10553_s21 }
 0x883   : > { %4177 = vrot.lane.b32.xlu0 %v8691_v1, %s10553_s21 }
 0x886   : > { %4273 = vrot.lane.b32.xlu1 %v8663_v60, %s10563_s0 }
 0x887   : > { %4275 = vrot.lane.b32.xlu0 %v8669_v32, %s10563_s0 }
 0x88a   : > { %4271 = vrot.lane.b32.xlu1 %v8676_v46, %s10563_s0 }
 0x88b   : > { %4281 = vrot.lane.b32.xlu0 %v8679_v47, %s10563_s0 }
 0x88e   : > { %4283 = vrot.lane.b32.xlu1 %v8682_v26, %s10563_s0 }
 0x88f   : > { %4279 = vrot.lane.b32.xlu0 %v8691_v1, %s10563_s0 }
 0x892   : > { %4375 = vrot.lane.b32.xlu1 %v8663_v60, %s10564_s29 }
 0x893   : > { %4073 = vrot.lane.b32.xlu0 %v8723_v3, %s10552_s20 }
 0x896   : > { %4373 = vrot.lane.b32.xlu1 %v8676_v46, %s10564_s29 }
 0x897   : > { %4081 = vrot.lane.b32.xlu0 %v8729_v48, %s10552_s20 }
 0x89a   : > { %4383 = vrot.lane.b32.xlu1 %v8679_v47, %s10564_s29 }
 0x89b   : > { %4377 = vrot.lane.b32.xlu0 %v8669_v32, %s10564_s29 }
 0x89e   : > { %4381 = vrot.lane.b32.xlu1 %v8691_v1, %s10564_s29 }
 0x89f   : > { %4385 = vrot.lane.b32.xlu0 %v8682_v26, %s10564_s29 }
 0x8a2   : > { %4175 = vrot.lane.b32.xlu1 %v8723_v3, %s10553_s21 }
 0x8a3   : > { %4477 = vrot.lane.b32.xlu0 %v8663_v60, %s10546_s26 }
 0x8a6   : > { %4479 = vrot.lane.b32.xlu1 %v8669_v32, %s10546_s26 }
 0x8a7   : > { %4183 = vrot.lane.b32.xlu0 %v8729_v48, %s10553_s21 }
 0x8aa   : > { %4475 = vrot.lane.b32.xlu1 %v8676_v46, %s10546_s26 }
 0x8ab   : > { %4487 = vrot.lane.b32.xlu0 %v8682_v26, %s10546_s26 }
 0x8ae   : > { %4485 = vrot.lane.b32.xlu1 %v8679_v47, %s10546_s26 }
 0x8af   : > { %4483 = vrot.lane.b32.xlu0 %v8691_v1, %s10546_s26 }
 0x8f2   : > { %v6639_v23 = vpop.f32.mrb[40].mxu0 }
 0x8f3   : > { %v6640_v63 = vpop.f32.mrb[41].mxu0 }
 0x8f4   : > { %v6641_v6 = vadd.f32 %v6640_v63, %v6639_v23  ;;  %v6642_v26 = vpop.f32.mrb[42].mxu0 }
 0x8f5   : > { %v6643_v2 = vpop.f32.mrb[43].mxu0 }
 0x8f6   : > { %v6644_v50 = vadd.f32 %v6643_v2, %v6642_v26  ;;  %v3331_v10 = vadd.f32 %v6641_v6, %v8625_v19 }
 0x8f8   : > { %v3334_v0 = vadd.f32 %v6644_v50, %v8627_v18 }
 0x8fa   : > { %v6645_v53 = vpop.f32.mrb[44].mxu0 }
 0x8fb   : > { %v6646_v21 = vpop.f32.mrb[45].mxu0 }
 0x8fc   : > { %v6647_v55 = vadd.f32 %v6646_v21, %v6645_v53  ;;  %v6648_v38 = vpop.f32.mrb[46].mxu0 }
 0x8fd   : > { %v6649_v28 = vpop.f32.mrb[47].mxu0 }
 0x8fe   : > { %v6650_v30 = vadd.f32 %v6649_v28, %v6648_v38  ;;  %v3339_v21 = vadd.f32 %v6647_v55, %v8636_v35 }
 0x900   : > { %v3342_v18 = vadd.f32 %v6650_v30, %v8638_v37 }
 0x902   : > { %v6651_v11 = vpop.f32.mrb[48].mxu0 }
 0x903   : > { %v6652_v49 = vpop.f32.mrb[49].mxu0 }
 0x904   : > { %v6653_v5 = vadd.f32 %v6652_v49, %v6651_v11  ;;  %v6654_v27 = vpop.f32.mrb[50].mxu0 }
 0x905   : > { %v6655_v54 = vpop.f32.mrb[51].mxu0 }
 0x906   : > { %v6656_v56 = vadd.f32 %v6655_v54, %v6654_v27 }
 0x90a   : > { %v6657_v57 = vpop.f32.mrb[52].mxu0 }
 0x90b   : > { %v6658_v61 = vpop.f32.mrb[53].mxu0 }
 0x90c   : > { %v8853_v41 = vadd.f32 %v6658_v61, %v6657_v57  ;;  %v6660_v43 = vpop.f32.mrb[54].mxu0 }
 0x90d   : > { %v6661_v62 = vpop.f32.mrb[55].mxu0  ;;  %v6679_v29 = vpop.f32.mrb[28].mxu1 }
 0x90e   : > { %v8855_v25 = vadd.f32 %v6661_v62, %v6660_v43  ;;  %v6680_v9 = vpop.f32.mrb[29].mxu1 }
 0x90f   : > { %v6681_v12 = vadd.f32 %v6680_v9, %v6679_v29  ;;  %v6682_v52 = vpop.f32.mrb[30].mxu1 }
 0x910   : > { %v6683_v14 = vpop.f32.mrb[31].mxu1 }
 0x911   : > { %v6684_v8 = vadd.f32 %v6683_v14, %v6682_v52  ;;  %v3396_v33 = vadd.f32 %v6681_v12, %v3331_v10 }
 0x913   : > { %v6858_v15 = vpop.f32.mrb[56].mxu0  ;;  %v3399_v45 = vadd.f32 %v6684_v8, %v3334_v0  ;;  %v3350_v0 = vadd.f32 %v6656_v56, %v8647_v59  ;;  %v3355_v59 = vadd.f32 %v8853_v41, %v8653_v42 }
 0x914   : > { %v3460_v22 = vpop.f32.mrb[57].mxu0 }
 0x915   : > { %v3461_v23 = vadd.f32 %v3460_v22, %v3396_v33  ;;  %v6859_v63 = vpop.f32.mrb[58].mxu0  ;;  %v6685_v26 = vpop.f32.mrb[32].mxu1 }
 0x916   : > { %v3463_v2 = vpop.f32.mrb[59].mxu0  ;;  %v6686_v53 = vpop.f32.mrb[33].mxu1 }
 0x917   : > { %v8861_v38 = vadd.f32 %v8629_v31, %v3461_v23  ;;  %v3464_v19 = vadd.f32 %v3463_v2, %v3399_v45  ;;  %v6687_v6 = vadd.f32 %v6686_v53, %v6685_v26  ;;  %v6688_v28 = vpop.f32.mrb[34].mxu1 }
 0x918   : > { %v6689_v50 = vpop.f32.mrb[35].mxu1 }
 0x919   : > { %v6470_v11 = vmul.f32 -1.442695, %v8861_v38  ;;  %v8866_v49 = vadd.f32 %v8631_v4, %v3464_v19  ;;  %v3404_v27 = vadd.f32 %v6687_v6, %v3339_v21  ;;  %v6690_v54 = vadd.f32 %v6689_v50, %v6688_v28 }
 0x91a   : > { %v3347_v4 = vadd.f32 %v6653_v5, %v8645_v34  ;;  %v3358_v6 = vadd.f32 %v8855_v25, %v8655_v17 }
 0x91b   : > { %7267 = vpow2.f32 %v6470_v11  ;;  %v6471_v57 = vmul.f32 -1.442695, %v8866_v49  ;;  %v3469_v35 = vadd.f32 %v6858_v15, %v3404_v27  ;;  %v3407_v55 = vadd.f32 %v6690_v54, %v3342_v18  ;;  %v6862_v31 = vpop.f32.mrb[60].mxu0 }
 0x91c   : > { %v3476_v61 = vpop.f32.mrb[61].mxu0 }
 0x91d   : > { %7269 = vpow2.f32 %v6471_v57  ;;  %v8870_v43 = vadd.f32 %v8641_v36, %v3469_v35  ;;  %v3472_v37 = vadd.f32 %v6859_v63, %v3407_v55  ;;  %v6691_v30 = vpop.f32.mrb[36].mxu1  ;;  %v6863_v62 = vpop.f32.mrb[62].mxu0 }
 0x91e   : > { %v6692_v29 = vpop.f32.mrb[37].mxu1  ;;  %v3479_v9 = vpop.f32.mrb[63].mxu0 }
 0x91f   : > { %v6472_v10 = vmul.f32 -1.442695, %v8870_v43  ;;  %v8875_v12 = vadd.f32 %v8643_v58, %v3472_v37  ;;  %v6693_v52 = vadd.f32 %v6692_v29, %v6691_v30  ;;  %v6694_v14 = vpop.f32.mrb[38].mxu1 }
 0x920   : > { %v6695_v8 = vpop.f32.mrb[39].mxu1 }
 0x921   : > { %7271 = vpow2.f32 %v6472_v10  ;;  %v6473_v36 = vmul.f32 -1.442695, %v8875_v12  ;;  %v6696_v33 = vadd.f32 %v6695_v8, %v6694_v14  ;;  %v3412_v15 = vadd.f32 %v6693_v52, %v3347_v4 }
 0x923   : > { %7273 = vpow2.f32 %v6473_v36  ;;  %v3477_v45 = vadd.f32 %v3476_v61, %v3412_v15  ;;  %v3415_v22 = vadd.f32 %v6696_v33, %v3350_v0 }
 0x925   : > { %v7268_v23 = vpop.eup %7267  ;;  %v8880_v34 = vadd.f32 %v8649_v39, %v3477_v45  ;;  %v3480_v5 = vadd.f32 %v3479_v9, %v3415_v22  ;;  %v6697_v58 = vpop.f32.mrb[40].mxu1 }
 0x926   : > { %v3563_v63 = vadd.f32 1.0, %v7268_v23  ;;  %v6698_v26 = vpop.f32.mrb[41].mxu1 }
 0x927   : > { %v7270_v2 = vpop.eup %7269  ;;  %v6474_v56 = vmul.f32 -1.442695, %v8880_v34  ;;  %v3536_v53 = vadd.f32 %v8651_v40, %v3480_v5  ;;  %v6699_v21 = vadd.f32 %v6698_v26, %v6697_v58  ;;  %v6700_v19 = vpop.f32.mrb[42].mxu1 }
 0x928   : > { %7275 = vrcp.f32 %v3563_v63  ;;  %v3564_v39 = vadd.f32 1.0, %v7270_v2  ;;  %v6701_v28 = vpop.f32.mrb[43].mxu1 }
 0x929   : > { %7277 = vpow2.f32 %v6474_v56  ;;  %v6475_v18 = vmul.f32 -1.442695, %v3536_v53  ;;  %v3420_v50 = vadd.f32 %v6699_v21, %v3355_v59  ;;  %v6702_v11 = vadd.f32 %v6701_v28, %v6700_v19 }
 0x92a   : > { %7279 = vrcp.f32 %v3564_v39 }
 0x92b   : > { %v7272_v27 = vpop.eup %7271  ;;  %7281 = vpow2.f32 %v6475_v18  ;;  %v3485_v42 = vadd.f32 %v6862_v31, %v3420_v50  ;;  %v3423_v41 = vadd.f32 %v6702_v11, %v3358_v6 }
 0x92c   : > { %v3565_v54 = vadd.f32 1.0, %v7272_v27 }
 0x92d   : > { %v7274_v57 = vpop.eup %7273  ;;  %v3537_v40 = vadd.f32 %v8657_v44, %v3485_v42  ;;  %v3488_v35 = vadd.f32 %v6863_v62, %v3423_v41 }
 0x92e   : > { %7283 = vrcp.f32 %v3565_v54  ;;  %v3566_v55 = vadd.f32 1.0, %v7274_v57 }
 0x92f   : > { %v6476_v17 = vmul.f32 -1.442695, %v3537_v40  ;;  %v3538_v25 = vadd.f32 %v8659_v24, %v3488_v35 }
 0x930   : > { %7285 = vrcp.f32 %v3566_v55 }
 0x931   : > { %7287 = vpow2.f32 %v6476_v17  ;;  %v6477_v61 = vmul.f32 -1.442695, %v3538_v25 }
 0x932   : > { %v7276_v37 = vpop.eup %7275 }
 0x933   : > { %v7278_v30 = vpop.eup %7277  ;;  %7289 = vpow2.f32 %v6477_v61  ;;  %v3587_v4 = vmul.f32 %v7276_v37, %v8861_v38  ;;  %v8930_v61 = vpop.permute.xlu1 %4069 }
 0x934   : > { %v7280_v29 = vpop.eup %7279  ;;  %v3567_v9 = vadd.f32 1.0, %v7278_v30  ;;  %v8932_v37 = vpop.permute.xlu0 %4071 }
 0x935   : > { %v7282_v31 = vpop.eup %7281  ;;  %v3588_v10 = vmul.f32 %v7280_v29, %v8866_v49 }
 0x936   : > { %7291 = vrcp.f32 %v3567_v9  ;;  %v3568_v44 = vadd.f32 1.0, %v7282_v31 }
 0x937   : > { %v3595_v62 = vpack.c.bf16 %v3588_v10, %v3587_v4 }
 0x938   : > { %v7284_v52 = vpop.eup %7283  ;;  %7293 = vrcp.f32 %v3568_v44 }
 0x939   : > { %3824 = vmatmul.mubr.bf16.vlgmr.msra.gmra.mrb[44].mxu1 %v3595_v62  ;;  %3897 = vmatmul.mubr.bf16.vlgmr.msra.gmra.mrb[64].mxu0 %v3595_v62  ;;  %v3589_v0 = vmul.f32 %v7284_v52, %v8870_v43 }
 0x93a   : > { %v7286_v24 = vpop.eup %7285  ;;  %3833 = vmatprep.mubr.bf16.mxu1 %v8622_v51  ;;  %3906 = vmatprep.mubr.bf16.mxu0 %v8622_v51 }
 0x93b   : > { %v7288_v14 = vpop.eup %7287  ;;  %v3590_v8 = vmul.f32 %v7286_v24, %v8875_v12 }
 0x93c   : > { %v3569_v38 = vadd.f32 1.0, %v7288_v14 }
 0x93d   : > { %v7290_v36 = vpop.eup %7289  ;;  %v3596_v49 = vpack.c.bf16 %v3590_v8, %v3589_v0  ;;  %v8951_v8 = vpop.permute.xlu1 %4067 }
 0x93e   : > { %7295 = vrcp.f32 %v3569_v38  ;;  %v3570_v33 = vadd.f32 1.0, %v7290_v36  ;;  %v8953_v38 = vpop.permute.xlu0 %4077 }
 0x940   : > { %v7292_v15 = vpop.eup %7291  ;;  %7297 = vrcp.f32 %v3570_v33 }
 0x941   : > { %3834 = vmatmul.mubr.bf16.gmra.mrb[48].mxu1 %v3596_v49  ;;  %3907 = vmatmul.mubr.bf16.gmra.mrb[68].mxu0 %v3596_v49  ;;  %v3591_v22 = vmul.f32 %v7292_v15, %v8880_v34 }
 0x942   : > { %v7294_v45 = vpop.eup %7293  ;;  %3843 = vmatprep.mubr.bf16.mxu1 %v8622_v51  ;;  %3916 = vmatprep.mubr.bf16.mxu0 %v8622_v51 }
 0x943   : > { %v3592_v23 = vmul.f32 %v7294_v45, %v3536_v53 }
 0x945   : > { %v3597_v43 = vpack.c.bf16 %v3592_v23, %v3591_v22 }
 0x948   : > { %v7296_v5 = vpop.eup %7295 }
 0x949   : > { %3844 = vmatmul.mubr.bf16.gmra.mrb[52].mxu1 %v3597_v43  ;;  %3917 = vmatmul.mubr.bf16.gmra.mrb[72].mxu0 %v3597_v43  ;;  %v3593_v58 = vmul.f32 %v7296_v5, %v3537_v40 }
 0x94a   : > { %v7298_v12 = vpop.eup %7297  ;;  %3853 = vmatprep.mubr.bf16.mxu1 %v8622_v51  ;;  %3926 = vmatprep.mubr.bf16.mxu0 %v8622_v51 }
 0x94b   : > { %v3594_v63 = vmul.f32 %v7298_v12, %v3538_v25 }
 0x94d   : > { %v3598_v26 = vpack.c.bf16 %v3594_v63, %v3593_v58 }
 0x951   : > { %3854 = vmatmul.mubr.bf16.gmra.mrb[56].mxu1 %v3598_v26  ;;  %3927 = vmatmul.mubr.bf16.gmra.mrb[76].mxu0 %v3598_v26 }
 0xa0c   : > { %v3825_v2 = vpop.f32.mrb[44].mxu1  ;;  %v3898_v59 = vpop.f32.mrb[64].mxu0 }
 0xa0d   : > { %v3827_v56 = vpop.f32.mrb[45].mxu1  ;;  %v3900_v21 = vpop.f32.mrb[65].mxu0 }
 0xa0e   : > { %v3829_v34 = vpop.f32.mrb[46].mxu1  ;;  %v3902_v53 = vpop.f32.mrb[66].mxu0 }
 0xa0f   : > { %v8901_v19 = vpack.c.bf16 %v3829_v34, %v3825_v2  ;;  %v8903_v6 = vpack.c.bf16 %v3902_v53, %v3898_v59  ;;  %v3831_v39 = vpop.f32.mrb[47].mxu1  ;;  %v3904_v28 = vpop.f32.mrb[67].mxu0 }
 0xa10   : > { %v8905_v18 = vpack.c.bf16 %v3831_v39, %v3827_v56  ;;  %v3940_v51 = vpack.c.bf16 %v3904_v28, %v3900_v21  ;;  %v8974_v2 = vpop.permute.xlu1 %4079  ;;  %v8976_v59 = vpop.permute.xlu0 %4075 }
 0xa11   : > { %4039 = vrot.lane.b32.xlu0 %v8903_v6, %s10552_s20  ;;  %4035 = vrot.lane.b32.xlu1 %v8901_v19, %s10552_s20 }
 0xa12   : > { %3956 = vst.msk [vmem:[#allocation3 + $0x18] sm:$0xff] %vm1012_vm9, %v3940_v51  ;;  %5130 = vmatprep.subr.bf16.mxu1 %v8905_v18 }
 0xa13   : > { %5131 = vmatpush1.bf16.msra.mxu1 %v8901_v19 }
 0xa14   : > { %v3835_v50 = vpop.f32.mrb[48].mxu1  ;;  %v3908_v11 = vpop.f32.mrb[68].mxu0 }
 0xa15   : > { %v3837_v27 = vpop.f32.mrb[49].mxu1  ;;  %v3910_v42 = vpop.f32.mrb[69].mxu0  ;;  %4141 = vrot.lane.b32.xlu0 %v8903_v6, %s10553_s21  ;;  %4137 = vrot.lane.b32.xlu1 %v8901_v19, %s10553_s21 }
 0xa16   : > { %v3839_v41 = vpop.f32.mrb[50].mxu1  ;;  %v3912_v54 = vpop.f32.mrb[70].mxu0 }
 0xa17   : > { %v8918_v57 = vpack.c.bf16 %v3839_v41, %v3835_v50  ;;  %v8920_v40 = vpack.c.bf16 %v3912_v54, %v3908_v11  ;;  %v3841_v35 = vpop.f32.mrb[51].mxu1  ;;  %v3914_v55 = vpop.f32.mrb[71].mxu0 }
 0xa18   : > { %v8922_v17 = vpack.c.bf16 %v3841_v35, %v3837_v27  ;;  %v3944_v25 = vpack.c.bf16 %v3914_v55, %v3910_v42  ;;  %v8986_v56 = vpop.permute.xlu1 %4171  ;;  %v8988_v21 = vpop.permute.xlu0 %4173 }
 0xa19   : > { %4243 = vrot.lane.b32.xlu0 %v8903_v6, %s10563_s0  ;;  %4239 = vrot.lane.b32.xlu1 %v8901_v19, %s10563_s0  ;;  %v8956_v33 = vld [vmem:[#allocation3 + $0x18] sm:$0xff] }
 0xa1a   : > { %3960 = vst.msk [vmem:[#allocation3 + $0x38] sm:$0xff] %vm1012_vm9, %v3944_v25  ;;  %5132 = vmatprep.subr.bf16.mxu1 %v8922_v17 }
 0xa1b   : > { %5133 = vmatpush1.bf16.msra.mxu1 %v8918_v57 }
 0xa1c   : > { %v3845_v30 = vpop.f32.mrb[52].mxu1  ;;  %v3918_v29 = vpop.f32.mrb[72].mxu0 }
 0xa1d   : > { %v3847_v9 = vpop.f32.mrb[53].mxu1  ;;  %v3920_v31 = vpop.f32.mrb[73].mxu0  ;;  %4345 = vrot.lane.b32.xlu0 %v8903_v6, %s10564_s29  ;;  %4341 = vrot.lane.b32.xlu1 %v8901_v19, %s10564_s29 }
 0xa1e   : > { %v3849_v4 = vpop.f32.mrb[54].mxu1  ;;  %v3922_v10 = vpop.f32.mrb[74].mxu0 }
 0xa1f   : > { %v8939_v44 = vpack.c.bf16 %v3849_v4, %v3845_v30  ;;  %v8941_v62 = vpack.c.bf16 %v3922_v10, %v3918_v29  ;;  %v3851_v52 = vpop.f32.mrb[55].mxu1  ;;  %v3924_v24 = vpop.f32.mrb[75].mxu0 }
 0xa20   : > { %v8943_v14 = vpack.c.bf16 %v3851_v52, %v3847_v9  ;;  %v3948_v0 = vpack.c.bf16 %v3924_v24, %v3920_v31  ;;  %v9001_v34 = vpop.permute.xlu0 %4179 }
 0xa21   : > { %4447 = vrot.lane.b32.xlu0 %v8903_v6, %s10546_s26  ;;  %4443 = vrot.lane.b32.xlu1 %v8901_v19, %s10546_s26  ;;  %v9047_v42 = vld [vmem:[#allocation3 + $0x38] sm:$0xff] }
 0xa22   : > { %3964 = vst.msk [vmem:[#allocation3 + $0x58] sm:$0xff] %vm1012_vm9, %v3948_v0  ;;  %5134 = vmatprep.subr.bf16.mxu1 %v8943_v14 }
 0xa23   : > { %5135 = vmatpush1.bf16.msra.mxu1 %v8939_v44 }
 0xa24   : > { %v3855_v36 = vpop.f32.mrb[56].mxu1  ;;  %v3928_v49 = vpop.f32.mrb[76].mxu0 }
 0xa25   : > { %v3857_v15 = vpop.f32.mrb[57].mxu1  ;;  %v3930_v45 = vpop.f32.mrb[77].mxu0  ;;  %4143 = vrot.lane.b32.xlu0 %v8956_v33, %s10553_s21  ;;  %4549 = vrot.lane.b32.xlu1 %v8903_v6, %s10547_s19 }
 0xa26   : > { %v3859_v22 = vpop.f32.mrb[58].mxu1  ;;  %v3932_v23 = vpop.f32.mrb[78].mxu0 }
 0xa27   : > { %v8962_v43 = vpack.c.bf16 %v3859_v22, %v3855_v36  ;;  %v8964_v5 = vpack.c.bf16 %v3932_v23, %v3928_v49  ;;  %v3861_v12 = vpop.f32.mrb[59].mxu1  ;;  %v3934_v58 = vpop.f32.mrb[79].mxu0 }
 0xa28   : > { %v8966_v63 = vpack.c.bf16 %v3861_v12, %v3857_v15  ;;  %v3952_v26 = vpack.c.bf16 %v3934_v58, %v3930_v45  ;;  %v9009_v39 = vpop.permute.xlu0 %4177 }
 0xa29   : > { %4347 = vrot.lane.b32.xlu0 %v8956_v33, %s10564_s29  ;;  %4037 = vrot.lane.b32.xlu1 %v8905_v18, %s10552_s20  ;;  %v9089_v31 = vld [vmem:[#allocation3 + $0x58] sm:$0xff] }
 0xa2a   : > { %3968 = vst.msk [vmem:[#allocation3 + $0x78] sm:$0xff] %vm1012_vm9, %v3952_v26  ;;  %5136 = vmatprep.subr.bf16.mxu1 %v8966_v63  ;;  %vm10700_vm9 = vmmov %vm10698_vm7 }
 0xa2b   : > { %5137 = vmatpush1.bf16.msra.mxu1 %v8962_v43 }
 0xa2c   : > { %5138 = vmatprep.subr.bf16.mxu1 %v8663_v60  ;;  %v8999_v60 = vpop.permute.xlu1 %4169  ;;  %v9021_v28 = vpop.permute.xlu0 %4275 }
 0xa2d   : > { %4547 = vrot.lane.b32.xlu0 %v8905_v18, %s10547_s19  ;;  %4139 = vrot.lane.b32.xlu1 %v8905_v18, %s10553_s21  ;;  %10566 = vst [vmem:[#allocation13_spill] sm:$0xff] %v9021_v28 }
 0xa2f   : > { %5139 = vmatpush1.bf16.msra.mxu1 %v8676_v46 }
 0xa30   : > { %5140 = vmatprep.subr.bf16.mxu1 %v8679_v47  ;;  %v9007_v53 = vpop.permute.xlu1 %4181  ;;  %v9029_v50 = vpop.permute.xlu0 %4281 }
 0xa31   : > { %4043 = vrot.lane.b32.xlu0 %v8918_v57, %s10552_s20  ;;  %4241 = vrot.lane.b32.xlu1 %v8905_v18, %s10563_s0  ;;  %10568 = vst [vmem:[#allocation15_spill] sm:$0xff] %v9029_v50 }
 0xa33   : > { %5141 = vmatpush1.bf16.msra.mxu1 %v8691_v1 }
 0xa34   : > { %v9019_v1 = vpop.permute.xlu1 %4273  ;;  %v9041_v27 = vpop.permute.xlu0 %4279 }
 0xa35   : > { %4145 = vrot.lane.b32.xlu0 %v8918_v57, %s10553_s21  ;;  %4343 = vrot.lane.b32.xlu1 %v8905_v18, %s10564_s29  ;;  %10565 = vst [vmem:[#allocation12_spill] sm:$0xff] %v9019_v1  ;;  %10570 = vst [vmem:[#allocation17_spill] sm:$0xff] %v9041_v27  ;;  %v9384_v27 = vld [vmem:[#allocation3 + $0x80] sm:$0xff] }
 0xa36   : > { %10619 = vst [vmem:[#allocation66_spill] sm:$0xff] %v9384_v27 }
 0xa38   : > { %v9027_v51 = vpop.permute.xlu1 %4271  ;;  %v9051_v54 = vpop.permute.xlu0 %4073 }
 0xa39   : > { %4247 = vrot.lane.b32.xlu0 %v8918_v57, %s10563_s0  ;;  %4445 = vrot.lane.b32.xlu1 %v8905_v18, %s10546_s26  ;;  %10567 = vst [vmem:[#allocation14_spill] sm:$0xff] %v9027_v51  ;;  %10572 = vst [vmem:[#allocation19_spill] sm:$0xff] %v9051_v54  ;;  %v9402_v51 = vld [vmem:[#allocation3 + $0xa8] sm:$0xff] }
 0xa3a   : > { %10622 = vst [vmem:[#allocation69_spill] sm:$0xff] %v9402_v51 }
 0xa3c   : > { %v9039_v11 = vpop.permute.xlu1 %4283  ;;  %v9063_v55 = vpop.permute.xlu0 %4081 }
 0xa3d   : > { %4353 = vrot.lane.b32.xlu0 %v8920_v40, %s10564_s29  ;;  %4041 = vrot.lane.b32.xlu1 %v8956_v33, %s10552_s20  ;;  %10569 = vst [vmem:[#allocation16_spill] sm:$0xff] %v9039_v11  ;;  %10574 = vst [vmem:[#allocation21_spill] sm:$0xff] %v9063_v55  ;;  %v9308_v55 = vld [vmem:[#allocation3 + $0x98] sm:$0xff] }
 0xa40   : > { %v9049_v41 = vpop.permute.xlu1 %4375  ;;  %v9071_v30 = vpop.permute.xlu0 %4377 }
 0xa41   : > { %4455 = vrot.lane.b32.xlu0 %v8920_v40, %s10546_s26  ;;  %4245 = vrot.lane.b32.xlu1 %v8956_v33, %s10563_s0  ;;  %10571 = vst [vmem:[#allocation18_spill] sm:$0xff] %v9049_v41  ;;  %10576 = vst [vmem:[#allocation23_spill] sm:$0xff] %v9071_v30 }
 0xa44   : > { %v9061_v35 = vpop.permute.xlu1 %4373  ;;  %v9083_v9 = vpop.permute.xlu0 %4385 }
 0xa45   : > { %4451 = vrot.lane.b32.xlu0 %v8918_v57, %s10546_s26  ;;  %4047 = vrot.lane.b32.xlu1 %v8920_v40, %s10552_s20  ;;  %10573 = vst [vmem:[#allocation20_spill] sm:$0xff] %v9061_v35  ;;  %10578 = vst [vmem:[#allocation25_spill] sm:$0xff] %v9083_v9  ;;  %v9306_v35 = vld [vmem:[#allocation3 + $0x78] sm:$0xff] }
 0xa48   : > { %v9069_v25 = vpop.permute.xlu1 %4383  ;;  %v9093_v10 = vpop.permute.xlu0 %4477 }
 0xa49   : > { %4045 = vrot.lane.b32.xlu0 %v8922_v17, %s10552_s20  ;;  %4149 = vrot.lane.b32.xlu1 %v8920_v40, %s10553_s21  ;;  %10575 = vst [vmem:[#allocation22_spill] sm:$0xff] %v9069_v25  ;;  %10580 = vst [vmem:[#allocation27_spill] sm:$0xff] %v9093_v10  ;;  %v9250_v25 = vld [vmem:[#allocation3 + $0x88] sm:$0xff] }
 0xa4c   : > { %v9081_v29 = vpop.permute.xlu1 %4381  ;;  %v9105_v24 = vpop.permute.xlu0 %4183 }
 0xa4d   : > { %4147 = vrot.lane.b32.xlu0 %v8922_v17, %s10553_s21  ;;  %4251 = vrot.lane.b32.xlu1 %v8920_v40, %s10563_s0  ;;  %10577 = vst [vmem:[#allocation24_spill] sm:$0xff] %v9081_v29  ;;  %10582 = vst [vmem:[#allocation29_spill] sm:$0xff] %v9105_v24 }
 0xa50   : > { %v9091_v4 = vpop.permute.xlu1 %4175  ;;  %v9113_v36 = vpop.permute.xlu0 %4487 }
 0xa51   : > { %4249 = vrot.lane.b32.xlu0 %v8922_v17, %s10563_s0  ;;  %4349 = vrot.lane.b32.xlu1 %v8918_v57, %s10564_s29  ;;  %10579 = vst [vmem:[#allocation26_spill] sm:$0xff] %v9091_v4  ;;  %10584 = vst [vmem:[#allocation31_spill] sm:$0xff] %v9113_v36 }
 0xa54   : > { %v9103_v52 = vpop.permute.xlu1 %4479  ;;  %v9125_v15 = vpop.permute.xlu0 %4483 }
 0xa55   : > { %4151 = vrot.lane.b32.xlu0 %v9047_v42, %s10553_s21  ;;  %4351 = vrot.lane.b32.xlu1 %v8922_v17, %s10564_s29  ;;  %10581 = vst [vmem:[#allocation28_spill] sm:$0xff] %v9103_v52  ;;  %10586 = vst [vmem:[#allocation33_spill] sm:$0xff] %v9125_v15 }
 0xa58   : > { %v9111_v0 = vpop.permute.xlu1 %4475 }
 0xa59   : > { %4049 = vrot.lane.b32.xlu0 %v9047_v42, %s10552_s20  ;;  %4453 = vrot.lane.b32.xlu1 %v8922_v17, %s10546_s26  ;;  %10583 = vst [vmem:[#allocation30_spill] sm:$0xff] %v9111_v0 }
 0xa5c   : > { %v9123_v49 = vpop.permute.xlu1 %4485 }
 0xa5d   : > { %4055 = vrot.lane.b32.xlu0 %v8941_v62, %s10552_s20  ;;  %4355 = vrot.lane.b32.xlu1 %v9047_v42, %s10564_s29  ;;  %10585 = vst [vmem:[#allocation32_spill] sm:$0xff] %v9123_v49 }
 0xa61   : > { %4157 = vrot.lane.b32.xlu0 %v8941_v62, %s10553_s21  ;;  %4051 = vrot.lane.b32.xlu1 %v8939_v44, %s10552_s20 }
 0xa65   : > { %4259 = vrot.lane.b32.xlu0 %v8941_v62, %s10563_s0  ;;  %4153 = vrot.lane.b32.xlu1 %v8939_v44, %s10553_s21 }
 0xa69   : > { %4361 = vrot.lane.b32.xlu0 %v8941_v62, %s10564_s29  ;;  %4255 = vrot.lane.b32.xlu1 %v8939_v44, %s10563_s0 }
 0xa6d   : > { %4057 = vrot.lane.b32.xlu0 %v9089_v31, %s10552_s20  ;;  %4357 = vrot.lane.b32.xlu1 %v8939_v44, %s10564_s29 }
 0xa71   : > { %4159 = vrot.lane.b32.xlu0 %v9089_v31, %s10553_s21  ;;  %4463 = vrot.lane.b32.xlu1 %v8941_v62, %s10546_s26 }
 0xa75   : > { %4461 = vrot.lane.b32.xlu0 %v8943_v14, %s10546_s26  ;;  %4459 = vrot.lane.b32.xlu1 %v8939_v44, %s10546_s26 }
 0xa79   : > { %4363 = vrot.lane.b32.xlu0 %v9089_v31, %s10564_s29  ;;  %4053 = vrot.lane.b32.xlu1 %v8943_v14, %s10552_s20 }
 0xa7d   : > { %4059 = vrot.lane.b32.xlu0 %v8962_v43, %s10552_s20  ;;  %4155 = vrot.lane.b32.xlu1 %v8943_v14, %s10553_s21 }
 0xa81   : > { %4161 = vrot.lane.b32.xlu0 %v8962_v43, %s10553_s21  ;;  %4257 = vrot.lane.b32.xlu1 %v8943_v14, %s10563_s0 }
 0xa83   : > { %v4036_v45 = vpop.permute.xlu1 %4035  ;;  %v9131_v22 = vpop.permute.xlu0 %4039 }
 0xa84   : > { %10587 = vst [vmem:[#allocation34_spill] sm:$0xff] %v9131_v22 }
 0xa85   : > { %4263 = vrot.lane.b32.xlu0 %v8962_v43, %s10563_s0  ;;  %4359 = vrot.lane.b32.xlu1 %v8943_v14, %s10564_s29 }
 0xa87   : > { %v9137_v23 = vpop.permute.xlu1 %4137  ;;  %v9139_v12 = vpop.permute.xlu0 %4141 }
 0xa89   : > { %4369 = vrot.lane.b32.xlu0 %v8964_v5, %s10564_s29  ;;  %4063 = vrot.lane.b32.xlu1 %v8964_v5, %s10552_s20 }
 0xa8b   : > { %v9145_v58 = vpop.permute.xlu1 %4239  ;;  %v9147_v26 = vpop.permute.xlu0 %4243 }
 0xa8d   : > { %4471 = vrot.lane.b32.xlu0 %v8964_v5, %s10546_s26  ;;  %4165 = vrot.lane.b32.xlu1 %v8964_v5, %s10553_s21 }
 0xa8f   : > { %v9153_v7 = vpop.permute.xlu1 %4341  ;;  %v9155_v20 = vpop.permute.xlu0 %4345 }
 0xa90   : > { %10588 = vst [vmem:[#allocation35_spill] sm:$0xff] %v9153_v7  ;;  %10589 = vst [vmem:[#allocation36_spill] sm:$0xff] %v9155_v20 }
 0xa91   : > { %4267 = vrot.lane.b32.xlu1 %v8964_v5, %s10563_s0  ;;  %4467 = vrot.lane.b32.xlu0 %v8962_v43, %s10546_s26 }
 0xa93   : > { %v9161_v16 = vpop.permute.xlu1 %4443  ;;  %v9163_v13 = vpop.permute.xlu0 %4447 }
 0xa94   : > { %10590 = vst [vmem:[#allocation37_spill] sm:$0xff] %v9161_v16  ;;  %10591 = vst [vmem:[#allocation38_spill] sm:$0xff] %v9163_v13 }
 0xa95   : > { %4365 = vrot.lane.b32.xlu1 %v8962_v43, %s10564_s29  ;;  %4061 = vrot.lane.b32.xlu0 %v8966_v63, %s10552_s20 }
 0xa97   : > { %v9169_v15 = vpop.permute.xlu1 %4549  ;;  %v9171_v49 = vpop.permute.xlu0 %4143 }
 0xa98   : > { %10592 = vst [vmem:[#allocation39_spill] sm:$0xff] %v9169_v15  ;;  %10593 = vst [vmem:[#allocation40_spill] sm:$0xff] %v9171_v49 }
 0xa99   : > { %4545 = vrot.lane.b32.xlu1 %v8901_v19, %s10547_s19  ;;  %4253 = vrot.lane.b32.xlu0 %v9047_v42, %s10563_s0 }
 0xa9b   : > { %v4038_v36 = vpop.permute.xlu1 %4037  ;;  %v9177_v24 = vpop.permute.xlu0 %4347 }
 0xa9c   : > { %10594 = vst [vmem:[#allocation41_spill] sm:$0xff] %v9177_v24  ;;  %v4084_v0 = vsel %vm657_vm1, %v4038_v36, %v9131_v22  ;;  %v4083_v10 = vsel %vm657_vm1, %v4036_v45, %v4038_v36  ;;  %v7168_v45 = vld [vmem:[%s10443_s12 + $0x4] ss:$28 sps:$4 sm:$0xff]  }
 0xa9d   : > { %4555 = vrot.lane.b32.xlu1 %v8922_v17, %s10547_s19  ;;  %4379 = vrot.lane.b32.xlu0 %v8723_v3, %s10564_s29 }
 0xa9e   : > { %5142 = vmatprep.subr.bf16.mxu1 %v4084_v0  ;;  %5162 = vmatprep.mubr.bf16.mxu1 %v7168_v45 }
 0xa9f   : > { %5143 = vmatpush1.bf16.msra.mxu1 %v4083_v10  ;;  %v9186_v15 = vpop.permute.xlu1 %4139  ;;  %v9188_v52 = vpop.permute.xlu0 %4547  ;;  %5374 = vmatprep.mubr.bf16.mxu0 %v7168_v45 }
 0xaa0   : > { %10595 = vst [vmem:[#allocation42_spill] sm:$0xff] %v9188_v52 }
 0xaa1   : > { %4261 = vrot.lane.b32.xlu1 %v9089_v31, %s10563_s0  ;;  %4557 = vrot.lane.b32.xlu0 %v8920_v40, %s10547_s19 }
 0xaa3   : > { %v9194_v4 = vpop.permute.xlu1 %4241  ;;  %v4044_v36 = vpop.permute.xlu0 %4043 }
 0xaa5   : > { %4387 = vrot.lane.b32.xlu1 %v8729_v48, %s10564_s29  ;;  %4553 = vrot.lane.b32.xlu0 %v8918_v57, %s10547_s19 }
 0xaa7   : > { %v9203_v10 = vpop.permute.xlu1 %4343  ;;  %v9205_v0 = vpop.permute.xlu0 %4145 }
 0xaa8   : > { %10596 = vst [vmem:[#allocation43_spill] sm:$0xff] %v9203_v10  ;;  %v9352_v10 = vld [vmem:[#allocation3 + $0xb8] sm:$0xff] }
 0xaa9   : > { %4565 = vrot.lane.b32.xlu1 %v8941_v62, %s10547_s19  ;;  %4563 = vrot.lane.b32.xlu0 %v8943_v14, %s10547_s19 }
 0xaab   : > { %v9211_v52 = vpop.permute.xlu1 %4445  ;;  %v9213_v24 = vpop.permute.xlu0 %4247 }
 0xaac   : > { %10597 = vst [vmem:[#allocation44_spill] sm:$0xff] %v9211_v52 }
 0xaad   : > { %4561 = vrot.lane.b32.xlu1 %v8939_v44, %s10547_s19  ;;  %4163 = vrot.lane.b32.xlu0 %v8966_v63, %s10553_s21 }
 0xaaf   : > { %v9219_v45 = vpop.permute.xlu1 %4041  ;;  %v9221_v22 = vpop.permute.xlu0 %4353 }
 0xab0   : > { %10598 = vst [vmem:[#allocation45_spill] sm:$0xff] %v9219_v45  ;;  %10599 = vst [vmem:[#allocation46_spill] sm:$0xff] %v9221_v22 }
 0xab1   : > { %4277 = vrot.lane.b32.xlu1 %v8723_v3, %s10563_s0  ;;  %4449 = vrot.lane.b32.xlu0 %v8956_v33, %s10546_s26 }
 0xab3   : > { %v9227_v16 = vpop.permute.xlu1 %4245  ;;  %v9229_v52 = vpop.permute.xlu0 %4455 }
 0xab4   : > { %10600 = vst [vmem:[#allocation47_spill] sm:$0xff] %v9227_v16  ;;  %10601 = vst [vmem:[#allocation48_spill] sm:$0xff] %v9229_v52 }
 0xab5   : > { %4457 = vrot.lane.b32.xlu1 %v9047_v42, %s10546_s26  ;;  %4573 = vrot.lane.b32.xlu0 %v8964_v5, %s10547_s19 }
 0xab7   : > { %v9235_v13 = vpop.permute.xlu1 %4047  ;;  %v9237_v45 = vpop.permute.xlu0 %4451 }
 0xab8   : > { %10602 = vst [vmem:[#allocation49_spill] sm:$0xff] %v9235_v13  ;;  %10603 = vst [vmem:[#allocation50_spill] sm:$0xff] %v9237_v45 }
 0xab9   : > { %4581 = vrot.lane.b32.xlu1 %v8669_v32, %s10547_s19  ;;  %4569 = vrot.lane.b32.xlu0 %v8962_v43, %s10547_s19 }
 0xabb   : > { %v9243_v29 = vpop.permute.xlu1 %4149  ;;  %v4046_v16 = vpop.permute.xlu0 %4045 }
 0xabc   : > { %v4087_v52 = vsel %vm657_vm1, %v4046_v16, %v9235_v13  ;;  %v4086_v49 = vsel %vm657_vm1, %v4044_v36, %v4046_v16  ;;  %v9284_v13 = vld [vmem:[#allocation3 + $0xb0] sm:$0xff] }
 0xabd   : > { %4577 = vrot.lane.b32.xlu1 %v8676_v46, %s10547_s19  ;;  %4579 = vrot.lane.b32.xlu0 %v9250_v25, %s10547_s19 }
 0xabe   : > { %5144 = vmatprep.subr.bf16.mxu1 %v4087_v52 }
 0xabf   : > { %5145 = vmatpush1.bf16.msra.mxu1 %v4086_v49  ;;  %v9254_v32 = vpop.permute.xlu1 %4251  ;;  %v9256_v45 = vpop.permute.xlu0 %4147 }
 0xac1   : > { %4587 = vrot.lane.b32.xlu1 %v8679_v47, %s10547_s19  ;;  %4285 = vrot.lane.b32.xlu0 %v8729_v48, %s10563_s0 }
 0xac3   : > { %v9262_v16 = vpop.permute.xlu1 %4349  ;;  %v9264_v46 = vpop.permute.xlu0 %4249 }
 0xac4   : > { %10604 = vst [vmem:[#allocation51_spill] sm:$0xff] %v9262_v16 }
 0xac5   : > { %4465 = vrot.lane.b32.xlu1 %v9089_v31, %s10546_s26  ;;  %4265 = vrot.lane.b32.xlu0 %v8966_v63, %s10563_s0 }
 0xac7   : > { %v9270_v52 = vpop.permute.xlu1 %4351  ;;  %v9272_v49 = vpop.permute.xlu0 %4151 }
 0xac8   : > { %10605 = vst [vmem:[#allocation52_spill] sm:$0xff] %v9270_v52  ;;  %10606 = vst [vmem:[#allocation53_spill] sm:$0xff] %v9272_v49 }
 0xac9   : > { %4591 = vrot.lane.b32.xlu1 %v8729_v48, %s10547_s19  ;;  %4583 = vrot.lane.b32.xlu0 %v8723_v3, %s10547_s19  ;;  %v9292_v48 = vld [vmem:[#allocation3 + $0xa0] sm:$0xff] }
 0xacb   : > { %v9278_v47 = vpop.permute.xlu1 %4453  ;;  %v9280_v36 = vpop.permute.xlu0 %4049 }
 0xacc   : > { %10607 = vst [vmem:[#allocation54_spill] sm:$0xff] %v9278_v47  ;;  %10608 = vst [vmem:[#allocation55_spill] sm:$0xff] %v9280_v36 }
 0xacd   : > { %4651 = vrot.lane.b32.xlu1 %v8903_v6, %s10548_s1  ;;  %4589 = vrot.lane.b32.xlu0 %v9284_v13, %s10547_s19 }
 0xacf   : > { %v9288_v9 = vpop.permute.xlu1 %4355  ;;  %v4056_v49 = vpop.permute.xlu0 %4055 }
 0xad0   : > { %10609 = vst [vmem:[#allocation56_spill] sm:$0xff] %v9288_v9 }
 0xad1   : > { %4647 = vrot.lane.b32.xlu1 %v8901_v19, %s10548_s1  ;;  %4585 = vrot.lane.b32.xlu0 %v9292_v48, %s10547_s19 }
 0xad3   : > { %v4052_v3 = vpop.permute.xlu1 %4051  ;;  %v9296_v36 = vpop.permute.xlu0 %4157 }
 0xad5   : > { %4657 = vrot.lane.b32.xlu1 %v8922_v17, %s10548_s1  ;;  %4649 = vrot.lane.b32.xlu0 %v8905_v18, %s10548_s1 }
 0xad7   : > { %v9302_v47 = vpop.permute.xlu1 %4153  ;;  %v9304_v9 = vpop.permute.xlu0 %4259 }
 0xad9   : > { %4481 = vrot.lane.b32.xlu1 %v9308_v55, %s10546_s26  ;;  %4065 = vrot.lane.b32.xlu0 %v9306_v35, %s10552_s20 }
 0xadb   : > { %v9314_v41 = vpop.permute.xlu1 %4255  ;;  %v9316_v30 = vpop.permute.xlu0 %4361 }
 0xadc   : > { %10610 = vst [vmem:[#allocation57_spill] sm:$0xff] %v9316_v30 }
 0xadd   : > { %4367 = vrot.lane.b32.xlu1 %v8966_v63, %s10564_s29  ;;  %4653 = vrot.lane.b32.xlu0 %v8956_v33, %s10548_s1 }
 0xadf   : > { %v9322_v54 = vpop.permute.xlu1 %4357  ;;  %v4058_v16 = vpop.permute.xlu0 %4057 }
 0xae0   : > { %10611 = vst [vmem:[#allocation58_spill] sm:$0xff] %v9322_v54  ;;  %v4091_v52 = vsel %vm657_vm1, %v4056_v49, %v4058_v16 }
 0xae1   : > { %4661 = vrot.lane.b32.xlu1 %v9047_v42, %s10548_s1  ;;  %4659 = vrot.lane.b32.xlu0 %v8920_v40, %s10548_s1 }
 0xae2   : > { %6711 = vmatprep.subr.bf16.mxu0 %v4091_v52 }
 0xae3   : > { %6712 = vmatpush3.bf16.msra.mxu0 %v8903_v6  ;;  %v9330_v30 = vpop.permute.xlu1 %4463  ;;  %v9332_v22 = vpop.permute.xlu0 %4159 }
 0xae4   : > { %10612 = vst [vmem:[#allocation59_spill] sm:$0xff] %v9330_v30  ;;  %10613 = vst [vmem:[#allocation60_spill] sm:$0xff] %v9332_v22 }
 0xae5   : > { %4667 = vrot.lane.b32.xlu1 %v8941_v62, %s10548_s1  ;;  %4655 = vrot.lane.b32.xlu0 %v8918_v57, %s10548_s1 }
 0xae7   : > { %v9338_v16 = vpop.permute.xlu1 %4459  ;;  %v9340_v54 = vpop.permute.xlu0 %4461 }
 0xae8   : > { %10614 = vst [vmem:[#allocation61_spill] sm:$0xff] %v9338_v16  ;;  %10615 = vst [vmem:[#allocation62_spill] sm:$0xff] %v9340_v54 }
 0xae9   : > { %4663 = vrot.lane.b32.xlu1 %v8939_v44, %s10548_s1  ;;  %4665 = vrot.lane.b32.xlu0 %v8943_v14, %s10548_s1 }
 0xaeb   : > { %v4054_v52 = vpop.permute.xlu1 %4053  ;;  %v9346_v30 = vpop.permute.xlu0 %4363 }
 0xaec   : > { %10616 = vst [vmem:[#allocation63_spill] sm:$0xff] %v9346_v30  ;;  %v4090_v22 = vsel %vm657_vm1, %v4054_v52, %v4056_v49  ;;  %v4089_v7 = vsel %vm657_vm1, %v4052_v3, %v4054_v52  ;;  %v9374_v52 = vld [vmem:[#allocation3 + $0x90] sm:$0xff] }
 0xaed   : > { %4551 = vrot.lane.b32.xlu1 %v8956_v33, %s10547_s19  ;;  %4489 = vrot.lane.b32.xlu0 %v9352_v10, %s10546_s26 }
 0xaee   : > { %5146 = vmatprep.subr.bf16.mxu1 %v4090_v22 }
 0xaef   : > { %5147 = vmatpush1.bf16.msra.mxu1 %v4089_v7  ;;  %v9356_v16 = vpop.permute.xlu1 %4155  ;;  %v4060_v54 = vpop.permute.xlu0 %4059 }
 0xaf1   : > { %4167 = vrot.lane.b32.xlu1 %v9306_v35, %s10553_s21  ;;  %4669 = vrot.lane.b32.xlu0 %v9089_v31, %s10548_s1 }
 0xaf3   : > { %v9362_v49 = vpop.permute.xlu1 %4257  ;;  %v9364_v3 = vpop.permute.xlu0 %4161 }
 0xaf5   : > { %4469 = vrot.lane.b32.xlu1 %v8966_v63, %s10546_s26  ;;  %4675 = vrot.lane.b32.xlu0 %v8964_v5, %s10548_s1 }
 0xaf7   : > { %v9370_v7 = vpop.permute.xlu1 %4359  ;;  %v9372_v22 = vpop.permute.xlu0 %4263 }
 0xaf8   : > { %10617 = vst [vmem:[#allocation64_spill] sm:$0xff] %v9370_v7 }
 0xaf9   : > { %4683 = vrot.lane.b32.xlu1 %v9374_v52, %s10548_s1  ;;  %4671 = vrot.lane.b32.xlu0 %v8962_v43, %s10548_s1 }
 0xafb   : > { %v9380_v30 = vpop.permute.xlu1 %4063  ;;  %v9382_v20 = vpop.permute.xlu0 %4369 }
 0xafc   : > { %10618 = vst [vmem:[#allocation65_spill] sm:$0xff] %v9382_v20 }
 0xafd   : > { %4679 = vrot.lane.b32.xlu1 %v9384_v27, %s10548_s1  ;;  %4681 = vrot.lane.b32.xlu0 %v9250_v25, %s10548_s1 }
 0xaff   : > { %v9390_v7 = vpop.permute.xlu1 %4165  ;;  %v9392_v50 = vpop.permute.xlu0 %4471 }
 0xb00   : > { %10620 = vst [vmem:[#allocation67_spill] sm:$0xff] %v9392_v50 }
 0xb01   : > { %4371 = vrot.lane.b32.xlu1 %v9306_v35, %s10564_s29  ;;  %4559 = vrot.lane.b32.xlu0 %v9047_v42, %s10547_s19 }
 0xb03   : > { %v9398_v11 = vpop.permute.xlu1 %4267  ;;  %v9400_v20 = vpop.permute.xlu0 %4467 }
 0xb04   : > { %10621 = vst [vmem:[#allocation68_spill] sm:$0xff] %v9400_v20 }
 0xb05   : > { %4689 = vrot.lane.b32.xlu1 %v9402_v51, %s10548_s1  ;;  %4685 = vrot.lane.b32.xlu0 %v9308_v55, %s10548_s1 }
 0xb07   : > { %v9408_v27 = vpop.permute.xlu1 %4365  ;;  %v4062_v50 = vpop.permute.xlu0 %4061 }
 0xb08   : > { %10623 = vst [vmem:[#allocation70_spill] sm:$0xff] %v9408_v27  ;;  %v4093_v1 = vsel %vm657_vm1, %v4062_v50, %v9380_v30  ;;  %v4092_v28 = vsel %vm657_vm1, %v4060_v54, %v4062_v50  ;;  %v4096_v27 = vsel %vm657_vm1, %v8930_v61, %v8932_v37  ;;  %v4099_v50 = vsel %vm657_vm1, %v8953_v38, %v8974_v2 }
 0xb09   : > { %4567 = vrot.lane.b32.xlu1 %v9089_v31, %s10547_s19  ;;  %4269 = vrot.lane.b32.xlu0 %v9306_v35, %s10563_s0 }
 0xb0a   : > { %5148 = vmatprep.subr.bf16.mxu1 %v4093_v1  ;;  %v4095_v1 = vsel %vm657_vm1, %v8951_v8, %v8930_v61  ;;  %v4098_v61 = vsel %vm657_vm1, %v8976_v59, %v8953_v38  ;;  %v4185_v38 = vsel %vm675_vm2, %v9137_v23, %v9186_v15 }
 0xb0b   : > { %5149 = vmatpush1.bf16.msra.mxu1 %v4092_v28  ;;  %v9417_v20 = vpop.permute.xlu1 %4545  ;;  %v9422_v51 = vpop.permute.xlu0 %4253 }
 0xb0c   : > { %5150 = vmatprep.subr.bf16.mxu1 %v4096_v27  ;;  %v4186_v27 = vsel %vm675_vm2, %v9186_v15, %v9139_v12  ;;  %v4192_v15 = vsel %vm675_vm2, %v9356_v16, %v9296_v36 }
 0xb0d   : > { %4571 = vrot.lane.b32.xlu1 %v8966_v63, %s10547_s19  ;;  %4691 = vrot.lane.b32.xlu0 %v9284_v13, %s10548_s1 }
 0xb0f   : > { %5151 = vmatpush1.bf16.msra.mxu1 %v4095_v1  ;;  %v9431_v28 = vpop.permute.xlu1 %4555  ;;  %v9436_v54 = vpop.permute.xlu0 %4379 }
 0xb10   : > { %5152 = vmatprep.subr.bf16.mxu1 %v4099_v50  ;;  %v4189_v50 = vsel %vm675_vm2, %v9256_v45, %v9243_v29 }
 0xb11   : > { %4693 = vrot.lane.b32.xlu1 %v9352_v10, %s10548_s1  ;;  %4687 = vrot.lane.b32.xlu0 %v9292_v48, %s10548_s1 }
 0xb13   : > { %5153 = vmatpush1.bf16.msra.mxu1 %v4098_v61  ;;  %v9445_v8 = vpop.permute.xlu1 %4261  ;;  %v9450_v1 = vpop.permute.xlu0 %4557 }
 0xb14   : > { %5154 = vmatprep.subr.bf16.mxu1 %v4186_v27 }
 0xb15   : > { %4753 = vrot.lane.b32.xlu1 %v8903_v6, %s10624_s4  ;;  %4751 = vrot.lane.b32.xlu0 %v8905_v18, %s10624_s4  ;;  %v4188_v6 = vsel %vm675_vm2, %v9205_v0, %v9256_v45 }
 0xb17   : > { %5155 = vmatpush1.bf16.msra.mxu1 %v4185_v38  ;;  %v9459_v59 = vpop.permute.xlu1 %4387  ;;  %v9464_v61 = vpop.permute.xlu0 %4553 }
 0xb18   : > { %5156 = vmatprep.subr.bf16.mxu1 %v4189_v50 }
 0xb19   : > { %4749 = vrot.lane.b32.xlu1 %v8901_v19, %s10624_s4  ;;  %4473 = vrot.lane.b32.xlu0 %v9306_v35, %s10546_s26  ;;  %v4191_v19 = vsel %vm675_vm2, %v9302_v47, %v9356_v16  ;;  %v4198_v47 = vsel %vm675_vm2, %v8986_v56, %v8988_v21 }
 0xb1b   : > { %5157 = vmatpush1.bf16.msra.mxu1 %v4188_v6  ;;  %v9473_v18 = vpop.permute.xlu1 %4565  ;;  %v9478_v23 = vpop.permute.xlu0 %4563  ;;  %v4201_v6 = vsel %vm675_vm2, %v9001_v34, %v9007_v53 }
 0xb1c   : > { %5158 = vmatprep.subr.bf16.mxu1 %v4192_v15 }
 0xb1d   : > { %4759 = vrot.lane.b32.xlu1 %v8922_v17, %s10624_s4  ;;  %4755 = vrot.lane.b32.xlu0 %v8956_v33, %s10624_s4  ;;  %v9500_v17 = vld [vmem:[%s10443_s12] ss:$28 sps:$4 sm:$0xff]  }
 0xb1f   : > { %5159 = vmatpush1.bf16.msra.mxu1 %v4191_v19  ;;  %v9487_v0 = vpop.permute.xlu1 %4561  ;;  %v4164_v45 = vpop.permute.xlu0 %4163  ;;  %v4288_v19 = vsel %vm693_vm3, %v9194_v4, %v9147_v26 }
 0xb20   : > { %v4195_v27 = vsel %vm675_vm2, %v4164_v45, %v9390_v7  ;;  %v4194_v38 = vsel %vm675_vm2, %v9364_v3, %v4164_v45  ;;  %v4197_v3 = vsel %vm675_vm2, %v8999_v60, %v8986_v56  ;;  %v4200_v56 = vsel %vm675_vm2, %v9009_v39, %v9001_v34  ;;  %v9540_v60 = vld [vmem:[%s10443_s12 + $0x38] ss:$28 sps:$4 sm:$0xff]  }
 0xb21   : > { %4757 = vrot.lane.b32.xlu1 %v8918_v57, %s10624_s4  ;;  %4761 = vrot.lane.b32.xlu0 %v8920_v40, %s10624_s4  ;;  %v9512_v57 = vld [vmem:[%s10443_s12 + $0x3c] ss:$28 sps:$4 sm:$0xff]   ;;  %v4287_v34 = vsel %vm693_vm3, %v9145_v58, %v9194_v4  ;;  %v4294_v4 = vsel %vm693_vm3, %v9362_v49, %v9304_v9 }
 0xb22   : > { %5160 = vmatprep.subr.bf16.mxu1 %v4195_v27  ;;  %v9552_v27 = vld [vmem:[%s10443_s12 + $0xc] ss:$28 sps:$4 sm:$0xff]  }
 0xb23   : > { %5161 = vmatpush1.bf16.msra.mxu1 %v4194_v38  ;;  %v9502_v33 = vpop.permute.xlu1 %4277  ;;  %v9507_v16 = vpop.permute.xlu0 %4449  ;;  %v4291_v38 = vsel %vm693_vm3, %v9264_v46, %v9254_v32 }
 0xb24   : > { %5183 = vmatprep.subr.bf16.mxu1 %v4198_v47 }
 0xb25   : > { %4673 = vrot.lane.b32.xlu1 %v8966_v63, %s10548_s1  ;;  %4763 = vrot.lane.b32.xlu0 %v9047_v42, %s10624_s4 }
 0xb26   : > { %5163 = vmatmul.mubr.bf16.vlgmr.msra.gmra.mrb[60].mxu1 %v9500_v17 }
 0xb27   : > { %5184 = vmatpush1.bf16.msra.mxu1 %v4197_v3  ;;  %v9522_v50 = vpop.permute.xlu1 %4457  ;;  %v9527_v15 = vpop.permute.xlu0 %4573  ;;  %5172 = vmatprep.mubr.bf16.mxu1 %v9512_v57 }
 0xb28   : > { %5185 = vmatprep.subr.bf16.mxu1 %v4201_v6 }
 0xb29   : > { %4677 = vrot.lane.b32.xlu1 %v9306_v35, %s10548_s1  ;;  %4769 = vrot.lane.b32.xlu0 %v8941_v62, %s10624_s4 }
 0xb2b   : > { %5186 = vmatpush1.bf16.msra.mxu1 %v4200_v56  ;;  %v9542_v42 = vpop.permute.xlu1 %4581  ;;  %v9547_v45 = vpop.permute.xlu0 %4569 }
 0xb2c   : > { %5187 = vmatprep.subr.bf16.mxu1 %v4288_v19 }
 0xb2d   : > { %4767 = vrot.lane.b32.xlu1 %v8943_v14, %s10624_s4  ;;  %4771 = vrot.lane.b32.xlu0 %v9089_v31, %s10624_s4  ;;  %v4290_v14 = vsel %vm693_vm3, %v9213_v24, %v9264_v46 }
 0xb2e   : > { %5173 = vmatmul.mubr.bf16.gmra.mrb[64].mxu1 %v9540_v60 }
 0xb2f   : > { %5188 = vmatpush1.bf16.msra.mxu1 %v4287_v34  ;;  %v9562_v39 = vpop.permute.xlu1 %4577  ;;  %v9567_v47 = vpop.permute.xlu0 %4579  ;;  %5215 = vmatprep.mubr.bf16.mxu1 %v9552_v27 }
 0xb30   : > { %5189 = vmatprep.subr.bf16.mxu1 %v4291_v38  ;;  %v10630_v38 = vld [vmem:[#allocation16_spill] sm:$0xff] }
 0xb31   : > { %4765 = vrot.lane.b32.xlu1 %v8939_v44, %s10624_s4  ;;  %4575 = vrot.lane.b32.xlu0 %v9306_v35, %s10547_s19  ;;  %v4293_v44 = vsel %vm693_vm3, %v9314_v41, %v9362_v49  ;;  %v10626_v41 = vld [vmem:[#allocation13_spill] sm:$0xff]  ;;  %v10627_v49 = vld [vmem:[#allocation12_spill] sm:$0xff] }
 0xb32   : > { %v4300_v56 = vsel %vm693_vm3, %v10627_v49, %v10626_v41 }
 0xb33   : > { %5190 = vmatpush1.bf16.msra.mxu1 %v4290_v14  ;;  %v9577_v31 = vpop.permute.xlu1 %4587  ;;  %v9582_v58 = vpop.permute.xlu0 %4285  ;;  %v10631_v14 = vld [vmem:[#allocation15_spill] sm:$0xff] }
 0xb34   : > { %5191 = vmatprep.subr.bf16.mxu1 %v4294_v4  ;;  %v4303_v4 = vsel %vm693_vm3, %v10631_v14, %v10630_v38 }
 0xb35   : > { %4773 = vrot.lane.b32.xlu1 %v8962_v43, %s10624_s4  ;;  %4777 = vrot.lane.b32.xlu0 %v8964_v5, %s10624_s4 }
 0xb37   : > { %5192 = vmatpush1.bf16.msra.mxu1 %v4293_v44  ;;  %v9591_v24 = vpop.permute.xlu1 %4465  ;;  %v4266_v46 = vpop.permute.xlu0 %4265 }
 0xb38   : > { %v4297_v3 = vsel %vm693_vm3, %v4266_v46, %v9398_v11  ;;  %v4296_v6 = vsel %vm693_vm3, %v9372_v22, %v4266_v46  ;;  %v10632_v46 = vld [vmem:[#allocation66_spill] sm:$0xff] }
 0xb39   : > { %4783 = vrot.lane.b32.xlu1 %v9250_v25, %s10624_s4  ;;  %4785 = vrot.lane.b32.xlu0 %v9374_v52, %s10624_s4  ;;  %v10628_v25 = vld [vmem:[#allocation14_spill] sm:$0xff] }
 0xb3a   : > { %5193 = vmatprep.subr.bf16.mxu1 %v4297_v3  ;;  %v4299_v22 = vsel %vm693_vm3, %v10628_v25, %v10627_v49  ;;  %v10636_v49 = vld [vmem:[#allocation43_spill] sm:$0xff] }
 0xb3b   : > { %5194 = vmatpush1.bf16.msra.mxu1 %v4296_v6  ;;  %v9601_v43 = vpop.permute.xlu1 %4591  ;;  %v9606_v19 = vpop.permute.xlu0 %4583  ;;  %v10635_v6 = vld [vmem:[#allocation36_spill] sm:$0xff] }
 0xb3c   : > { %10625 = vst [vmem:[#allocation71_spill] sm:$0xff] %v9601_v43  ;;  %5195 = vmatprep.subr.bf16.mxu1 %v4300_v56  ;;  %v4390_v56 = vsel %vm711_vm4, %v10636_v49, %v10635_v6 }
 0xb3d   : > { %4775 = vrot.lane.b32.xlu1 %v8966_v63, %s10624_s4  ;;  %4787 = vrot.lane.b32.xlu0 %v9308_v55, %s10624_s4  ;;  %v10633_v63 = vld [vmem:[#allocation17_spill] sm:$0xff] }
 0xb3e   : > { %v4302_v55 = vsel %vm693_vm3, %v10633_v63, %v10631_v14  ;;  %v10641_v63 = vld [vmem:[#allocation52_spill] sm:$0xff] }
 0xb3f   : > { %5196 = vmatpush1.bf16.msra.mxu1 %v4299_v22  ;;  %v9615_v34 = vpop.permute.xlu1 %4651  ;;  %v9620_v44 = vpop.permute.xlu0 %4589  ;;  %v10637_v22 = vld [vmem:[#allocation69_spill] sm:$0xff] }
 0xb40   : > { %10629 = vst [vmem:[#allocation13_spill] sm:$0xff] %v9615_v34  ;;  %5197 = vmatprep.subr.bf16.mxu1 %v4303_v4  ;;  %v10658_v34 = vld [vmem:[#allocation22_spill] sm:$0xff] }
 0xb41   : > { %4781 = vrot.lane.b32.xlu1 %v10632_v46, %s10624_s4  ;;  %4779 = vrot.lane.b32.xlu0 %v9306_v35, %s10624_s4  ;;  %v10638_v35 = vld [vmem:[#allocation35_spill] sm:$0xff]  ;;  %v10640_v46 = vld [vmem:[#allocation46_spill] sm:$0xff] }
 0xb42   : > { %v4389_v14 = vsel %vm711_vm4, %v10638_v35, %v10636_v49  ;;  %v5030_v35 = vld [vmem:[%s10444_s13 + $0x8] sm:$0xff] }
 0xb43   : > { %5198 = vmatpush1.bf16.msra.mxu1 %v4302_v55  ;;  %v9629_v3 = vpop.permute.xlu1 %4647  ;;  %v9634_v25 = vpop.permute.xlu0 %4585  ;;  %v4393_v55 = vsel %vm711_vm4, %v10641_v63, %v10640_v46 }
 0xb44   : > { %10634 = vst [vmem:[#allocation12_spill] sm:$0xff] %v9629_v3  ;;  %5199 = vmatprep.subr.bf16.mxu1 %v4390_v56  ;;  %v10643_v56 = vld [vmem:[#allocation51_spill] sm:$0xff] }
 0xb45   : > { %4791 = vrot.lane.b32.xlu1 %v10637_v22, %s10624_s4  ;;  %4793 = vrot.lane.b32.xlu0 %v9284_v13, %s10624_s4  ;;  %v4392_v49 = vsel %vm711_vm4, %v10643_v56, %v10641_v63  ;;  %v5029_v22 = vld [vmem:[%s10444_s13] sm:$0xff]  ;;  %v10647_v56 = vld [vmem:[#allocation58_spill] sm:$0xff] }
 0xb47   : > { %5200 = vmatpush1.bf16.msra.mxu1 %v4389_v14  ;;  %v9643_v4 = vpop.permute.xlu1 %4657  ;;  %v9648_v3 = vpop.permute.xlu0 %4649 }
 0xb48   : > { %10639 = vst [vmem:[#allocation14_spill] sm:$0xff] %v9643_v4  ;;  %10642 = vst [vmem:[#allocation16_spill] sm:$0xff] %v9648_v3  ;;  %5201 = vmatprep.subr.bf16.mxu1 %v4393_v55  ;;  %v10645_v55 = vld [vmem:[#allocation57_spill] sm:$0xff] }
 0xb49   : > { %4789 = vrot.lane.b32.xlu1 %v9292_v48, %s10624_s4  ;;  %4795 = vrot.lane.b32.xlu0 %v9352_v10, %s10624_s4  ;;  %v10646_v48 = vld [vmem:[#allocation64_spill] sm:$0xff]  ;;  %v10655_v3 = vld [vmem:[#allocation21_spill] sm:$0xff] }
 0xb4a   : > { %v4396_v4 = vsel %vm711_vm4, %v10646_v48, %v10645_v55 }
 0xb4b   : > { %5202 = vmatpush1.bf16.msra.mxu1 %v4392_v49  ;;  %v9663_v14 = vpop.permute.xlu1 %4481  ;;  %v4066_v10 = vpop.permute.xlu0 %4065  ;;  %v4395_v49 = vsel %vm711_vm4, %v10647_v56, %v10646_v48  ;;  %v10650_v48 = vld [vmem:[#allocation65_spill] sm:$0xff]  ;;  %v10651_v56 = vld [vmem:[#allocation70_spill] sm:$0xff] }
 0xb4c   : > { %10644 = vst [vmem:[#allocation15_spill] sm:$0xff] %v9663_v14  ;;  %5203 = vmatprep.subr.bf16.mxu1 %v4396_v4  ;;  %v4094_v63 = vsel %vm657_vm1, %v9380_v30, %v4066_v10  ;;  %v5031_v14 = vld [vmem:[%s10444_s13 + $0x10] sm:$0xff]  ;;  %v5032_v4 = vld [vmem:[%s10444_s13 + $0x18] sm:$0xff] }
 0xb4d   : > { %5035 = vperm.xlu1 %6981, %v5029_v22   ;;  %5040 = vperm.xlu0 %6980, %v5030_v35   ;;  %v10648_v22 = vld [vmem:[#allocation19_spill] sm:$0xff] }
 0xb4e   : > { %6713 = vmatprep.subr.bf16.mxu0 %v4094_v63  ;;  %v4097_v35 = vsel %vm657_vm1, %v8932_v37, %v10648_v22  ;;  %v10653_v22 = vld [vmem:[#allocation23_spill] sm:$0xff] }
 0xb4f   : > { %5204 = vmatpush1.bf16.msra.mxu1 %v4395_v49  ;;  %6714 = vmatpush3.bf16.msra.mxu0 %v8920_v40  ;;  %v4368_v30 = vpop.permute.xlu1 %4367  ;;  %v9683_v10 = vpop.permute.xlu0 %4653  ;;  %v619_v40 = vld [vmem:[%s7766_s22 + $0xa0] sm:$0xff]  ;;  %v620_v49 = vld [vmem:[%s7766_s22 + $0xa8] sm:$0xff] }
 0xb50   : > { %10649 = vst [vmem:[#allocation66_spill] sm:$0xff] %v9683_v10  ;;  %6715 = vmatprep.subr.bf16.mxu0 %v4097_v35  ;;  %v4399_v63 = vsel %vm711_vm4, %v4368_v30, %v10650_v48  ;;  %v4398_v43 = vsel %vm711_vm4, %v10651_v56, %v4368_v30  ;;  %v10654_v35 = vld [vmem:[#allocation18_spill] sm:$0xff]  ;;  %v4100_v30 = vsel %vm657_vm1, %v8974_v2, %v10655_v3  ;;  %v10659_v3 = vld [vmem:[#allocation40_spill] sm:$0xff] }
 0xb51   : > { %5045 = vperm.xlu1 %6981, %v5031_v14   ;;  %5050 = vperm.xlu0 %6980, %v5032_v4   ;;  %v4402_v10 = vsel %vm711_vm4, %v10654_v35, %v10653_v22  ;;  %v621_v4 = vld [vmem:[%s7766_s22 + $0xb0] sm:$0xff] }
 0xb52   : > { %5205 = vmatprep.subr.bf16.mxu1 %v4399_v63  ;;  %v622_v63 = vld [vmem:[%s7766_s22 + $0xb8] sm:$0xff] }
 0xb53   : > { %5206 = vmatpush1.bf16.msra.mxu1 %v4398_v43  ;;  %6716 = vmatpush3.bf16.msra.mxu0 %v8941_v62  ;;  %v9692_v37 = vpop.permute.xlu1 %4661  ;;  %v9700_v14 = vpop.permute.xlu0 %4659  ;;  %v10656_v43 = vld [vmem:[#allocation20_spill] sm:$0xff] }
 0xb54   : > { %10652 = vst [vmem:[#allocation17_spill] sm:$0xff] %v9692_v37  ;;  %5207 = vmatprep.subr.bf16.mxu1 %v4402_v10  ;;  %6717 = vmatprep.subr.bf16.mxu0 %v4100_v30  ;;  %v4401_v62 = vsel %vm711_vm4, %v10656_v43, %v10654_v35  ;;  %v10657_v37 = vld [vmem:[#allocation25_spill] sm:$0xff]  ;;  %v4187_v10 = vsel %vm675_vm2, %v9139_v12, %v10659_v3  ;;  %v10662_v30 = vld [vmem:[#allocation38_spill] sm:$0xff]  ;;  %v10663_v43 = vld [vmem:[#allocation44_spill] sm:$0xff] }
 0xb55   : > { %5540 = vperm.xlu1 %6981, %v619_v40   ;;  %5545 = vperm.xlu0 %6980, %v620_v49   ;;  %v4405_v2 = vsel %vm711_vm4, %v10658_v34, %v10657_v37  ;;  %v10660_v49 = vld [vmem:[#allocation24_spill] sm:$0xff]  ;;  %v10664_v12 = vld [vmem:[#allocation53_spill] sm:$0xff] }
 0xb57   : > { %5208 = vmatpush1.bf16.msra.mxu1 %v4401_v62  ;;  %6718 = vmatpush3.bf16.msra.mxu0 %v8964_v5  ;;  %v9708_v56 = vpop.permute.xlu1 %4667  ;;  %v9716_v40 = vpop.permute.xlu0 %4655  ;;  %v4404_v5 = vsel %vm711_vm4, %v10660_v49, %v10658_v34  ;;  %v4492_v62 = vsel %vm729_vm5, %v10663_v43, %v10662_v30 }
 0xb58   : > { %5209 = vmatprep.subr.bf16.mxu1 %v4405_v2  ;;  %6719 = vmatprep.subr.bf16.mxu0 %v4187_v10  ;;  %v4190_v2 = vsel %vm675_vm2, %v9243_v29, %v10664_v12  ;;  %v10668_v10 = vld [vmem:[#allocation54_spill] sm:$0xff] }
 0xb59   : > { %5550 = vperm.xlu1 %6981, %v621_v4   ;;  %5555 = vperm.xlu0 %6980, %v622_v63   ;;  %v10665_v4 = vld [vmem:[#allocation37_spill] sm:$0xff]  ;;  %v10667_v63 = vld [vmem:[#allocation48_spill] sm:$0xff] }
 0xb5a   : > { %v4491_v34 = vsel %vm729_vm5, %v10665_v4, %v10663_v43  ;;  %v4495_v49 = vsel %vm729_vm5, %v10668_v10, %v10667_v63 }
 0xb5b   : > { %5210 = vmatpush1.bf16.msra.mxu1 %v4404_v5  ;;  %6720 = vmatpush3.bf16.msra.mxu0 %v9374_v52  ;;  %v9722_v35 = vpop.permute.xlu1 %4663  ;;  %v9730_v3 = vpop.permute.xlu0 %4665  ;;  %v10669_v5 = vld [vmem:[#allocation60_spill] sm:$0xff] }
 0xb5c   : > { %10661 = vst [vmem:[#allocation36_spill] sm:$0xff] %v9722_v35  ;;  %5211 = vmatprep.subr.bf16.mxu1 %v4492_v62  ;;  %6721 = vmatprep.subr.bf16.mxu0 %v4190_v2  ;;  %v4193_v29 = vsel %vm675_vm2, %v9296_v36, %v10669_v5  ;;  %v10670_v62 = vld [vmem:[#allocation45_spill] sm:$0xff]  ;;  %v10671_v2 = vld [vmem:[#allocation34_spill] sm:$0xff]  ;;  %v10673_v5 = vld [vmem:[#allocation59_spill] sm:$0xff] }
 0xb5d   : > { %v4085_v43 = vsel %vm657_vm1, %v10671_v2, %v10670_v62  ;;  %v10677_v2 = vld [vmem:[#allocation49_spill] sm:$0xff]  ;;  %v9774_v35 = vld [vmem:[%s10443_s12 + $0x44] ss:$28 sps:$4 sm:$0xff]  }
 0xb5f   : > { %5212 = vmatpush1.bf16.msra.mxu1 %v4491_v34  ;;  %6722 = vmatpush3.bf16.msra.mxu0 %v9284_v13  ;;  %v9736_v52 = vpop.permute.xlu1 %4551  ;;  %v9744_v12 = vpop.permute.xlu0 %4489  ;;  %v10672_v13 = vld [vmem:[#allocation50_spill] sm:$0xff]  ;;  %v9755_v34 = vld [vmem:[%s10443_s12 + $0x8] ss:$28 sps:$4 sm:$0xff]  }
 0xb60   : > { %10666 = vst [vmem:[#allocation43_spill] sm:$0xff] %v9736_v52  ;;  %5213 = vmatprep.subr.bf16.mxu1 %v4495_v49  ;;  %6723 = vmatprep.subr.bf16.mxu0 %v4193_v29  ;;  %v4494_v4 = vsel %vm729_vm5, %v10672_v13, %v10668_v10  ;;  %v10674_v52 = vld [vmem:[#allocation62_spill] sm:$0xff]  ;;  %v10676_v10 = vld [vmem:[#allocation55_spill] sm:$0xff] }
 0xb61   : > { %v4498_v49 = vsel %vm729_vm5, %v10674_v52, %v10673_v5  ;;  %v4088_v13 = vsel %vm657_vm1, %v10677_v2, %v10676_v10  ;;  %v10681_v10 = vld [vmem:[#allocation67_spill] sm:$0xff] }
 0xb63   : > { %5214 = vmatpush1.bf16.msra.mxu1 %v4494_v4  ;;  %6724 = vmatpush3.bf16.msra.mxu0 %v4085_v43  ;;  %v4168_v36 = vpop.permute.xlu1 %4167  ;;  %v9760_v29 = vpop.permute.xlu0 %4669  ;;  %v10678_v43 = vld [vmem:[#allocation61_spill] sm:$0xff] }
 0xb64   : > { %10675 = vst [vmem:[#allocation69_spill] sm:$0xff] %v9760_v29  ;;  %5236 = vmatprep.subr.bf16.mxu1 %v4498_v49  ;;  %v4196_v62 = vsel %vm675_vm2, %v9390_v7, %v4168_v36  ;;  %v4497_v4 = vsel %vm729_vm5, %v10678_v43, %v10674_v52  ;;  %v10679_v7 = vld [vmem:[#allocation41_spill] sm:$0xff]  ;;  %v10682_v29 = vld [vmem:[#allocation68_spill] sm:$0xff]  ;;  %v10683_v43 = vld [vmem:[#allocation26_spill] sm:$0xff] }
 0xb65   : > { %6725 = vmatprep.subr.bf16.mxu0 %v4196_v62  ;;  %v4391_v36 = vsel %vm711_vm4, %v10635_v6, %v10679_v7  ;;  %v10686_v7 = vld [vmem:[#allocation27_spill] sm:$0xff] }
 0xb66   : > { %5216 = vmatmul.mubr.bf16.vlgmr.msra.gmra.mrb[60].mxu1 %v9755_v34 }
 0xb67   : > { %5237 = vmatpush1.bf16.msra.mxu1 %v4497_v4  ;;  %6726 = vmatpush3.bf16.msra.mxu0 %v4088_v13  ;;  %v4470_v49 = vpop.permute.xlu1 %4469  ;;  %v9779_v62 = vpop.permute.xlu0 %4675  ;;  %v4199_v13 = vsel %vm675_vm2, %v8988_v21, %v10683_v43  ;;  %v10685_v4 = vld [vmem:[#allocation28_spill] sm:$0xff] }
 0xb68   : > { %10680 = vst [vmem:[#allocation35_spill] sm:$0xff] %v9779_v62  ;;  %6739 = vmatprep.subr.bf16.mxu0 %v4391_v36  ;;  %v4501_v2 = vsel %vm729_vm5, %v4470_v49, %v10681_v10  ;;  %v4500_v52 = vsel %vm729_vm5, %v10682_v29, %v4470_v49  ;;  %5225 = vmatprep.mubr.bf16.mxu1 %v9774_v35  ;;  %v10687_v62 = vld [vmem:[#allocation56_spill] sm:$0xff] }
 0xb69   : > { %5238 = vmatprep.subr.bf16.mxu1 %v4501_v2  ;;  %v4504_v36 = vsel %vm729_vm5, %v10686_v7, %v10685_v4  ;;  %v4394_v29 = vsel %vm711_vm4, %v10640_v46, %v10687_v62  ;;  %v9803_v21 = vld [vmem:[%s10443_s12 + $0x40] ss:$28 sps:$4 sm:$0xff]   ;;  %v10689_v2 = vld [vmem:[#allocation30_spill] sm:$0xff]  ;;  %v10690_v62 = vld [vmem:[#allocation29_spill] sm:$0xff] }
 0xb6a   : > { %5375 = vmatmul.mubr.bf16.vlgmr.msra.gmra.mrb[80].mxu0 %v9500_v17  ;;  %v9809_v17 = vld [vmem:[%s10443_s12 + $0x14] ss:$28 sps:$4 sm:$0xff]   ;;  %v4503_v46 = vsel %vm729_vm5, %v10689_v2, %v10686_v7  ;;  %v10695_v2 = vld [vmem:[#allocation47_spill] sm:$0xff] }
 0xb6b   : > { %5239 = vmatpush1.bf16.msra.mxu1 %v4500_v52  ;;  %6740 = vmatpush3.bf16.msra.mxu0 %v4199_v13  ;;  %v9790_v6 = vpop.permute.xlu1 %4683  ;;  %v9798_v49 = vpop.permute.xlu0 %4671  ;;  %v4202_v52 = vsel %vm675_vm2, %v9007_v53, %v10690_v62  ;;  %v10692_v13 = vld [vmem:[#allocation32_spill] sm:$0xff]  ;;  %v10694_v53 = vld [vmem:[#allocation33_spill] sm:$0xff] }
 0xb6c   : > { %10684 = vst [vmem:[#allocation46_spill] sm:$0xff] %v9790_v6  ;;  %10688 = vst [vmem:[#allocation52_spill] sm:$0xff] %v9798_v49  ;;  %5240 = vmatprep.subr.bf16.mxu1 %v4504_v36  ;;  %6741 = vmatprep.subr.bf16.mxu0 %v4394_v29  ;;  %v10693_v29 = vld [vmem:[#allocation63_spill] sm:$0xff]  ;;  %v4506_v7 = vsel %vm729_vm5, %v10694_v53, %v10692_v13  ;;  %v4597_v53 = vsel %vm10700_vm9, %v9431_v28, %v9450_v1 }
 0xb6d   : > { %5382 = vmatprep.mubr.bf16.mxu0 %v9512_v57  ;;  %v10691_v57 = vld [vmem:[#allocation31_spill] sm:$0xff]  ;;  %v4397_v6 = vsel %vm711_vm4, %v10645_v55, %v10693_v29  ;;  %vm10708_vm9 = vmmov %vm10705_vm6 }
 0xb6e   : > { %5226 = vmatmul.mubr.bf16.gmra.mrb[64].mxu1 %v9803_v21  ;;  %v4507_v36 = vsel %vm729_vm5, %v10692_v13, %v10691_v57  ;;  %v10696_v55 = vld [vmem:[#allocation39_spill] sm:$0xff] }
 0xb6f   : > { %5241 = vmatpush1.bf16.msra.mxu1 %v4503_v46  ;;  %6742 = vmatpush3.bf16.msra.mxu0 %v4202_v52  ;;  %v9818_v43 = vpop.permute.xlu1 %4679  ;;  %v9826_v49 = vpop.permute.xlu0 %4681  ;;  %v4289_v46 = vsel %vm693_vm3, %v9147_v26, %v10695_v2  ;;  %v10697_v52 = vld [vmem:[#allocation42_spill] sm:$0xff] }
 0xb70   : > { %5242 = vmatprep.subr.bf16.mxu1 %v4507_v36  ;;  %6743 = vmatprep.subr.bf16.mxu0 %v4397_v6  ;;  %v4594_v36 = vsel %vm10698_vm7, %v10697_v52, %v10696_v55  ;;  %v4593_v26 = vsel %vm10699_vm8, %v9417_v20, %v10697_v52  ;;  %v4295_v20 = vsel %vm693_vm3, %v9304_v9, %v9445_v8  ;;  %vm10706_vm7 = vmmov %vm10705_vm6 }
 0xb71   : > { %5268 = vmatprep.mubr.bf16.mxu1 %v9809_v17  ;;  %vm10707_vm8 = vmmov %vm10705_vm6 }
 0xb72   : > { %5383 = vmatmul.mubr.bf16.gmra.mrb[84].mxu0 %v9540_v60  ;;  %v4292_v60 = vsel %vm693_vm3, %v9254_v32, %v9422_v51  ;;  %v4596_v51 = vsel %vm10701_vm12, %v9464_v61, %v9431_v28  ;;  %v4599_v28 = vsel %vm10703_vm15, %v9487_v0, %v9478_v23  ;;  %v4493_v61 = vsel %vm729_vm5, %v10662_v30, %v9507_v16  ;;  %vm10709_vm12 = vmmov %vm10705_vm6 }
 0xb73   : > { %5243 = vmatpush1.bf16.msra.mxu1 %v4506_v7  ;;  %6744 = vmatpush3.bf16.msra.mxu0 %v4289_v46  ;;  %v4372_v62 = vpop.permute.xlu1 %4371  ;;  %v9839_v6 = vpop.permute.xlu0 %4559  ;;  %v4606_v16 = vsel %vm10706_vm7, %v9567_v47, %v9542_v42  ;;  %vm10713_vm15 = vcmask 646144  }
 0xb74   : > { %5244 = vmatprep.subr.bf16.mxu1 %v4594_v36  ;;  %v4400_v29 = vsel %vm711_vm4, %v10650_v48, %v4372_v62  ;;  %5423 = vmatprep.mubr.bf16.mxu0 %v9552_v27  ;;  %v4403_v27 = vsel %vm711_vm4, %v10653_v22, %v9436_v54  ;;  %v4600_v54 = vsel %vm10702_vm14, %v9478_v23, %v9473_v18  ;;  %vm10710_vm14 = vmmov %vm10705_vm6  ;;  %v10714_v62 = vld [vmem:[#allocation71_spill] sm:$0xff] }
 0xb75   : > { %6745 = vmatprep.subr.bf16.mxu0 %v4400_v29  ;;  %v4406_v22 = vsel %vm711_vm4, %v10657_v37, %v9459_v59  ;;  %v4301_v23 = vsel %vm693_vm3, %v10626_v41, %v9502_v33  ;;  %v4496_v37 = vsel %vm729_vm5, %v10667_v63, %v9522_v50  ;;  %v4304_v33 = vsel %vm693_vm3, %v10630_v38, %v9582_v58  ;;  %v10711_v38 = vld [vmem:[#allocation13_spill] sm:$0xff]  ;;  %v10720_v29 = vld [vmem:[#allocation66_spill] sm:$0xff] }
 0xb76   : > { %v4609_v50 = vsel %vm10708_vm9, %v9577_v31, %v9620_v44  ;;  %v4607_v63 = vsel %vm10709_vm12, %v9542_v42, %v9606_v19  ;;  %v10712_v42 = vld [vmem:[#allocation16_spill] sm:$0xff] }
 0xb77   : > { %5245 = vmatpush1.bf16.msra.mxu1 %v4593_v26  ;;  %6746 = vmatpush3.bf16.msra.mxu0 %v4292_v60  ;;  %v9850_v13 = vpop.permute.xlu1 %4689  ;;  %v9858_v48 = vpop.permute.xlu0 %4685  ;;  %v4696_v19 = vsel %vm10713_vm15, %v10712_v42, %v10711_v38 }
 0xb78   : > { %5246 = vmatprep.subr.bf16.mxu1 %v4597_v53  ;;  %6747 = vmatprep.subr.bf16.mxu0 %v4403_v27 }
 0xb7b   : > { %5247 = vmatpush1.bf16.msra.mxu1 %v4596_v51  ;;  %6748 = vmatpush3.bf16.msra.mxu0 %v4295_v20  ;;  %v9866_v32 = vpop.permute.xlu1 %4567  ;;  %v4270_v7 = vpop.permute.xlu0 %4269  ;;  %v10725_v51 = vld [vmem:[#allocation17_spill] sm:$0xff] }
 0xb7c   : > { %5248 = vmatprep.subr.bf16.mxu1 %v4600_v54  ;;  %6749 = vmatprep.subr.bf16.mxu0 %v4406_v22  ;;  %v4298_v9 = vsel %vm693_vm3, %v9398_v11, %v4270_v7 }
 0xb7f   : > { %5249 = vmatpush1.bf16.msra.mxu1 %v4599_v28  ;;  %6750 = vmatpush3.bf16.msra.mxu0 %v4298_v9  ;;  %v4572_v8 = vpop.permute.xlu1 %4571  ;;  %v9882_v2 = vpop.permute.xlu0 %4691  ;;  %v10729_v9 = vld [vmem:[#allocation69_spill] sm:$0xff] }
 0xb80   : > { %6751 = vmatprep.subr.bf16.mxu0 %v4493_v61  ;;  %v4603_v59 = vsel %vm10704_vm13, %v4572_v8, %v9527_v15  ;;  %v4602_v11 = vsel %vm10705_vm6, %v9547_v45, %v4572_v8  ;;  %v4605_v45 = vsel %vm10707_vm8, %v9562_v39, %v9567_v47  ;;  %v4499_v39 = vsel %vm729_vm5, %v10673_v5, %v9591_v24  ;;  %vm10715_vm13 = vmmov %vm10705_vm6  ;;  %v10716_v24 = vld [vmem:[#allocation12_spill] sm:$0xff]  ;;  %v10718_v5 = vld [vmem:[#allocation14_spill] sm:$0xff] }
 0xb81   : > { %5250 = vmatprep.subr.bf16.mxu1 %v4603_v59  ;;  %v4608_v47 = vsel %vm10710_vm14, %v9634_v25, %v9577_v31  ;;  %v4610_v52 = vsel %vm10715_vm13, %v9620_v44, %v10714_v62  ;;  %vm10717_vm6 = vmmov %vm10713_vm15  ;;  %v10731_v8 = vld [vmem:[#allocation35_spill] sm:$0xff]  ;;  %v10732_v61 = vld [vmem:[#allocation52_spill] sm:$0xff] }
 0xb82   : > { %v4695_v25 = vsel %vm10717_vm6, %v10716_v24, %v10712_v42  ;;  %vm10719_vm7 = vmmov %vm10717_vm6 }
 0xb83   : > { %5251 = vmatpush1.bf16.msra.mxu1 %v4602_v11  ;;  %6752 = vmatpush3.bf16.msra.mxu0 %v4301_v23  ;;  %v9891_v0 = vpop.permute.xlu1 %4693  ;;  %v9899_v30 = vpop.permute.xlu0 %4687  ;;  %v4699_v44 = vsel %vm10719_vm7, %v10718_v5, %v9700_v14  ;;  %vm10721_vm8 = vmmov %vm10717_vm6  ;;  %v10736_v11 = vld [vmem:[#allocation46_spill] sm:$0xff] }
 0xb84   : > { %5252 = vmatprep.subr.bf16.mxu1 %v4606_v16  ;;  %6753 = vmatprep.subr.bf16.mxu0 %v4496_v37  ;;  %v4697_v26 = vsel %vm10721_vm8, %v10711_v38, %v10720_v29  ;;  %vm10723_vm9 = vmmov %vm10717_vm6  ;;  %vm10735_vm8 = vcmask 654336  }
 0xb85   : > { %v4698_v53 = vsel %vm10723_vm9, %v9716_v40, %v10718_v5  ;;  %vm10724_vm12 = vmmov %vm10717_vm6  ;;  %v4508_v40 = vsel %vm729_vm5, %v10691_v57, %v9744_v12  ;;  %v10734_v12 = vld [vmem:[#allocation43_spill] sm:$0xff] }
 0xb86   : > { %v4702_v20 = vsel %vm10724_vm12, %v9730_v3, %v9708_v56  ;;  %vm10726_vm14 = vmmov %vm10717_vm6  ;;  %v7184_v5 = vld [vmem:[%s10443_s12 + $0x18] ss:$28 sps:$4 sm:$0xff]  }
 0xb87   : > { %5253 = vmatpush1.bf16.msra.mxu1 %v4605_v45  ;;  %6754 = vmatpush3.bf16.msra.mxu0 %v4304_v33  ;;  %v9907_v41 = vpop.permute.xlu1 %4753  ;;  %v9915_v46 = vpop.permute.xlu0 %4751  ;;  %v4700_v54 = vsel %vm10726_vm14, %v9700_v14, %v10725_v51  ;;  %vm10728_vm15 = vmmov %vm10717_vm6 }
 0xb88   : > { %5254 = vmatprep.subr.bf16.mxu1 %v4609_v50  ;;  %6767 = vmatprep.subr.bf16.mxu0 %v4607_v63  ;;  %vm10730_vm13 = vmmov %vm10717_vm6  ;;  %v4709_v50 = vsel %vm10717_vm6, %v10736_v11, %v9858_v48 }
 0xb89   : > { %v4703_v14 = vsel %vm10730_vm13, %v9708_v56, %v10729_v9  ;;  %vm10733_vm7 = vmmov %vm10717_vm6 }
 0xb8a   : > { %5424 = vmatmul.mubr.bf16.vlgmr.msra.gmra.mrb[88].mxu0 %v9755_v34  ;;  %vm10737_vm9 = vmmov %vm10717_vm6 }
 0xb8b   : > { %5255 = vmatpush1.bf16.msra.mxu1 %v4608_v47  ;;  %6768 = vmatpush3.bf16.msra.mxu0 %v4499_v39  ;;  %v9924_v58 = vpop.permute.xlu1 %4749  ;;  %v4474_v36 = vpop.permute.xlu0 %4473  ;;  %v4708_v56 = vsel %vm10737_vm9, %v9826_v49, %v10736_v11  ;;  %vm10738_vm12 = vmmov %vm10717_vm6  ;;  %vm10744_vm9 = vcmask 637952  }
 0xb8c   : > { %5256 = vmatprep.subr.bf16.mxu1 %v4696_v19  ;;  %6769 = vmatprep.subr.bf16.mxu0 %v4610_v52  ;;  %v4502_v31 = vsel %vm729_vm5, %v10681_v10, %v4474_v36  ;;  %vm10739_vm14 = vmmov %vm10735_vm8  ;;  %v4798_v48 = vsel %vm10744_vm9, %v9915_v46, %v9907_v41  ;;  %v7183_v19 = vld [vmem:[%s10443_s12 + $0x48] ss:$28 sps:$4 sm:$0xff]  }
 0xb8d   : > { %5431 = vmatprep.mubr.bf16.mxu0 %v9774_v35  ;;  %v10722_v35 = vld [vmem:[#allocation15_spill] sm:$0xff]  ;;  %v4598_v37 = vsel %vm10739_vm14, %v9450_v1, %v9839_v6  ;;  %vm10741_vm13 = vmmov %vm10717_vm6 }
 0xb8e   : > { %v4505_v10 = vsel %vm729_vm5, %v10685_v4, %v10722_v35  ;;  %v10727_v4 = vld [vmem:[#allocation36_spill] sm:$0xff]  ;;  %v4711_v45 = vsel %vm10741_vm13, %v9850_v13, %v9882_v2  ;;  %vm10748_vm13 = vmmov %vm10744_vm9 }
 0xb8f   : > { %5257 = vmatpush1.bf16.msra.mxu1 %v4695_v25  ;;  %6770 = vmatpush3.bf16.msra.mxu0 %v4502_v31  ;;  %v9938_v34 = vpop.permute.xlu1 %4759  ;;  %v9946_v60 = vpop.permute.xlu0 %4755 }
 0xb90   : > { %5258 = vmatprep.subr.bf16.mxu1 %v4699_v44  ;;  %6771 = vmatprep.subr.bf16.mxu0 %v4697_v26 }
 0xb92   : > { %5432 = vmatmul.mubr.bf16.gmra.mrb[92].mxu0 %v9803_v21  ;;  %v4701_v21 = vsel %vm10728_vm15, %v10727_v4, %v9730_v3  ;;  %v4595_v3 = vsel %vm10735_vm8, %v10696_v55, %v10734_v12  ;;  %vm10740_vm15 = vmmov %vm10717_vm6  ;;  %v7185_v4 = vld [vmem:[%s10443_s12 + $0x50] ss:$28 sps:$4 sm:$0xff]  }
 0xb93   : > { %5259 = vmatpush1.bf16.msra.mxu1 %v4698_v53  ;;  %6772 = vmatpush3.bf16.msra.mxu0 %v4505_v10  ;;  %v4758_v27 = vpop.permute.xlu1 %4757  ;;  %v9961_v22 = vpop.permute.xlu0 %4761  ;;  %v4707_v55 = vsel %vm10740_vm15, %v9818_v43, %v9826_v49  ;;  %v7178_v43 = vld [vmem:[%s10443_s12 + $0x10] ss:$28 sps:$4 sm:$0xff]   ;;  %vm10747_vm15 = vmmov %vm10744_vm9 }
 0xb94   : > { %5260 = vmatprep.subr.bf16.mxu1 %v4702_v20  ;;  %6773 = vmatprep.subr.bf16.mxu0 %v4700_v54  ;;  %v4801_v47 = vsel %vm10748_vm13, %v9938_v34, %v9961_v22 }
 0xb95   : > { %5472 = vmatprep.mubr.bf16.mxu0 %v9809_v17 }
 0xb97   : > { %5261 = vmatpush1.bf16.msra.mxu1 %v4701_v21  ;;  %6774 = vmatpush3.bf16.msra.mxu0 %v4508_v40  ;;  %v4674_v7 = vpop.permute.xlu1 %4673  ;;  %v4764_v28 = vpop.permute.xlu0 %4763 }
 0xb98   : > { %6775 = vmatprep.subr.bf16.mxu0 %v4703_v14  ;;  %v4705_v17 = vsel %vm10717_vm6, %v4674_v7, %v10731_v8  ;;  %v4704_v59 = vsel %vm10733_vm7, %v10732_v61, %v4674_v7  ;;  %vm10742_vm7 = vmmov %vm10735_vm8 }
 0xb99   : > { %5262 = vmatprep.subr.bf16.mxu1 %v4705_v17  ;;  %v4601_v1 = vsel %vm10742_vm7, %v9473_v18, %v9866_v32  ;;  %vm10743_vm8 = vmmov %vm10717_vm6  ;;  %v4797_v32 = vsel %vm10747_vm15, %v9924_v58, %v9915_v46 }
 0xb9a   : > { %v4710_v49 = vsel %vm10743_vm8, %v9899_v30, %v9850_v13  ;;  %vm10746_vm14 = vmmov %vm10742_vm7 }
 0xb9b   : > { %5263 = vmatpush1.bf16.msra.mxu1 %v4704_v59  ;;  %6776 = vmatpush3.bf16.msra.mxu0 %v4595_v3  ;;  %v4678_v57 = vpop.permute.xlu1 %4677  ;;  %v4770_v23 = vpop.permute.xlu0 %4769 }
 0xb9c   : > { %5264 = vmatprep.subr.bf16.mxu1 %v4708_v56  ;;  %v4706_v16 = vsel %vm10738_vm12, %v10731_v8, %v4678_v57  ;;  %vm10745_vm12 = vmmov %vm10717_vm6 }
 0xb9d   : > { %6777 = vmatprep.subr.bf16.mxu0 %v4706_v16  ;;  %v4712_v39 = vsel %vm10745_vm12, %v9882_v2, %v9891_v0  ;;  %vm10749_vm6 = vmmov %vm10744_vm9 }
 0xb9e   : > { %v4799_v2 = vsel %vm10749_vm6, %v9907_v41, %v9946_v60  ;;  %vm10750_vm7 = vmmov %vm10749_vm6 }
 0xb9f   : > { %5265 = vmatpush1.bf16.msra.mxu1 %v4707_v55  ;;  %6778 = vmatpush3.bf16.msra.mxu0 %v4598_v37  ;;  %v4768_v33 = vpop.permute.xlu1 %4767  ;;  %v4772_v63 = vpop.permute.xlu0 %4771  ;;  %v4800_v46 = vsel %vm10750_vm7, %v4758_v27, %v9938_v34  ;;  %vm10751_vm8 = vmmov %vm10749_vm6  ;;  %v10038_v34 = vld [vmem:[#allocation6] sm:$0xff] }
 0xba0   : > { %5266 = vmatprep.subr.bf16.mxu1 %v4711_v45  ;;  %6779 = vmatprep.subr.bf16.mxu0 %v4709_v50  ;;  %v4804_v38 = vsel %vm10751_vm8, %v4768_v33, %v4770_v23  ;;  %vm10752_vm9 = vmmov %vm10749_vm6 }
 0xba1   : > { %v4802_v41 = vsel %vm10752_vm9, %v9961_v22, %v4764_v28  ;;  %vm10753_vm12 = vmmov %vm10749_vm6 }
 0xba2   : > { %vm10755_vm15 = vmmov %vm10749_vm6 }
 0xba3   : > { %5267 = vmatpush1.bf16.msra.mxu1 %v4710_v49  ;;  %6780 = vmatpush3.bf16.msra.mxu0 %v4601_v1  ;;  %v4766_v6 = vpop.permute.xlu1 %4765  ;;  %v4576_v18 = vpop.permute.xlu0 %4575  ;;  %vm10756_vm13 = vmmov %vm10749_vm6 }
 0xba4   : > { %5289 = vmatprep.subr.bf16.mxu1 %v4798_v48  ;;  %6781 = vmatprep.subr.bf16.mxu0 %v4712_v39  ;;  %v4604_v13 = vsel %vm10746_vm14, %v9527_v15, %v4576_v18  ;;  %v7181_v15 = vld [vmem:[%s10443_s12 + $0x4c] ss:$28 sps:$4 sm:$0xff]   ;;  %v4803_v62 = vsel %vm10753_vm12, %v4766_v6, %v4768_v33  ;;  %vm10754_vm14 = vmmov %vm10749_vm6 }
 0xba5   : > { %v4805_v36 = vsel %vm10754_vm14, %v4770_v23, %v4772_v63  ;;  %vm10757_vm7 = vmmov %vm10749_vm6 }
 0xba6   : > { %5269 = vmatmul.mubr.bf16.vlgmr.msra.gmra.mrb[60].mxu1 %v7178_v43  ;;  %vm10758_vm8 = vmmov %vm10749_vm6 }
 0xba7   : > { %5290 = vmatpush1.bf16.msra.mxu1 %v4797_v32  ;;  %6782 = vmatpush3.bf16.msra.mxu0 %v4604_v13  ;;  %v4774_v30 = vpop.permute.xlu1 %4773  ;;  %v4778_v0 = vpop.permute.xlu0 %4777  ;;  %vm10759_vm9 = vmmov %vm10749_vm6 }
 0xba8   : > { %5291 = vmatprep.subr.bf16.mxu1 %v4801_v47  ;;  %6864 = vmatprep.subr.bf16.mxu0 %v4799_v2  ;;  %vm10760_vm12 = vmmov %vm10749_vm6 }
 0xba9   : > { %5278 = vmatprep.mubr.bf16.mxu1 %v7181_v15  ;;  %vm10761_vm14 = vmmov %vm10749_vm6 }
 0xbaa   : > { %5473 = vmatmul.mubr.bf16.vlgmr.msra.gmra.mrb[96].mxu0 %v7178_v43 }
 0xbab   : > { %5292 = vmatpush1.bf16.msra.mxu1 %v4800_v46  ;;  %6865 = vmatpush3.bf16.msra.mxu0 %v4799_v2  ;;  %v4784_v58 = vpop.permute.xlu1 %4783  ;;  %v4786_v42 = vpop.permute.xlu0 %4785 }
 0xbac   : > { %5293 = vmatprep.subr.bf16.mxu1 %v4804_v38  ;;  %6866 = vmatprep.subr.bf16.mxu0 %v4802_v41  ;;  %v4810_v29 = vsel %vm10749_vm6, %v4784_v58, %v4786_v42 }
 0xbad   : > { %5480 = vmatprep.mubr.bf16.mxu0 %v7181_v15 }
 0xbae   : > { %5279 = vmatmul.mubr.bf16.gmra.mrb[64].mxu1 %v7183_v19 }
 0xbaf   : > { %5294 = vmatpush1.bf16.msra.mxu1 %v4803_v62  ;;  %6867 = vmatpush3.bf16.msra.mxu0 %v4802_v41  ;;  %v4776_v52 = vpop.permute.xlu1 %4775  ;;  %v4788_v31 = vpop.permute.xlu0 %4787 }
 0xbb0   : > { %v4806_v24 = vsel %vm10755_vm15, %v4774_v30, %v4776_v52  ;;  %6868 = vmatprep.subr.bf16.mxu0 %v4805_v36  ;;  %v4807_v25 = vsel %vm10756_vm13, %v4776_v52, %v4778_v0  ;;  %5321 = vmatprep.mubr.bf16.mxu1 %v10038_v34  ;;  %v4811_v53 = vsel %vm10759_vm9, %v4786_v42, %v4788_v31  ;;  %vm10762_vm15 = vmmov %vm10749_vm6  ;;  %vm10773_vm13 = vcmask 646144  }
 0xbb1   : > { %5295 = vmatprep.subr.bf16.mxu1 %v4807_v25  ;;  %vm10774_vm6 = vmmov %vm10773_vm13 }
 0xbb2   : > { %5481 = vmatmul.mubr.bf16.gmra.mrb[100].mxu0 %v7183_v19 }
 0xbb3   : > { %5296 = vmatpush1.bf16.msra.mxu1 %v4806_v24  ;;  %6869 = vmatpush3.bf16.msra.mxu0 %v4805_v36  ;;  %v4782_v44 = vpop.permute.xlu1 %4781  ;;  %v4780_v26 = vpop.permute.xlu0 %4779 }
 0xbb4   : > { %v4809_v60 = vsel %vm10757_vm7, %v4782_v44, %v4784_v58  ;;  %5297 = vmatprep.subr.bf16.mxu1 %v4810_v29  ;;  %v4808_v35 = vsel %vm10758_vm8, %v4778_v0, %v4780_v26  ;;  %6876 = vmatprep.mubr.msk.bf16.mxu0 %vm2354_vm0, %v7184_v5 }
 0xbb5   : > { %6870 = vmatprep.subr.bf16.mxu0 %v4808_v35 }
 0xbb7   : > { %5298 = vmatpush1.bf16.msra.mxu1 %v4809_v60  ;;  %6871 = vmatpush3.bf16.msra.mxu0 %v4808_v35  ;;  %v4792_v10 = vpop.permute.xlu1 %4791  ;;  %v4794_v27 = vpop.permute.xlu0 %4793 }
 0xbb8   : > { %6872 = vmatprep.subr.bf16.mxu0 %v4811_v53  ;;  %v4813_v20 = vsel %vm10760_vm12, %v4792_v10, %v4794_v27  ;;  %vm10778_vm12 = vmmov %vm10759_vm9 }
 0xbb9   : > { %5299 = vmatprep.subr.bf16.mxu1 %v4813_v20 }
 0xbbb   : > { %6873 = vmatpush3.bf16.msra.mxu0 %v4811_v53  ;;  %v4790_v51 = vpop.permute.xlu1 %4789  ;;  %v4796_v54 = vpop.permute.xlu0 %4795 }
 0xbbc   : > { %v4812_v22 = vsel %vm10761_vm14, %v4790_v51, %v4792_v10  ;;  %v4814_v40 = vsel %vm10762_vm15, %v4794_v27, %v4796_v54  ;;  %vm10779_vm14 = vmmov %vm10759_vm9 }
 0xbbd   : > { %5300 = vmatpush1.bf16.msra.mxu1 %v4812_v22  ;;  %6874 = vmatprep.subr.bf16.mxu0 %v4814_v40  ;;  %vm10780_vm15 = vmmov %vm10759_vm9 }
 0xbbf   : > { %6875 = vmatpush3.bf16.msra.mxu0 %v4814_v40 }
 0xbc0   : > { %6524 = vmatmul.mubr.msk.bf16.vlgmr.msra.gmra.mrb[60].mxu1 %vm2354_vm0, %v7184_v5 }
 0xbc1   : > { %5331 = vmatprep.mubr.bf16.mxu1 %v10038_v34 }
 0xbc2   : > { %6877 = vmatmul.mubr.msk.bf16.vlgmr.msra.gmra.mrb[104].mxu0 %vm2354_vm0, %v7185_v4 }
 0xbc8   : > { %6525 = vmatmul.mubr.msk.bf16.gmra.mrb[64].mxu1 %vm2354_vm0, %v7185_v4 }
 0xbcc   : > { %v5036_v56 = vpop.permute.xlu1 %5035  ;;  %v5041_v33 = vpop.permute.xlu0 %5040 }
 0xbd0   : > { %v10059_v6 = vpop.permute.xlu1 %5045  ;;  %v10062_v32 = vpop.permute.xlu0 %5050 }
 0xbd4   : > { %v5541_v60 = vpop.permute.xlu1 %5540  ;;  %v5546_v35 = vpop.permute.xlu0 %5545 }
 0xc3d   : > { %v6727_v21 = vpop.f32.mrb[80].mxu0 }
 0xc3e   : > { %v6728_v7 = vpop.f32.mrb[81].mxu0 }
 0xc3f   : > { %v6729_v9 = vadd.f32 %v6728_v7, %v6727_v21  ;;  %v6730_v14 = vpop.f32.mrb[82].mxu0 }
 0xc40   : > { %v6731_v28 = vpop.f32.mrb[83].mxu0 }
 0xc41   : > { %v6732_v8 = vadd.f32 %v6731_v28, %v6730_v14  ;;  %v5377_v16 = vadd.f32 %v6729_v9, %v5036_v56  ;;  %v5551_v9 = vpop.permute.xlu1 %5550 }
 0xc43   : > { %v5380_v50 = vadd.f32 %v6732_v8, %v5041_v33 }
 0xc45   : > { %v6733_v17 = vpop.f32.mrb[84].mxu0 }
 0xc46   : > { %v6734_v61 = vpop.f32.mrb[85].mxu0 }
 0xc47   : > { %v6735_v59 = vadd.f32 %v6734_v61, %v6733_v17  ;;  %v6736_v12 = vpop.f32.mrb[86].mxu0 }
 0xc48   : > { %v6737_v3 = vpop.f32.mrb[87].mxu0 }
 0xc49   : > { %v6738_v57 = vadd.f32 %v6737_v3, %v6736_v12  ;;  %v5385_v39 = vadd.f32 %v6735_v59, %v10059_v6 }
 0xc4b   : > { %v5388_v47 = vadd.f32 %v6738_v57, %v10062_v32 }
 0xc5d   : > { %v6755_v11 = vpop.f32.mrb[88].mxu0 }
 0xc5e   : > { %v6756_v23 = vpop.f32.mrb[89].mxu0 }
 0xc5f   : > { %v6757_v37 = vadd.f32 %v6756_v23, %v6755_v11  ;;  %v6758_v55 = vpop.f32.mrb[90].mxu0  ;;  %v5556_v11 = vpop.permute.xlu0 %5555 }
 0xc60   : > { %v6759_v45 = vpop.f32.mrb[91].mxu0 }
 0xc61   : > { %v5426_v63 = vadd.f32 %v6757_v37, %v5377_v16  ;;  %v6760_v1 = vadd.f32 %v6759_v45, %v6758_v55 }
 0xc63   : > { %v5429_v49 = vadd.f32 %v6760_v1, %v5380_v50 }
 0xc65   : > { %v6761_v43 = vpop.f32.mrb[92].mxu0 }
 0xc66   : > { %v6762_v48 = vpop.f32.mrb[93].mxu0 }
 0xc67   : > { %v6763_v18 = vadd.f32 %v6762_v48, %v6761_v43  ;;  %v6764_v13 = vpop.f32.mrb[94].mxu0 }
 0xc68   : > { %v6765_v30 = vpop.f32.mrb[95].mxu0 }
 0xc69   : > { %v5434_v2 = vadd.f32 %v6763_v18, %v5385_v39  ;;  %v6766_v0 = vadd.f32 %v6765_v30, %v6764_v13 }
 0xc6b   : > { %v5437_v15 = vadd.f32 %v6766_v0, %v5388_v47 }
 0xc7d   : > { %v6783_v46 = vpop.f32.mrb[96].mxu0 }
 0xc7e   : > { %v6784_v58 = vpop.f32.mrb[97].mxu0 }
 0xc7f   : > { %v6785_v38 = vadd.f32 %v6784_v58, %v6783_v46  ;;  %v6786_v41 = vpop.f32.mrb[98].mxu0 }
 0xc80   : > { %v6787_v42 = vpop.f32.mrb[99].mxu0 }
 0xc81   : > { %v6788_v19 = vadd.f32 %v6787_v42, %v6786_v41  ;;  %v5475_v62 = vadd.f32 %v6785_v38, %v5426_v63 }
 0xc83   : > { %v5478_v52 = vadd.f32 %v6788_v19, %v5429_v49 }
 0xc85   : > { %v6789_v36 = vpop.f32.mrb[100].mxu0 }
 0xc86   : > { %v6790_v31 = vpop.f32.mrb[101].mxu0 }
 0xc87   : > { %v6791_v24 = vadd.f32 %v6790_v31, %v6789_v36  ;;  %v6792_v25 = vpop.f32.mrb[102].mxu0 }
 0xc88   : > { %v6793_v5 = vpop.f32.mrb[103].mxu0 }
 0xc89   : > { %v6794_v44 = vadd.f32 %v6793_v5, %v6792_v25  ;;  %v5483_v29 = vadd.f32 %v6791_v24, %v5434_v2 }
 0xc8b   : > { %v5486_v26 = vadd.f32 %v6794_v44, %v5437_v15 }
 0xc93   : > { %v5323_v10 = vpop.f32.mrb[60].mxu1 }
 0xc94   : > { %v6896_v53 = vadd.f32 %v5323_v10, %v5036_v56  ;;  %v5325_v27 = vpop.f32.mrb[61].mxu1 }
 0xc95   : > { %v6897_v20 = vadd.f32 %v5325_v27, %v5036_v56  ;;  %v6878_v51 = vpop.f32.mrb[104].mxu0  ;;  %v5327_v54 = vpop.f32.mrb[62].mxu1 }
 0xc96   : > { %v10065_v22 = vadd.f32 %v6896_v53, %v5541_v60  ;;  %v5532_v40 = vadd.f32 %v6878_v51, %v5483_v29  ;;  %v6898_v4 = vadd.f32 %v5327_v54, %v5041_v33  ;;  %v5523_v21 = vpop.f32.mrb[105].mxu0  ;;  %v5329_v7 = vpop.f32.mrb[63].mxu1 }
 0xc97   : > { %v10067_v14 = vadd.f32 %v6897_v20, %v5541_v60  ;;  %v5524_v28 = vadd.f32 %v5523_v21, %v5475_v62  ;;  %v6899_v8 = vadd.f32 %v5329_v7, %v5041_v33  ;;  %v6879_v17 = vpop.f32.mrb[106].mxu0 }
 0xc98   : > { %v6528_v61 = vmul.f32 -1.442695, %v10065_v22  ;;  %v10070_v59 = vadd.f32 %v5551_v9, %v5532_v40  ;;  %v10072_v12 = vadd.f32 %v6898_v4, %v5546_v35  ;;  %v5535_v3 = vadd.f32 %v6879_v17, %v5486_v26  ;;  %v5526_v57 = vpop.f32.mrb[107].mxu0 }
 0xc99   : > { %v6529_v56 = vmul.f32 -1.442695, %v10067_v14  ;;  %v10075_v23 = vadd.f32 %v5541_v60, %v5524_v28  ;;  %v10077_v16 = vadd.f32 %v6899_v8, %v5546_v35  ;;  %v5527_v37 = vadd.f32 %v5526_v57, %v5478_v52 }
 0xc9a   : > { %7299 = vpow2.f32 %v6528_v61  ;;  %v6536_v55 = vmul.f32 -1.442695, %v10070_v59  ;;  %v6531_v33 = vmul.f32 -1.442695, %v10072_v12  ;;  %v10081_v45 = vadd.f32 %v5556_v11, %v5535_v3 }
 0xc9b   : > { %7301 = vpow2.f32 %v6529_v56  ;;  %v6530_v50 = vmul.f32 -1.442695, %v10075_v23  ;;  %v6532_v63 = vmul.f32 -1.442695, %v10077_v16  ;;  %v10085_v1 = vadd.f32 %v5546_v35, %v5527_v37  ;;  %v5333_v49 = vpop.f32.mrb[64].mxu1 }
 0xc9c   : > { %7303 = vpow2.f32 %v6536_v55  ;;  %v6539_v43 = vmul.f32 -1.442695, %v10081_v45  ;;  %v6900_v48 = vadd.f32 %v5333_v49, %v10059_v6  ;;  %v5335_v39 = vpop.f32.mrb[65].mxu1 }
 0xc9d   : > { %7305 = vpow2.f32 %v6531_v33  ;;  %v6533_v18 = vmul.f32 -1.442695, %v10085_v1  ;;  %v6901_v13 = vadd.f32 %v5335_v39, %v10059_v6  ;;  %v5337_v30 = vpop.f32.mrb[66].mxu1 }
 0xc9e   : > { %7307 = vpow2.f32 %v6530_v50  ;;  %v10091_v47 = vadd.f32 %v6900_v48, %v5551_v9  ;;  %v6902_v2 = vadd.f32 %v5337_v30, %v10062_v32  ;;  %v5339_v0 = vpop.f32.mrb[67].mxu1  ;;  %v10763_v50 = vld [vmem:[#allocation9_spill] sm:$0xff] }
 0xc9f   : > { %7309 = vpow2.f32 %v6532_v63  ;;  %v10094_v15 = vadd.f32 %v6901_v13, %v5551_v9  ;;  %v6903_v46 = vadd.f32 %v5339_v0, %v10062_v32  ;;  %v10764_v13 = vld [vmem:[#allocation10_spill] sm:$0xff]  ;;  %v10765_v0 = vld [vmem:[#allocation11_spill] sm:$0xff] }
 0xca0   : > { %7311 = vpow2.f32 %v6539_v43  ;;  %v6534_v58 = vmul.f32 -1.442695, %v10091_v47  ;;  %v10098_v38 = vadd.f32 %v6902_v2, %v5556_v11 }
 0xca1   : > { %7313 = vpow2.f32 %v6533_v18  ;;  %v6535_v6 = vmul.f32 -1.442695, %v10094_v15  ;;  %v10101_v41 = vadd.f32 %v6903_v46, %v5556_v11 }
 0xca2   : > { %7315 = vpow2.f32 %v6534_v58  ;;  %v6537_v42 = vmul.f32 -1.442695, %v10098_v38 }
 0xca3   : > { %7317 = vpow2.f32 %v6535_v6  ;;  %v6538_v19 = vmul.f32 -1.442695, %v10101_v41 }
 0xca4   : > { %v7300_v62 = vpop.eup %7299  ;;  %7319 = vpow2.f32 %v6537_v42 }
 0xca5   : > { %v7302_v52 = vpop.eup %7301  ;;  %v5606_v32 = vadd.f32 1.0, %v7300_v62  ;;  %7321 = vpow2.f32 %v6538_v19 }
 0xca6   : > { %v7304_v36 = vpop.eup %7303  ;;  %v5607_v31 = vadd.f32 1.0, %v7302_v52 }
 0xca7   : > { %v7306_v24 = vpop.eup %7305  ;;  %7323 = vrcp.f32 %v5606_v32  ;;  %v5614_v25 = vadd.f32 1.0, %v7304_v36 }
 0xca8   : > { %v7308_v5 = vpop.eup %7307  ;;  %7325 = vrcp.f32 %v5607_v31  ;;  %v5609_v44 = vadd.f32 1.0, %v7306_v24 }
 0xca9   : > { %v7310_v29 = vpop.eup %7309  ;;  %7327 = vrcp.f32 %v5614_v25  ;;  %v5608_v26 = vadd.f32 1.0, %v7308_v5 }
 0xcaa   : > { %v7312_v60 = vpop.eup %7311  ;;  %7329 = vrcp.f32 %v5609_v44  ;;  %v5610_v35 = vadd.f32 1.0, %v7310_v29 }
 0xcab   : > { %v7314_v10 = vpop.eup %7313  ;;  %7331 = vrcp.f32 %v5608_v26  ;;  %v5617_v53 = vadd.f32 1.0, %v7312_v60 }
 0xcac   : > { %v7316_v27 = vpop.eup %7315  ;;  %7333 = vrcp.f32 %v5610_v35  ;;  %v5611_v20 = vadd.f32 1.0, %v7314_v10 }
 0xcad   : > { %v7318_v51 = vpop.eup %7317  ;;  %7335 = vrcp.f32 %v5617_v53  ;;  %v5612_v54 = vadd.f32 1.0, %v7316_v27 }
 0xcae   : > { %v7320_v40 = vpop.eup %7319  ;;  %7337 = vrcp.f32 %v5611_v20  ;;  %v5613_v4 = vadd.f32 1.0, %v7318_v51 }
 0xcaf   : > { %v7322_v21 = vpop.eup %7321  ;;  %7339 = vrcp.f32 %v5612_v54  ;;  %v5615_v7 = vadd.f32 1.0, %v7320_v40 }
 0xcb0   : > { %7341 = vrcp.f32 %v5613_v4  ;;  %v5616_v9 = vadd.f32 1.0, %v7322_v21  ;;  %v7383_v4 = vmov 1983009808  }
 0xcb1   : > { %v7324_v28 = vpop.eup %7323  ;;  %7343 = vrcp.f32 %v5615_v7  ;;  %v6076_v21 = vunpack.c.l.s4 %v7383_v4 }
 0xcb2   : > { %v7326_v8 = vpop.eup %7325  ;;  %7345 = vrcp.f32 %v5616_v9  ;;  %v5642_v61 = vmul.f32 %v7324_v28, %v10065_v22  ;;  %v10766_v9 = vld [vmem:[#allocation8_spill] sm:$0xff] }
 0xcb3   : > { %v7328_v17 = vpop.eup %7327  ;;  %v5643_v11 = vmul.f32 %v7326_v8, %v10067_v14  ;;  %v6077_v7 = vunpack.c.0.s8 %v6076_v21  ;;  %v6012_v8 = vld [vmem:[%s10445_s14] sm:$0x3f] }
 0xcb4   : > { %v7330_v3 = vpop.eup %7329  ;;  %v5650_v55 = vmul.f32 %v7328_v17, %v10070_v59  ;;  %v5654_v63 = vmul.f32 %v5642_v61, %v10763_v50 }
 0xcb5   : > { %v7332_v57 = vpop.eup %7331  ;;  %v5645_v56 = vmul.f32 %v7330_v3, %v10072_v12  ;;  %v5655_v14 = vmul.f32 %v5643_v11, %v10764_v13  ;;  %v6080_v28 = vsub.s32 %v6077_v7, %v10766_v9  ;;  %v6074_v3 = vcombine.high %v6012_v8, %v6012_v8 }
 0xcb6   : > { %v7334_v37 = vpop.eup %7333  ;;  %v5644_v43 = vmul.f32 %v7332_v57, %v10075_v23  ;;  %v5662_v46 = vmul.f32 %v5650_v55, %v10765_v0 }
 0xcb7   : > { %v7336_v33 = vpop.eup %7335  ;;  %v5657_v49 = vmul.f32 %v5645_v56, %v10763_v50  ;;  %v5646_v48 = vmul.f32 %v7334_v37, %v10077_v16  ;;  %v10267_v17 = vrot.slane %v6012_v8, %v6080_v28  ;;  %v10283_v57 = vrot.slane %v6074_v3, %v6080_v28 }
 0xcb8   : > { %v7338_v39 = vpop.eup %7337  ;;  %v5653_v22 = vmul.f32 %v7336_v33, %v10081_v45  ;;  %v5656_v16 = vmul.f32 %v5644_v43, %v10765_v0 }
 0xcb9   : > { %v7340_v18 = vpop.eup %7339  ;;  %v5658_v12 = vmul.f32 %v5646_v48, %v10764_v13  ;;  %v5647_v30 = vmul.f32 %v7338_v39, %v10085_v1  ;;  %v5666_v59 = vpack.c.bf16 %v5657_v49, %v5654_v63  ;;  %v6089_v61 = vcombine.high %v10267_v17, %v10267_v17  ;;  %v6067_v48 = vld [vmem:[%s10446_s15] sm:$0xf] }
 0xcba   : > { %v7342_v2 = vpop.eup %7341  ;;  %v5665_v58 = vmul.f32 %v5653_v22, %v10765_v0  ;;  %v5648_v23 = vmul.f32 %v7340_v18, %v10091_v47 }
 0xcbb   : > { %v7344_v6 = vpop.eup %7343  ;;  %v5659_v45 = vmul.f32 %v5647_v30, %v10765_v0  ;;  %v5649_v42 = vmul.f32 %v7342_v2, %v10094_v15  ;;  %v5667_v19 = vpack.c.bf16 %v5658_v12, %v5655_v14  ;;  %6127 = vmatprep.mubr.bf16.mxu0 %v6089_v61  ;;  %6209 = vmatprep.mubr.bf16.mxu1 %v6089_v61 }
 0xcbc   : > { %v7346_v62 = vpop.eup %7345  ;;  %v5651_v52 = vmul.f32 %v7344_v6, %v10098_v38  ;;  %v5671_v1 = vpack.c.bf16 %v5665_v58, %v5662_v46  ;;  %v5660_v31 = vmul.f32 %v5648_v23, %v10763_v50 }
 0xcbd   : > { %v5652_v32 = vmul.f32 %v7346_v62, %v10101_v41  ;;  %5688 = vrot.lane.b32.xlu0 %v5667_v19, %s10562_s5  ;;  %v5668_v36 = vpack.c.bf16 %v5659_v45, %v5656_v16  ;;  %v5661_v24 = vmul.f32 %v5649_v42, %v10764_v13 }
 0xcbe   : > { %v5663_v47 = vmul.f32 %v5651_v52, %v10763_v50 }
 0xcbf   : > { %v5664_v25 = vmul.f32 %v5652_v32, %v10764_v13  ;;  %5690 = vrot.lane.b32.xlu1 %v5668_v36, %s10562_s5 }
 0xcc0   : > { %v5669_v15 = vpack.c.bf16 %v5663_v47, %v5660_v31 }
 0xcc1   : > { %v5670_v5 = vpack.c.bf16 %v5664_v25, %v5661_v24 }
 0xcc2   : > { %5692 = vrot.lane.b32.xlu0 %v5669_v15, %s10562_s5 }
 0xcc3   : > { %5686 = vrot.lane.b32.xlu1 %v5666_v59, %s10562_s5 }
 0xcc6   : > { %5696 = vrot.lane.b32.xlu0 %v5671_v1, %s10562_s5 }
 0xcc7   : > { %5694 = vrot.lane.b32.xlu1 %v5670_v5, %s10562_s5 }
 0xd2f   : > { %v5689_v38 = vpop.permute.xlu0 %5688 }
 0xd31   : > { %v5691_v41 = vpop.permute.xlu1 %5690 }
 0xd32   : > { %v10136_v44 = vsel %vm1036_vm10, %v5689_v38, %v5691_v41  ;;  %5713 = vst.msk [vmem:[#allocation6 + $0x18] sm:$0xff] %vm1036_vm10, %v5691_v41 }
 0xd34   : > { %v5693_v29 = vpop.permute.xlu0 %5692 }
 0xd35   : > { %v5687_v26 = vpop.permute.xlu1 %5686  ;;  %5714 = vst.msk [vmem:[#allocation6 + $0x20] sm:$0xff] %vm1049_vm11, %v5693_v29 }
 0xd36   : > { %v10141_v60 = vsel %vm1036_vm10, %v5687_v26, %v5689_v38  ;;  %5710 = vst.msk [vmem:[#allocation6] sm:$0xff] %vm1049_vm11, %v5687_v26 }
 0xd37   : > { %6095 = vmatprep.subr.bf16.mxu0 %v10141_v60 }
 0xd38   : > { %v5697_v35 = vpop.permute.xlu0 %5696 }
 0xd39   : > { %v5695_v10 = vpop.permute.xlu1 %5694  ;;  %v10145_v53 = vld [vmem:[#allocation6 + $0x18] sm:$0xff]  ;;  %5717 = vst.msk [vmem:[#allocation6 + $0x38] sm:$0xff] %vm1036_vm10, %v5697_v35 }
 0xd3a   : > { %v10149_v27 = vsel %vm1036_vm10, %v5693_v29, %v5695_v10  ;;  %5746 = vrot.lane.b32.xlu0 %v10145_v53, %s10552_s20  ;;  %v10154_v20 = vsel %vm1036_vm10, %v5695_v10, %v5697_v35  ;;  %vm10767_vm10 = vcmask 654336  }
 0xd3c   : > { %v10164_v40 = vld [vmem:[#allocation6 + $0x20] sm:$0xff] }
 0xd3d   : > { %v10156_v51 = vld [vmem:[#allocation6] sm:$0xff] }
 0xd3e   : > { %5910 = vrot.lane.b32.xlu0 %v10156_v51, %s10547_s19  ;;  %6096 = vmatpush1.bf16.msra.mxu0 %v10156_v51 }
 0xd3f   : > { %6097 = vmatprep.subr.bf16.mxu0 %v10149_v27 }
 0xd40   : > { %v10162_v54 = vld [vmem:[#allocation6 + $0x38] sm:$0xff] }
 0xd41   : > { %5856 = vrot.lane.b32.xlu1 %v10162_v54, %s10564_s29 }
 0xd42   : > { %5744 = vrot.lane.b32.xlu0 %v10136_v44, %s10552_s20  ;;  %6098 = vmatpush1.bf16.msra.mxu0 %v10164_v40 }
 0xd45   : > { %5848 = vrot.lane.b32.xlu1 %v10145_v53, %s10564_s29 }
 0xd46   : > { %5778 = vrot.lane.b32.xlu0 %v10136_v44, %s10553_s21 }
 0xd49   : > { %5882 = vrot.lane.b32.xlu1 %v10145_v53, %s10546_s26 }
 0xd4a   : > { %5812 = vrot.lane.b32.xlu0 %v10136_v44, %s10563_s0 }
 0xd4d   : > { %5740 = vrot.lane.b32.xlu1 %v10156_v51, %s10552_s20 }
 0xd4e   : > { %5846 = vrot.lane.b32.xlu0 %v10136_v44, %s10564_s29 }
 0xd51   : > { %5774 = vrot.lane.b32.xlu1 %v10156_v51, %s10553_s21 }
 0xd52   : > { %5880 = vrot.lane.b32.xlu0 %v10136_v44, %s10546_s26 }
 0xd55   : > { %5808 = vrot.lane.b32.xlu1 %v10156_v51, %s10563_s0 }
 0xd56   : > { %5912 = vrot.lane.b32.xlu0 %v10141_v60, %s10547_s19 }
 0xd59   : > { %5842 = vrot.lane.b32.xlu1 %v10156_v51, %s10564_s29 }
 0xd5a   : > { %5748 = vrot.lane.b32.xlu0 %v10164_v40, %s10552_s20 }
 0xd5d   : > { %5876 = vrot.lane.b32.xlu1 %v10156_v51, %s10546_s26 }
 0xd5e   : > { %5782 = vrot.lane.b32.xlu0 %v10164_v40, %s10553_s21 }
 0xd61   : > { %5742 = vrot.lane.b32.xlu1 %v10141_v60, %s10552_s20 }
 0xd62   : > { %5816 = vrot.lane.b32.xlu0 %v10164_v40, %s10563_s0 }
 0xd65   : > { %5776 = vrot.lane.b32.xlu1 %v10141_v60, %s10553_s21 }
 0xd66   : > { %5850 = vrot.lane.b32.xlu0 %v10164_v40, %s10564_s29 }
 0xd69   : > { %5810 = vrot.lane.b32.xlu1 %v10141_v60, %s10563_s0 }
 0xd6a   : > { %5884 = vrot.lane.b32.xlu0 %v10164_v40, %s10546_s26 }
 0xd6d   : > { %5844 = vrot.lane.b32.xlu1 %v10141_v60, %s10564_s29 }
 0xd6e   : > { %5918 = vrot.lane.b32.xlu0 %v10164_v40, %s10547_s19 }
 0xd71   : > { %5878 = vrot.lane.b32.xlu1 %v10141_v60, %s10546_s26 }
 0xd72   : > { %5750 = vrot.lane.b32.xlu0 %v10149_v27, %s10552_s20 }
 0xd75   : > { %5914 = vrot.lane.b32.xlu1 %v10136_v44, %s10547_s19 }
 0xd76   : > { %5948 = vrot.lane.b32.xlu0 %v10136_v44, %s10548_s1 }
 0xd79   : > { %5752 = vrot.lane.b32.xlu1 %v10154_v20, %s10552_s20 }
 0xd7a   : > { %5784 = vrot.lane.b32.xlu0 %v10149_v27, %s10553_s21 }
 0xd7d   : > { %5946 = vrot.lane.b32.xlu1 %v10141_v60, %s10548_s1 }
 0xd7e   : > { %5890 = vrot.lane.b32.xlu0 %v10162_v54, %s10546_s26 }
 0xd81   : > { %5786 = vrot.lane.b32.xlu1 %v10154_v20, %s10553_s21 }
 0xd82   : > { %5818 = vrot.lane.b32.xlu0 %v10149_v27, %s10563_s0 }
 0xd85   : > { %5944 = vrot.lane.b32.xlu1 %v10156_v51, %s10548_s1 }
 0xd86   : > { %5952 = vrot.lane.b32.xlu0 %v10164_v40, %s10548_s1 }
 0xd89   : > { %5820 = vrot.lane.b32.xlu1 %v10154_v20, %s10563_s0 }
 0xd8a   : > { %5852 = vrot.lane.b32.xlu0 %v10149_v27, %s10564_s29 }
 0xd8d   : > { %5754 = vrot.lane.b32.xlu1 %v10162_v54, %s10552_s20 }
 0xd8e   : > { %5780 = vrot.lane.b32.xlu0 %v10145_v53, %s10553_s21 }
 0xd91   : > { %5854 = vrot.lane.b32.xlu1 %v10154_v20, %s10564_s29 }
 0xd92   : > { %5886 = vrot.lane.b32.xlu0 %v10149_v27, %s10546_s26 }
 0xd95   : > { %5916 = vrot.lane.b32.xlu1 %v10145_v53, %s10547_s19 }
 0xd96   : > { %5788 = vrot.lane.b32.xlu0 %v10162_v54, %s10553_s21 }
 0xd99   : > { %5888 = vrot.lane.b32.xlu1 %v10154_v20, %s10546_s26 }
 0xd9a   : > { %5920 = vrot.lane.b32.xlu0 %v10149_v27, %s10547_s19 }
 0xd9d   : > { %5924 = vrot.lane.b32.xlu1 %v10162_v54, %s10547_s19 }
 0xd9e   : > { %5982 = vrot.lane.b32.xlu0 %v10136_v44, %s10624_s4 }
 0xda1   : > { %5922 = vrot.lane.b32.xlu1 %v10154_v20, %s10547_s19 }
 0xda2   : > { %5954 = vrot.lane.b32.xlu0 %v10149_v27, %s10548_s1 }
 0xda5   : > { %5980 = vrot.lane.b32.xlu1 %v10141_v60, %s10624_s4 }
 0xda6   : > { %5950 = vrot.lane.b32.xlu0 %v10145_v53, %s10548_s1 }
 0xda9   : > { %5956 = vrot.lane.b32.xlu1 %v10154_v20, %s10548_s1 }
 0xdaa   : > { %5986 = vrot.lane.b32.xlu0 %v10164_v40, %s10624_s4 }
 0xdac   : > { %v5747_v11 = vpop.permute.xlu0 %5746 }
 0xdad   : > { %5978 = vrot.lane.b32.xlu1 %v10156_v51, %s10624_s4 }
 0xdae   : > { %5988 = vrot.lane.b32.xlu0 %v10149_v27, %s10624_s4 }
 0xdb0   : > { %v5911_v56 = vpop.permute.xlu0 %5910 }
 0xdb1   : > { %5814 = vrot.lane.b32.xlu1 %v10145_v53, %s10563_s0 }
 0xdb2   : > { %5822 = vrot.lane.b32.xlu0 %v10162_v54, %s10563_s0 }
 0xdb3   : > { %v10293_v37 = vpop.permute.xlu1 %5856 }
 0xdb4   : > { %v5745_v55 = vpop.permute.xlu0 %5744 }
 0xdb5   : > { %v10296_v33 = vsel %vm657_vm1, %v5745_v55, %v5747_v11  ;;  %5990 = vrot.lane.b32.xlu1 %v10154_v20, %s10624_s4 }
 0xdb6   : > { %5992 = vrot.lane.b32.xlu0 %v10162_v54, %s10624_s4 }
 0xdb7   : > { %v5849_v50 = vpop.permute.xlu1 %5848 }
 0xdb8   : > { %v10302_v63 = vpop.permute.xlu0 %5778 }
 0xdb9   : > { %5958 = vrot.lane.b32.xlu1 %v10162_v54, %s10548_s1  ;;  %s6951_s1 = smul.u32 12, %s10787_s28 }
 0xdbb   : > { %v5883_v49 = vpop.permute.xlu1 %5882  ;;  %s595_s29 = scalar_lea.vmem %s10449_s18, %s6951_s1 }
 0xdbc   : > { %v10306_v43 = vpop.permute.xlu0 %5812 }
 0xdbd   : > { %5984 = vrot.lane.b32.xlu1 %v10145_v53, %s10624_s4 }
 0xdbf   : > { %v5741_v39 = vpop.permute.xlu1 %5740 }
 0xdc0   : > { %v5847_v22 = vpop.permute.xlu0 %5846 }
 0xdc1   : > { %v5860_v18 = vsel %vm711_vm4, %v5847_v22, %v5849_v50  ;;  %6070 = vperm.xlu1 %6981, %v6067_v48  }
 0xdc2   : > { %6803 = vmatprep.subr.bf16.mxu1 %v5860_v18 }
 0xdc3   : > { %6804 = vmatpush3.bf16.msra.mxu1 %v10136_v44  ;;  %v5775_v13 = vpop.permute.xlu1 %5774 }
 0xdc4   : > { %v10315_v14 = vpop.permute.xlu0 %5880 }
 0xdc5   : > { %v10319_v12 = vsel %vm729_vm5, %v10315_v14, %v5883_v49 }
 0xdc7   : > { %v5809_v30 = vpop.permute.xlu1 %5808 }
 0xdc8   : > { %v10321_v59 = vpop.permute.xlu0 %5912 }
 0xdc9   : > { %v10325_v2 = vsel %vm10767_vm10, %v5911_v56, %v10321_v59 }
 0xdcb   : > { %v5843_v0 = vpop.permute.xlu1 %5842 }
 0xdcc   : > { %v5749_v46 = vpop.permute.xlu0 %5748 }
 0xdcf   : > { %v10327_v58 = vpop.permute.xlu1 %5876 }
 0xdd0   : > { %v5783_v23 = vpop.permute.xlu0 %5782 }
 0xdd3   : > { %v5743_v6 = vpop.permute.xlu1 %5742 }
 0xdd4   : > { %v5817_v16 = vpop.permute.xlu0 %5816  ;;  %v5756_v45 = vsel %vm657_vm1, %v5741_v39, %v5743_v6  ;;  %v5757_v42 = vsel %vm657_vm1, %v5743_v6, %v5745_v55 }
 0xdd5   : > { %6099 = vmatprep.subr.bf16.mxu0 %v5757_v42 }
 0xdd6   : > { %6100 = vmatpush1.bf16.msra.mxu0 %v5756_v45 }
 0xdd7   : > { %v5777_v19 = vpop.permute.xlu1 %5776 }
 0xdd8   : > { %v5851_v62 = vpop.permute.xlu0 %5850  ;;  %v5791_v44 = vsel %vm675_vm2, %v5777_v19, %v10302_v63  ;;  %v5790_v60 = vsel %vm675_vm2, %v5775_v13, %v5777_v19 }
 0xddb   : > { %v5811_v52 = vpop.permute.xlu1 %5810 }
 0xddc   : > { %v10331_v1 = vpop.permute.xlu0 %5884  ;;  %v5825_v51 = vsel %vm693_vm3, %v5811_v52, %v10306_v43  ;;  %v5824_v4 = vsel %vm693_vm3, %v5809_v30, %v5811_v52 }
 0xddf   : > { %v5845_v32 = vpop.permute.xlu1 %5844 }
 0xde0   : > { %v10333_v36 = vpop.permute.xlu0 %5918  ;;  %v5859_v8 = vsel %vm711_vm4, %v5845_v32, %v5847_v22  ;;  %v5858_v11 = vsel %vm711_vm4, %v5843_v0, %v5845_v32 }
 0xde3   : > { %v5879_v31 = vpop.permute.xlu1 %5878 }
 0xde4   : > { %v5751_v47 = vpop.permute.xlu0 %5750  ;;  %v5893_v39 = vsel %vm729_vm5, %v5879_v31, %v10315_v14  ;;  %v5892_v13 = vsel %vm729_vm5, %v10327_v58, %v5879_v31 }
 0xde5   : > { %v5759_v41 = vsel %vm657_vm1, %v5749_v46, %v5751_v47 }
 0xde7   : > { %v10335_v24 = vpop.permute.xlu1 %5914 }
 0xde8   : > { %v10337_v25 = vpop.permute.xlu0 %5948 }
 0xdeb   : > { %v5753_v15 = vpop.permute.xlu1 %5752 }
 0xdec   : > { %v5785_v5 = vpop.permute.xlu0 %5784  ;;  %v5760_v38 = vsel %vm657_vm1, %v5751_v47, %v5753_v15 }
 0xded   : > { %6101 = vmatprep.subr.bf16.mxu0 %v5760_v38  ;;  %v5793_v27 = vsel %vm675_vm2, %v5783_v23, %v5785_v5 }
 0xdee   : > { %6102 = vmatpush1.bf16.msra.mxu0 %v5759_v41 }
 0xdef   : > { %v10343_v29 = vpop.permute.xlu1 %5946  ;;  %6103 = vmatprep.subr.bf16.mxu0 %v5791_v44 }
 0xdf0   : > { %v5891_v26 = vpop.permute.xlu0 %5890 }
 0xdf2   : > { %6104 = vmatpush1.bf16.msra.mxu0 %v5790_v60 }
 0xdf3   : > { %v10346_v35 = vpop.permute.xlu1 %5786 }
 0xdf4   : > { %v5819_v10 = vpop.permute.xlu0 %5818  ;;  %v5794_v53 = vsel %vm675_vm2, %v5785_v5, %v10346_v35 }
 0xdf5   : > { %6105 = vmatprep.subr.bf16.mxu0 %v5794_v53  ;;  %v5827_v28 = vsel %vm693_vm3, %v5817_v16, %v5819_v10  ;;  %v7384_v53 = vmov 0.0  }
 0xdf6   : > { %6106 = vmatpush1.bf16.msra.mxu0 %v5793_v27 }
 0xdf7   : > { %v10353_v54 = vpop.permute.xlu1 %5944  ;;  %6107 = vmatprep.subr.bf16.mxu0 %v5825_v51 }
 0xdf8   : > { %v10355_v40 = vpop.permute.xlu0 %5952 }
 0xdfa   : > { %6108 = vmatpush1.bf16.msra.mxu0 %v5824_v4 }
 0xdfb   : > { %v10358_v21 = vpop.permute.xlu1 %5820 }
 0xdfc   : > { %v5853_v7 = vpop.permute.xlu0 %5852  ;;  %v5828_v9 = vsel %vm693_vm3, %v5819_v10, %v10358_v21 }
 0xdfd   : > { %6109 = vmatprep.subr.bf16.mxu0 %v5828_v9  ;;  %v5861_v48 = vsel %vm711_vm4, %v5851_v62, %v5853_v7 }
 0xdfe   : > { %6110 = vmatpush1.bf16.msra.mxu0 %v5827_v28 }
 0xdff   : > { %v5755_v61 = vpop.permute.xlu1 %5754  ;;  %6111 = vmatprep.subr.bf16.mxu0 %v5859_v8 }
 0xe00   : > { %v5781_v3 = vpop.permute.xlu0 %5780  ;;  %v5761_v46 = vsel %vm657_vm1, %v5753_v15, %v5755_v61 }
 0xe01   : > { %v5792_v6 = vsel %vm675_vm2, %v10302_v63, %v5781_v3  ;;  %v5961_v63 = vsel %vm10773_vm13, %v10343_v29, %v10337_v25 }
 0xe02   : > { %6112 = vmatpush1.bf16.msra.mxu0 %v5858_v11 }
 0xe03   : > { %v5855_v56 = vpop.permute.xlu1 %5854 }
 0xe04   : > { %v5887_v55 = vpop.permute.xlu0 %5886  ;;  %v5862_v50 = vsel %vm711_vm4, %v5853_v7, %v5855_v56  ;;  %v5863_v49 = vsel %vm711_vm4, %v5855_v56, %v10293_v37  ;;  %vm10768_vm4 = vmmov %vm10767_vm10 }
 0xe05   : > { %6113 = vmatprep.subr.bf16.mxu0 %v5862_v50  ;;  %6805 = vmatprep.subr.bf16.mxu1 %v5863_v49  ;;  %v5895_v14 = vsel %vm729_vm5, %v10331_v1, %v5887_v55  ;;  %vm10769_vm11 = vmmov %vm10768_vm4  ;;  %v5960_v1 = vsel %vm10774_vm6, %v10353_v54, %v10343_v29 }
 0xe06   : > { %6114 = vmatpush1.bf16.msra.mxu0 %v5861_v48  ;;  %6806 = vmatpush3.bf16.msra.mxu1 %v10154_v20  ;;  %vm10770_vm1 = vmmov %vm10768_vm4 }
 0xe07   : > { %v5917_v22 = vpop.permute.xlu1 %5916  ;;  %6115 = vmatprep.subr.bf16.mxu0 %v5893_v39  ;;  %6807 = vmatprep.subr.bf16.mxu1 %v10319_v12  ;;  %v5927_v12 = vsel %vm10768_vm4, %v10321_v59, %v10335_v24  ;;  %vm10772_vm0 = vmmov %vm10770_vm1  ;;  %vm10782_vm4 = vcmask 261120  }
 0xe08   : > { %v5789_v18 = vpop.permute.xlu0 %5788 }
 0xe09   : > { %v5795_v59 = vsel %vm675_vm2, %v10346_v35, %v5789_v18  ;;  %vm10775_vm2 = vmmov %vm10774_vm6 }
 0xe0a   : > { %6116 = vmatpush1.bf16.msra.mxu0 %v5892_v13  ;;  %6808 = vmatpush3.bf16.msra.mxu1 %v10296_v33  ;;  %v5928_v33 = vsel %vm10769_vm11, %v10335_v24, %v5917_v22  ;;  %vm10776_vm7 = vmmov %vm10775_vm2  ;;  %vm7385_vm11 = vmmov 0  }
 0xe0b   : > { %v5889_v37 = vpop.permute.xlu1 %5888  ;;  %vm10777_vm8 = vmmov %vm10775_vm2 }
 0xe0c   : > { %v5921_v30 = vpop.permute.xlu0 %5920  ;;  %v5896_v0 = vsel %vm729_vm5, %v5887_v55, %v5889_v37  ;;  %v5897_v20 = vsel %vm729_vm5, %v5889_v37, %v5891_v26  ;;  %vm10771_vm5 = vmmov %vm10770_vm1 }
 0xe0d   : > { %6117 = vmatprep.subr.bf16.mxu0 %v5896_v0  ;;  %6809 = vmatprep.subr.bf16.mxu1 %v5897_v20  ;;  %v5929_v62 = vsel %vm10772_vm0, %v10333_v36, %v5921_v30  ;;  %vm10781_vm10 = vmmov %vm10775_vm2 }
 0xe0e   : > { %6118 = vmatpush1.bf16.msra.mxu0 %v5895_v14  ;;  %6810 = vmatpush3.bf16.msra.mxu1 %v5761_v46 }
 0xe0f   : > { %v5925_v58 = vpop.permute.xlu1 %5924  ;;  %6119 = vmatprep.subr.bf16.mxu0 %v5927_v12  ;;  %6811 = vmatprep.subr.bf16.mxu1 %v5928_v33 }
 0xe10   : > { %v5983_v23 = vpop.permute.xlu0 %5982 }
 0xe12   : > { %6120 = vmatpush1.bf16.msra.mxu0 %v10325_v2  ;;  %6812 = vmatpush3.bf16.msra.mxu1 %v5792_v6 }
 0xe13   : > { %v5923_v16 = vpop.permute.xlu1 %5922 }
 0xe14   : > { %v5955_v45 = vpop.permute.xlu0 %5954  ;;  %v5930_v42 = vsel %vm10770_vm1, %v5921_v30, %v5923_v16  ;;  %v5931_v19 = vsel %vm10771_vm5, %v5923_v16, %v5925_v58  ;;  %vm10783_vm1 = vmmov %vm10759_vm9 }
 0xe15   : > { %6121 = vmatprep.subr.bf16.mxu0 %v5930_v42  ;;  %6813 = vmatprep.subr.bf16.mxu1 %v5931_v19  ;;  %v5963_v47 = vsel %vm10777_vm8, %v10355_v40, %v5955_v45  ;;  %vm10784_vm5 = vmmov %vm10783_vm1 }
 0xe16   : > { %6122 = vmatpush1.bf16.msra.mxu0 %v5929_v62  ;;  %6814 = vmatpush3.bf16.msra.mxu1 %v5795_v59 }
 0xe17   : > { %v5981_v2 = vpop.permute.xlu1 %5980  ;;  %6123 = vmatprep.subr.bf16.mxu0 %v5961_v63 }
 0xe18   : > { %v5951_v52 = vpop.permute.xlu0 %5950  ;;  %v5995_v15 = vsel %vm10759_vm9, %v5981_v2, %v5983_v23 }
 0xe19   : > { %v5962_v32 = vsel %vm10775_vm2, %v10337_v25, %v5951_v52 }
 0xe1a   : > { %6815 = vmatprep.subr.bf16.mxu1 %v5962_v32  ;;  %6124 = vmatpush1.bf16.msra.mxu0 %v5960_v1 }
 0xe1b   : > { %v5957_v36 = vpop.permute.xlu1 %5956 }
 0xe1c   : > { %v5964_v31 = vsel %vm10776_vm7, %v5955_v45, %v5957_v36  ;;  %v5987_v24 = vpop.permute.xlu0 %5986 }
 0xe1d   : > { %6125 = vmatprep.subr.bf16.mxu0 %v5964_v31 }
 0xe1e   : > { %6126 = vmatpush1.bf16.msra.mxu0 %v5963_v47 }
 0xe1f   : > { %v5979_v5 = vpop.permute.xlu1 %5978  ;;  %6136 = vmatprep.subr.bf16.mxu0 %v5995_v15 }
 0xe20   : > { %v5994_v38 = vsel %vm10778_vm12, %v5979_v5, %v5981_v2  ;;  %v5989_v41 = vpop.permute.xlu0 %5988 }
 0xe21   : > { %6128 = vmatmul.mubr.bf16.vlgmr.msra.gmra.mrb[108].mxu0 %v10267_v17  ;;  %v5997_v60 = vsel %vm10780_vm15, %v5987_v24, %v5989_v41 }
 0xe22   : > { %6137 = vmatpush1.bf16.msra.mxu0 %v5994_v38  ;;  %6168 = vmatprep.mubr.bf16.mxu0 %v10038_v34 }
 0xe23   : > { %v5815_v25 = vpop.permute.xlu1 %5814 }
 0xe24   : > { %v5826_v44 = vsel %vm693_vm3, %v10306_v43, %v5815_v25  ;;  %v5823_v35 = vpop.permute.xlu0 %5822 }
 0xe25   : > { %6816 = vmatpush3.bf16.msra.mxu1 %v5826_v44  ;;  %v5829_v34 = vsel %vm693_vm3, %v10358_v21, %v5823_v35  ;;  %vm10785_vm3 = vmmov %vm10782_vm4 }
 0xe27   : > { %v5991_v29 = vpop.permute.xlu1 %5990 }
 0xe28   : > { %v5998_v26 = vsel %vm10779_vm14, %v5989_v41, %v5991_v29  ;;  %v5993_v54 = vpop.permute.xlu0 %5992 }
 0xe29   : > { %6138 = vmatprep.subr.bf16.mxu0 %v5998_v26  ;;  %v5999_v40 = vsel %vm10784_vm5, %v5991_v29, %v5993_v54 }
 0xe2a   : > { %6139 = vmatpush1.bf16.msra.mxu0 %v5997_v60 }
 0xe2b   : > { %v5959_v10 = vpop.permute.xlu1 %5958  ;;  %6880 = vmatprep.subr.bf16.mxu0 %v7384_v53 }
 0xe2c   : > { %v5965_v27 = vsel %vm10781_vm10, %v5957_v36, %v5959_v10 }
 0xe2d   : > { %6540 = vmatmul.mubr.msk.bf16.vlgmr.msra.gmra.mrb[108].mxu0 %vm10782_vm4, %v10283_v57  ;;  %6817 = vmatprep.subr.bf16.mxu1 %v5965_v27 }
 0xe2e   : > { %6818 = vmatpush3.bf16.msra.mxu1 %v5829_v34  ;;  %6884 = vmatprep.mubr.msk.bf16.mxu0 %vm7385_vm11, %v7384_v53 }
 0xe2f   : > { %v5985_v43 = vpop.permute.xlu1 %5984 }
 0xe30   : > { %v5996_v51 = vsel %vm10783_vm1, %v5983_v23, %v5985_v43 }
 0xe31   : > { %6210 = vmatmul.mubr.bf16.vlgmr.msra.gmra.mrb[68].mxu1 %v10267_v17  ;;  %6881 = vmatpush3.bf16.msra.mxu0 %v5996_v51 }
 0xe32   : > { %6882 = vmatprep.subr.bf16.mxu0 %v7384_v53 }
 0xe35   : > { %6883 = vmatpush3.bf16.msra.mxu0 %v5999_v40 }
 0xe38   : > { %6885 = vmatmul.mubr.msk.bf16.vlgmr.msra.gmra.mrb[112].mxu0 %vm10785_vm3, %v10283_v57 }
 0xe40   : > { %v6071_v4 = vpop.permute.xlu1 %6070 }
 0xf00   : > { %v6170_v21 = vpop.f32.mrb[108].mxu0 }
 0xf01   : > { %v6904_v7 = vadd.f32 %v6170_v21, %v6071_v4  ;;  %v6172_v9 = vpop.f32.mrb[109].mxu0 }
 0xf02   : > { %v6905_v28 = vadd.f32 %v6172_v9, %v6071_v4  ;;  %v6174_v8 = vpop.f32.mrb[110].mxu0 }
 0xf03   : > { %v6175_v61 = vpop.f32.mrb[111].mxu0 }
 0xf04   : > { %v6259_v17 = vcombine.low %v6904_v7, %v6905_v28  ;;  %v6819_v3 = vpop.f32.mrb[68].mxu1 }
 0xf05   : > { %v6820_v11 = vpop.f32.mrb[69].mxu1 }
 0xf06   : > { %v6821_v56 = vadd.f32 %v6820_v11, %v6819_v3  ;;  %6261 = vst [vmem:[%s595_s29] sm:$0xff] %v6259_v17  ;;  %v6822_v55 = vpop.f32.mrb[70].mxu1 }
 0xf07   : > { %v6823_v50 = vpop.f32.mrb[71].mxu1 }
 0xf08   : > { %v6212_v57 = vadd.f32 %v6821_v56, %v6071_v4 }
 0xf0b   : > { %v6251_v49 = vpop.f32.mrb[112].mxu0 }
 0xf0c   : > { %v6252_v48 = vadd.f32 %v6251_v49, %v6212_v57  ;;  %v6886_v39 = vpop.f32.mrb[113].mxu0 }
 0xf0d   : > { %v6254_v22 = vpop.f32.mrb[114].mxu0 }
 0xf0e   : > { %6262 = vst [vmem:[%s595_s29 + $0x8] sm:$0xf] %v6252_v48  ;;  %v6887_v18 = vpop.f32.mrb[115].mxu0 }
 0xf0f PF: > { %s28_s27 = sadd.s32 1, %s7364_s27  }
 0xf10   : > { %p25_p4 = scmp.ge.s32.totalorder %s28_s27, 4  }
 0xf12   :  { %27 = sbr.rel (!%p25_p4) target bundleno = 10 (0xa), region = 125 }

</bundles_post_ra>
